<compile_context>
chip_gen: v7x
topology: tpu7x:2x2x1
jax: 0.10.0
libtpu: 0.0.40
codegen_flags: <defaults>
</compile_context>

<pallas_src>
import functools

import jax
import jax.numpy as jnp
from jax import lax
from jax.experimental import pallas as pl
from jax.experimental.pallas import tpu as pltpu

NUM = 3
C_IN = 256 * NUM     # 768
C_MID = 768
C_OUT = 1
KH = KW = 3


def convnet_kernel(x0_ref, x1_ref, x2_ref, w1_ref, b1_ref, w2_ref, b2_ref,
                   o_ref, acc_ref):
    """One grid step = one output image row, all batches at once.

    x{0,1,2}_ref: (B, Wp, C_IN) bf16  — padded input rows r, r+1, r+2 (Wp = W + 2).
    w1_ref:       (9, C_IN, C_MID) bf16 — conv1 taps, resident in VMEM.
    b1_ref:       (1, C_MID) f32;  w2_ref: (1, C_MID) f32;  b2_ref: (1, 1) f32.
    o_ref:        (B, W) f32 output row.   acc_ref: (B, W, C_MID) f32 scratch.
    """
    B, Wp, _ = x0_ref.shape
    W = Wp - 2
    x_rows = (x0_ref, x1_ref, x2_ref)
    # (B, W, C) <-> (B*W, C) is a pure layout no-op when W % 8 == 0 (or B == 1);
    # in that case one big matmul per tap gives the best MXU utilization.
    flat = (B == 1) or (W % 8 == 0)

    acc_ref[...] = jnp.zeros_like(acc_ref)
    for dy in range(KH):
        row_ref = x_rows[dy]
        for dx in range(KW):
            tap = w1_ref[dy * KW + dx]                       # (C_IN, C_MID) bf16
            if flat:
                lhs = row_ref[:, dx:dx + W, :].reshape(B * W, C_IN)
                acc_ref[...] += jnp.dot(
                    lhs, tap, preferred_element_type=jnp.float32
                ).reshape(B, W, C_MID)
            else:
                for b in range(B):
                    acc_ref[b] += jnp.dot(
                        row_ref[b, dx:dx + W, :], tap,
                        preferred_element_type=jnp.float32)

    # bias + ReLU in f32, then the 1x1 conv as a VPU multiply + lane reduction.
    h = jnp.maximum(acc_ref[...] + b1_ref[...], 0.0)          # (B, W, C_MID)
    out = jnp.sum(h * w2_ref[...], axis=-1) + b2_ref[...]     # (B, W)
    o_ref[...] = out.astype(o_ref.dtype)


@functools.partial(jax.jit, static_argnames=("batch_size",))
def convnet_forward(features, w1, b1, w2, b2, batch_size):
    """features: (B, NUM, 256, H, W) like the stacked PyTorch list; returns (B, 1, H, W)."""
    B = batch_size
    H, W = features.shape[3], features.shape[4]
    Hp, Wp = H + 2, W + 2

    # Same reshape as the PyTorch forward, then NCHW -> NHWC, bf16, zero halo pad.
    x = features.reshape(B, C_IN, H, W)
    x_nhwc = jnp.transpose(x, (0, 2, 3, 1)).astype(jnp.bfloat16)
    x_pad = jnp.pad(x_nhwc, ((0, 0), (1, 1), (1, 1), (0, 0)))   # (B, Hp, Wp, C_IN)

    # torch (Cout, Cin, 3, 3) -> (dy, dx, Cin, Cout) -> (9, Cin, Cout), bf16 for the MXU.
    w1_taps = jnp.transpose(w1, (2, 3, 1, 0)).reshape(KH * KW, C_IN, C_MID)
    w1_taps = w1_taps.astype(jnp.bfloat16)
    b1_row = b1.reshape(1, C_MID).astype(jnp.float32)
    w2_row = w2.reshape(C_OUT, C_MID).astype(jnp.float32)       # (1, 768)
    b2_sc = b2.reshape(1, 1).astype(jnp.float32)

    def x_spec(dy):
        # Output row r needs padded rows r, r+1, r+2 (block size 1 along the row dim
        # -> block index == element row, so the +dy halo shift is expressible).
        return pl.BlockSpec((B, None, Wp, C_IN),
                            lambda r, dy=dy: (0, r + dy, 0, 0))

    out_hbw = pl.pallas_call(
        convnet_kernel,
        out_shape=jax.ShapeDtypeStruct((H, B, W), jnp.float32),
        grid_spec=pltpu.PrefetchScalarGridSpec(
            num_scalar_prefetch=0,
            grid=(H,),
            in_specs=[
                x_spec(0), x_spec(1), x_spec(2),
                # W1 resident: constant index_map -> DMA'd once, never re-streamed.
                pl.BlockSpec((KH * KW, C_IN, C_MID), lambda r: (0, 0, 0)),
                pl.BlockSpec((1, C_MID), lambda r: (0, 0)),     # b1
                pl.BlockSpec((1, C_MID), lambda r: (0, 0)),     # w2 row
                pl.BlockSpec((1, 1), lambda r: (0, 0)),         # b2
            ],
            out_specs=pl.BlockSpec((None, B, W), lambda r: (r, 0, 0)),
            scratch_shapes=[pltpu.VMEM((B, W, C_MID), jnp.float32)],
        ),
        compiler_params=pltpu.CompilerParams(
            dimension_semantics=("parallel",),
            vmem_limit_bytes=48 * 1024 * 1024),
    )(x_pad, x_pad, x_pad, w1_taps, b1_row, w2_row, b2_sc)

    # (H, B, W) -> (B, H, W) -> NCHW (B, 1, H, W)
    return jnp.transpose(out_hbw, (1, 0, 2)).reshape(B, C_OUT, H, W)


def reference_forward(features, w1, b1, w2, b2, batch_size):
    """f32 lax.conv reference on the same bf16-rounded inputs the kernel consumes."""
    H, W = features.shape[3], features.shape[4]
    x = features.reshape(batch_size, C_IN, H, W)
    xq = x.astype(jnp.bfloat16).astype(jnp.float32)
    w1q = w1.astype(jnp.bfloat16).astype(jnp.float32)
    y = lax.conv_general_dilated(xq, w1q, window_strides=(1, 1), padding="SAME",
                                 dimension_numbers=("NCHW", "OIHW", "NCHW"),
                                 precision=lax.Precision.HIGHEST)
    y = jnp.maximum(y + b1.reshape(1, C_MID, 1, 1), 0.0)
    z = lax.conv_general_dilated(y, w2, window_strides=(1, 1), padding="VALID",
                                 dimension_numbers=("NCHW", "OIHW", "NCHW"),
                                 precision=lax.Precision.HIGHEST)
    return z + b2.reshape(1, C_OUT, 1, 1)


if __name__ == "__main__":
    key = jax.random.PRNGKey(0)
    k_feat, k_w1, k_b1, k_w2, k_b2 = jax.random.split(key, 5)

    B, Hs, Ws = 2, 8, 8   # small spatial / batch; channel dims fixed by the module
    features = jax.random.normal(k_feat, (B, NUM, 256, Hs, Ws), dtype=jnp.float32)

    # Deterministic parameter init (shapes from nn.Conv2d in __init__)
    w1 = jax.random.normal(k_w1, (C_MID, C_IN, KH, KW), dtype=jnp.float32) * 0.02
    b1 = jax.random.normal(k_b1, (C_MID,), dtype=jnp.float32) * 0.02
    w2 = jax.random.normal(k_w2, (C_OUT, C_MID, 1, 1), dtype=jnp.float32) * 0.02
    b2 = jax.random.normal(k_b2, (C_OUT,), dtype=jnp.float32) * 0.02

    out = convnet_forward(features, w1, b1, w2, b2, batch_size=B)
    out = jax.block_until_ready(out)

    ref = reference_forward(features, w1, b1, w2, b2, batch_size=B)
    assert out.shape == (B, 1, Hs, Ws), out.shape
    max_err = float(jnp.max(jnp.abs(out - ref)))
    assert jnp.allclose(out, ref, atol=1e-2, rtol=1e-2), max_err

    print("KERNEL_OK")
</pallas_src>

<mosaic_0001>
module attributes {stable_mosaic.version = 11 : i64} {
  func.func @convnet_kernel(%arg0: i32, %arg1: memref<2x1x10x768xbf16, #tpu.memory_space<vmem>>, %arg2: memref<2x1x10x768xbf16, #tpu.memory_space<vmem>>, %arg3: memref<2x1x10x768xbf16, #tpu.memory_space<vmem>>, %arg4: memref<9x768x768xbf16, #tpu.memory_space<vmem>>, %arg5: memref<1x768xf32, #tpu.memory_space<vmem>>, %arg6: memref<1x768xf32, #tpu.memory_space<vmem>>, %arg7: memref<1x1xf32, #tpu.memory_space<vmem>>, %arg8: memref<1x2x8xf32, #tpu.memory_space<vmem>>, %arg9: memref<2x8x768xf32, #tpu.memory_space<vmem>>) attributes {dimension_semantics = [#tpu.dimension_semantics<parallel>], iteration_bounds = array<i64: 8>, scalar_prefetch = 0 : i64, scratch_operands = 1 : i64, tpu.core_type = #tpu.core_type<tc>, window_params = [{transform_indices = @transform_0, window_bounds = array<i64: 2, 1, 10, 768>}, {transform_indices = @transform_1, window_bounds = array<i64: 2, 1, 10, 768>}, {transform_indices = @transform_2, window_bounds = array<i64: 2, 1, 10, 768>}, {pipeline_mode = #tpu.pipeline_mode<synchronous>, transform_indices = @transform_3, window_bounds = array<i64: 9, 768, 768>}, {pipeline_mode = #tpu.pipeline_mode<synchronous>, transform_indices = @transform_4, window_bounds = array<i64: 1, 768>}, {pipeline_mode = #tpu.pipeline_mode<synchronous>, transform_indices = @transform_5, window_bounds = array<i64: 1, 768>}, {pipeline_mode = #tpu.pipeline_mode<synchronous>, transform_indices = @transform_6, window_bounds = array<i64: 1, 1>}, {transform_indices = @transform_7, window_bounds = array<i64: 1, 2, 8>}]} {
    %cst = arith.constant 0.000000e+00 : f32
    %0 = vector.broadcast %cst : f32 to vector<2x8x768xf32>
    %c0 = arith.constant 0 : index
    %c0_0 = arith.constant 0 : index
    %c0_1 = arith.constant 0 : index
    %1 = vector.load %arg9[%c0, %c0_0, %c0_1] : memref<2x8x768xf32, #tpu.memory_space<vmem>>, vector<2x8x768xf32>
    tpu.vector_store %arg9[%c0, %c0_0, %c0_1], %0 {strides = array<i32>} : memref<2x8x768xf32, #tpu.memory_space<vmem>>, vector<2x8x768xf32>,
    %c0_2 = arith.constant 0 : index
    %c0_3 = arith.constant 0 : index
    %c0_4 = arith.constant 0 : index
    %2 = vector.load %arg4[%c0_2, %c0_3, %c0_4] : memref<9x768x768xbf16, #tpu.memory_space<vmem>>, vector<1x768x768xbf16>
    %3 = vector.shape_cast %2 : vector<1x768x768xbf16> to vector<768x768xbf16>
    %c0_5 = arith.constant 0 : index
    %c0_6 = arith.constant 0 : index
    %c0_7 = arith.constant 0 : index
    %c0_8 = arith.constant 0 : index
    %4 = vector.load %arg1[%c0_5, %c0_6, %c0_7, %c0_8] : memref<2x1x10x768xbf16, #tpu.memory_space<vmem>>, vector<2x1x8x768xbf16>
    %5 = vector.shape_cast %4 : vector<2x1x8x768xbf16> to vector<2x8x768xbf16>
    %6 = vector.shape_cast %5 : vector<2x8x768xbf16> to vector<16x768xbf16>
    %c0_9 = arith.constant 0 : index
    %c0_10 = arith.constant 0 : index
    %c0_11 = arith.constant 0 : index
    %7 = vector.load %arg9[%c0_9, %c0_10, %c0_11] : memref<2x8x768xf32, #tpu.memory_space<vmem>>, vector<2x8x768xf32>
    %cst_12 = arith.constant dense<0.000000e+00> : vector<16x768xf32>
    %8 = tpu.matmul %6, %3, %cst_12 {dimension_numbers = #tpu.dot_dimension_numbers<[1], [0], [0], [1], [0, 0, 1, 1], [], []>} : vector<16x768xbf16>, vector<768x768xbf16>, vector<16x768xf32> -> vector<16x768xf32>
    %9 = vector.shape_cast %8 : vector<16x768xf32> to vector<2x8x768xf32>
    %10 = arith.addf %7, %9 : vector<2x8x768xf32>
    %c0_13 = arith.constant 0 : index
    %c0_14 = arith.constant 0 : index
    %c0_15 = arith.constant 0 : index
    %11 = vector.load %arg9[%c0_13, %c0_14, %c0_15] : memref<2x8x768xf32, #tpu.memory_space<vmem>>, vector<2x8x768xf32>
    tpu.vector_store %arg9[%c0_13, %c0_14, %c0_15], %10 {strides = array<i32>} : memref<2x8x768xf32, #tpu.memory_space<vmem>>, vector<2x8x768xf32>,
    %c1 = arith.constant 1 : index
    %c0_16 = arith.constant 0 : index
    %c0_17 = arith.constant 0 : index
    %12 = vector.load %arg4[%c1, %c0_16, %c0_17] : memref<9x768x768xbf16, #tpu.memory_space<vmem>>, vector<1x768x768xbf16>
    %13 = vector.shape_cast %12 : vector<1x768x768xbf16> to vector<768x768xbf16>
    %c0_18 = arith.constant 0 : index
    %c0_19 = arith.constant 0 : index
    %c1_20 = arith.constant 1 : index
    %c0_21 = arith.constant 0 : index
    %14 = vector.load %arg1[%c0_18, %c0_19, %c1_20, %c0_21] : memref<2x1x10x768xbf16, #tpu.memory_space<vmem>>, vector<2x1x8x768xbf16>
    %15 = vector.shape_cast %14 : vector<2x1x8x768xbf16> to vector<2x8x768xbf16>
    %16 = vector.shape_cast %15 : vector<2x8x768xbf16> to vector<16x768xbf16>
    %c0_22 = arith.constant 0 : index
    %c0_23 = arith.constant 0 : index
    %c0_24 = arith.constant 0 : index
    %17 = vector.load %arg9[%c0_22, %c0_23, %c0_24] : memref<2x8x768xf32, #tpu.memory_space<vmem>>, vector<2x8x768xf32>
    %cst_25 = arith.constant dense<0.000000e+00> : vector<16x768xf32>
    %18 = tpu.matmul %16, %13, %cst_25 {dimension_numbers = #tpu.dot_dimension_numbers<[1], [0], [0], [1], [0, 0, 1, 1], [], []>} : vector<16x768xbf16>, vector<768x768xbf16>, vector<16x768xf32> -> vector<16x768xf32>
    %19 = vector.shape_cast %18 : vector<16x768xf32> to vector<2x8x768xf32>
    %20 = arith.addf %17, %19 : vector<2x8x768xf32>
    %c0_26 = arith.constant 0 : index
    %c0_27 = arith.constant 0 : index
    %c0_28 = arith.constant 0 : index
    %21 = vector.load %arg9[%c0_26, %c0_27, %c0_28] : memref<2x8x768xf32, #tpu.memory_space<vmem>>, vector<2x8x768xf32>
    tpu.vector_store %arg9[%c0_26, %c0_27, %c0_28], %20 {strides = array<i32>} : memref<2x8x768xf32, #tpu.memory_space<vmem>>, vector<2x8x768xf32>,
    %c2 = arith.constant 2 : index
    %c0_29 = arith.constant 0 : index
    %c0_30 = arith.constant 0 : index
    %22 = vector.load %arg4[%c2, %c0_29, %c0_30] : memref<9x768x768xbf16, #tpu.memory_space<vmem>>, vector<1x768x768xbf16>
    %23 = vector.shape_cast %22 : vector<1x768x768xbf16> to vector<768x768xbf16>
    %c0_31 = arith.constant 0 : index
    %c0_32 = arith.constant 0 : index
    %c2_33 = arith.constant 2 : index
    %c0_34 = arith.constant 0 : index
    %24 = vector.load %arg1[%c0_31, %c0_32, %c2_33, %c0_34] : memref<2x1x10x768xbf16, #tpu.memory_space<vmem>>, vector<2x1x8x768xbf16>
    %25 = vector.shape_cast %24 : vector<2x1x8x768xbf16> to vector<2x8x768xbf16>
    %26 = vector.shape_cast %25 : vector<2x8x768xbf16> to vector<16x768xbf16>
    %c0_35 = arith.constant 0 : index
    %c0_36 = arith.constant 0 : index
    %c0_37 = arith.constant 0 : index
    %27 = vector.load %arg9[%c0_35, %c0_36, %c0_37] : memref<2x8x768xf32, #tpu.memory_space<vmem>>, vector<2x8x768xf32>
    %cst_38 = arith.constant dense<0.000000e+00> : vector<16x768xf32>
    %28 = tpu.matmul %26, %23, %cst_38 {dimension_numbers = #tpu.dot_dimension_numbers<[1], [0], [0], [1], [0, 0, 1, 1], [], []>} : vector<16x768xbf16>, vector<768x768xbf16>, vector<16x768xf32> -> vector<16x768xf32>
    %29 = vector.shape_cast %28 : vector<16x768xf32> to vector<2x8x768xf32>
    %30 = arith.addf %27, %29 : vector<2x8x768xf32>
    %c0_39 = arith.constant 0 : index
    %c0_40 = arith.constant 0 : index
    %c0_41 = arith.constant 0 : index
    %31 = vector.load %arg9[%c0_39, %c0_40, %c0_41] : memref<2x8x768xf32, #tpu.memory_space<vmem>>, vector<2x8x768xf32>
    tpu.vector_store %arg9[%c0_39, %c0_40, %c0_41], %30 {strides = array<i32>} : memref<2x8x768xf32, #tpu.memory_space<vmem>>, vector<2x8x768xf32>,
    %c3 = arith.constant 3 : index
    %c0_42 = arith.constant 0 : index
    %c0_43 = arith.constant 0 : index
    %32 = vector.load %arg4[%c3, %c0_42, %c0_43] : memref<9x768x768xbf16, #tpu.memory_space<vmem>>, vector<1x768x768xbf16>
    %33 = vector.shape_cast %32 : vector<1x768x768xbf16> to vector<768x768xbf16>
    %c0_44 = arith.constant 0 : index
    %c0_45 = arith.constant 0 : index
    %c0_46 = arith.constant 0 : index
    %c0_47 = arith.constant 0 : index
    %34 = vector.load %arg2[%c0_44, %c0_45, %c0_46, %c0_47] : memref<2x1x10x768xbf16, #tpu.memory_space<vmem>>, vector<2x1x8x768xbf16>
    %35 = vector.shape_cast %34 : vector<2x1x8x768xbf16> to vector<2x8x768xbf16>
    %36 = vector.shape_cast %35 : vector<2x8x768xbf16> to vector<16x768xbf16>
    %c0_48 = arith.constant 0 : index
    %c0_49 = arith.constant 0 : index
    %c0_50 = arith.constant 0 : index
    %37 = vector.load %arg9[%c0_48, %c0_49, %c0_50] : memref<2x8x768xf32, #tpu.memory_space<vmem>>, vector<2x8x768xf32>
    %cst_51 = arith.constant dense<0.000000e+00> : vector<16x768xf32>
    %38 = tpu.matmul %36, %33, %cst_51 {dimension_numbers = #tpu.dot_dimension_numbers<[1], [0], [0], [1], [0, 0, 1, 1], [], []>} : vector<16x768xbf16>, vector<768x768xbf16>, vector<16x768xf32> -> vector<16x768xf32>
    %39 = vector.shape_cast %38 : vector<16x768xf32> to vector<2x8x768xf32>
    %40 = arith.addf %37, %39 : vector<2x8x768xf32>
    %c0_52 = arith.constant 0 : index
    %c0_53 = arith.constant 0 : index
    %c0_54 = arith.constant 0 : index
    %41 = vector.load %arg9[%c0_52, %c0_53, %c0_54] : memref<2x8x768xf32, #tpu.memory_space<vmem>>, vector<2x8x768xf32>
    tpu.vector_store %arg9[%c0_52, %c0_53, %c0_54], %40 {strides = array<i32>} : memref<2x8x768xf32, #tpu.memory_space<vmem>>, vector<2x8x768xf32>,
    %c4 = arith.constant 4 : index
    %c0_55 = arith.constant 0 : index
    %c0_56 = arith.constant 0 : index
    %42 = vector.load %arg4[%c4, %c0_55, %c0_56] : memref<9x768x768xbf16, #tpu.memory_space<vmem>>, vector<1x768x768xbf16>
    %43 = vector.shape_cast %42 : vector<1x768x768xbf16> to vector<768x768xbf16>
    %c0_57 = arith.constant 0 : index
    %c0_58 = arith.constant 0 : index
    %c1_59 = arith.constant 1 : index
    %c0_60 = arith.constant 0 : index
    %44 = vector.load %arg2[%c0_57, %c0_58, %c1_59, %c0_60] : memref<2x1x10x768xbf16, #tpu.memory_space<vmem>>, vector<2x1x8x768xbf16>
    %45 = vector.shape_cast %44 : vector<2x1x8x768xbf16> to vector<2x8x768xbf16>
    %46 = vector.shape_cast %45 : vector<2x8x768xbf16> to vector<16x768xbf16>
    %c0_61 = arith.constant 0 : index
    %c0_62 = arith.constant 0 : index
    %c0_63 = arith.constant 0 : index
    %47 = vector.load %arg9[%c0_61, %c0_62, %c0_63] : memref<2x8x768xf32, #tpu.memory_space<vmem>>, vector<2x8x768xf32>
    %cst_64 = arith.constant dense<0.000000e+00> : vector<16x768xf32>
    %48 = tpu.matmul %46, %43, %cst_64 {dimension_numbers = #tpu.dot_dimension_numbers<[1], [0], [0], [1], [0, 0, 1, 1], [], []>} : vector<16x768xbf16>, vector<768x768xbf16>, vector<16x768xf32> -> vector<16x768xf32>
    %49 = vector.shape_cast %48 : vector<16x768xf32> to vector<2x8x768xf32>
    %50 = arith.addf %47, %49 : vector<2x8x768xf32>
    %c0_65 = arith.constant 0 : index
    %c0_66 = arith.constant 0 : index
    %c0_67 = arith.constant 0 : index
    %51 = vector.load %arg9[%c0_65, %c0_66, %c0_67] : memref<2x8x768xf32, #tpu.memory_space<vmem>>, vector<2x8x768xf32>
    tpu.vector_store %arg9[%c0_65, %c0_66, %c0_67], %50 {strides = array<i32>} : memref<2x8x768xf32, #tpu.memory_space<vmem>>, vector<2x8x768xf32>,
    %c5 = arith.constant 5 : index
    %c0_68 = arith.constant 0 : index
    %c0_69 = arith.constant 0 : index
    %52 = vector.load %arg4[%c5, %c0_68, %c0_69] : memref<9x768x768xbf16, #tpu.memory_space<vmem>>, vector<1x768x768xbf16>
    %53 = vector.shape_cast %52 : vector<1x768x768xbf16> to vector<768x768xbf16>
    %c0_70 = arith.constant 0 : index
    %c0_71 = arith.constant 0 : index
    %c2_72 = arith.constant 2 : index
    %c0_73 = arith.constant 0 : index
    %54 = vector.load %arg2[%c0_70, %c0_71, %c2_72, %c0_73] : memref<2x1x10x768xbf16, #tpu.memory_space<vmem>>, vector<2x1x8x768xbf16>
    %55 = vector.shape_cast %54 : vector<2x1x8x768xbf16> to vector<2x8x768xbf16>
    %56 = vector.shape_cast %55 : vector<2x8x768xbf16> to vector<16x768xbf16>
    %c0_74 = arith.constant 0 : index
    %c0_75 = arith.constant 0 : index
    %c0_76 = arith.constant 0 : index
    %57 = vector.load %arg9[%c0_74, %c0_75, %c0_76] : memref<2x8x768xf32, #tpu.memory_space<vmem>>, vector<2x8x768xf32>
    %cst_77 = arith.constant dense<0.000000e+00> : vector<16x768xf32>
    %58 = tpu.matmul %56, %53, %cst_77 {dimension_numbers = #tpu.dot_dimension_numbers<[1], [0], [0], [1], [0, 0, 1, 1], [], []>} : vector<16x768xbf16>, vector<768x768xbf16>, vector<16x768xf32> -> vector<16x768xf32>
    %59 = vector.shape_cast %58 : vector<16x768xf32> to vector<2x8x768xf32>
    %60 = arith.addf %57, %59 : vector<2x8x768xf32>
    %c0_78 = arith.constant 0 : index
    %c0_79 = arith.constant 0 : index
    %c0_80 = arith.constant 0 : index
    %61 = vector.load %arg9[%c0_78, %c0_79, %c0_80] : memref<2x8x768xf32, #tpu.memory_space<vmem>>, vector<2x8x768xf32>
    tpu.vector_store %arg9[%c0_78, %c0_79, %c0_80], %60 {strides = array<i32>} : memref<2x8x768xf32, #tpu.memory_space<vmem>>, vector<2x8x768xf32>,
    %c6 = arith.constant 6 : index
    %c0_81 = arith.constant 0 : index
    %c0_82 = arith.constant 0 : index
    %62 = vector.load %arg4[%c6, %c0_81, %c0_82] : memref<9x768x768xbf16, #tpu.memory_space<vmem>>, vector<1x768x768xbf16>
    %63 = vector.shape_cast %62 : vector<1x768x768xbf16> to vector<768x768xbf16>
    %c0_83 = arith.constant 0 : index
    %c0_84 = arith.constant 0 : index
    %c0_85 = arith.constant 0 : index
    %c0_86 = arith.constant 0 : index
    %64 = vector.load %arg3[%c0_83, %c0_84, %c0_85, %c0_86] : memref<2x1x10x768xbf16, #tpu.memory_space<vmem>>, vector<2x1x8x768xbf16>
    %65 = vector.shape_cast %64 : vector<2x1x8x768xbf16> to vector<2x8x768xbf16>
    %66 = vector.shape_cast %65 : vector<2x8x768xbf16> to vector<16x768xbf16>
    %c0_87 = arith.constant 0 : index
    %c0_88 = arith.constant 0 : index
    %c0_89 = arith.constant 0 : index
    %67 = vector.load %arg9[%c0_87, %c0_88, %c0_89] : memref<2x8x768xf32, #tpu.memory_space<vmem>>, vector<2x8x768xf32>
    %cst_90 = arith.constant dense<0.000000e+00> : vector<16x768xf32>
    %68 = tpu.matmul %66, %63, %cst_90 {dimension_numbers = #tpu.dot_dimension_numbers<[1], [0], [0], [1], [0, 0, 1, 1], [], []>} : vector<16x768xbf16>, vector<768x768xbf16>, vector<16x768xf32> -> vector<16x768xf32>
    %69 = vector.shape_cast %68 : vector<16x768xf32> to vector<2x8x768xf32>
    %70 = arith.addf %67, %69 : vector<2x8x768xf32>
    %c0_91 = arith.constant 0 : index
    %c0_92 = arith.constant 0 : index
    %c0_93 = arith.constant 0 : index
    %71 = vector.load %arg9[%c0_91, %c0_92, %c0_93] : memref<2x8x768xf32, #tpu.memory_space<vmem>>, vector<2x8x768xf32>
    tpu.vector_store %arg9[%c0_91, %c0_92, %c0_93], %70 {strides = array<i32>} : memref<2x8x768xf32, #tpu.memory_space<vmem>>, vector<2x8x768xf32>,
    %c7 = arith.constant 7 : index
    %c0_94 = arith.constant 0 : index
    %c0_95 = arith.constant 0 : index
    %72 = vector.load %arg4[%c7, %c0_94, %c0_95] : memref<9x768x768xbf16, #tpu.memory_space<vmem>>, vector<1x768x768xbf16>
    %73 = vector.shape_cast %72 : vector<1x768x768xbf16> to vector<768x768xbf16>
    %c0_96 = arith.constant 0 : index
    %c0_97 = arith.constant 0 : index
    %c1_98 = arith.constant 1 : index
    %c0_99 = arith.constant 0 : index
    %74 = vector.load %arg3[%c0_96, %c0_97, %c1_98, %c0_99] : memref<2x1x10x768xbf16, #tpu.memory_space<vmem>>, vector<2x1x8x768xbf16>
    %75 = vector.shape_cast %74 : vector<2x1x8x768xbf16> to vector<2x8x768xbf16>
    %76 = vector.shape_cast %75 : vector<2x8x768xbf16> to vector<16x768xbf16>
    %c0_100 = arith.constant 0 : index
    %c0_101 = arith.constant 0 : index
    %c0_102 = arith.constant 0 : index
    %77 = vector.load %arg9[%c0_100, %c0_101, %c0_102] : memref<2x8x768xf32, #tpu.memory_space<vmem>>, vector<2x8x768xf32>
    %cst_103 = arith.constant dense<0.000000e+00> : vector<16x768xf32>
    %78 = tpu.matmul %76, %73, %cst_103 {dimension_numbers = #tpu.dot_dimension_numbers<[1], [0], [0], [1], [0, 0, 1, 1], [], []>} : vector<16x768xbf16>, vector<768x768xbf16>, vector<16x768xf32> -> vector<16x768xf32>
    %79 = vector.shape_cast %78 : vector<16x768xf32> to vector<2x8x768xf32>
    %80 = arith.addf %77, %79 : vector<2x8x768xf32>
    %c0_104 = arith.constant 0 : index
    %c0_105 = arith.constant 0 : index
    %c0_106 = arith.constant 0 : index
    %81 = vector.load %arg9[%c0_104, %c0_105, %c0_106] : memref<2x8x768xf32, #tpu.memory_space<vmem>>, vector<2x8x768xf32>
    tpu.vector_store %arg9[%c0_104, %c0_105, %c0_106], %80 {strides = array<i32>} : memref<2x8x768xf32, #tpu.memory_space<vmem>>, vector<2x8x768xf32>,
    %c8 = arith.constant 8 : index
    %c0_107 = arith.constant 0 : index
    %c0_108 = arith.constant 0 : index
    %82 = vector.load %arg4[%c8, %c0_107, %c0_108] : memref<9x768x768xbf16, #tpu.memory_space<vmem>>, vector<1x768x768xbf16>
    %83 = vector.shape_cast %82 : vector<1x768x768xbf16> to vector<768x768xbf16>
    %c0_109 = arith.constant 0 : index
    %c0_110 = arith.constant 0 : index
    %c2_111 = arith.constant 2 : index
    %c0_112 = arith.constant 0 : index
    %84 = vector.load %arg3[%c0_109, %c0_110, %c2_111, %c0_112] : memref<2x1x10x768xbf16, #tpu.memory_space<vmem>>, vector<2x1x8x768xbf16>
    %85 = vector.shape_cast %84 : vector<2x1x8x768xbf16> to vector<2x8x768xbf16>
    %86 = vector.shape_cast %85 : vector<2x8x768xbf16> to vector<16x768xbf16>
    %c0_113 = arith.constant 0 : index
    %c0_114 = arith.constant 0 : index
    %c0_115 = arith.constant 0 : index
    %87 = vector.load %arg9[%c0_113, %c0_114, %c0_115] : memref<2x8x768xf32, #tpu.memory_space<vmem>>, vector<2x8x768xf32>
    %cst_116 = arith.constant dense<0.000000e+00> : vector<16x768xf32>
    %88 = tpu.matmul %86, %83, %cst_116 {dimension_numbers = #tpu.dot_dimension_numbers<[1], [0], [0], [1], [0, 0, 1, 1], [], []>} : vector<16x768xbf16>, vector<768x768xbf16>, vector<16x768xf32> -> vector<16x768xf32>
    %89 = vector.shape_cast %88 : vector<16x768xf32> to vector<2x8x768xf32>
    %90 = arith.addf %87, %89 : vector<2x8x768xf32>
    %c0_117 = arith.constant 0 : index
    %c0_118 = arith.constant 0 : index
    %c0_119 = arith.constant 0 : index
    %91 = vector.load %arg9[%c0_117, %c0_118, %c0_119] : memref<2x8x768xf32, #tpu.memory_space<vmem>>, vector<2x8x768xf32>
    tpu.vector_store %arg9[%c0_117, %c0_118, %c0_119], %90 {strides = array<i32>} : memref<2x8x768xf32, #tpu.memory_space<vmem>>, vector<2x8x768xf32>,
    %c0_120 = arith.constant 0 : index
    %c0_121 = arith.constant 0 : index
    %c0_122 = arith.constant 0 : index
    %92 = vector.load %arg9[%c0_120, %c0_121, %c0_122] : memref<2x8x768xf32, #tpu.memory_space<vmem>>, vector<2x8x768xf32>
    %c0_123 = arith.constant 0 : index
    %c0_124 = arith.constant 0 : index
    %93 = vector.load %arg5[%c0_123, %c0_124] : memref<1x768xf32, #tpu.memory_space<vmem>>, vector<1x768xf32>
    %94 = vector.shape_cast %93 : vector<1x768xf32> to vector<1x1x768xf32>
    %95 = vector.broadcast %94 : vector<1x1x768xf32> to vector<2x8x768xf32>
    %96 = arith.addf %92, %95 : vector<2x8x768xf32>
    %cst_125 = arith.constant 0.000000e+00 : f32
    %97 = vector.broadcast %cst_125 : f32 to vector<2x8x768xf32>
    %98 = arith.maximumf %96, %97 : vector<2x8x768xf32>
    %c0_126 = arith.constant 0 : index
    %c0_127 = arith.constant 0 : index
    %99 = vector.load %arg6[%c0_126, %c0_127] : memref<1x768xf32, #tpu.memory_space<vmem>>, vector<1x768xf32>
    %100 = vector.shape_cast %99 : vector<1x768xf32> to vector<1x1x768xf32>
    %101 = vector.broadcast %100 : vector<1x1x768xf32> to vector<2x8x768xf32>
    %102 = arith.mulf %98, %101 : vector<2x8x768xf32>
    %cst_128 = arith.constant dense<0.000000e+00> : vector<2x8xf32>
    %103 = vector.multi_reduction <add>, %102, %cst_128 [2] : vector<2x8x768xf32> to vector<2x8xf32>
    %c0_129 = arith.constant 0 : index
    %c0_130 = arith.constant 0 : index
    %104 = vector.load %arg7[%c0_129, %c0_130] : memref<1x1xf32, #tpu.memory_space<vmem>>, vector<1x1xf32>
    %105 = vector.broadcast %104 : vector<1x1xf32> to vector<2x8xf32>
    %106 = arith.addf %103, %105 : vector<2x8xf32>
    %c0_131 = arith.constant 0 : index
    %c0_132 = arith.constant 0 : index
    %c0_133 = arith.constant 0 : index
    %107 = vector.load %arg8[%c0_131, %c0_132, %c0_133] : memref<1x2x8xf32, #tpu.memory_space<vmem>>, vector<1x2x8xf32>
    %108 = vector.shape_cast %107 : vector<1x2x8xf32> to vector<2x8xf32>
    %109 = vector.shape_cast %106 : vector<2x8xf32> to vector<1x2x8xf32>
    tpu.vector_store %arg8[%c0_131, %c0_132, %c0_133], %109 {strides = array<i32>} : memref<1x2x8xf32, #tpu.memory_space<vmem>>, vector<1x2x8xf32>,
    return
  }
  func.func @transform_0(%arg0: i32) -> (i32, i32, i32, i32) {
    %c0_i32 = arith.constant 0 : i32
    %0 = arith.addi %arg0, %c0_i32 : i32
    %c0_i32_0 = arith.constant 0 : i32
    %c0_i32_1 = arith.constant 0 : i32
    %c0_i32_2 = arith.constant 0 : i32
    %c0_i32_3 = arith.constant 0 : i32
    return %c0_i32_0, %0, %c0_i32_1, %c0_i32_2 : i32, i32, i32, i32
  }
  func.func @transform_1(%arg0: i32) -> (i32, i32, i32, i32) {
    %c1_i32 = arith.constant 1 : i32
    %0 = arith.addi %arg0, %c1_i32 : i32
    %c0_i32 = arith.constant 0 : i32
    %c0_i32_0 = arith.constant 0 : i32
    %c0_i32_1 = arith.constant 0 : i32
    %c0_i32_2 = arith.constant 0 : i32
    return %c0_i32, %0, %c0_i32_0, %c0_i32_1 : i32, i32, i32, i32
  }
  func.func @transform_2(%arg0: i32) -> (i32, i32, i32, i32) {
    %c2_i32 = arith.constant 2 : i32
    %0 = arith.addi %arg0, %c2_i32 : i32
    %c0_i32 = arith.constant 0 : i32
    %c0_i32_0 = arith.constant 0 : i32
    %c0_i32_1 = arith.constant 0 : i32
    %c0_i32_2 = arith.constant 0 : i32
    return %c0_i32, %0, %c0_i32_0, %c0_i32_1 : i32, i32, i32, i32
  }
  func.func @transform_3(%arg0: i32) -> (i32, i32, i32) {
    %c0_i32 = arith.constant 0 : i32
    %c0_i32_0 = arith.constant 0 : i32
    %c0_i32_1 = arith.constant 0 : i32
    %c0_i32_2 = arith.constant 0 : i32
    return %c0_i32, %c0_i32_0, %c0_i32_1 : i32, i32, i32
  }
  func.func @transform_4(%arg0: i32) -> (i32, i32) {
    %c0_i32 = arith.constant 0 : i32
    %c0_i32_0 = arith.constant 0 : i32
    %c0_i32_1 = arith.constant 0 : i32
    return %c0_i32, %c0_i32_0 : i32, i32
  }
  func.func @transform_5(%arg0: i32) -> (i32, i32) {
    %c0_i32 = arith.constant 0 : i32
    %c0_i32_0 = arith.constant 0 : i32
    %c0_i32_1 = arith.constant 0 : i32
    return %c0_i32, %c0_i32_0 : i32, i32
  }
  func.func @transform_6(%arg0: i32) -> (i32, i32) {
    %c0_i32 = arith.constant 0 : i32
    %c0_i32_0 = arith.constant 0 : i32
    %c0_i32_1 = arith.constant 0 : i32
    return %c0_i32, %c0_i32_0 : i32, i32
  }
  func.func @transform_7(%arg0: i32) -> (i32, i32, i32) {
    %c0_i32 = arith.constant 0 : i32
    %c0_i32_0 = arith.constant 0 : i32
    %c0_i32_1 = arith.constant 0 : i32
    return %arg0, %c0_i32, %c0_i32_0 : i32, i32, i32
  }
}

</mosaic_0001>

<bundles_post_ra>
// kernel: convnet_forward.1
= control target key start
LH: loop header
LB: loop body
LE: loop exit
PB: predicated region body
PF: predicated region fallthrough
CT: control target
= control target key end

     0   :  { %s38716_s0 = inlined_call_operand.vmem [shape: bf16[2,10,10,768], index: 0, kind: input, shape index: {}, may-alias: {0,1,2}]   ;;  %s38717_s1 = inlined_call_operand.vmem [shape: bf16[2,10,10,768], index: 1, kind: input, shape index: {}, may-alias: {0,1,2}]   ;;  %s38718_s2 = inlined_call_operand.vmem [shape: bf16[2,10,10,768], index: 2, kind: input, shape index: {}, may-alias: {0,1,2}]   ;;  %s38719_s3 = inlined_call_operand.vmem [shape: bf16[9,768,768], index: 3, kind: input, shape index: {}]   ;;  %s38720_s4 = inlined_call_operand.vmem [shape: f32[1,768], index: 4, kind: input, shape index: {}]   ;;  %s38721_s5 = inlined_call_operand.vmem [shape: f32[1,768], index: 5, kind: input, shape index: {}]   ;;  %s38722_s6 = inlined_call_operand.<no memory space> [shape: f32[1,1], index: 6, kind: input, shape index: {}]   ;;  %s38723_s7 = inlined_call_operand.vmem [shape: f32[8,2,8], index: 7, kind: output, shape index: {}]  }
   0x1   :  { %v12_v0 = vstv %s38722_s6 }
   0x2   :  { %13 = vst [vmem:[#allocation3] sm:$0x1] %v12_v0 }
   0x3   :  { %s30199_s26 = smov 0   ;;  %s30201_s27 = smov 0  }
   0x4   :  { %s30203_s28 = smov 0   ;;  %s30205_s29 = smov 0  }
   0x5   :  { %s30207_s30 = smov 0   ;;  %s30209_s8 = smov 0  }
   0x6   :  { %s30211_s9 = smov 0  }
   0x7 LB: > { %s20774_s6 = sadd.s32 4294967295, %s30153_s9   ;;  %s30236_s10 = sadd.s32 1, %s30153_s9   ;;  %s30153_s9 = sphi %s30211_s9, %s38737_s9   ;;  %s30149_s8 = sphi %s30209_s8, %s38736_s8   ;;  %s30145_s30 = sphi %s30207_s30, %s38735_s30   ;;  %s30141_s29 = sphi %s30205_s29, %s38734_s29   ;;  %s30137_s28 = sphi %s30203_s28, %s38733_s28   ;;  %s30133_s27 = sphi %s30201_s27, %s38732_s27   ;;  %s30129_s26 = sphi %s30199_s26, %s38731_s26  }
   0x8   : > { %s23_s11 = ssub.s32 %s30153_s9, %s30236_s10  ;;  %s26_s12 = sadd.s32 1, %s30149_s8 }
   0x9   : > { %p24_p0 = scmp.eq.s32.totalorder %s23_s11, 0  ;;  %p33_p1 = scmp.ne.s32.totalorder %s30149_s8, %s30145_s30 }
   0xa   : > { %p34_p2 = scmp.eq.s32.totalorder %s30153_s9, 0  ;;  %s50_s13 = sadd.s32 1, %s30236_s10 }
   0xb   : > { %s30246_s14 = scalar_select %p24_p0, %s30149_s8, %s26_s12  }
   0xc   : > { %p30250_p3 = por %p34_p2, %p33_p1  ;;  %s51_s16 = ssub.s32 %s30236_s10, %s50_s13 }
   0xd   : > { %p52_p4 = scmp.eq.s32.totalorder %s51_s16, 0  ;;  %s54_s17 = sadd.s32 1, %s30141_s29 }
   0xe   : > { %p61_p5 = scmp.ne.s32.totalorder %s30141_s29, %s30137_s28  ;;  %s77_s18 = sadd.s32 2, %s30153_s9 }
   0xf   : > { %s30260_s19 = scalar_select %p52_p4, %s30141_s29, %s54_s17  }
  0x10   : > { %p30264_p6 = por %p61_p5, %p34_p2  ;;  %s78_s21 = sadd.s32 2, %s30236_s10 }
  0x11   : > { %s79_s22 = ssub.s32 %s77_s18, %s78_s21  ;;  %s82_s23 = sadd.s32 1, %s30133_s27 }
  0x12   : > { %p80_p7 = scmp.eq.s32.totalorder %s79_s22, 0  ;;  %p89_p8 = scmp.ne.s32.totalorder %s30133_s27, %s30129_s26 }
  0x13   : > { %p20777_p10 = scmp.ge.s32.totalorder %s30153_s9, 8 }
  0x14   : > { %s30273_s24 = scalar_select %p80_p7, %s30133_s27, %s82_s23  }
  0x15   : > { %p30277_p9 = por %p89_p8, %p34_p2  ;;  %237 = sbr.rel (%p20777_p10) target bundleno = 61 (0x3d), region = 32 }
  0x1c   : > { %240 = sbr.rel (!%p30250_p3) target bundleno = 39 (0x27), region = 36  ;;  %s242_s11 = sand.u32 (%p30250_p3), 1, %s30149_s8  }
  0x1d   : > { %s26089_s12 = smul.u32 (%p30250_p3), 48, %s30153_s9 }
  0x1e   : > { %s26088_s13 = smul.u32 (%p30250_p3), 96, %s242_s11 }
  0x1f   : > { %s247_s18 = scalar_lea.vmem (%p30250_p3), %s38716_s0, %s26089_s12 }
  0x20   : > { %v260_v1 = vld [vmem:[%s247_s18] sm:$0xff] (%p30250_p3)  ;;  %v262_v2 = vld [vmem:[%s247_s18 + $0x8] sm:$0xff] (%p30250_p3)  ;;  %v264_v3 = vld [vmem:[%s247_s18 + $0x10] sm:$0xff] (%p30250_p3)  ;;  %s244_s21 = scalar_lea.vmem (%p30250_p3), [#allocation4], %s26088_s13 }
  0x21   : > { %261 = vst [vmem:[%s244_s21] sm:$0xff] (%p30250_p3), %v260_v1  ;;  %263 = vst [vmem:[%s244_s21 + $0x8] sm:$0xff] (%p30250_p3), %v262_v2  ;;  %v266_v4 = vld [vmem:[%s247_s18 + $0x18] sm:$0xff] (%p30250_p3)  ;;  %v268_v5 = vld [vmem:[%s247_s18 + $0x20] sm:$0xff] (%p30250_p3) }
  0x22   : > { %265 = vst [vmem:[%s244_s21 + $0x10] sm:$0xff] (%p30250_p3), %v264_v3  ;;  %v270_v6 = vld [vmem:[%s247_s18 + $0x28] sm:$0xff] (%p30250_p3)  ;;  %267 = vst [vmem:[%s244_s21 + $0x18] sm:$0xff] (%p30250_p3), %v266_v4  ;;  %v272_v7 = vld [vmem:[%s247_s18 + $0x1e0] sm:$0xff] (%p30250_p3) }
  0x23   : > { %269 = vst [vmem:[%s244_s21 + $0x20] sm:$0xff] %v268_v5  ;;  %271 = vst [vmem:[%s244_s21 + $0x28] sm:$0xff] %v270_v6  ;;  %v274_v8 = vld [vmem:[%s247_s18 + $0x1e8] sm:$0xff]  ;;  %v276_v9 = vld [vmem:[%s247_s18 + $0x1f0] sm:$0xff] }
  0x24   : > { %273 = vst [vmem:[%s244_s21 + $0x30] sm:$0xff] %v272_v7  ;;  %275 = vst [vmem:[%s244_s21 + $0x38] sm:$0xff] %v274_v8  ;;  %v278_v10 = vld [vmem:[%s247_s18 + $0x1f8] sm:$0xff]  ;;  %v280_v11 = vld [vmem:[%s247_s18 + $0x200] sm:$0xff] }
  0x25   : > { %277 = vst [vmem:[%s244_s21 + $0x40] sm:$0xff] %v276_v9  ;;  %v282_v12 = vld [vmem:[%s247_s18 + $0x208] sm:$0xff]  ;;  %279 = vst [vmem:[%s244_s21 + $0x48] sm:$0xff] %v278_v10 }
  0x26   : > { %281 = vst [vmem:[%s244_s21 + $0x50] sm:$0xff] %v280_v11  ;;  %283 = vst [vmem:[%s244_s21 + $0x58] sm:$0xff] %v282_v12 }
  0x27 PF: > { %289 = sbr.rel (!%p30264_p6) target bundleno = 50 (0x32), region = 59  ;;  %s291_s15 = sand.u32 (%p30264_p6), 1, %s30141_s29  }
  0x28   : > { %s20702_s22 = smul.u32 (%p30264_p6), 48, %s30153_s9 }
  0x29   : > { %s26090_s23 = smul.u32 (%p30264_p6), 96, %s291_s15 }
  0x2a   : > { %s20703_s13 = scalar_lea.vmem (%p30264_p6), %s38717_s1, %s20702_s22 }
  0x2b   : > { %v20779_v13 = vld [vmem:[%s20703_s13 + $0x30] sm:$0xff] (%p30264_p6)  ;;  %v20780_v14 = vld [vmem:[%s20703_s13 + $0x38] sm:$0xff] (%p30264_p6)  ;;  %v20781_v15 = vld [vmem:[%s20703_s13 + $0x40] sm:$0xff] (%p30264_p6)  ;;  %s293_s16 = scalar_lea.vmem (%p30264_p6), [#allocation5], %s26090_s23 }
  0x2c   : > { %311 = vst [vmem:[%s293_s16] sm:$0xff] (%p30264_p6), %v20779_v13  ;;  %313 = vst [vmem:[%s293_s16 + $0x8] sm:$0xff] (%p30264_p6), %v20780_v14  ;;  %v20782_v16 = vld [vmem:[%s20703_s13 + $0x48] sm:$0xff] (%p30264_p6)  ;;  %v20783_v17 = vld [vmem:[%s20703_s13 + $0x50] sm:$0xff] (%p30264_p6) }
  0x2d   : > { %315 = vst [vmem:[%s293_s16 + $0x10] sm:$0xff] (%p30264_p6), %v20781_v15  ;;  %v20784_v18 = vld [vmem:[%s20703_s13 + $0x58] sm:$0xff] (%p30264_p6)  ;;  %317 = vst [vmem:[%s293_s16 + $0x18] sm:$0xff] (%p30264_p6), %v20782_v16  ;;  %v20785_v19 = vld [vmem:[%s20703_s13 + $0x210] sm:$0xff] (%p30264_p6) }
  0x2e   : > { %319 = vst [vmem:[%s293_s16 + $0x20] sm:$0xff] %v20783_v17  ;;  %321 = vst [vmem:[%s293_s16 + $0x28] sm:$0xff] %v20784_v18  ;;  %v20786_v20 = vld [vmem:[%s20703_s13 + $0x218] sm:$0xff]  ;;  %v20787_v21 = vld [vmem:[%s20703_s13 + $0x220] sm:$0xff] }
  0x2f   : > { %323 = vst [vmem:[%s293_s16 + $0x30] sm:$0xff] %v20785_v19  ;;  %325 = vst [vmem:[%s293_s16 + $0x38] sm:$0xff] %v20786_v20  ;;  %v20788_v22 = vld [vmem:[%s20703_s13 + $0x228] sm:$0xff]  ;;  %v20789_v23 = vld [vmem:[%s20703_s13 + $0x230] sm:$0xff] }
  0x30   : > { %327 = vst [vmem:[%s293_s16 + $0x40] sm:$0xff] %v20787_v21  ;;  %v20790_v24 = vld [vmem:[%s20703_s13 + $0x238] sm:$0xff]  ;;  %329 = vst [vmem:[%s293_s16 + $0x48] sm:$0xff] %v20788_v22 }
  0x31   : > { %331 = vst [vmem:[%s293_s16 + $0x50] sm:$0xff] %v20789_v23  ;;  %333 = vst [vmem:[%s293_s16 + $0x58] sm:$0xff] %v20790_v24 }
  0x32 PF: > { %339 = sbr.rel (!%p30277_p9) target bundleno = 61 (0x3d), region = 82  ;;  %s341_s20 = sand.u32 (%p30277_p9), 1, %s30133_s27  }
  0x33   : > { %s20707_s17 = smul.u32 (%p30277_p9), 48, %s30153_s9 }
  0x34   : > { %s26091_s18 = smul.u32 (%p30277_p9), 96, %s341_s20 }
  0x35   : > { %s20708_s22 = scalar_lea.vmem (%p30277_p9), %s38718_s2, %s20707_s17 }
  0x36   : > { %v20791_v25 = vld [vmem:[%s20708_s22 + $0x60] sm:$0xff] (%p30277_p9)  ;;  %v20792_v26 = vld [vmem:[%s20708_s22 + $0x68] sm:$0xff] (%p30277_p9)  ;;  %v20793_v27 = vld [vmem:[%s20708_s22 + $0x70] sm:$0xff] (%p30277_p9)  ;;  %s343_s23 = scalar_lea.vmem (%p30277_p9), [#allocation6], %s26091_s18 }
  0x37   : > { %361 = vst [vmem:[%s343_s23] sm:$0xff] (%p30277_p9), %v20791_v25  ;;  %363 = vst [vmem:[%s343_s23 + $0x8] sm:$0xff] (%p30277_p9), %v20792_v26  ;;  %v20794_v28 = vld [vmem:[%s20708_s22 + $0x78] sm:$0xff] (%p30277_p9)  ;;  %v20795_v29 = vld [vmem:[%s20708_s22 + $0x80] sm:$0xff] (%p30277_p9) }
  0x38   : > { %365 = vst [vmem:[%s343_s23 + $0x10] sm:$0xff] (%p30277_p9), %v20793_v27  ;;  %v20796_v30 = vld [vmem:[%s20708_s22 + $0x88] sm:$0xff] (%p30277_p9)  ;;  %367 = vst [vmem:[%s343_s23 + $0x18] sm:$0xff] (%p30277_p9), %v20794_v28  ;;  %v20797_v31 = vld [vmem:[%s20708_s22 + $0x240] sm:$0xff] (%p30277_p9) }
  0x39   : > { %369 = vst [vmem:[%s343_s23 + $0x20] sm:$0xff] %v20795_v29  ;;  %371 = vst [vmem:[%s343_s23 + $0x28] sm:$0xff] %v20796_v30  ;;  %v20798_v32 = vld [vmem:[%s20708_s22 + $0x248] sm:$0xff]  ;;  %v20799_v33 = vld [vmem:[%s20708_s22 + $0x250] sm:$0xff] }
  0x3a   : > { %373 = vst [vmem:[%s343_s23 + $0x30] sm:$0xff] %v20797_v31  ;;  %375 = vst [vmem:[%s343_s23 + $0x38] sm:$0xff] %v20798_v32  ;;  %v20800_v34 = vld [vmem:[%s20708_s22 + $0x258] sm:$0xff]  ;;  %v20801_v35 = vld [vmem:[%s20708_s22 + $0x260] sm:$0xff] }
  0x3b   : > { %377 = vst [vmem:[%s343_s23 + $0x40] sm:$0xff] %v20799_v33  ;;  %v20802_v36 = vld [vmem:[%s20708_s22 + $0x268] sm:$0xff]  ;;  %379 = vst [vmem:[%s343_s23 + $0x48] sm:$0xff] %v20800_v34 }
  0x3c   : > { %381 = vst [vmem:[%s343_s23 + $0x50] sm:$0xff] %v20801_v35  ;;  %383 = vst [vmem:[%s343_s23 + $0x58] sm:$0xff] %v20802_v36 }
  0x3d PF: > { %p20803_p11 = scmp.ge.s32.totalorder %s30153_s9, 1  ;;  %p388_p12 = scmp.lt.s32.totalorder %s30153_s9, 9 }
  0x3f   : > { %p389_p13 = pnand %p20803_p11, %p388_p12 }
  0x40   : > { %v26154_v37 = vld [vmem:[%s38719_s3 + $0x4] ss:$24 sps:$4 sm:$0xff] (!%p389_p13)   ;;  %v26158_v39 = vld [vmem:[%s38719_s3] ss:$24 sps:$4 sm:$0xff] (!%p389_p13)   ;;  %v26160_v41 = vld [vmem:[%s38719_s3 + $0x34] ss:$24 sps:$4 sm:$0xff] (!%p389_p13)  }
  0x41   : > { %392 = sbr.rel (%p389_p13) target bundleno = 3066 (0xbfa), region = 105  ;;  %v26156_v38 = vld [vmem:[%s38719_s3 + $0x1504] ss:$24 sps:$4 sm:$0xff] (!%p389_p13)   ;;  %2241 = vmatprep.subr.bf16.mxu1 (!%p389_p13), %v26154_v37  ;;  %v26159_v40 = vld [vmem:[%s38719_s3 + $0x1500] ss:$24 sps:$4 sm:$0xff] (!%p389_p13)   ;;  %s395_s16 = sand.u32 (!%p389_p13), 1, %s30145_s30  }
  0x42   : > { %6786 = vmatprep.subr.bf16.mxu0 (!%p389_p13), %v26156_v38  ;;  %2242 = vmatpush1.bf16.msra.mxu1 (!%p389_p13), %v26158_v39  ;;  %v26162_v42 = vld [vmem:[%s38719_s3 + $0x1534] ss:$24 sps:$4 sm:$0xff] (!%p389_p13)   ;;  %v26164_v43 = vld [vmem:[%s38719_s3 + $0x30] ss:$24 sps:$4 sm:$0xff] (!%p389_p13)   ;;  %v26166_v45 = vld [vmem:[%s38719_s3 + $0x64] ss:$24 sps:$4 sm:$0xff] (!%p389_p13)  }
  0x43   : > { %6787 = vmatpush1.bf16.msra.mxu0 (!%p389_p13), %v26159_v40  ;;  %2243 = vmatprep.subr.bf16.mxu1 (!%p389_p13), %v26160_v41  ;;  %v26165_v44 = vld [vmem:[%s38719_s3 + $0x1530] ss:$24 sps:$4 sm:$0xff] (!%p389_p13)   ;;  %v26168_v46 = vld [vmem:[%s38719_s3 + $0x1564] ss:$24 sps:$4 sm:$0xff] (!%p389_p13)   ;;  %v26170_v47 = vld [vmem:[%s38719_s3 + $0x60] ss:$24 sps:$4 sm:$0xff] (!%p389_p13)  }
  0x44   : > { %6788 = vmatprep.subr.bf16.mxu0 (!%p389_p13), %v26162_v42  ;;  %v26171_v48 = vld [vmem:[%s38719_s3 + $0x1560] ss:$24 sps:$4 sm:$0xff] (!%p389_p13)   ;;  %v26172_v49 = vld [vmem:[%s38719_s3 + $0x94] ss:$24 sps:$4 sm:$0xff] (!%p389_p13)   ;;  %v26176_v51 = vld [vmem:[%s38719_s3 + $0x90] ss:$24 sps:$4 sm:$0xff] (!%p389_p13)  }
  0x45   : > { %v26174_v50 = vld [vmem:[%s38719_s3 + $0x1594] ss:$24 sps:$4 sm:$0xff] (!%p389_p13)   ;;  %v26177_v52 = vld [vmem:[%s38719_s3 + $0x1590] ss:$24 sps:$4 sm:$0xff] (!%p389_p13)   ;;  %v26178_v53 = vld [vmem:[%s38719_s3 + $0xc4] ss:$24 sps:$4 sm:$0xff] (!%p389_p13)  }
  0x46   : > { %2244 = vmatpush1.bf16.msra.mxu1 (!%p389_p13), %v26164_v43  ;;  %v26180_v54 = vld [vmem:[%s38719_s3 + $0x15c4] ss:$24 sps:$4 sm:$0xff] (!%p389_p13)   ;;  %v26182_v55 = vld [vmem:[%s38719_s3 + $0xc0] ss:$24 sps:$4 sm:$0xff] (!%p389_p13)   ;;  %v26184_v57 = vld [vmem:[%s38719_s3 + $0xf4] ss:$24 sps:$4 sm:$0xff] (!%p389_p13)  }
  0x47   : > { %6789 = vmatpush1.bf16.msra.mxu0 (!%p389_p13), %v26165_v44  ;;  %2245 = vmatprep.subr.bf16.mxu1 (!%p389_p13), %v26166_v45  ;;  %v26183_v56 = vld [vmem:[%s38719_s3 + $0x15c0] ss:$24 sps:$4 sm:$0xff] (!%p389_p13)   ;;  %v26186_v58 = vld [vmem:[%s38719_s3 + $0x15f4] ss:$24 sps:$4 sm:$0xff] (!%p389_p13)   ;;  %v26188_v59 = vld [vmem:[%s38719_s3 + $0xf0] ss:$24 sps:$4 sm:$0xff] (!%p389_p13)  }
  0x48   : > { %6790 = vmatprep.subr.bf16.mxu0 %v26168_v46  ;;  %v26189_v60 = vld [vmem:[%s38719_s3 + $0x15f0] ss:$24 sps:$4 sm:$0xff]   ;;  %v26190_v61 = vld [vmem:[%s38719_s3 + $0x124] ss:$24 sps:$4 sm:$0xff]   ;;  %v26194_v63 = vld [vmem:[%s38719_s3 + $0x120] ss:$24 sps:$4 sm:$0xff]  }
  0x49   : > { %v26192_v62 = vld [vmem:[%s38719_s3 + $0x1624] ss:$24 sps:$4 sm:$0xff]   ;;  %v26195_v0 = vld [vmem:[%s38719_s3 + $0x1620] ss:$24 sps:$4 sm:$0xff]   ;;  %v26196_v1 = vld [vmem:[%s38719_s3 + $0x154] ss:$24 sps:$4 sm:$0xff]  }
  0x4a   : > { %2246 = vmatpush1.bf16.msra.mxu1 %v26170_v47  ;;  %v26198_v2 = vld [vmem:[%s38719_s3 + $0x1654] ss:$24 sps:$4 sm:$0xff]   ;;  %v26200_v3 = vld [vmem:[%s38719_s3 + $0x150] ss:$24 sps:$4 sm:$0xff]   ;;  %v26202_v5 = vld [vmem:[%s38719_s3 + $0x184] ss:$24 sps:$4 sm:$0xff]  }
  0x4b   : > { %6791 = vmatpush1.bf16.msra.mxu0 %v26171_v48  ;;  %2247 = vmatprep.subr.bf16.mxu1 %v26172_v49  ;;  %v26201_v4 = vld [vmem:[%s38719_s3 + $0x1650] ss:$24 sps:$4 sm:$0xff]   ;;  %v26204_v6 = vld [vmem:[%s38719_s3 + $0x1684] ss:$24 sps:$4 sm:$0xff]   ;;  %v26206_v7 = vld [vmem:[%s38719_s3 + $0x180] ss:$24 sps:$4 sm:$0xff]  }
  0x4c   : > { %6792 = vmatprep.subr.bf16.mxu0 %v26174_v50  ;;  %v26207_v8 = vld [vmem:[%s38719_s3 + $0x1680] ss:$24 sps:$4 sm:$0xff]   ;;  %v26208_v9 = vld [vmem:[%s38719_s3 + $0x1b4] ss:$24 sps:$4 sm:$0xff]   ;;  %v26212_v11 = vld [vmem:[%s38719_s3 + $0x1b0] ss:$24 sps:$4 sm:$0xff]  }
  0x4d   : > { %v26210_v10 = vld [vmem:[%s38719_s3 + $0x16b4] ss:$24 sps:$4 sm:$0xff]   ;;  %v26213_v12 = vld [vmem:[%s38719_s3 + $0x16b0] ss:$24 sps:$4 sm:$0xff]   ;;  %v26214_v13 = vld [vmem:[%s38719_s3 + $0x1e4] ss:$24 sps:$4 sm:$0xff]  }
  0x4e   : > { %2248 = vmatpush1.bf16.msra.mxu1 %v26176_v51  ;;  %v26216_v14 = vld [vmem:[%s38719_s3 + $0x16e4] ss:$24 sps:$4 sm:$0xff]   ;;  %s26092_s30 = smul.u32 96, %s395_s16  ;;  %v26218_v15 = vld [vmem:[%s38719_s3 + $0x1e0] ss:$24 sps:$4 sm:$0xff]   ;;  %vm5240_vm0 = vcmask 1042432  }
  0x4f   : > { %6793 = vmatpush1.bf16.msra.mxu0 %v26177_v52  ;;  %2249 = vmatprep.subr.bf16.mxu1 %v26178_v53  ;;  %v26219_v16 = vld [vmem:[%s38719_s3 + $0x16e0] ss:$24 sps:$4 sm:$0xff]   ;;  %v26220_v17 = vld [vmem:[%s38719_s3 + $0x214] ss:$24 sps:$4 sm:$0xff]   ;;  %v26224_v19 = vld [vmem:[%s38719_s3 + $0x210] ss:$24 sps:$4 sm:$0xff]  }
  0x50   : > { %6794 = vmatprep.subr.bf16.mxu0 %v26180_v54  ;;  %v26222_v18 = vld [vmem:[%s38719_s3 + $0x1714] ss:$24 sps:$4 sm:$0xff]   ;;  %v26225_v20 = vld [vmem:[%s38719_s3 + $0x1710] ss:$24 sps:$4 sm:$0xff]   ;;  %s30450_s11 = scalar_lea.vmem [#allocation4], %s26092_s30  ;;  %vm5241_vm1 = vcmask 1046532  }
  0x51   : > { %v26250_v21 = vld [vmem:[%s30450_s11 + $0x4] ss:$48 sps:$4 sm:$0xff]   ;;  %v5217_v24 = vld [vmem:[%s30450_s11 + $0x8] sm:$0xee]  ;;  %v5223_v26 = vld [vmem:[%s30450_s11 + $0x38] sm:$0xee] }
  0x52   : > { %2250 = vmatpush1.bf16.msra.mxu1 %v26182_v55  ;;  %v26226_v22 = vld [vmem:[%s38719_s3 + $0x244] ss:$24 sps:$4 sm:$0xff]   ;;  %2273 = vmatprep.mubr.bf16.mxu1 %v26250_v21  ;;  %v5226_v27 = vld [vmem:[%s30450_s11 + $0x50] sm:$0x11]  ;;  %vm30463_vm2 = vmor %vm5240_vm0, %vm5241_vm1  ;;  %v21970_v29 = vrot.slane %v5217_v24, 9  ;;  %v21973_v31 = vrot.slane %v5223_v26, 9 }
  0x53   : > { %6795 = vmatpush1.bf16.msra.mxu0 %v26183_v56  ;;  %2251 = vmatprep.subr.bf16.mxu1 %v26184_v57  ;;  %v26228_v23 = vld [vmem:[%s38719_s3 + $0x1744] ss:$24 sps:$4 sm:$0xff]   ;;  %v26230_v32 = vld [vmem:[%s38719_s3 + $0x240] ss:$24 sps:$4 sm:$0xff]   ;;  %v5261_v33 = vrot.slane %v5226_v27, 5  ;;  %s402_s16 = sand.u32 1, %s30137_s28  }
  0x54   : > { %6796 = vmatprep.subr.bf16.mxu0 %v26186_v58  ;;  %v5220_v25 = vld [vmem:[%s30450_s11 + $0x20] sm:$0x11]  ;;  %v26232_v36 = vld [vmem:[%s38719_s3 + $0x274] ss:$24 sps:$4 sm:$0xff]   ;;  %v26236_v40 = vld [vmem:[%s38719_s3 + $0x270] ss:$24 sps:$4 sm:$0xff]  }
  0x55   : > { %v5249_v30 = vrot.slane %v5220_v25, 5  ;;  %v26231_v34 = vld [vmem:[%s38719_s3 + $0x1740] ss:$24 sps:$4 sm:$0xff]   ;;  %v26234_v37 = vld [vmem:[%s38719_s3 + $0x1774] ss:$24 sps:$4 sm:$0xff]   ;;  %v5262_v38 = vsel %vm30463_vm2, %v21973_v31, %v5261_v33  ;;  %s26093_s30 = smul.u32 96, %s402_s16 }
  0x56   : > { %2252 = vmatpush1.bf16.msra.mxu1 %v26188_v59  ;;  %v26237_v41 = vld [vmem:[%s38719_s3 + $0x1770] ss:$24 sps:$4 sm:$0xff]   ;;  %v26238_v42 = vld [vmem:[%s38719_s3 + $0x2a4] ss:$24 sps:$4 sm:$0xff]   ;;  %v26242_v44 = vld [vmem:[%s38719_s3 + $0x2a0] ss:$24 sps:$4 sm:$0xff]  }
  0x57   : > { %6797 = vmatpush1.bf16.msra.mxu0 %v26189_v60  ;;  %2253 = vmatprep.subr.bf16.mxu1 %v26190_v61  ;;  %v5250_v35 = vsel %vm30463_vm2, %v21970_v29, %v5249_v30  ;;  %v26240_v43 = vld [vmem:[%s38719_s3 + $0x17a4] ss:$24 sps:$4 sm:$0xff]   ;;  %v26243_v45 = vld [vmem:[%s38719_s3 + $0x17a0] ss:$24 sps:$4 sm:$0xff]   ;;  %v26244_v46 = vld [vmem:[%s38719_s3 + $0x2d4] ss:$24 sps:$4 sm:$0xff]  }
  0x58   : > { %6798 = vmatprep.subr.bf16.mxu0 %v26192_v62  ;;  %v30483_v39 = vcombine.high %v5250_v35, %v5262_v38  ;;  %v26246_v47 = vld [vmem:[%s38719_s3 + $0x17d4] ss:$24 sps:$4 sm:$0xff]   ;;  %v26248_v48 = vld [vmem:[%s38719_s3 + $0x2d0] ss:$24 sps:$4 sm:$0xff]   ;;  %v26254_v50 = vld [vmem:[%s38719_s3 + $0x304] ss:$24 sps:$4 sm:$0xff]   ;;  %v30526_v54 = vcombine.low %v5250_v35, %v5262_v38 }
  0x59   : > { %v26249_v49 = vld [vmem:[%s38719_s3 + $0x17d0] ss:$24 sps:$4 sm:$0xff]   ;;  %v26257_v51 = vld [vmem:[%s38719_s3 + $0x1804] ss:$24 sps:$4 sm:$0xff]   ;;  %v26252_v52 = vld [vmem:[%s38719_s3 + $0x300] ss:$24 sps:$4 sm:$0xff]  }
  0x5a   : > { %2254 = vmatpush1.bf16.msra.mxu1 %v26194_v63  ;;  %6818 = vmatprep.mubr.bf16.mxu0 %v30483_v39  ;;  %v26258_v53 = vld [vmem:[%s30450_s11] ss:$48 sps:$4 sm:$0xff]   ;;  %v5227_v24 = vld [vmem:[%s30450_s11 + $0x58] sm:$0x11]  ;;  %s31193_s13 = scalar_lea.vmem [#allocation5], %s26093_s30  ;;  %s409_s16 = sand.u32 1, %s30129_s26  }
  0x5b   : > { %6799 = vmatpush1.bf16.msra.mxu0 %v26195_v0  ;;  %2255 = vmatprep.subr.bf16.mxu1 %v26196_v1  ;;  %v26255_v55 = vld [vmem:[%s38719_s3 + $0x1800] ss:$24 sps:$4 sm:$0xff]   ;;  %v26261_v56 = vld [vmem:[%s38719_s3 + $0x334] ss:$24 sps:$4 sm:$0xff]   ;;  %v26259_v58 = vld [vmem:[%s38719_s3 + $0x330] ss:$24 sps:$4 sm:$0xff]  }
  0x5c   : > { %6800 = vmatprep.subr.bf16.mxu0 %v26198_v2  ;;  %v26264_v57 = vld [vmem:[%s38719_s3 + $0x1834] ss:$24 sps:$4 sm:$0xff]   ;;  %v26262_v59 = vld [vmem:[%s38719_s3 + $0x1830] ss:$24 sps:$4 sm:$0xff]   ;;  %v26267_v60 = vld [vmem:[%s38719_s3 + $0x364] ss:$24 sps:$4 sm:$0xff]  }
  0x5d   : > { %v26270_v61 = vld [vmem:[%s38719_s3 + $0x1864] ss:$24 sps:$4 sm:$0xff]   ;;  %v26265_v62 = vld [vmem:[%s38719_s3 + $0x360] ss:$24 sps:$4 sm:$0xff]   ;;  %v26273_v0 = vld [vmem:[%s38719_s3 + $0x394] ss:$24 sps:$4 sm:$0xff]  }
  0x5e   : > { %2256 = vmatpush1.bf16.msra.mxu1 %v26200_v3  ;;  %v26268_v63 = vld [vmem:[%s38719_s3 + $0x1860] ss:$24 sps:$4 sm:$0xff]   ;;  %v26276_v1 = vld [vmem:[%s38719_s3 + $0x1894] ss:$24 sps:$4 sm:$0xff]   ;;  %v26271_v2 = vld [vmem:[%s38719_s3 + $0x390] ss:$24 sps:$4 sm:$0xff]  }
  0x5f   : > { %6801 = vmatpush1.bf16.msra.mxu0 %v26201_v4  ;;  %2257 = vmatprep.subr.bf16.mxu1 %v26202_v5  ;;  %v26274_v3 = vld [vmem:[%s38719_s3 + $0x1890] ss:$24 sps:$4 sm:$0xff]   ;;  %v26279_v4 = vld [vmem:[%s38719_s3 + $0x3c4] ss:$24 sps:$4 sm:$0xff]   ;;  %v5265_v31 = vrot.slane %v5227_v24, 5  ;;  %s26094_s20 = smul.u32 96, %s409_s16 }
  0x60   : > { %6802 = vmatprep.subr.bf16.mxu0 %v26204_v6  ;;  %v26282_v5 = vld [vmem:[%s38719_s3 + $0x18c4] ss:$24 sps:$4 sm:$0xff]   ;;  %v26277_v6 = vld [vmem:[%s38719_s3 + $0x3c0] ss:$24 sps:$4 sm:$0xff]   ;;  %v26312_v38 = vld [vmem:[%s38719_s3 + $0x19b4] ss:$24 sps:$4 sm:$0xff]  }
  0x61   : > { %v5218_v21 = vld [vmem:[%s30450_s11 + $0x10] sm:$0xee]  ;;  %v26303_v29 = vld [vmem:[%s38719_s3 + $0x484] ss:$24 sps:$4 sm:$0xff]   ;;  %vm2953_vm3 = vsmask.f32 3328 }
  0x62   : > { %2258 = vmatpush1.bf16.msra.mxu1 %v26206_v7  ;;  %v26280_v7 = vld [vmem:[%s38719_s3 + $0x18c0] ss:$24 sps:$4 sm:$0xff]   ;;  %v21971_v25 = vrot.slane %v5218_v21, 9  ;;  %v26306_v30 = vld [vmem:[%s38719_s3 + $0x1984] ss:$24 sps:$4 sm:$0xff]   ;;  %s34888_s22 = scalar_lea.vmem [#allocation6], %s26094_s20 }
  0x63   : > { %6803 = vmatpush1.bf16.msra.mxu0 %v26207_v8  ;;  %2259 = vmatprep.subr.bf16.mxu1 %v26208_v9  ;;  %v26285_v8 = vld [vmem:[%s38719_s3 + $0x3f4] ss:$24 sps:$4 sm:$0xff]   ;;  %v26304_v35 = vld [vmem:[%s38719_s3 + $0x1980] ss:$24 sps:$4 sm:$0xff]   ;;  %vm2954_vm4 = vsmask.f32 7440 }
  0x64   : > { %6804 = vmatprep.subr.bf16.mxu0 %v26210_v10  ;;  %v26288_v9 = vld [vmem:[%s38719_s3 + $0x18f4] ss:$24 sps:$4 sm:$0xff]   ;;  %v26283_v10 = vld [vmem:[%s38719_s3 + $0x3f0] ss:$24 sps:$4 sm:$0xff]   ;;  %v5219_v21 = vld [vmem:[%s30450_s11 + $0x18] sm:$0x11] }
  0x65   : > { %vm32133_vm5 = vmor %vm2953_vm3, %vm2954_vm4  ;;  %v29744_v28 = vld [vmem:[%s38719_s3 + $0x483c] ss:$24 sps:$4 sm:$0xff]   ;;  %p449_p0 = scmp.lt.s32.totalorder %s20774_s6, 7  ;;  %vm20672_vm6 = vcmask 1041409   ;;  %vm20675_vm7 = vcmask 58368  }
  0x66   : > { %2260 = vmatpush1.bf16.msra.mxu1 %v26212_v11  ;;  %v26286_v11 = vld [vmem:[%s38719_s3 + $0x18f0] ss:$24 sps:$4 sm:$0xff]  }
  0x67   : > { %6805 = vmatpush1.bf16.msra.mxu0 %v26213_v12  ;;  %2261 = vmatprep.subr.bf16.mxu1 %v26214_v13  ;;  %v26291_v12 = vld [vmem:[%s38719_s3 + $0x424] ss:$24 sps:$4 sm:$0xff]   ;;  %s38739_s6 = smov (!%p449_p0, %s20774_s6), 7 }
  0x68   : > { %6806 = vmatprep.subr.bf16.mxu0 %v26216_v14  ;;  %v26294_v13 = vld [vmem:[%s38719_s3 + $0x1924] ss:$24 sps:$4 sm:$0xff]   ;;  %v26289_v14 = vld [vmem:[%s38719_s3 + $0x420] ss:$24 sps:$4 sm:$0xff]   ;;  %s20804_s20 = sshll.u32 %s38739_s6, 1 }
  0x69   : > { %s452_s18 = scalar_lea.vmem %s38723_s7, %s20804_s20 }
  0x6a   : > { %2262 = vmatpush1.bf16.msra.mxu1 %v26218_v15  ;;  %v26292_v15 = vld [vmem:[%s38719_s3 + $0x1920] ss:$24 sps:$4 sm:$0xff]  }
  0x6b   : > { %6807 = vmatpush1.bf16.msra.mxu0 %v26219_v16  ;;  %2263 = vmatprep.subr.bf16.mxu1 %v26220_v17  ;;  %v26297_v16 = vld [vmem:[%s38719_s3 + $0x454] ss:$24 sps:$4 sm:$0xff]  }
  0x6c   : > { %6808 = vmatprep.subr.bf16.mxu0 %v26222_v18  ;;  %v26300_v17 = vld [vmem:[%s38719_s3 + $0x1954] ss:$24 sps:$4 sm:$0xff]  }
  0x6d   : > { %v26351_v18 = vld [vmem:[%s30450_s11 + $0xc] ss:$48 sps:$4 sm:$0xff]  }
  0x6e   : > { %2264 = vmatpush1.bf16.msra.mxu1 %v26224_v19  ;;  %v26295_v19 = vld [vmem:[%s38719_s3 + $0x450] ss:$24 sps:$4 sm:$0xff]  }
  0x6f   : > { %6809 = vmatpush1.bf16.msra.mxu0 %v26225_v20  ;;  %2265 = vmatprep.subr.bf16.mxu1 %v26226_v22  ;;  %v26298_v20 = vld [vmem:[%s38719_s3 + $0x1950] ss:$24 sps:$4 sm:$0xff]  }
  0x70   : > { %6810 = vmatprep.subr.bf16.mxu0 %v26228_v23  ;;  %v5221_v22 = vld [vmem:[%s30450_s11 + $0x28] sm:$0x11]  ;;  %v5224_v23 = vld [vmem:[%s30450_s11 + $0x40] sm:$0xee] }
  0x71   : > { %v5253_v26 = vrot.slane %v5221_v22, 5  ;;  %v21974_v27 = vrot.slane %v5224_v23, 9  ;;  %v5222_v22 = vld [vmem:[%s30450_s11 + $0x30] sm:$0xee]  ;;  %v5225_v23 = vld [vmem:[%s30450_s11 + $0x48] sm:$0x11] }
  0x72   : > { %2266 = vmatpush1.bf16.msra.mxu1 %v26230_v32 }
  0x73   : > { %6811 = vmatpush1.bf16.msra.mxu0 %v26231_v34  ;;  %2267 = vmatprep.subr.bf16.mxu1 %v26232_v36  ;;  %v30629_v32 = vsel %vm30463_vm2, %v21971_v25, %v5253_v26  ;;  %v30633_v33 = vsel %vm30463_vm2, %v21974_v27, %v5265_v31  ;;  %v26301_v34 = vld [vmem:[%s38719_s3 + $0x480] ss:$24 sps:$4 sm:$0xff]   ;;  %v5245_v25 = vrot.slane %v5219_v21, 5  ;;  %v21972_v26 = vrot.slane %v5222_v22, 9  ;;  %v26378_v31 = vld [vmem:[%s38719_s3 + $0x6c4] ss:$24 sps:$4 sm:$0xff]  }
  0x74   : > { %6812 = vmatprep.subr.bf16.mxu0 %v26234_v37  ;;  %v30643_v36 = vcombine.high %v30629_v32, %v30633_v33  ;;  %v26309_v37 = vld [vmem:[%s38719_s3 + $0x4b4] ss:$24 sps:$4 sm:$0xff]   ;;  %v5257_v27 = vrot.slane %v5225_v23, 5  ;;  %v26445_v21 = vld [vmem:[%s38719_s3 + $0x14e0] ss:$24 sps:$4 sm:$0xff]  }
  0x75   : > { %v26453_v22 = vld [vmem:[%s38719_s3 + $0xc] ss:$24 sps:$4 sm:$0xff]  }
  0x76   : > { %2268 = vmatpush1.bf16.msra.mxu1 %v26236_v40  ;;  %v26307_v40 = vld [vmem:[%s38719_s3 + $0x4b0] ss:$24 sps:$4 sm:$0xff]   ;;  %v26456_v23 = vld [vmem:[%s38719_s3 + $0x1514] ss:$24 sps:$4 sm:$0xff]  }
  0x77   : > { %6813 = vmatpush1.bf16.msra.mxu0 %v26237_v41  ;;  %2269 = vmatprep.subr.bf16.mxu1 %v26238_v42  ;;  %v26310_v41 = vld [vmem:[%s38719_s3 + $0x19b0] ss:$24 sps:$4 sm:$0xff]   ;;  %v26315_v42 = vld [vmem:[%s38719_s3 + $0x4e4] ss:$24 sps:$4 sm:$0xff]  }
  0x78   : > { %6814 = vmatprep.subr.bf16.mxu0 %v26240_v43  ;;  %v26318_v43 = vld [vmem:[%s38719_s3 + $0x19e4] ss:$24 sps:$4 sm:$0xff]  }
  0x7a   : > { %2270 = vmatpush1.bf16.msra.mxu1 %v26242_v44  ;;  %v26313_v44 = vld [vmem:[%s38719_s3 + $0x4e0] ss:$24 sps:$4 sm:$0xff]  }
  0x7b   : > { %6815 = vmatpush1.bf16.msra.mxu0 %v26243_v45  ;;  %2271 = vmatprep.subr.bf16.mxu1 %v26244_v46  ;;  %v26316_v45 = vld [vmem:[%s38719_s3 + $0x19e0] ss:$24 sps:$4 sm:$0xff]   ;;  %v26321_v46 = vld [vmem:[%s38719_s3 + $0x514] ss:$24 sps:$4 sm:$0xff]  }
  0x7c   : > { %6816 = vmatprep.subr.bf16.mxu0 %v26246_v47  ;;  %v26324_v47 = vld [vmem:[%s38719_s3 + $0x1a14] ss:$24 sps:$4 sm:$0xff]  }
  0x7e   : > { %2272 = vmatpush1.bf16.msra.mxu1 %v26248_v48  ;;  %v26319_v48 = vld [vmem:[%s38719_s3 + $0x510] ss:$24 sps:$4 sm:$0xff]  }
  0x7f   : > { %6817 = vmatpush1.bf16.msra.mxu0 %v26249_v49  ;;  %2284 = vmatprep.subr.bf16.mxu1 %v26254_v50  ;;  %v26322_v49 = vld [vmem:[%s38719_s3 + $0x1a10] ss:$24 sps:$4 sm:$0xff]   ;;  %v26327_v50 = vld [vmem:[%s38719_s3 + $0x544] ss:$24 sps:$4 sm:$0xff]  }
  0x80   : > { %6829 = vmatprep.subr.bf16.mxu0 %v26257_v51  ;;  %v26330_v51 = vld [vmem:[%s38719_s3 + $0x1a44] ss:$24 sps:$4 sm:$0xff]  }
  0x81   : > { %2274 = vmatmul.mubr.bf16.vlgmr.msra.gmra.mrb[0].mxu1 %v26258_v53  ;;  %v26328_v53 = vld [vmem:[%s38719_s3 + $0x1a40] ss:$24 sps:$4 sm:$0xff]  }
  0x82   : > { %6819 = vmatmul.mubr.bf16.vlgmr.msra.gmra.mrb[0].mxu0 %v30526_v54  ;;  %2285 = vmatpush1.bf16.msra.mxu1 %v26252_v52  ;;  %v26325_v52 = vld [vmem:[%s38719_s3 + $0x540] ss:$24 sps:$4 sm:$0xff]  }
  0x83   : > { %6830 = vmatpush1.bf16.msra.mxu0 %v26255_v55  ;;  %2286 = vmatprep.subr.bf16.mxu1 %v26261_v56  ;;  %v26333_v55 = vld [vmem:[%s38719_s3 + $0x574] ss:$24 sps:$4 sm:$0xff]  }
  0x84   : > { %6831 = vmatprep.subr.bf16.mxu0 %v26264_v57  ;;  %2316 = vmatprep.mubr.bf16.mxu1 %v26351_v18  ;;  %v26336_v56 = vld [vmem:[%s38719_s3 + $0x1a74] ss:$24 sps:$4 sm:$0xff]   ;;  %v26331_v57 = vld [vmem:[%s38719_s3 + $0x570] ss:$24 sps:$4 sm:$0xff]  }
  0x85   : > { %6861 = vmatprep.mubr.bf16.mxu0 %v30643_v36  ;;  %v26372_v18 = vld [vmem:[%s38719_s3 + $0x694] ss:$24 sps:$4 sm:$0xff]  }
  0x86   : > { %2287 = vmatpush1.bf16.msra.mxu1 %v26259_v58  ;;  %v26334_v58 = vld [vmem:[%s38719_s3 + $0x1a70] ss:$24 sps:$4 sm:$0xff]  }
  0x87   : > { %6832 = vmatpush1.bf16.msra.mxu0 %v26262_v59  ;;  %2288 = vmatprep.subr.bf16.mxu1 %v26267_v60  ;;  %v26339_v59 = vld [vmem:[%s38719_s3 + $0x5a4] ss:$24 sps:$4 sm:$0xff]  }
  0x88   : > { %6833 = vmatprep.subr.bf16.mxu0 %v26270_v61  ;;  %v26342_v60 = vld [vmem:[%s38719_s3 + $0x1aa4] ss:$24 sps:$4 sm:$0xff]   ;;  %v26337_v61 = vld [vmem:[%s38719_s3 + $0x5a0] ss:$24 sps:$4 sm:$0xff]  }
  0x8a   : > { %2289 = vmatpush1.bf16.msra.mxu1 %v26265_v62  ;;  %v26340_v62 = vld [vmem:[%s38719_s3 + $0x1aa0] ss:$24 sps:$4 sm:$0xff]  }
  0x8b   : > { %6834 = vmatpush1.bf16.msra.mxu0 %v26268_v63  ;;  %2290 = vmatprep.subr.bf16.mxu1 %v26273_v0  ;;  %v26345_v63 = vld [vmem:[%s38719_s3 + $0x5d4] ss:$24 sps:$4 sm:$0xff]  }
  0x8c   : > { %6835 = vmatprep.subr.bf16.mxu0 %v26276_v1  ;;  %v26348_v0 = vld [vmem:[%s38719_s3 + $0x1ad4] ss:$24 sps:$4 sm:$0xff]   ;;  %v26343_v1 = vld [vmem:[%s38719_s3 + $0x5d0] ss:$24 sps:$4 sm:$0xff]  }
  0x8e   : > { %2291 = vmatpush1.bf16.msra.mxu1 %v26271_v2  ;;  %v26346_v2 = vld [vmem:[%s38719_s3 + $0x1ad0] ss:$24 sps:$4 sm:$0xff]  }
  0x8f   : > { %6836 = vmatpush1.bf16.msra.mxu0 %v26274_v3  ;;  %2292 = vmatprep.subr.bf16.mxu1 %v26279_v4  ;;  %v26354_v3 = vld [vmem:[%s38719_s3 + $0x604] ss:$24 sps:$4 sm:$0xff]   ;;  %v26357_v4 = vld [vmem:[%s38719_s3 + $0x1214] ss:$24 sps:$4 sm:$0xff]  }
  0x90   : > { %6837 = vmatprep.subr.bf16.mxu0 %v26282_v5  ;;  %v26349_v5 = vld [vmem:[%s30450_s11 + $0x8] ss:$48 sps:$4 sm:$0xff]  }
  0x92   : > { %2293 = vmatpush1.bf16.msra.mxu1 %v26277_v6  ;;  %v30739_v6 = vcombine.low %v30629_v32, %v30633_v33  ;;  %v30798_v33 = vsel %vm30463_vm2, %v21972_v26, %v5257_v27  ;;  %v26454_v27 = vld [vmem:[%s38719_s3 + $0x1510] ss:$24 sps:$4 sm:$0xff]  }
  0x93   : > { %6838 = vmatpush1.bf16.msra.mxu0 %v26280_v7  ;;  %2294 = vmatprep.subr.bf16.mxu1 %v26285_v8  ;;  %v26352_v7 = vld [vmem:[%s38719_s3 + $0x600] ss:$24 sps:$4 sm:$0xff]   ;;  %v26355_v8 = vld [vmem:[%s38719_s3 + $0x1210] ss:$24 sps:$4 sm:$0xff]  }
  0x94   : > { %6839 = vmatprep.subr.bf16.mxu0 %v26288_v9  ;;  %v26360_v9 = vld [vmem:[%s38719_s3 + $0x634] ss:$24 sps:$4 sm:$0xff]  }
  0x96   : > { %2295 = vmatpush1.bf16.msra.mxu1 %v26283_v10  ;;  %v26363_v10 = vld [vmem:[%s38719_s3 + $0x1244] ss:$24 sps:$4 sm:$0xff]  }
  0x97   : > { %6840 = vmatpush1.bf16.msra.mxu0 %v26286_v11  ;;  %2296 = vmatprep.subr.bf16.mxu1 %v26291_v12  ;;  %v26358_v11 = vld [vmem:[%s38719_s3 + $0x630] ss:$24 sps:$4 sm:$0xff]   ;;  %v26361_v12 = vld [vmem:[%s38719_s3 + $0x1240] ss:$24 sps:$4 sm:$0xff]  }
  0x98   : > { %6841 = vmatprep.subr.bf16.mxu0 %v26294_v13  ;;  %v26366_v13 = vld [vmem:[%s38719_s3 + $0x664] ss:$24 sps:$4 sm:$0xff]  }
  0x9a   : > { %2297 = vmatpush1.bf16.msra.mxu1 %v26289_v14  ;;  %v26369_v14 = vld [vmem:[%s38719_s3 + $0x1274] ss:$24 sps:$4 sm:$0xff]  }
  0x9b   : > { %6842 = vmatpush1.bf16.msra.mxu0 %v26292_v15  ;;  %2298 = vmatprep.subr.bf16.mxu1 %v26297_v16  ;;  %v26364_v15 = vld [vmem:[%s38719_s3 + $0x660] ss:$24 sps:$4 sm:$0xff]   ;;  %v26367_v16 = vld [vmem:[%s38719_s3 + $0x1270] ss:$24 sps:$4 sm:$0xff]  }
  0x9c   : > { %6843 = vmatprep.subr.bf16.mxu0 %v26300_v17  ;;  %v26450_v17 = vld [vmem:[%s30450_s11 + $0x14] ss:$48 sps:$4 sm:$0xff]  }
  0x9e   : > { %2299 = vmatpush1.bf16.msra.mxu1 %v26295_v19  ;;  %v26375_v19 = vld [vmem:[%s38719_s3 + $0x12a4] ss:$24 sps:$4 sm:$0xff]  }
  0x9f   : > { %6844 = vmatpush1.bf16.msra.mxu0 %v26298_v20  ;;  %2300 = vmatprep.subr.bf16.mxu1 %v26303_v29  ;;  %v5216_v20 = vld [vmem:[%s30450_s11] sm:$0xee] }
  0xa0   : > { %6845 = vmatprep.subr.bf16.mxu0 %v26306_v30  ;;  %v21969_v24 = vrot.slane %v5216_v20, 9  ;;  %v26370_v29 = vld [vmem:[%s38719_s3 + $0x690] ss:$24 sps:$4 sm:$0xff]   ;;  %v26373_v30 = vld [vmem:[%s38719_s3 + $0x12a0] ss:$24 sps:$4 sm:$0xff]  }
  0xa1   : > { %v26442_v20 = vld [vmem:[%s38719_s3 + $0x8d0] ss:$24 sps:$4 sm:$0xff]  }
  0xa2   : > { %2301 = vmatpush1.bf16.msra.mxu1 %v26301_v34  ;;  %v30794_v32 = vsel %vm30463_vm2, %v21969_v24, %v5245_v25  ;;  %v26381_v34 = vld [vmem:[%s38719_s3 + $0x12d4] ss:$24 sps:$4 sm:$0xff]   ;;  %v26451_v25 = vld [vmem:[%s38719_s3 + $0x8] ss:$24 sps:$4 sm:$0xff]  }
  0xa3   : > { %6846 = vmatpush1.bf16.msra.mxu0 %v26304_v35  ;;  %2302 = vmatprep.subr.bf16.mxu1 %v26309_v37  ;;  %v30805_v35 = vcombine.high %v30794_v32, %v30798_v33  ;;  %v26376_v37 = vld [vmem:[%s38719_s3 + $0x6c0] ss:$24 sps:$4 sm:$0xff]   ;;  %v30958_v26 = vcombine.low %v30794_v32, %v30798_v33  ;;  %v26465_v33 = vld [vmem:[%s38719_s3 + $0x6c] ss:$24 sps:$4 sm:$0xff]  }
  0xa4   : > { %6847 = vmatprep.subr.bf16.mxu0 %v26312_v38  ;;  %v26379_v38 = vld [vmem:[%s38719_s3 + $0x12d0] ss:$24 sps:$4 sm:$0xff]   ;;  %v26460_v32 = vld [vmem:[%s38719_s3 + $0x1540] ss:$24 sps:$4 sm:$0xff]  }
  0xa5   : > { %v26448_v24 = vld [vmem:[%s30450_s11 + $0x10] ss:$48 sps:$4 sm:$0xff]  }
  0xa6   : > { %2303 = vmatpush1.bf16.msra.mxu1 %v26307_v40  ;;  %v26384_v40 = vld [vmem:[%s38719_s3 + $0x6f4] ss:$24 sps:$4 sm:$0xff]  }
  0xa7   : > { %6848 = vmatpush1.bf16.msra.mxu0 %v26310_v41  ;;  %2304 = vmatprep.subr.bf16.mxu1 %v26315_v42  ;;  %v26387_v41 = vld [vmem:[%s38719_s3 + $0x1304] ss:$24 sps:$4 sm:$0xff]   ;;  %v26382_v42 = vld [vmem:[%s38719_s3 + $0x6f0] ss:$24 sps:$4 sm:$0xff]  }
  0xa8   : > { %6849 = vmatprep.subr.bf16.mxu0 %v26318_v43  ;;  %v26385_v43 = vld [vmem:[%s38719_s3 + $0x1300] ss:$24 sps:$4 sm:$0xff]  }
  0xaa   : > { %2305 = vmatpush1.bf16.msra.mxu1 %v26313_v44  ;;  %v26390_v44 = vld [vmem:[%s38719_s3 + $0x724] ss:$24 sps:$4 sm:$0xff]  }
  0xab   : > { %6850 = vmatpush1.bf16.msra.mxu0 %v26316_v45  ;;  %2306 = vmatprep.subr.bf16.mxu1 %v26321_v46  ;;  %v26393_v45 = vld [vmem:[%s38719_s3 + $0x1334] ss:$24 sps:$4 sm:$0xff]   ;;  %v26388_v46 = vld [vmem:[%s38719_s3 + $0x720] ss:$24 sps:$4 sm:$0xff]  }
  0xac   : > { %6851 = vmatprep.subr.bf16.mxu0 %v26324_v47  ;;  %v26391_v47 = vld [vmem:[%s38719_s3 + $0x1330] ss:$24 sps:$4 sm:$0xff]  }
  0xae   : > { %2307 = vmatpush1.bf16.msra.mxu1 %v26319_v48  ;;  %v26396_v48 = vld [vmem:[%s38719_s3 + $0x754] ss:$24 sps:$4 sm:$0xff]  }
  0xaf   : > { %6852 = vmatpush1.bf16.msra.mxu0 %v26322_v49  ;;  %2308 = vmatprep.subr.bf16.mxu1 %v26327_v50  ;;  %v26399_v49 = vld [vmem:[%s38719_s3 + $0x1364] ss:$24 sps:$4 sm:$0xff]   ;;  %v26394_v50 = vld [vmem:[%s38719_s3 + $0x750] ss:$24 sps:$4 sm:$0xff]  }
  0xb0   : > { %6853 = vmatprep.subr.bf16.mxu0 %v26330_v51  ;;  %v26397_v51 = vld [vmem:[%s38719_s3 + $0x1360] ss:$24 sps:$4 sm:$0xff]  }
  0xb2   : > { %2309 = vmatpush1.bf16.msra.mxu1 %v26325_v52  ;;  %v26402_v52 = vld [vmem:[%s38719_s3 + $0x784] ss:$24 sps:$4 sm:$0xff]  }
  0xb3   : > { %6854 = vmatpush1.bf16.msra.mxu0 %v26328_v53  ;;  %2310 = vmatprep.subr.bf16.mxu1 %v26333_v55  ;;  %v26405_v53 = vld [vmem:[%s38719_s3 + $0x1394] ss:$24 sps:$4 sm:$0xff]   ;;  %v26400_v55 = vld [vmem:[%s38719_s3 + $0x780] ss:$24 sps:$4 sm:$0xff]  }
  0xb4   : > { %6855 = vmatprep.subr.bf16.mxu0 %v26336_v56  ;;  %v26403_v56 = vld [vmem:[%s38719_s3 + $0x1390] ss:$24 sps:$4 sm:$0xff]  }
  0xb6   : > { %2311 = vmatpush1.bf16.msra.mxu1 %v26331_v57  ;;  %v26408_v57 = vld [vmem:[%s38719_s3 + $0x7b4] ss:$24 sps:$4 sm:$0xff]  }
  0xb7   : > { %6856 = vmatpush1.bf16.msra.mxu0 %v26334_v58  ;;  %2312 = vmatprep.subr.bf16.mxu1 %v26339_v59  ;;  %v26411_v58 = vld [vmem:[%s38719_s3 + $0x13c4] ss:$24 sps:$4 sm:$0xff]   ;;  %v26406_v59 = vld [vmem:[%s38719_s3 + $0x7b0] ss:$24 sps:$4 sm:$0xff]  }
  0xb8   : > { %6857 = vmatprep.subr.bf16.mxu0 %v26342_v60  ;;  %v26409_v60 = vld [vmem:[%s38719_s3 + $0x13c0] ss:$24 sps:$4 sm:$0xff]  }
  0xba   : > { %2313 = vmatpush1.bf16.msra.mxu1 %v26337_v61  ;;  %v26414_v61 = vld [vmem:[%s38719_s3 + $0x7e4] ss:$24 sps:$4 sm:$0xff]  }
  0xbb   : > { %6858 = vmatpush1.bf16.msra.mxu0 %v26340_v62  ;;  %2314 = vmatprep.subr.bf16.mxu1 %v26345_v63  ;;  %v26417_v62 = vld [vmem:[%s38719_s3 + $0x13f4] ss:$24 sps:$4 sm:$0xff]   ;;  %v26412_v63 = vld [vmem:[%s38719_s3 + $0x7e0] ss:$24 sps:$4 sm:$0xff]  }
  0xbc   : > { %6859 = vmatprep.subr.bf16.mxu0 %v26348_v0  ;;  %v26415_v0 = vld [vmem:[%s38719_s3 + $0x13f0] ss:$24 sps:$4 sm:$0xff]  }
  0xbe   : > { %2315 = vmatpush1.bf16.msra.mxu1 %v26343_v1  ;;  %v26420_v1 = vld [vmem:[%s38719_s3 + $0x814] ss:$24 sps:$4 sm:$0xff]  }
  0xbf   : > { %6860 = vmatpush1.bf16.msra.mxu0 %v26346_v2  ;;  %2327 = vmatprep.subr.bf16.mxu1 %v26354_v3  ;;  %v26423_v2 = vld [vmem:[%s38719_s3 + $0x1424] ss:$24 sps:$4 sm:$0xff]   ;;  %v26418_v3 = vld [vmem:[%s38719_s3 + $0x810] ss:$24 sps:$4 sm:$0xff]  }
  0xc0   : > { %7001 = vmatprep.subr.bf16.mxu0 %v26357_v4  ;;  %v26421_v4 = vld [vmem:[%s38719_s3 + $0x1420] ss:$24 sps:$4 sm:$0xff]  }
  0xc1   : > { %2317 = vmatmul.mubr.bf16.vlgmr.msra.gmra.mrb[0].mxu1 %v26349_v5  ;;  %v26426_v5 = vld [vmem:[%s38719_s3 + $0x844] ss:$24 sps:$4 sm:$0xff]  }
  0xc2   : > { %6862 = vmatmul.mubr.bf16.vlgmr.msra.gmra.mrb[0].mxu0 %v30739_v6  ;;  %2328 = vmatpush1.bf16.msra.mxu1 %v26352_v7  ;;  %v26429_v7 = vld [vmem:[%s38719_s3 + $0x1454] ss:$24 sps:$4 sm:$0xff]  }
  0xc3   : > { %7002 = vmatpush1.bf16.msra.mxu0 %v26355_v8  ;;  %2329 = vmatprep.subr.bf16.mxu1 %v26360_v9  ;;  %v26424_v8 = vld [vmem:[%s38719_s3 + $0x840] ss:$24 sps:$4 sm:$0xff]   ;;  %v26427_v9 = vld [vmem:[%s38719_s3 + $0x1450] ss:$24 sps:$4 sm:$0xff]  }
  0xc4   : > { %7003 = vmatprep.subr.bf16.mxu0 %v26363_v10  ;;  %2359 = vmatprep.mubr.bf16.mxu1 %v26450_v17  ;;  %v26432_v10 = vld [vmem:[%s38719_s3 + $0x874] ss:$24 sps:$4 sm:$0xff]   ;;  %v26439_v17 = vld [vmem:[%s38719_s3 + $0x14b0] ss:$24 sps:$4 sm:$0xff]  }
  0xc5   : > { %7033 = vmatprep.mubr.bf16.mxu0 %v30805_v35 }
  0xc6   : > { %2330 = vmatpush1.bf16.msra.mxu1 %v26358_v11  ;;  %v26435_v11 = vld [vmem:[%s38719_s3 + $0x1484] ss:$24 sps:$4 sm:$0xff]  }
  0xc7   : > { %7004 = vmatpush1.bf16.msra.mxu0 %v26361_v12  ;;  %2331 = vmatprep.subr.bf16.mxu1 %v26366_v13  ;;  %v26430_v12 = vld [vmem:[%s38719_s3 + $0x870] ss:$24 sps:$4 sm:$0xff]   ;;  %v26433_v13 = vld [vmem:[%s38719_s3 + $0x1480] ss:$24 sps:$4 sm:$0xff]  }
  0xc8   : > { %7005 = vmatprep.subr.bf16.mxu0 %v26369_v14  ;;  %v26438_v14 = vld [vmem:[%s38719_s3 + $0x8a4] ss:$24 sps:$4 sm:$0xff]  }
  0xca   : > { %2332 = vmatpush1.bf16.msra.mxu1 %v26364_v15  ;;  %v26441_v15 = vld [vmem:[%s38719_s3 + $0x14b4] ss:$24 sps:$4 sm:$0xff]  }
  0xcb   : > { %7006 = vmatpush1.bf16.msra.mxu0 %v26367_v16  ;;  %2333 = vmatprep.subr.bf16.mxu1 %v26372_v18  ;;  %v26436_v16 = vld [vmem:[%s38719_s3 + $0x8a0] ss:$24 sps:$4 sm:$0xff]   ;;  %v26444_v18 = vld [vmem:[%s38719_s3 + $0x8d4] ss:$24 sps:$4 sm:$0xff]  }
  0xcc   : > { %7007 = vmatprep.subr.bf16.mxu0 %v26375_v19  ;;  %v26447_v19 = vld [vmem:[%s38719_s3 + $0x14e4] ss:$24 sps:$4 sm:$0xff]  }
  0xce   : > { %2334 = vmatpush1.bf16.msra.mxu1 %v26370_v29  ;;  %v26459_v29 = vld [vmem:[%s38719_s3 + $0x3c] ss:$24 sps:$4 sm:$0xff]  }
  0xcf   : > { %7008 = vmatpush1.bf16.msra.mxu0 %v26373_v30  ;;  %2335 = vmatprep.subr.bf16.mxu1 %v26378_v31  ;;  %v26462_v30 = vld [vmem:[%s38719_s3 + $0x1544] ss:$24 sps:$4 sm:$0xff]   ;;  %v26457_v31 = vld [vmem:[%s38719_s3 + $0x38] ss:$24 sps:$4 sm:$0xff]  }
  0xd0   : > { %7009 = vmatprep.subr.bf16.mxu0 %v26381_v34  ;;  %v26468_v34 = vld [vmem:[%s38719_s3 + $0x1574] ss:$24 sps:$4 sm:$0xff]  }
  0xd2   : > { %2336 = vmatpush1.bf16.msra.mxu1 %v26376_v37  ;;  %v30069_v37 = vld [vmem:[%s30450_s11 + $0x4] ss:$48 sps:$4 sm:$0xff]  }
  0xd3   : > { %7010 = vmatpush1.bf16.msra.mxu0 %v26379_v38  ;;  %2337 = vmatprep.subr.bf16.mxu1 %v26384_v40  ;;  %v26463_v38 = vld [vmem:[%s38719_s3 + $0x68] ss:$24 sps:$4 sm:$0xff]  }
  0xd4   : > { %7011 = vmatprep.subr.bf16.mxu0 %v26387_v41  ;;  %v26466_v40 = vld [vmem:[%s38719_s3 + $0x1570] ss:$24 sps:$4 sm:$0xff]   ;;  %v26471_v41 = vld [vmem:[%s38719_s3 + $0x9c] ss:$24 sps:$4 sm:$0xff]  }
  0xd6   : > { %2338 = vmatpush1.bf16.msra.mxu1 %v26382_v42  ;;  %v26474_v42 = vld [vmem:[%s38719_s3 + $0x15a4] ss:$24 sps:$4 sm:$0xff]  }
  0xd7   : > { %7012 = vmatpush1.bf16.msra.mxu0 %v26385_v43  ;;  %2339 = vmatprep.subr.bf16.mxu1 %v26390_v44  ;;  %v26469_v43 = vld [vmem:[%s38719_s3 + $0x98] ss:$24 sps:$4 sm:$0xff]  }
  0xd8   : > { %7013 = vmatprep.subr.bf16.mxu0 %v26393_v45  ;;  %v26472_v44 = vld [vmem:[%s38719_s3 + $0x15a0] ss:$24 sps:$4 sm:$0xff]   ;;  %v26477_v45 = vld [vmem:[%s38719_s3 + $0xcc] ss:$24 sps:$4 sm:$0xff]  }
  0xda   : > { %2340 = vmatpush1.bf16.msra.mxu1 %v26388_v46  ;;  %v26480_v46 = vld [vmem:[%s38719_s3 + $0x15d4] ss:$24 sps:$4 sm:$0xff]  }
  0xdb   : > { %7014 = vmatpush1.bf16.msra.mxu0 %v26391_v47  ;;  %2341 = vmatprep.subr.bf16.mxu1 %v26396_v48  ;;  %v26475_v47 = vld [vmem:[%s38719_s3 + $0xc8] ss:$24 sps:$4 sm:$0xff]  }
  0xdc   : > { %7015 = vmatprep.subr.bf16.mxu0 %v26399_v49  ;;  %v26478_v48 = vld [vmem:[%s38719_s3 + $0x15d0] ss:$24 sps:$4 sm:$0xff]   ;;  %v26483_v49 = vld [vmem:[%s38719_s3 + $0xfc] ss:$24 sps:$4 sm:$0xff]  }
  0xde   : > { %2342 = vmatpush1.bf16.msra.mxu1 %v26394_v50  ;;  %v26486_v50 = vld [vmem:[%s38719_s3 + $0x1604] ss:$24 sps:$4 sm:$0xff]  }
  0xdf   : > { %7016 = vmatpush1.bf16.msra.mxu0 %v26397_v51  ;;  %2343 = vmatprep.subr.bf16.mxu1 %v26402_v52  ;;  %v26481_v51 = vld [vmem:[%s38719_s3 + $0xf8] ss:$24 sps:$4 sm:$0xff]  }
  0xe0   : > { %7017 = vmatprep.subr.bf16.mxu0 %v26405_v53  ;;  %v26484_v52 = vld [vmem:[%s38719_s3 + $0x1600] ss:$24 sps:$4 sm:$0xff]   ;;  %v26489_v53 = vld [vmem:[%s38719_s3 + $0x12c] ss:$24 sps:$4 sm:$0xff]  }
  0xe2   : > { %2344 = vmatpush1.bf16.msra.mxu1 %v26400_v55  ;;  %v26492_v55 = vld [vmem:[%s38719_s3 + $0x1634] ss:$24 sps:$4 sm:$0xff]  }
  0xe3   : > { %7018 = vmatpush1.bf16.msra.mxu0 %v26403_v56  ;;  %2345 = vmatprep.subr.bf16.mxu1 %v26408_v57  ;;  %v26487_v56 = vld [vmem:[%s38719_s3 + $0x128] ss:$24 sps:$4 sm:$0xff]  }
  0xe4   : > { %7019 = vmatprep.subr.bf16.mxu0 %v26411_v58  ;;  %v26490_v57 = vld [vmem:[%s38719_s3 + $0x1630] ss:$24 sps:$4 sm:$0xff]   ;;  %v26495_v58 = vld [vmem:[%s38719_s3 + $0x15c] ss:$24 sps:$4 sm:$0xff]  }
  0xe6   : > { %2346 = vmatpush1.bf16.msra.mxu1 %v26406_v59  ;;  %v26498_v59 = vld [vmem:[%s38719_s3 + $0x1664] ss:$24 sps:$4 sm:$0xff]  }
  0xe7   : > { %7020 = vmatpush1.bf16.msra.mxu0 %v26409_v60  ;;  %2347 = vmatprep.subr.bf16.mxu1 %v26414_v61  ;;  %v26493_v60 = vld [vmem:[%s38719_s3 + $0x158] ss:$24 sps:$4 sm:$0xff]  }
  0xe8   : > { %7021 = vmatprep.subr.bf16.mxu0 %v26417_v62  ;;  %v26496_v61 = vld [vmem:[%s38719_s3 + $0x1660] ss:$24 sps:$4 sm:$0xff]   ;;  %v26501_v62 = vld [vmem:[%s38719_s3 + $0x18c] ss:$24 sps:$4 sm:$0xff]  }
  0xea   : > { %2348 = vmatpush1.bf16.msra.mxu1 %v26412_v63  ;;  %v26504_v63 = vld [vmem:[%s38719_s3 + $0x1694] ss:$24 sps:$4 sm:$0xff]  }
  0xeb   : > { %7022 = vmatpush1.bf16.msra.mxu0 %v26415_v0  ;;  %2349 = vmatprep.subr.bf16.mxu1 %v26420_v1  ;;  %v26499_v0 = vld [vmem:[%s38719_s3 + $0x188] ss:$24 sps:$4 sm:$0xff]  }
  0xec   : > { %7023 = vmatprep.subr.bf16.mxu0 %v26423_v2  ;;  %v26502_v1 = vld [vmem:[%s38719_s3 + $0x1690] ss:$24 sps:$4 sm:$0xff]   ;;  %v26507_v2 = vld [vmem:[%s38719_s3 + $0x1bc] ss:$24 sps:$4 sm:$0xff]  }
  0xee   : > { %2350 = vmatpush1.bf16.msra.mxu1 %v26418_v3  ;;  %v26510_v3 = vld [vmem:[%s38719_s3 + $0x16c4] ss:$24 sps:$4 sm:$0xff]  }
  0xef   : > { %7024 = vmatpush1.bf16.msra.mxu0 %v26421_v4  ;;  %2351 = vmatprep.subr.bf16.mxu1 %v26426_v5  ;;  %v26505_v4 = vld [vmem:[%s38719_s3 + $0x1b8] ss:$24 sps:$4 sm:$0xff]  }
  0xf0   : > { %7025 = vmatprep.subr.bf16.mxu0 %v26429_v7  ;;  %v26508_v5 = vld [vmem:[%s38719_s3 + $0x16c0] ss:$24 sps:$4 sm:$0xff]   ;;  %v26513_v7 = vld [vmem:[%s38719_s3 + $0x1ec] ss:$24 sps:$4 sm:$0xff]  }
  0xf2   : > { %2352 = vmatpush1.bf16.msra.mxu1 %v26424_v8  ;;  %v26516_v8 = vld [vmem:[%s38719_s3 + $0x16f4] ss:$24 sps:$4 sm:$0xff]  }
  0xf3   : > { %7026 = vmatpush1.bf16.msra.mxu0 %v26427_v9  ;;  %2353 = vmatprep.subr.bf16.mxu1 %v26432_v10  ;;  %v26511_v9 = vld [vmem:[%s38719_s3 + $0x1e8] ss:$24 sps:$4 sm:$0xff]  }
  0xf4   : > { %7027 = vmatprep.subr.bf16.mxu0 %v26435_v11  ;;  %v26514_v10 = vld [vmem:[%s38719_s3 + $0x16f0] ss:$24 sps:$4 sm:$0xff]   ;;  %v26519_v11 = vld [vmem:[%s38719_s3 + $0x21c] ss:$24 sps:$4 sm:$0xff]  }
  0xf6   : > { %2354 = vmatpush1.bf16.msra.mxu1 %v26430_v12  ;;  %v26522_v12 = vld [vmem:[%s38719_s3 + $0x1724] ss:$24 sps:$4 sm:$0xff]  }
  0xf7   : > { %7028 = vmatpush1.bf16.msra.mxu0 %v26433_v13  ;;  %2355 = vmatprep.subr.bf16.mxu1 %v26438_v14  ;;  %v26517_v13 = vld [vmem:[%s38719_s3 + $0x218] ss:$24 sps:$4 sm:$0xff]  }
  0xf8   : > { %7029 = vmatprep.subr.bf16.mxu0 %v26441_v15  ;;  %v26520_v14 = vld [vmem:[%s38719_s3 + $0x1720] ss:$24 sps:$4 sm:$0xff]   ;;  %v26525_v15 = vld [vmem:[%s38719_s3 + $0x24c] ss:$24 sps:$4 sm:$0xff]  }
  0xfa   : > { %2356 = vmatpush1.bf16.msra.mxu1 %v26436_v16  ;;  %v26528_v16 = vld [vmem:[%s38719_s3 + $0x1754] ss:$24 sps:$4 sm:$0xff]  }
  0xfb   : > { %7030 = vmatpush1.bf16.msra.mxu0 %v26439_v17  ;;  %2357 = vmatprep.subr.bf16.mxu1 %v26444_v18  ;;  %v26523_v17 = vld [vmem:[%s38719_s3 + $0x248] ss:$24 sps:$4 sm:$0xff]  }
  0xfc   : > { %7031 = vmatprep.subr.bf16.mxu0 %v26447_v19  ;;  %v26526_v18 = vld [vmem:[%s38719_s3 + $0x1750] ss:$24 sps:$4 sm:$0xff]   ;;  %v26531_v19 = vld [vmem:[%s38719_s3 + $0x27c] ss:$24 sps:$4 sm:$0xff]  }
  0xfe   : > { %2358 = vmatpush1.bf16.msra.mxu1 %v26442_v20  ;;  %v26534_v20 = vld [vmem:[%s38719_s3 + $0x1784] ss:$24 sps:$4 sm:$0xff]  }
  0xff   : > { %7032 = vmatpush1.bf16.msra.mxu0 %v26445_v21  ;;  %2370 = vmatprep.subr.bf16.mxu1 %v26453_v22  ;;  %v26529_v21 = vld [vmem:[%s38719_s3 + $0x278] ss:$24 sps:$4 sm:$0xff]  }
 0x100   : > { %7044 = vmatprep.subr.bf16.mxu0 %v26456_v23  ;;  %v26532_v22 = vld [vmem:[%s38719_s3 + $0x1780] ss:$24 sps:$4 sm:$0xff]   ;;  %v26537_v23 = vld [vmem:[%s38719_s3 + $0x2ac] ss:$24 sps:$4 sm:$0xff]  }
 0x101   : > { %2360 = vmatmul.mubr.bf16.vlgmr.msra.gmra.mrb[0].mxu1 %v26448_v24  ;;  %v26540_v24 = vld [vmem:[%s38719_s3 + $0x17b4] ss:$24 sps:$4 sm:$0xff]  }
 0x102   : > { %7034 = vmatmul.mubr.bf16.vlgmr.msra.gmra.mrb[4].mxu0 %v30958_v26  ;;  %2371 = vmatpush1.bf16.msra.mxu1 %v26451_v25  ;;  %v26535_v25 = vld [vmem:[%s38719_s3 + $0x2a8] ss:$24 sps:$4 sm:$0xff]  }
 0x103   : > { %7045 = vmatpush1.bf16.msra.mxu0 %v26454_v27  ;;  %2372 = vmatprep.subr.bf16.mxu1 %v26459_v29  ;;  %v26538_v27 = vld [vmem:[%s38719_s3 + $0x17b0] ss:$24 sps:$4 sm:$0xff]   ;;  %v26543_v29 = vld [vmem:[%s38719_s3 + $0x2dc] ss:$24 sps:$4 sm:$0xff]  }
 0x104   : > { %7046 = vmatprep.subr.bf16.mxu0 %v26462_v30  ;;  %2402 = vmatprep.mubr.bf16.mxu1 %v30069_v37  ;;  %v26546_v30 = vld [vmem:[%s38719_s3 + $0x17e4] ss:$24 sps:$4 sm:$0xff]   ;;  %v26547_v37 = vld [vmem:[%s38719_s3 + $0x308] ss:$24 sps:$4 sm:$0xff]  }
 0x105   : > { %7076 = vmatprep.mubr.bf16.mxu0 %v30483_v39 }
 0x106   : > { %2373 = vmatpush1.bf16.msra.mxu1 %v26457_v31  ;;  %v26541_v31 = vld [vmem:[%s38719_s3 + $0x2d8] ss:$24 sps:$4 sm:$0xff]  }
 0x107   : > { %7047 = vmatpush1.bf16.msra.mxu0 %v26460_v32  ;;  %2374 = vmatprep.subr.bf16.mxu1 %v26465_v33  ;;  %v26544_v32 = vld [vmem:[%s38719_s3 + $0x17e0] ss:$24 sps:$4 sm:$0xff]   ;;  %v26549_v33 = vld [vmem:[%s38719_s3 + $0x30c] ss:$24 sps:$4 sm:$0xff]  }
 0x108   : > { %7048 = vmatprep.subr.bf16.mxu0 %v26468_v34  ;;  %v26552_v34 = vld [vmem:[%s38719_s3 + $0x1814] ss:$24 sps:$4 sm:$0xff]  }
 0x10a   : > { %2375 = vmatpush1.bf16.msra.mxu1 %v26463_v38  ;;  %v26550_v38 = vld [vmem:[%s38719_s3 + $0x1810] ss:$24 sps:$4 sm:$0xff]  }
 0x10b   : > { %7049 = vmatpush1.bf16.msra.mxu0 %v26466_v40  ;;  %2376 = vmatprep.subr.bf16.mxu1 %v26471_v41  ;;  %v26555_v40 = vld [vmem:[%s38719_s3 + $0x33c] ss:$24 sps:$4 sm:$0xff]  }
 0x10c   : > { %7050 = vmatprep.subr.bf16.mxu0 %v26474_v42  ;;  %v26558_v41 = vld [vmem:[%s38719_s3 + $0x1844] ss:$24 sps:$4 sm:$0xff]  }
 0x10d   : > { %v30070_v42 = vld [vmem:[%s30450_s11] ss:$48 sps:$4 sm:$0xff]  }
 0x10e   : > { %2377 = vmatpush1.bf16.msra.mxu1 %v26469_v43  ;;  %v26553_v43 = vld [vmem:[%s38719_s3 + $0x338] ss:$24 sps:$4 sm:$0xff]  }
 0x10f   : > { %7051 = vmatpush1.bf16.msra.mxu0 %v26472_v44  ;;  %2378 = vmatprep.subr.bf16.mxu1 %v26477_v45  ;;  %v26556_v44 = vld [vmem:[%s38719_s3 + $0x1840] ss:$24 sps:$4 sm:$0xff]   ;;  %v26561_v45 = vld [vmem:[%s38719_s3 + $0x36c] ss:$24 sps:$4 sm:$0xff]  }
 0x110   : > { %7052 = vmatprep.subr.bf16.mxu0 %v26480_v46  ;;  %v26564_v46 = vld [vmem:[%s38719_s3 + $0x1874] ss:$24 sps:$4 sm:$0xff]  }
 0x112   : > { %2379 = vmatpush1.bf16.msra.mxu1 %v26475_v47  ;;  %v30071_v47 = vld [vmem:[%s30450_s11 + $0xc] ss:$48 sps:$4 sm:$0xff]  }
 0x113   : > { %7053 = vmatpush1.bf16.msra.mxu0 %v26478_v48  ;;  %2380 = vmatprep.subr.bf16.mxu1 %v26483_v49  ;;  %v26559_v48 = vld [vmem:[%s38719_s3 + $0x368] ss:$24 sps:$4 sm:$0xff]  }
 0x114   : > { %7054 = vmatprep.subr.bf16.mxu0 %v26486_v50  ;;  %v26562_v49 = vld [vmem:[%s38719_s3 + $0x1870] ss:$24 sps:$4 sm:$0xff]   ;;  %v26567_v50 = vld [vmem:[%s38719_s3 + $0x39c] ss:$24 sps:$4 sm:$0xff]  }
 0x116   : > { %2381 = vmatpush1.bf16.msra.mxu1 %v26481_v51  ;;  %v26570_v51 = vld [vmem:[%s38719_s3 + $0x18a4] ss:$24 sps:$4 sm:$0xff]  }
 0x117   : > { %7055 = vmatpush1.bf16.msra.mxu0 %v26484_v52  ;;  %2382 = vmatprep.subr.bf16.mxu1 %v26489_v53  ;;  %v26565_v52 = vld [vmem:[%s38719_s3 + $0x398] ss:$24 sps:$4 sm:$0xff]  }
 0x118   : > { %7056 = vmatprep.subr.bf16.mxu0 %v26492_v55  ;;  %v26568_v53 = vld [vmem:[%s38719_s3 + $0x18a0] ss:$24 sps:$4 sm:$0xff]   ;;  %v26573_v55 = vld [vmem:[%s38719_s3 + $0x3cc] ss:$24 sps:$4 sm:$0xff]  }
 0x11a   : > { %2383 = vmatpush1.bf16.msra.mxu1 %v26487_v56  ;;  %v26576_v56 = vld [vmem:[%s38719_s3 + $0x18d4] ss:$24 sps:$4 sm:$0xff]  }
 0x11b   : > { %7057 = vmatpush1.bf16.msra.mxu0 %v26490_v57  ;;  %2384 = vmatprep.subr.bf16.mxu1 %v26495_v58  ;;  %v26571_v57 = vld [vmem:[%s38719_s3 + $0x3c8] ss:$24 sps:$4 sm:$0xff]  }
 0x11c   : > { %7058 = vmatprep.subr.bf16.mxu0 %v26498_v59  ;;  %v26574_v58 = vld [vmem:[%s38719_s3 + $0x18d0] ss:$24 sps:$4 sm:$0xff]   ;;  %v26579_v59 = vld [vmem:[%s38719_s3 + $0x3fc] ss:$24 sps:$4 sm:$0xff]  }
 0x11e   : > { %2385 = vmatpush1.bf16.msra.mxu1 %v26493_v60  ;;  %v26582_v60 = vld [vmem:[%s38719_s3 + $0x1904] ss:$24 sps:$4 sm:$0xff]  }
 0x11f   : > { %7059 = vmatpush1.bf16.msra.mxu0 %v26496_v61  ;;  %2386 = vmatprep.subr.bf16.mxu1 %v26501_v62  ;;  %v26577_v61 = vld [vmem:[%s38719_s3 + $0x3f8] ss:$24 sps:$4 sm:$0xff]  }
 0x120   : > { %7060 = vmatprep.subr.bf16.mxu0 %v26504_v63  ;;  %v26580_v62 = vld [vmem:[%s38719_s3 + $0x1900] ss:$24 sps:$4 sm:$0xff]   ;;  %v26585_v63 = vld [vmem:[%s38719_s3 + $0x42c] ss:$24 sps:$4 sm:$0xff]  }
 0x122   : > { %2387 = vmatpush1.bf16.msra.mxu1 %v26499_v0  ;;  %v26588_v0 = vld [vmem:[%s38719_s3 + $0x1934] ss:$24 sps:$4 sm:$0xff]  }
 0x123   : > { %7061 = vmatpush1.bf16.msra.mxu0 %v26502_v1  ;;  %2388 = vmatprep.subr.bf16.mxu1 %v26507_v2  ;;  %v26583_v1 = vld [vmem:[%s38719_s3 + $0x428] ss:$24 sps:$4 sm:$0xff]  }
 0x124   : > { %7062 = vmatprep.subr.bf16.mxu0 %v26510_v3  ;;  %v26586_v2 = vld [vmem:[%s38719_s3 + $0x1930] ss:$24 sps:$4 sm:$0xff]   ;;  %v26591_v3 = vld [vmem:[%s38719_s3 + $0x45c] ss:$24 sps:$4 sm:$0xff]  }
 0x126   : > { %2389 = vmatpush1.bf16.msra.mxu1 %v26505_v4  ;;  %v26594_v4 = vld [vmem:[%s38719_s3 + $0x1964] ss:$24 sps:$4 sm:$0xff]  }
 0x127   : > { %7063 = vmatpush1.bf16.msra.mxu0 %v26508_v5  ;;  %2390 = vmatprep.subr.bf16.mxu1 %v26513_v7  ;;  %v26589_v5 = vld [vmem:[%s38719_s3 + $0x458] ss:$24 sps:$4 sm:$0xff]  }
 0x128   : > { %7064 = vmatprep.subr.bf16.mxu0 %v26516_v8  ;;  %v26592_v7 = vld [vmem:[%s38719_s3 + $0x1960] ss:$24 sps:$4 sm:$0xff]   ;;  %v26597_v8 = vld [vmem:[%s38719_s3 + $0x48c] ss:$24 sps:$4 sm:$0xff]  }
 0x12a   : > { %2391 = vmatpush1.bf16.msra.mxu1 %v26511_v9  ;;  %v26600_v9 = vld [vmem:[%s38719_s3 + $0x1994] ss:$24 sps:$4 sm:$0xff]  }
 0x12b   : > { %7065 = vmatpush1.bf16.msra.mxu0 %v26514_v10  ;;  %2392 = vmatprep.subr.bf16.mxu1 %v26519_v11  ;;  %v26595_v10 = vld [vmem:[%s38719_s3 + $0x488] ss:$24 sps:$4 sm:$0xff]  }
 0x12c   : > { %7066 = vmatprep.subr.bf16.mxu0 %v26522_v12  ;;  %v26598_v11 = vld [vmem:[%s38719_s3 + $0x1990] ss:$24 sps:$4 sm:$0xff]   ;;  %v26603_v12 = vld [vmem:[%s38719_s3 + $0x4bc] ss:$24 sps:$4 sm:$0xff]  }
 0x12e   : > { %2393 = vmatpush1.bf16.msra.mxu1 %v26517_v13  ;;  %v26606_v13 = vld [vmem:[%s38719_s3 + $0x19c4] ss:$24 sps:$4 sm:$0xff]  }
 0x12f   : > { %7067 = vmatpush1.bf16.msra.mxu0 %v26520_v14  ;;  %2394 = vmatprep.subr.bf16.mxu1 %v26525_v15  ;;  %v26601_v14 = vld [vmem:[%s38719_s3 + $0x4b8] ss:$24 sps:$4 sm:$0xff]  }
 0x130   : > { %7068 = vmatprep.subr.bf16.mxu0 %v26528_v16  ;;  %v26604_v15 = vld [vmem:[%s38719_s3 + $0x19c0] ss:$24 sps:$4 sm:$0xff]   ;;  %v26609_v16 = vld [vmem:[%s38719_s3 + $0x4ec] ss:$24 sps:$4 sm:$0xff]  }
 0x132   : > { %2395 = vmatpush1.bf16.msra.mxu1 %v26523_v17  ;;  %v26612_v17 = vld [vmem:[%s38719_s3 + $0x19f4] ss:$24 sps:$4 sm:$0xff]  }
 0x133   : > { %7069 = vmatpush1.bf16.msra.mxu0 %v26526_v18  ;;  %2396 = vmatprep.subr.bf16.mxu1 %v26531_v19  ;;  %v26607_v18 = vld [vmem:[%s38719_s3 + $0x4e8] ss:$24 sps:$4 sm:$0xff]  }
 0x134   : > { %7070 = vmatprep.subr.bf16.mxu0 %v26534_v20  ;;  %v26610_v19 = vld [vmem:[%s38719_s3 + $0x19f0] ss:$24 sps:$4 sm:$0xff]   ;;  %v26615_v20 = vld [vmem:[%s38719_s3 + $0x51c] ss:$24 sps:$4 sm:$0xff]  }
 0x136   : > { %2397 = vmatpush1.bf16.msra.mxu1 %v26529_v21  ;;  %v26618_v21 = vld [vmem:[%s38719_s3 + $0x1a24] ss:$24 sps:$4 sm:$0xff]  }
 0x137   : > { %7071 = vmatpush1.bf16.msra.mxu0 %v26532_v22  ;;  %2398 = vmatprep.subr.bf16.mxu1 %v26537_v23  ;;  %v26613_v22 = vld [vmem:[%s38719_s3 + $0x518] ss:$24 sps:$4 sm:$0xff]  }
 0x138   : > { %7072 = vmatprep.subr.bf16.mxu0 %v26540_v24  ;;  %v26616_v23 = vld [vmem:[%s38719_s3 + $0x1a20] ss:$24 sps:$4 sm:$0xff]   ;;  %v26621_v24 = vld [vmem:[%s38719_s3 + $0x54c] ss:$24 sps:$4 sm:$0xff]  }
 0x13a   : > { %2399 = vmatpush1.bf16.msra.mxu1 %v26535_v25  ;;  %v26624_v25 = vld [vmem:[%s38719_s3 + $0x1a54] ss:$24 sps:$4 sm:$0xff]  }
 0x13b   : > { %7073 = vmatpush1.bf16.msra.mxu0 %v26538_v27  ;;  %2400 = vmatprep.subr.bf16.mxu1 %v26543_v29  ;;  %v26619_v27 = vld [vmem:[%s38719_s3 + $0x548] ss:$24 sps:$4 sm:$0xff]  }
 0x13c   : > { %7074 = vmatprep.subr.bf16.mxu0 %v26546_v30  ;;  %v26622_v29 = vld [vmem:[%s38719_s3 + $0x1a50] ss:$24 sps:$4 sm:$0xff]   ;;  %v26627_v30 = vld [vmem:[%s38719_s3 + $0x57c] ss:$24 sps:$4 sm:$0xff]  }
 0x13e   : > { %2401 = vmatpush1.bf16.msra.mxu1 %v26541_v31  ;;  %v26630_v31 = vld [vmem:[%s38719_s3 + $0x1a84] ss:$24 sps:$4 sm:$0xff]  }
 0x13f   : > { %7075 = vmatpush1.bf16.msra.mxu0 %v26544_v32  ;;  %2413 = vmatprep.subr.bf16.mxu1 %v26549_v33  ;;  %v26625_v32 = vld [vmem:[%s38719_s3 + $0x578] ss:$24 sps:$4 sm:$0xff]  }
 0x140   : > { %7087 = vmatprep.subr.bf16.mxu0 %v26552_v34  ;;  %v26628_v33 = vld [vmem:[%s38719_s3 + $0x1a80] ss:$24 sps:$4 sm:$0xff]   ;;  %v26633_v34 = vld [vmem:[%s38719_s3 + $0x5ac] ss:$24 sps:$4 sm:$0xff]  }
 0x141   : > { %2403 = vmatmul.mubr.bf16.vlgmr.msra.gmra.mrb[4].mxu1 %v30070_v42  ;;  %v26642_v42 = vld [vmem:[%s38719_s3 + $0x1ae4] ss:$24 sps:$4 sm:$0xff]  }
 0x142   : > { %7077 = vmatmul.mubr.bf16.vlgmr.msra.gmra.mrb[4].mxu0 %v30526_v54  ;;  %2414 = vmatpush1.bf16.msra.mxu1 %v26547_v37  ;;  %v26636_v37 = vld [vmem:[%s38719_s3 + $0x1ab4] ss:$24 sps:$4 sm:$0xff]  }
 0x143   : > { %7088 = vmatpush1.bf16.msra.mxu0 %v26550_v38  ;;  %2415 = vmatprep.subr.bf16.mxu1 %v26555_v40  ;;  %v26631_v38 = vld [vmem:[%s38719_s3 + $0x5a8] ss:$24 sps:$4 sm:$0xff]  }
 0x144   : > { %7089 = vmatprep.subr.bf16.mxu0 %v26558_v41  ;;  %2445 = vmatprep.mubr.bf16.mxu1 %v30071_v47  ;;  %v26634_v40 = vld [vmem:[%s38719_s3 + $0x1ab0] ss:$24 sps:$4 sm:$0xff]   ;;  %v26639_v41 = vld [vmem:[%s38719_s3 + $0x5dc] ss:$24 sps:$4 sm:$0xff]  }
 0x145   : > { %7119 = vmatprep.mubr.bf16.mxu0 %v30643_v36  ;;  %v26643_v47 = vld [vmem:[%s38719_s3 + $0x608] ss:$24 sps:$4 sm:$0xff]  }
 0x146   : > { %2416 = vmatpush1.bf16.msra.mxu1 %v26553_v43  ;;  %v26637_v43 = vld [vmem:[%s38719_s3 + $0x5d8] ss:$24 sps:$4 sm:$0xff]  }
 0x147   : > { %7090 = vmatpush1.bf16.msra.mxu0 %v26556_v44  ;;  %2417 = vmatprep.subr.bf16.mxu1 %v26561_v45  ;;  %v26640_v44 = vld [vmem:[%s38719_s3 + $0x1ae0] ss:$24 sps:$4 sm:$0xff]   ;;  %v26645_v45 = vld [vmem:[%s38719_s3 + $0x60c] ss:$24 sps:$4 sm:$0xff]  }
 0x148   : > { %7091 = vmatprep.subr.bf16.mxu0 %v26564_v46  ;;  %v26648_v46 = vld [vmem:[%s38719_s3 + $0x1b04] ss:$24 sps:$4 sm:$0xff]  }
 0x14a   : > { %2418 = vmatpush1.bf16.msra.mxu1 %v26559_v48  ;;  %v26646_v48 = vld [vmem:[%s38719_s3 + $0x1b00] ss:$24 sps:$4 sm:$0xff]  }
 0x14b   : > { %7092 = vmatpush1.bf16.msra.mxu0 %v26562_v49  ;;  %2419 = vmatprep.subr.bf16.mxu1 %v26567_v50  ;;  %v26651_v49 = vld [vmem:[%s38719_s3 + $0x63c] ss:$24 sps:$4 sm:$0xff]  }
 0x14c   : > { %7093 = vmatprep.subr.bf16.mxu0 %v26570_v51  ;;  %v26654_v50 = vld [vmem:[%s38719_s3 + $0x1b34] ss:$24 sps:$4 sm:$0xff]  }
 0x14d   : > { %v26744_v51 = vld [vmem:[%s31193_s13 + $0x4] ss:$48 sps:$4 sm:$0xff]  }
 0x14e   : > { %2420 = vmatpush1.bf16.msra.mxu1 %v26565_v52  ;;  %v30072_v52 = vld [vmem:[%s30450_s11 + $0x8] ss:$48 sps:$4 sm:$0xff]  }
 0x14f   : > { %7094 = vmatpush1.bf16.msra.mxu0 %v26568_v53  ;;  %2421 = vmatprep.subr.bf16.mxu1 %v26573_v55  ;;  %v26649_v53 = vld [vmem:[%s38719_s3 + $0x638] ss:$24 sps:$4 sm:$0xff]  }
 0x150   : > { %7095 = vmatprep.subr.bf16.mxu0 %v26576_v56  ;;  %v26652_v55 = vld [vmem:[%s38719_s3 + $0x1b30] ss:$24 sps:$4 sm:$0xff]   ;;  %v26657_v56 = vld [vmem:[%s38719_s3 + $0x66c] ss:$24 sps:$4 sm:$0xff]  }
 0x152   : > { %2422 = vmatpush1.bf16.msra.mxu1 %v26571_v57  ;;  %v26660_v57 = vld [vmem:[%s38719_s3 + $0x1b64] ss:$24 sps:$4 sm:$0xff]  }
 0x153   : > { %7096 = vmatpush1.bf16.msra.mxu0 %v26574_v58  ;;  %2423 = vmatprep.subr.bf16.mxu1 %v26579_v59  ;;  %v30073_v58 = vld [vmem:[%s30450_s11 + $0x14] ss:$48 sps:$4 sm:$0xff]  }
 0x154   : > { %7097 = vmatprep.subr.bf16.mxu0 %v26582_v60  ;;  %v26655_v59 = vld [vmem:[%s38719_s3 + $0x668] ss:$24 sps:$4 sm:$0xff]  }
 0x155   : > { %v26658_v60 = vld [vmem:[%s38719_s3 + $0x1b60] ss:$24 sps:$4 sm:$0xff]  }
 0x156   : > { %2424 = vmatpush1.bf16.msra.mxu1 %v26577_v61  ;;  %v26663_v61 = vld [vmem:[%s38719_s3 + $0x69c] ss:$24 sps:$4 sm:$0xff]  }
 0x157   : > { %7098 = vmatpush1.bf16.msra.mxu0 %v26580_v62  ;;  %2425 = vmatprep.subr.bf16.mxu1 %v26585_v63  ;;  %v26666_v62 = vld [vmem:[%s38719_s3 + $0x1b94] ss:$24 sps:$4 sm:$0xff]   ;;  %v26661_v63 = vld [vmem:[%s38719_s3 + $0x698] ss:$24 sps:$4 sm:$0xff]  }
 0x158   : > { %7099 = vmatprep.subr.bf16.mxu0 %v26588_v0  ;;  %v26664_v0 = vld [vmem:[%s38719_s3 + $0x1b90] ss:$24 sps:$4 sm:$0xff]  }
 0x15a   : > { %2426 = vmatpush1.bf16.msra.mxu1 %v26583_v1  ;;  %v26669_v1 = vld [vmem:[%s38719_s3 + $0x6cc] ss:$24 sps:$4 sm:$0xff]  }
 0x15b   : > { %7100 = vmatpush1.bf16.msra.mxu0 %v26586_v2  ;;  %2427 = vmatprep.subr.bf16.mxu1 %v26591_v3  ;;  %v26672_v2 = vld [vmem:[%s38719_s3 + $0x1bc4] ss:$24 sps:$4 sm:$0xff]   ;;  %v26667_v3 = vld [vmem:[%s38719_s3 + $0x6c8] ss:$24 sps:$4 sm:$0xff]  }
 0x15c   : > { %7101 = vmatprep.subr.bf16.mxu0 %v26594_v4  ;;  %v26670_v4 = vld [vmem:[%s38719_s3 + $0x1bc0] ss:$24 sps:$4 sm:$0xff]  }
 0x15e   : > { %2428 = vmatpush1.bf16.msra.mxu1 %v26589_v5  ;;  %v26675_v5 = vld [vmem:[%s38719_s3 + $0x6fc] ss:$24 sps:$4 sm:$0xff]  }
 0x15f   : > { %7102 = vmatpush1.bf16.msra.mxu0 %v26592_v7  ;;  %2429 = vmatprep.subr.bf16.mxu1 %v26597_v8  ;;  %v26678_v7 = vld [vmem:[%s38719_s3 + $0x1bf4] ss:$24 sps:$4 sm:$0xff]   ;;  %v26673_v8 = vld [vmem:[%s38719_s3 + $0x6f8] ss:$24 sps:$4 sm:$0xff]  }
 0x160   : > { %7103 = vmatprep.subr.bf16.mxu0 %v26600_v9  ;;  %v26676_v9 = vld [vmem:[%s38719_s3 + $0x1bf0] ss:$24 sps:$4 sm:$0xff]  }
 0x162   : > { %2430 = vmatpush1.bf16.msra.mxu1 %v26595_v10  ;;  %v26681_v10 = vld [vmem:[%s38719_s3 + $0x72c] ss:$24 sps:$4 sm:$0xff]  }
 0x163   : > { %7104 = vmatpush1.bf16.msra.mxu0 %v26598_v11  ;;  %2431 = vmatprep.subr.bf16.mxu1 %v26603_v12  ;;  %v26684_v11 = vld [vmem:[%s38719_s3 + $0x1c24] ss:$24 sps:$4 sm:$0xff]   ;;  %v26679_v12 = vld [vmem:[%s38719_s3 + $0x728] ss:$24 sps:$4 sm:$0xff]  }
 0x164   : > { %7105 = vmatprep.subr.bf16.mxu0 %v26606_v13  ;;  %v26682_v13 = vld [vmem:[%s38719_s3 + $0x1c20] ss:$24 sps:$4 sm:$0xff]  }
 0x166   : > { %2432 = vmatpush1.bf16.msra.mxu1 %v26601_v14  ;;  %v26687_v14 = vld [vmem:[%s38719_s3 + $0x75c] ss:$24 sps:$4 sm:$0xff]  }
 0x167   : > { %7106 = vmatpush1.bf16.msra.mxu0 %v26604_v15  ;;  %2433 = vmatprep.subr.bf16.mxu1 %v26609_v16  ;;  %v26690_v15 = vld [vmem:[%s38719_s3 + $0x1c54] ss:$24 sps:$4 sm:$0xff]   ;;  %v26685_v16 = vld [vmem:[%s38719_s3 + $0x758] ss:$24 sps:$4 sm:$0xff]  }
 0x168   : > { %7107 = vmatprep.subr.bf16.mxu0 %v26612_v17  ;;  %v26688_v17 = vld [vmem:[%s38719_s3 + $0x1c50] ss:$24 sps:$4 sm:$0xff]  }
 0x16a   : > { %2434 = vmatpush1.bf16.msra.mxu1 %v26607_v18  ;;  %v26693_v18 = vld [vmem:[%s38719_s3 + $0x78c] ss:$24 sps:$4 sm:$0xff]  }
 0x16b   : > { %7108 = vmatpush1.bf16.msra.mxu0 %v26610_v19  ;;  %2435 = vmatprep.subr.bf16.mxu1 %v26615_v20  ;;  %v26696_v19 = vld [vmem:[%s38719_s3 + $0x1c84] ss:$24 sps:$4 sm:$0xff]   ;;  %v26691_v20 = vld [vmem:[%s38719_s3 + $0x788] ss:$24 sps:$4 sm:$0xff]  }
 0x16c   : > { %7109 = vmatprep.subr.bf16.mxu0 %v26618_v21  ;;  %v26694_v21 = vld [vmem:[%s38719_s3 + $0x1c80] ss:$24 sps:$4 sm:$0xff]  }
 0x16e   : > { %2436 = vmatpush1.bf16.msra.mxu1 %v26613_v22  ;;  %v26699_v22 = vld [vmem:[%s38719_s3 + $0x7bc] ss:$24 sps:$4 sm:$0xff]  }
 0x16f   : > { %7110 = vmatpush1.bf16.msra.mxu0 %v26616_v23  ;;  %2437 = vmatprep.subr.bf16.mxu1 %v26621_v24  ;;  %v26702_v23 = vld [vmem:[%s38719_s3 + $0x1cb4] ss:$24 sps:$4 sm:$0xff]   ;;  %v26697_v24 = vld [vmem:[%s38719_s3 + $0x7b8] ss:$24 sps:$4 sm:$0xff]  }
 0x170   : > { %7111 = vmatprep.subr.bf16.mxu0 %v26624_v25  ;;  %v26700_v25 = vld [vmem:[%s38719_s3 + $0x1cb0] ss:$24 sps:$4 sm:$0xff]  }
 0x172   : > { %2438 = vmatpush1.bf16.msra.mxu1 %v26619_v27  ;;  %v26705_v27 = vld [vmem:[%s38719_s3 + $0x7ec] ss:$24 sps:$4 sm:$0xff]  }
 0x173   : > { %7112 = vmatpush1.bf16.msra.mxu0 %v26622_v29  ;;  %2439 = vmatprep.subr.bf16.mxu1 %v26627_v30  ;;  %v26708_v29 = vld [vmem:[%s38719_s3 + $0x1ce4] ss:$24 sps:$4 sm:$0xff]   ;;  %v26703_v30 = vld [vmem:[%s38719_s3 + $0x7e8] ss:$24 sps:$4 sm:$0xff]  }
 0x174   : > { %7113 = vmatprep.subr.bf16.mxu0 %v26630_v31  ;;  %v26706_v31 = vld [vmem:[%s38719_s3 + $0x1ce0] ss:$24 sps:$4 sm:$0xff]  }
 0x176   : > { %2440 = vmatpush1.bf16.msra.mxu1 %v26625_v32  ;;  %v26711_v32 = vld [vmem:[%s38719_s3 + $0x81c] ss:$24 sps:$4 sm:$0xff]  }
 0x177   : > { %7114 = vmatpush1.bf16.msra.mxu0 %v26628_v33  ;;  %2441 = vmatprep.subr.bf16.mxu1 %v26633_v34  ;;  %v26714_v33 = vld [vmem:[%s38719_s3 + $0x1d14] ss:$24 sps:$4 sm:$0xff]   ;;  %v26709_v34 = vld [vmem:[%s38719_s3 + $0x818] ss:$24 sps:$4 sm:$0xff]  }
 0x178   : > { %7115 = vmatprep.subr.bf16.mxu0 %v26636_v37  ;;  %v26712_v37 = vld [vmem:[%s38719_s3 + $0x1d10] ss:$24 sps:$4 sm:$0xff]  }
 0x17a   : > { %2442 = vmatpush1.bf16.msra.mxu1 %v26631_v38  ;;  %v26717_v38 = vld [vmem:[%s38719_s3 + $0x84c] ss:$24 sps:$4 sm:$0xff]  }
 0x17b   : > { %7116 = vmatpush1.bf16.msra.mxu0 %v26634_v40  ;;  %2443 = vmatprep.subr.bf16.mxu1 %v26639_v41  ;;  %v26720_v40 = vld [vmem:[%s38719_s3 + $0x1d44] ss:$24 sps:$4 sm:$0xff]   ;;  %v26715_v41 = vld [vmem:[%s38719_s3 + $0x848] ss:$24 sps:$4 sm:$0xff]  }
 0x17c   : > { %7117 = vmatprep.subr.bf16.mxu0 %v26642_v42  ;;  %v26718_v42 = vld [vmem:[%s38719_s3 + $0x1d40] ss:$24 sps:$4 sm:$0xff]  }
 0x17e   : > { %2444 = vmatpush1.bf16.msra.mxu1 %v26637_v43  ;;  %v26723_v43 = vld [vmem:[%s38719_s3 + $0x87c] ss:$24 sps:$4 sm:$0xff]  }
 0x17f   : > { %7118 = vmatpush1.bf16.msra.mxu0 %v26640_v44  ;;  %2456 = vmatprep.subr.bf16.mxu1 %v26645_v45  ;;  %v26726_v44 = vld [vmem:[%s38719_s3 + $0x1d74] ss:$24 sps:$4 sm:$0xff]   ;;  %v26721_v45 = vld [vmem:[%s38719_s3 + $0x878] ss:$24 sps:$4 sm:$0xff]  }
 0x180   : > { %8931 = vmatprep.subr.bf16.mxu0 %v26648_v46  ;;  %v26724_v46 = vld [vmem:[%s38719_s3 + $0x1d70] ss:$24 sps:$4 sm:$0xff]  }
 0x181   : > { %2446 = vmatmul.mubr.bf16.vlgmr.msra.gmra.mrb[4].mxu1 %v30072_v52  ;;  %v26738_v52 = vld [vmem:[%s38719_s3 + $0x1dd4] ss:$24 sps:$4 sm:$0xff]  }
 0x182   : > { %7120 = vmatmul.mubr.bf16.vlgmr.msra.gmra.mrb[4].mxu0 %v30739_v6  ;;  %2457 = vmatpush1.bf16.msra.mxu1 %v26643_v47  ;;  %v26729_v47 = vld [vmem:[%s38719_s3 + $0x8ac] ss:$24 sps:$4 sm:$0xff]  }
 0x183   : > { %8932 = vmatpush1.bf16.msra.mxu0 %v26646_v48  ;;  %2458 = vmatprep.subr.bf16.mxu1 %v26651_v49  ;;  %v26732_v48 = vld [vmem:[%s38719_s3 + $0x1da4] ss:$24 sps:$4 sm:$0xff]   ;;  %v26727_v49 = vld [vmem:[%s38719_s3 + $0x8a8] ss:$24 sps:$4 sm:$0xff]  }
 0x184   : > { %8933 = vmatprep.subr.bf16.mxu0 %v26654_v50  ;;  %2488 = vmatprep.mubr.bf16.mxu1 %v30073_v58  ;;  %v26730_v50 = vld [vmem:[%s38719_s3 + $0x1da0] ss:$24 sps:$4 sm:$0xff]   ;;  %v26747_v58 = vld [vmem:[%s38719_s3 + $0x1e04] ss:$24 sps:$4 sm:$0xff]  }
 0x185   : > { %8963 = vmatprep.mubr.bf16.mxu0 %v26744_v51  ;;  %v26735_v51 = vld [vmem:[%s38719_s3 + $0x8dc] ss:$24 sps:$4 sm:$0xff]  }
 0x186   : > { %2459 = vmatpush1.bf16.msra.mxu1 %v26649_v53  ;;  %v26733_v53 = vld [vmem:[%s38719_s3 + $0x8d8] ss:$24 sps:$4 sm:$0xff]  }
 0x187   : > { %8934 = vmatpush1.bf16.msra.mxu0 %v26652_v55  ;;  %2460 = vmatprep.subr.bf16.mxu1 %v26657_v56  ;;  %v26736_v55 = vld [vmem:[%s38719_s3 + $0x1dd0] ss:$24 sps:$4 sm:$0xff]   ;;  %v26741_v56 = vld [vmem:[%s38719_s3 + $0x14] ss:$24 sps:$4 sm:$0xff]  }
 0x188   : > { %8935 = vmatprep.subr.bf16.mxu0 %v26660_v57  ;;  %v26742_v57 = vld [vmem:[%s31193_s13] ss:$48 sps:$4 sm:$0xff]  }
 0x18a   : > { %2461 = vmatpush1.bf16.msra.mxu1 %v26655_v59  ;;  %v26739_v59 = vld [vmem:[%s38719_s3 + $0x10] ss:$24 sps:$4 sm:$0xff]  }
 0x18b   : > { %8936 = vmatpush1.bf16.msra.mxu0 %v26658_v60  ;;  %2462 = vmatprep.subr.bf16.mxu1 %v26663_v61  ;;  %v26745_v60 = vld [vmem:[%s38719_s3 + $0x1e00] ss:$24 sps:$4 sm:$0xff]   ;;  %v26750_v61 = vld [vmem:[%s38719_s3 + $0x44] ss:$24 sps:$4 sm:$0xff]  }
 0x18c   : > { %8937 = vmatprep.subr.bf16.mxu0 %v26666_v62  ;;  %v26753_v62 = vld [vmem:[%s38719_s3 + $0x1e34] ss:$24 sps:$4 sm:$0xff]  }
 0x18e   : > { %2463 = vmatpush1.bf16.msra.mxu1 %v26661_v63  ;;  %v26843_v63 = vld [vmem:[%s31193_s13 + $0xc] ss:$48 sps:$4 sm:$0xff]  }
 0x18f   : > { %8938 = vmatpush1.bf16.msra.mxu0 %v26664_v0  ;;  %2464 = vmatprep.subr.bf16.mxu1 %v26669_v1  ;;  %v30074_v0 = vld [vmem:[%s30450_s11 + $0x10] ss:$48 sps:$4 sm:$0xff]  }
 0x190   : > { %8939 = vmatprep.subr.bf16.mxu0 %v26672_v2  ;;  %v26748_v1 = vld [vmem:[%s38719_s3 + $0x40] ss:$24 sps:$4 sm:$0xff]   ;;  %v26751_v2 = vld [vmem:[%s38719_s3 + $0x1e30] ss:$24 sps:$4 sm:$0xff]  }
 0x192   : > { %2465 = vmatpush1.bf16.msra.mxu1 %v26667_v3  ;;  %v26756_v3 = vld [vmem:[%s38719_s3 + $0x74] ss:$24 sps:$4 sm:$0xff]  }
 0x193   : > { %8940 = vmatpush1.bf16.msra.mxu0 %v26670_v4  ;;  %2466 = vmatprep.subr.bf16.mxu1 %v26675_v5  ;;  %v26759_v4 = vld [vmem:[%s38719_s3 + $0x1e64] ss:$24 sps:$4 sm:$0xff]  }
 0x194   : > { %8941 = vmatprep.subr.bf16.mxu0 %v26678_v7  ;;  %v30075_v5 = vld [vmem:[%s30450_s11 + $0x4] ss:$48 sps:$4 sm:$0xff]  }
 0x195   : > { %v26754_v7 = vld [vmem:[%s38719_s3 + $0x70] ss:$24 sps:$4 sm:$0xff]  }
 0x196   : > { %2467 = vmatpush1.bf16.msra.mxu1 %v26673_v8  ;;  %v26757_v8 = vld [vmem:[%s38719_s3 + $0x1e60] ss:$24 sps:$4 sm:$0xff]  }
 0x197   : > { %8942 = vmatpush1.bf16.msra.mxu0 %v26676_v9  ;;  %2468 = vmatprep.subr.bf16.mxu1 %v26681_v10  ;;  %v26762_v9 = vld [vmem:[%s38719_s3 + $0xa4] ss:$24 sps:$4 sm:$0xff]   ;;  %v26765_v10 = vld [vmem:[%s38719_s3 + $0x1e94] ss:$24 sps:$4 sm:$0xff]  }
 0x198   : > { %8943 = vmatprep.subr.bf16.mxu0 %v26684_v11  ;;  %v26760_v11 = vld [vmem:[%s38719_s3 + $0xa0] ss:$24 sps:$4 sm:$0xff]  }
 0x19a   : > { %2469 = vmatpush1.bf16.msra.mxu1 %v26679_v12  ;;  %v26763_v12 = vld [vmem:[%s38719_s3 + $0x1e90] ss:$24 sps:$4 sm:$0xff]  }
 0x19b   : > { %8944 = vmatpush1.bf16.msra.mxu0 %v26682_v13  ;;  %2470 = vmatprep.subr.bf16.mxu1 %v26687_v14  ;;  %v26768_v13 = vld [vmem:[%s38719_s3 + $0xd4] ss:$24 sps:$4 sm:$0xff]   ;;  %v26771_v14 = vld [vmem:[%s38719_s3 + $0x1ec4] ss:$24 sps:$4 sm:$0xff]  }
 0x19c   : > { %8945 = vmatprep.subr.bf16.mxu0 %v26690_v15  ;;  %v26766_v15 = vld [vmem:[%s38719_s3 + $0xd0] ss:$24 sps:$4 sm:$0xff]  }
 0x19e   : > { %2471 = vmatpush1.bf16.msra.mxu1 %v26685_v16  ;;  %v26769_v16 = vld [vmem:[%s38719_s3 + $0x1ec0] ss:$24 sps:$4 sm:$0xff]  }
 0x19f   : > { %8946 = vmatpush1.bf16.msra.mxu0 %v26688_v17  ;;  %2472 = vmatprep.subr.bf16.mxu1 %v26693_v18  ;;  %v26774_v17 = vld [vmem:[%s38719_s3 + $0x104] ss:$24 sps:$4 sm:$0xff]   ;;  %v26777_v18 = vld [vmem:[%s38719_s3 + $0x1ef4] ss:$24 sps:$4 sm:$0xff]  }
 0x1a0   : > { %8947 = vmatprep.subr.bf16.mxu0 %v26696_v19  ;;  %v26772_v19 = vld [vmem:[%s38719_s3 + $0x100] ss:$24 sps:$4 sm:$0xff]  }
 0x1a2   : > { %2473 = vmatpush1.bf16.msra.mxu1 %v26691_v20  ;;  %v26775_v20 = vld [vmem:[%s38719_s3 + $0x1ef0] ss:$24 sps:$4 sm:$0xff]  }
 0x1a3   : > { %8948 = vmatpush1.bf16.msra.mxu0 %v26694_v21  ;;  %2474 = vmatprep.subr.bf16.mxu1 %v26699_v22  ;;  %v26780_v21 = vld [vmem:[%s38719_s3 + $0x134] ss:$24 sps:$4 sm:$0xff]   ;;  %v26783_v22 = vld [vmem:[%s38719_s3 + $0x1f24] ss:$24 sps:$4 sm:$0xff]  }
 0x1a4   : > { %8949 = vmatprep.subr.bf16.mxu0 %v26702_v23  ;;  %v26778_v23 = vld [vmem:[%s38719_s3 + $0x130] ss:$24 sps:$4 sm:$0xff]  }
 0x1a6   : > { %2475 = vmatpush1.bf16.msra.mxu1 %v26697_v24  ;;  %v26781_v24 = vld [vmem:[%s38719_s3 + $0x1f20] ss:$24 sps:$4 sm:$0xff]  }
 0x1a7   : > { %8950 = vmatpush1.bf16.msra.mxu0 %v26700_v25  ;;  %2476 = vmatprep.subr.bf16.mxu1 %v26705_v27  ;;  %v26786_v25 = vld [vmem:[%s38719_s3 + $0x164] ss:$24 sps:$4 sm:$0xff]   ;;  %v26789_v27 = vld [vmem:[%s38719_s3 + $0x1f54] ss:$24 sps:$4 sm:$0xff]  }
 0x1a8   : > { %8951 = vmatprep.subr.bf16.mxu0 %v26708_v29  ;;  %v26784_v29 = vld [vmem:[%s38719_s3 + $0x160] ss:$24 sps:$4 sm:$0xff]  }
 0x1aa   : > { %2477 = vmatpush1.bf16.msra.mxu1 %v26703_v30  ;;  %v26787_v30 = vld [vmem:[%s38719_s3 + $0x1f50] ss:$24 sps:$4 sm:$0xff]  }
 0x1ab   : > { %8952 = vmatpush1.bf16.msra.mxu0 %v26706_v31  ;;  %2478 = vmatprep.subr.bf16.mxu1 %v26711_v32  ;;  %v26792_v31 = vld [vmem:[%s38719_s3 + $0x194] ss:$24 sps:$4 sm:$0xff]   ;;  %v26795_v32 = vld [vmem:[%s38719_s3 + $0x1f84] ss:$24 sps:$4 sm:$0xff]  }
 0x1ac   : > { %8953 = vmatprep.subr.bf16.mxu0 %v26714_v33  ;;  %v26790_v33 = vld [vmem:[%s38719_s3 + $0x190] ss:$24 sps:$4 sm:$0xff]  }
 0x1ae   : > { %2479 = vmatpush1.bf16.msra.mxu1 %v26709_v34  ;;  %v26793_v34 = vld [vmem:[%s38719_s3 + $0x1f80] ss:$24 sps:$4 sm:$0xff]  }
 0x1af   : > { %8954 = vmatpush1.bf16.msra.mxu0 %v26712_v37  ;;  %2480 = vmatprep.subr.bf16.mxu1 %v26717_v38  ;;  %v26798_v37 = vld [vmem:[%s38719_s3 + $0x1c4] ss:$24 sps:$4 sm:$0xff]   ;;  %v26801_v38 = vld [vmem:[%s38719_s3 + $0x1fb4] ss:$24 sps:$4 sm:$0xff]  }
 0x1b0   : > { %8955 = vmatprep.subr.bf16.mxu0 %v26720_v40  ;;  %v26796_v40 = vld [vmem:[%s38719_s3 + $0x1c0] ss:$24 sps:$4 sm:$0xff]  }
 0x1b2   : > { %2481 = vmatpush1.bf16.msra.mxu1 %v26715_v41  ;;  %v26799_v41 = vld [vmem:[%s38719_s3 + $0x1fb0] ss:$24 sps:$4 sm:$0xff]  }
 0x1b3   : > { %8956 = vmatpush1.bf16.msra.mxu0 %v26718_v42  ;;  %2482 = vmatprep.subr.bf16.mxu1 %v26723_v43  ;;  %v26804_v42 = vld [vmem:[%s38719_s3 + $0x1f4] ss:$24 sps:$4 sm:$0xff]   ;;  %v26807_v43 = vld [vmem:[%s38719_s3 + $0x1fe4] ss:$24 sps:$4 sm:$0xff]  }
 0x1b4   : > { %8957 = vmatprep.subr.bf16.mxu0 %v26726_v44  ;;  %v26802_v44 = vld [vmem:[%s38719_s3 + $0x1f0] ss:$24 sps:$4 sm:$0xff]  }
 0x1b6   : > { %2483 = vmatpush1.bf16.msra.mxu1 %v26721_v45  ;;  %v26805_v45 = vld [vmem:[%s38719_s3 + $0x1fe0] ss:$24 sps:$4 sm:$0xff]  }
 0x1b7   : > { %8958 = vmatpush1.bf16.msra.mxu0 %v26724_v46  ;;  %2484 = vmatprep.subr.bf16.mxu1 %v26729_v47  ;;  %v26810_v46 = vld [vmem:[%s38719_s3 + $0x224] ss:$24 sps:$4 sm:$0xff]   ;;  %v26813_v47 = vld [vmem:[%s38719_s3 + $0x2014] ss:$24 sps:$4 sm:$0xff]  }
 0x1b8   : > { %8959 = vmatprep.subr.bf16.mxu0 %v26732_v48  ;;  %v26808_v48 = vld [vmem:[%s38719_s3 + $0x220] ss:$24 sps:$4 sm:$0xff]  }
 0x1ba   : > { %2485 = vmatpush1.bf16.msra.mxu1 %v26727_v49  ;;  %v26811_v49 = vld [vmem:[%s38719_s3 + $0x2010] ss:$24 sps:$4 sm:$0xff]  }
 0x1bb   : > { %8960 = vmatpush1.bf16.msra.mxu0 %v26730_v50  ;;  %2486 = vmatprep.subr.bf16.mxu1 %v26735_v51  ;;  %v26816_v50 = vld [vmem:[%s38719_s3 + $0x254] ss:$24 sps:$4 sm:$0xff]   ;;  %v26819_v51 = vld [vmem:[%s38719_s3 + $0x2044] ss:$24 sps:$4 sm:$0xff]  }
 0x1bc   : > { %8961 = vmatprep.subr.bf16.mxu0 %v26738_v52  ;;  %v26814_v52 = vld [vmem:[%s38719_s3 + $0x250] ss:$24 sps:$4 sm:$0xff]  }
 0x1be   : > { %2487 = vmatpush1.bf16.msra.mxu1 %v26733_v53  ;;  %v26817_v53 = vld [vmem:[%s38719_s3 + $0x2040] ss:$24 sps:$4 sm:$0xff]  }
 0x1bf   : > { %8962 = vmatpush1.bf16.msra.mxu0 %v26736_v55  ;;  %2499 = vmatprep.subr.bf16.mxu1 %v26741_v56  ;;  %v26822_v55 = vld [vmem:[%s38719_s3 + $0x284] ss:$24 sps:$4 sm:$0xff]   ;;  %v26825_v56 = vld [vmem:[%s38719_s3 + $0x2074] ss:$24 sps:$4 sm:$0xff]  }
 0x1c0   : > { %8974 = vmatprep.subr.bf16.mxu0 %v26747_v58  ;;  %v26823_v58 = vld [vmem:[%s38719_s3 + $0x2070] ss:$24 sps:$4 sm:$0xff]  }
 0x1c1   : > { %2489 = vmatmul.mubr.bf16.vlgmr.msra.gmra.mrb[4].mxu1 %v30074_v0  ;;  %v26837_v0 = vld [vmem:[%s38719_s3 + $0x20d4] ss:$24 sps:$4 sm:$0xff]  }
 0x1c2   : > { %8964 = vmatmul.mubr.bf16.vlgmr.msra.gmra.mrb[0].mxu0 %v26742_v57  ;;  %2500 = vmatpush1.bf16.msra.mxu1 %v26739_v59  ;;  %v26820_v57 = vld [vmem:[%s38719_s3 + $0x280] ss:$24 sps:$4 sm:$0xff]   ;;  %v26828_v59 = vld [vmem:[%s38719_s3 + $0x2b4] ss:$24 sps:$4 sm:$0xff]  }
 0x1c3   : > { %8975 = vmatpush1.bf16.msra.mxu0 %v26745_v60  ;;  %2501 = vmatprep.subr.bf16.mxu1 %v26750_v61  ;;  %v26831_v60 = vld [vmem:[%s38719_s3 + $0x20a4] ss:$24 sps:$4 sm:$0xff]   ;;  %v26826_v61 = vld [vmem:[%s38719_s3 + $0x2b0] ss:$24 sps:$4 sm:$0xff]  }
 0x1c4   : > { %8976 = vmatprep.subr.bf16.mxu0 %v26753_v62  ;;  %2531 = vmatprep.mubr.bf16.mxu1 %v30075_v5  ;;  %v26829_v62 = vld [vmem:[%s38719_s3 + $0x20a0] ss:$24 sps:$4 sm:$0xff]   ;;  %v26846_v5 = vld [vmem:[%s38719_s3 + $0x2104] ss:$24 sps:$4 sm:$0xff]  }
 0x1c5   : > { %9006 = vmatprep.mubr.bf16.mxu0 %v26843_v63  ;;  %v26834_v63 = vld [vmem:[%s38719_s3 + $0x2e4] ss:$24 sps:$4 sm:$0xff]  }
 0x1c6   : > { %2502 = vmatpush1.bf16.msra.mxu1 %v26748_v1  ;;  %v26832_v1 = vld [vmem:[%s38719_s3 + $0x2e0] ss:$24 sps:$4 sm:$0xff]  }
 0x1c7   : > { %8977 = vmatpush1.bf16.msra.mxu0 %v26751_v2  ;;  %2503 = vmatprep.subr.bf16.mxu1 %v26756_v3  ;;  %v26835_v2 = vld [vmem:[%s38719_s3 + $0x20d0] ss:$24 sps:$4 sm:$0xff]   ;;  %v26840_v3 = vld [vmem:[%s38719_s3 + $0x314] ss:$24 sps:$4 sm:$0xff]  }
 0x1c8   : > { %8978 = vmatprep.subr.bf16.mxu0 %v26759_v4  ;;  %v26841_v4 = vld [vmem:[%s31193_s13 + $0x8] ss:$48 sps:$4 sm:$0xff]  }
 0x1ca   : > { %2504 = vmatpush1.bf16.msra.mxu1 %v26754_v7  ;;  %v26838_v7 = vld [vmem:[%s38719_s3 + $0x310] ss:$24 sps:$4 sm:$0xff]  }
 0x1cb   : > { %8979 = vmatpush1.bf16.msra.mxu0 %v26757_v8  ;;  %2505 = vmatprep.subr.bf16.mxu1 %v26762_v9  ;;  %v26844_v8 = vld [vmem:[%s38719_s3 + $0x2100] ss:$24 sps:$4 sm:$0xff]   ;;  %v26849_v9 = vld [vmem:[%s38719_s3 + $0x344] ss:$24 sps:$4 sm:$0xff]  }
 0x1cc   : > { %8980 = vmatprep.subr.bf16.mxu0 %v26765_v10  ;;  %v26852_v10 = vld [vmem:[%s38719_s3 + $0x2134] ss:$24 sps:$4 sm:$0xff]  }
 0x1ce   : > { %2506 = vmatpush1.bf16.msra.mxu1 %v26760_v11  ;;  %v26942_v11 = vld [vmem:[%s31193_s13 + $0x14] ss:$48 sps:$4 sm:$0xff]  }
 0x1cf   : > { %8981 = vmatpush1.bf16.msra.mxu0 %v26763_v12  ;;  %2507 = vmatprep.subr.bf16.mxu1 %v26768_v13  ;;  %v30076_v12 = vld [vmem:[%s30450_s11] ss:$48 sps:$4 sm:$0xff]  }
 0x1d0   : > { %8982 = vmatprep.subr.bf16.mxu0 %v26771_v14  ;;  %v26847_v13 = vld [vmem:[%s38719_s3 + $0x340] ss:$24 sps:$4 sm:$0xff]   ;;  %v26850_v14 = vld [vmem:[%s38719_s3 + $0x2130] ss:$24 sps:$4 sm:$0xff]  }
 0x1d2   : > { %2508 = vmatpush1.bf16.msra.mxu1 %v26766_v15  ;;  %v26855_v15 = vld [vmem:[%s38719_s3 + $0x374] ss:$24 sps:$4 sm:$0xff]  }
 0x1d3   : > { %8983 = vmatpush1.bf16.msra.mxu0 %v26769_v16  ;;  %2509 = vmatprep.subr.bf16.mxu1 %v26774_v17  ;;  %v26858_v16 = vld [vmem:[%s38719_s3 + $0x2164] ss:$24 sps:$4 sm:$0xff]  }
 0x1d4   : > { %8984 = vmatprep.subr.bf16.mxu0 %v26777_v18  ;;  %v30077_v17 = vld [vmem:[%s30450_s11 + $0xc] ss:$48 sps:$4 sm:$0xff]  }
 0x1d5   : > { %v26853_v18 = vld [vmem:[%s38719_s3 + $0x370] ss:$24 sps:$4 sm:$0xff]  }
 0x1d6   : > { %2510 = vmatpush1.bf16.msra.mxu1 %v26772_v19  ;;  %v26856_v19 = vld [vmem:[%s38719_s3 + $0x2160] ss:$24 sps:$4 sm:$0xff]  }
 0x1d7   : > { %8985 = vmatpush1.bf16.msra.mxu0 %v26775_v20  ;;  %2511 = vmatprep.subr.bf16.mxu1 %v26780_v21  ;;  %v26861_v20 = vld [vmem:[%s38719_s3 + $0x3a4] ss:$24 sps:$4 sm:$0xff]   ;;  %v26864_v21 = vld [vmem:[%s38719_s3 + $0x2194] ss:$24 sps:$4 sm:$0xff]  }
 0x1d8   : > { %8986 = vmatprep.subr.bf16.mxu0 %v26783_v22  ;;  %v26859_v22 = vld [vmem:[%s38719_s3 + $0x3a0] ss:$24 sps:$4 sm:$0xff]  }
 0x1da   : > { %2512 = vmatpush1.bf16.msra.mxu1 %v26778_v23  ;;  %v26862_v23 = vld [vmem:[%s38719_s3 + $0x2190] ss:$24 sps:$4 sm:$0xff]  }
 0x1db   : > { %8987 = vmatpush1.bf16.msra.mxu0 %v26781_v24  ;;  %2513 = vmatprep.subr.bf16.mxu1 %v26786_v25  ;;  %v26867_v24 = vld [vmem:[%s38719_s3 + $0x3d4] ss:$24 sps:$4 sm:$0xff]   ;;  %v26870_v25 = vld [vmem:[%s38719_s3 + $0x21c4] ss:$24 sps:$4 sm:$0xff]  }
 0x1dc   : > { %8988 = vmatprep.subr.bf16.mxu0 %v26789_v27  ;;  %v26865_v27 = vld [vmem:[%s38719_s3 + $0x3d0] ss:$24 sps:$4 sm:$0xff]  }
 0x1de   : > { %2514 = vmatpush1.bf16.msra.mxu1 %v26784_v29  ;;  %v26868_v29 = vld [vmem:[%s38719_s3 + $0x21c0] ss:$24 sps:$4 sm:$0xff]  }
 0x1df   : > { %8989 = vmatpush1.bf16.msra.mxu0 %v26787_v30  ;;  %2515 = vmatprep.subr.bf16.mxu1 %v26792_v31  ;;  %v26873_v30 = vld [vmem:[%s38719_s3 + $0x404] ss:$24 sps:$4 sm:$0xff]   ;;  %v26876_v31 = vld [vmem:[%s38719_s3 + $0x21f4] ss:$24 sps:$4 sm:$0xff]  }
 0x1e0   : > { %8990 = vmatprep.subr.bf16.mxu0 %v26795_v32  ;;  %v26871_v32 = vld [vmem:[%s38719_s3 + $0x400] ss:$24 sps:$4 sm:$0xff]  }
 0x1e2   : > { %2516 = vmatpush1.bf16.msra.mxu1 %v26790_v33  ;;  %v26874_v33 = vld [vmem:[%s38719_s3 + $0x21f0] ss:$24 sps:$4 sm:$0xff]  }
 0x1e3   : > { %8991 = vmatpush1.bf16.msra.mxu0 %v26793_v34  ;;  %2517 = vmatprep.subr.bf16.mxu1 %v26798_v37  ;;  %v26879_v34 = vld [vmem:[%s38719_s3 + $0x434] ss:$24 sps:$4 sm:$0xff]   ;;  %v26882_v37 = vld [vmem:[%s38719_s3 + $0x2224] ss:$24 sps:$4 sm:$0xff]  }
 0x1e4   : > { %8992 = vmatprep.subr.bf16.mxu0 %v26801_v38  ;;  %v26877_v38 = vld [vmem:[%s38719_s3 + $0x430] ss:$24 sps:$4 sm:$0xff]  }
 0x1e6   : > { %2518 = vmatpush1.bf16.msra.mxu1 %v26796_v40  ;;  %v26880_v40 = vld [vmem:[%s38719_s3 + $0x2220] ss:$24 sps:$4 sm:$0xff]  }
 0x1e7   : > { %8993 = vmatpush1.bf16.msra.mxu0 %v26799_v41  ;;  %2519 = vmatprep.subr.bf16.mxu1 %v26804_v42  ;;  %v26885_v41 = vld [vmem:[%s38719_s3 + $0x464] ss:$24 sps:$4 sm:$0xff]   ;;  %v26888_v42 = vld [vmem:[%s38719_s3 + $0x2254] ss:$24 sps:$4 sm:$0xff]  }
 0x1e8   : > { %8994 = vmatprep.subr.bf16.mxu0 %v26807_v43  ;;  %v26883_v43 = vld [vmem:[%s38719_s3 + $0x460] ss:$24 sps:$4 sm:$0xff]  }
 0x1ea   : > { %2520 = vmatpush1.bf16.msra.mxu1 %v26802_v44  ;;  %v26886_v44 = vld [vmem:[%s38719_s3 + $0x2250] ss:$24 sps:$4 sm:$0xff]  }
 0x1eb   : > { %8995 = vmatpush1.bf16.msra.mxu0 %v26805_v45  ;;  %2521 = vmatprep.subr.bf16.mxu1 %v26810_v46  ;;  %v26891_v45 = vld [vmem:[%s38719_s3 + $0x494] ss:$24 sps:$4 sm:$0xff]   ;;  %v26894_v46 = vld [vmem:[%s38719_s3 + $0x2284] ss:$24 sps:$4 sm:$0xff]  }
 0x1ec   : > { %8996 = vmatprep.subr.bf16.mxu0 %v26813_v47  ;;  %v26889_v47 = vld [vmem:[%s38719_s3 + $0x490] ss:$24 sps:$4 sm:$0xff]  }
 0x1ee   : > { %2522 = vmatpush1.bf16.msra.mxu1 %v26808_v48  ;;  %v26892_v48 = vld [vmem:[%s38719_s3 + $0x2280] ss:$24 sps:$4 sm:$0xff]  }
 0x1ef   : > { %8997 = vmatpush1.bf16.msra.mxu0 %v26811_v49  ;;  %2523 = vmatprep.subr.bf16.mxu1 %v26816_v50  ;;  %v26897_v49 = vld [vmem:[%s38719_s3 + $0x4c4] ss:$24 sps:$4 sm:$0xff]   ;;  %v26900_v50 = vld [vmem:[%s38719_s3 + $0x22b4] ss:$24 sps:$4 sm:$0xff]  }
 0x1f0   : > { %8998 = vmatprep.subr.bf16.mxu0 %v26819_v51  ;;  %v26895_v51 = vld [vmem:[%s38719_s3 + $0x4c0] ss:$24 sps:$4 sm:$0xff]  }
 0x1f2   : > { %2524 = vmatpush1.bf16.msra.mxu1 %v26814_v52  ;;  %v26898_v52 = vld [vmem:[%s38719_s3 + $0x22b0] ss:$24 sps:$4 sm:$0xff]  }
 0x1f3   : > { %8999 = vmatpush1.bf16.msra.mxu0 %v26817_v53  ;;  %2525 = vmatprep.subr.bf16.mxu1 %v26822_v55  ;;  %v26903_v53 = vld [vmem:[%s38719_s3 + $0x4f4] ss:$24 sps:$4 sm:$0xff]   ;;  %v26906_v55 = vld [vmem:[%s38719_s3 + $0x22e4] ss:$24 sps:$4 sm:$0xff]  }
 0x1f4   : > { %9000 = vmatprep.subr.bf16.mxu0 %v26825_v56  ;;  %v26901_v56 = vld [vmem:[%s38719_s3 + $0x4f0] ss:$24 sps:$4 sm:$0xff]  }
 0x1f6   : > { %2526 = vmatpush1.bf16.msra.mxu1 %v26820_v57  ;;  %v26904_v57 = vld [vmem:[%s38719_s3 + $0x22e0] ss:$24 sps:$4 sm:$0xff]  }
 0x1f7   : > { %9001 = vmatpush1.bf16.msra.mxu0 %v26823_v58  ;;  %2527 = vmatprep.subr.bf16.mxu1 %v26828_v59  ;;  %v26909_v58 = vld [vmem:[%s38719_s3 + $0x524] ss:$24 sps:$4 sm:$0xff]   ;;  %v26912_v59 = vld [vmem:[%s38719_s3 + $0x2314] ss:$24 sps:$4 sm:$0xff]  }
 0x1f8   : > { %9002 = vmatprep.subr.bf16.mxu0 %v26831_v60  ;;  %v26907_v60 = vld [vmem:[%s38719_s3 + $0x520] ss:$24 sps:$4 sm:$0xff]  }
 0x1fa   : > { %2528 = vmatpush1.bf16.msra.mxu1 %v26826_v61  ;;  %v26910_v61 = vld [vmem:[%s38719_s3 + $0x2310] ss:$24 sps:$4 sm:$0xff]  }
 0x1fb   : > { %9003 = vmatpush1.bf16.msra.mxu0 %v26829_v62  ;;  %2529 = vmatprep.subr.bf16.mxu1 %v26834_v63  ;;  %v26915_v62 = vld [vmem:[%s38719_s3 + $0x554] ss:$24 sps:$4 sm:$0xff]   ;;  %v26918_v63 = vld [vmem:[%s38719_s3 + $0x2344] ss:$24 sps:$4 sm:$0xff]  }
 0x1fc   : > { %9004 = vmatprep.subr.bf16.mxu0 %v26837_v0  ;;  %v26913_v0 = vld [vmem:[%s38719_s3 + $0x550] ss:$24 sps:$4 sm:$0xff]  }
 0x1fe   : > { %2530 = vmatpush1.bf16.msra.mxu1 %v26832_v1  ;;  %v26916_v1 = vld [vmem:[%s38719_s3 + $0x2340] ss:$24 sps:$4 sm:$0xff]  }
 0x1ff   : > { %9005 = vmatpush1.bf16.msra.mxu0 %v26835_v2  ;;  %2542 = vmatprep.subr.bf16.mxu1 %v26840_v3  ;;  %v26921_v2 = vld [vmem:[%s38719_s3 + $0x584] ss:$24 sps:$4 sm:$0xff]   ;;  %v26924_v3 = vld [vmem:[%s38719_s3 + $0x2374] ss:$24 sps:$4 sm:$0xff]  }
 0x200   : > { %9017 = vmatprep.subr.bf16.mxu0 %v26846_v5  ;;  %v26922_v5 = vld [vmem:[%s38719_s3 + $0x2370] ss:$24 sps:$4 sm:$0xff]  }
 0x201   : > { %2532 = vmatmul.mubr.bf16.vlgmr.msra.gmra.mrb[8].mxu1 %v30076_v12  ;;  %v26936_v12 = vld [vmem:[%s38719_s3 + $0x23d4] ss:$24 sps:$4 sm:$0xff]  }
 0x202   : > { %9007 = vmatmul.mubr.bf16.vlgmr.msra.gmra.mrb[0].mxu0 %v26841_v4  ;;  %2543 = vmatpush1.bf16.msra.mxu1 %v26838_v7  ;;  %v26919_v4 = vld [vmem:[%s38719_s3 + $0x580] ss:$24 sps:$4 sm:$0xff]   ;;  %v26927_v7 = vld [vmem:[%s38719_s3 + $0x5b4] ss:$24 sps:$4 sm:$0xff]  }
 0x203   : > { %9018 = vmatpush1.bf16.msra.mxu0 %v26844_v8  ;;  %2544 = vmatprep.subr.bf16.mxu1 %v26849_v9  ;;  %v26930_v8 = vld [vmem:[%s38719_s3 + $0x23a4] ss:$24 sps:$4 sm:$0xff]   ;;  %v26925_v9 = vld [vmem:[%s38719_s3 + $0x5b0] ss:$24 sps:$4 sm:$0xff]  }
 0x204   : > { %9019 = vmatprep.subr.bf16.mxu0 %v26852_v10  ;;  %2574 = vmatprep.mubr.bf16.mxu1 %v30077_v17  ;;  %v26928_v10 = vld [vmem:[%s38719_s3 + $0x23a0] ss:$24 sps:$4 sm:$0xff]  }
 0x205   : > { %9049 = vmatprep.mubr.bf16.mxu0 %v26942_v11  ;;  %v26933_v11 = vld [vmem:[%s38719_s3 + $0x5e4] ss:$24 sps:$4 sm:$0xff]  }
 0x206   : > { %2545 = vmatpush1.bf16.msra.mxu1 %v26847_v13  ;;  %v26931_v13 = vld [vmem:[%s38719_s3 + $0x5e0] ss:$24 sps:$4 sm:$0xff]  }
 0x207   : > { %9020 = vmatpush1.bf16.msra.mxu0 %v26850_v14  ;;  %2546 = vmatprep.subr.bf16.mxu1 %v26855_v15  ;;  %v26934_v14 = vld [vmem:[%s38719_s3 + $0x23d0] ss:$24 sps:$4 sm:$0xff]   ;;  %v26939_v15 = vld [vmem:[%s38719_s3 + $0x614] ss:$24 sps:$4 sm:$0xff]  }
 0x208   : > { %9021 = vmatprep.subr.bf16.mxu0 %v26858_v16  ;;  %v26945_v16 = vld [vmem:[%s38719_s3 + $0x1b14] ss:$24 sps:$4 sm:$0xff]  }
 0x209   : > { %v26940_v17 = vld [vmem:[%s31193_s13 + $0x10] ss:$48 sps:$4 sm:$0xff]  }
 0x20a   : > { %2547 = vmatpush1.bf16.msra.mxu1 %v26853_v18  ;;  %v26937_v18 = vld [vmem:[%s38719_s3 + $0x610] ss:$24 sps:$4 sm:$0xff]  }
 0x20b   : > { %9022 = vmatpush1.bf16.msra.mxu0 %v26856_v19  ;;  %2548 = vmatprep.subr.bf16.mxu1 %v26861_v20  ;;  %v26943_v19 = vld [vmem:[%s38719_s3 + $0x1b10] ss:$24 sps:$4 sm:$0xff]   ;;  %v26948_v20 = vld [vmem:[%s38719_s3 + $0x644] ss:$24 sps:$4 sm:$0xff]  }
 0x20c   : > { %9023 = vmatprep.subr.bf16.mxu0 %v26864_v21  ;;  %v26951_v21 = vld [vmem:[%s38719_s3 + $0x1b44] ss:$24 sps:$4 sm:$0xff]  }
 0x20e   : > { %2549 = vmatpush1.bf16.msra.mxu1 %v26859_v22  ;;  %v30078_v22 = vld [vmem:[%s30450_s11 + $0x8] ss:$48 sps:$4 sm:$0xff]  }
 0x20f   : > { %9024 = vmatpush1.bf16.msra.mxu0 %v26862_v23  ;;  %2550 = vmatprep.subr.bf16.mxu1 %v26867_v24  ;;  %v26946_v23 = vld [vmem:[%s38719_s3 + $0x640] ss:$24 sps:$4 sm:$0xff]  }
 0x210   : > { %9025 = vmatprep.subr.bf16.mxu0 %v26870_v25  ;;  %v26949_v24 = vld [vmem:[%s38719_s3 + $0x1b40] ss:$24 sps:$4 sm:$0xff]   ;;  %v26954_v25 = vld [vmem:[%s38719_s3 + $0x674] ss:$24 sps:$4 sm:$0xff]  }
 0x212   : > { %2551 = vmatpush1.bf16.msra.mxu1 %v26865_v27  ;;  %v26957_v27 = vld [vmem:[%s38719_s3 + $0x1b74] ss:$24 sps:$4 sm:$0xff]  }
 0x213   : > { %9026 = vmatpush1.bf16.msra.mxu0 %v26868_v29  ;;  %2552 = vmatprep.subr.bf16.mxu1 %v26873_v30  ;;  %v30079_v29 = vld [vmem:[%s30450_s11 + $0x14] ss:$48 sps:$4 sm:$0xff]  }
 0x214   : > { %9027 = vmatprep.subr.bf16.mxu0 %v26876_v31  ;;  %v30080_v30 = vld [vmem:[%s31193_s13 + $0x4] ss:$48 sps:$4 sm:$0xff]  }
 0x215   : > { %v26952_v31 = vld [vmem:[%s38719_s3 + $0x670] ss:$24 sps:$4 sm:$0xff]  }
 0x216   : > { %2553 = vmatpush1.bf16.msra.mxu1 %v26871_v32  ;;  %v26955_v32 = vld [vmem:[%s38719_s3 + $0x1b70] ss:$24 sps:$4 sm:$0xff]  }
 0x217   : > { %9028 = vmatpush1.bf16.msra.mxu0 %v26874_v33  ;;  %2554 = vmatprep.subr.bf16.mxu1 %v26879_v34  ;;  %v26960_v33 = vld [vmem:[%s38719_s3 + $0x6a4] ss:$24 sps:$4 sm:$0xff]  }
 0x218   : > { %9029 = vmatprep.subr.bf16.mxu0 %v26882_v37  ;;  %v26963_v34 = vld [vmem:[%s38719_s3 + $0x1ba4] ss:$24 sps:$4 sm:$0xff]   ;;  %v26958_v37 = vld [vmem:[%s38719_s3 + $0x6a0] ss:$24 sps:$4 sm:$0xff]  }
 0x21a   : > { %2555 = vmatpush1.bf16.msra.mxu1 %v26877_v38  ;;  %v26961_v38 = vld [vmem:[%s38719_s3 + $0x1ba0] ss:$24 sps:$4 sm:$0xff]  }
 0x21b   : > { %9030 = vmatpush1.bf16.msra.mxu0 %v26880_v40  ;;  %2556 = vmatprep.subr.bf16.mxu1 %v26885_v41  ;;  %v26966_v40 = vld [vmem:[%s38719_s3 + $0x6d4] ss:$24 sps:$4 sm:$0xff]  }
 0x21c   : > { %9031 = vmatprep.subr.bf16.mxu0 %v26888_v42  ;;  %v26969_v41 = vld [vmem:[%s38719_s3 + $0x1bd4] ss:$24 sps:$4 sm:$0xff]   ;;  %v26964_v42 = vld [vmem:[%s38719_s3 + $0x6d0] ss:$24 sps:$4 sm:$0xff]  }
 0x21e   : > { %2557 = vmatpush1.bf16.msra.mxu1 %v26883_v43  ;;  %v26967_v43 = vld [vmem:[%s38719_s3 + $0x1bd0] ss:$24 sps:$4 sm:$0xff]  }
 0x21f   : > { %9032 = vmatpush1.bf16.msra.mxu0 %v26886_v44  ;;  %2558 = vmatprep.subr.bf16.mxu1 %v26891_v45  ;;  %v26972_v44 = vld [vmem:[%s38719_s3 + $0x704] ss:$24 sps:$4 sm:$0xff]  }
 0x220   : > { %9033 = vmatprep.subr.bf16.mxu0 %v26894_v46  ;;  %v26975_v45 = vld [vmem:[%s38719_s3 + $0x1c04] ss:$24 sps:$4 sm:$0xff]   ;;  %v26970_v46 = vld [vmem:[%s38719_s3 + $0x700] ss:$24 sps:$4 sm:$0xff]  }
 0x222   : > { %2559 = vmatpush1.bf16.msra.mxu1 %v26889_v47  ;;  %v26973_v47 = vld [vmem:[%s38719_s3 + $0x1c00] ss:$24 sps:$4 sm:$0xff]  }
 0x223   : > { %9034 = vmatpush1.bf16.msra.mxu0 %v26892_v48  ;;  %2560 = vmatprep.subr.bf16.mxu1 %v26897_v49  ;;  %v26978_v48 = vld [vmem:[%s38719_s3 + $0x734] ss:$24 sps:$4 sm:$0xff]  }
 0x224   : > { %9035 = vmatprep.subr.bf16.mxu0 %v26900_v50  ;;  %v26981_v49 = vld [vmem:[%s38719_s3 + $0x1c34] ss:$24 sps:$4 sm:$0xff]   ;;  %v26976_v50 = vld [vmem:[%s38719_s3 + $0x730] ss:$24 sps:$4 sm:$0xff]  }
 0x226   : > { %2561 = vmatpush1.bf16.msra.mxu1 %v26895_v51  ;;  %v26979_v51 = vld [vmem:[%s38719_s3 + $0x1c30] ss:$24 sps:$4 sm:$0xff]  }
 0x227   : > { %9036 = vmatpush1.bf16.msra.mxu0 %v26898_v52  ;;  %2562 = vmatprep.subr.bf16.mxu1 %v26903_v53  ;;  %v26984_v52 = vld [vmem:[%s38719_s3 + $0x764] ss:$24 sps:$4 sm:$0xff]  }
 0x228   : > { %9037 = vmatprep.subr.bf16.mxu0 %v26906_v55  ;;  %v26987_v53 = vld [vmem:[%s38719_s3 + $0x1c64] ss:$24 sps:$4 sm:$0xff]   ;;  %v26982_v55 = vld [vmem:[%s38719_s3 + $0x760] ss:$24 sps:$4 sm:$0xff]  }
 0x22a   : > { %2563 = vmatpush1.bf16.msra.mxu1 %v26901_v56  ;;  %v26985_v56 = vld [vmem:[%s38719_s3 + $0x1c60] ss:$24 sps:$4 sm:$0xff]  }
 0x22b   : > { %9038 = vmatpush1.bf16.msra.mxu0 %v26904_v57  ;;  %2564 = vmatprep.subr.bf16.mxu1 %v26909_v58  ;;  %v26990_v57 = vld [vmem:[%s38719_s3 + $0x794] ss:$24 sps:$4 sm:$0xff]  }
 0x22c   : > { %9039 = vmatprep.subr.bf16.mxu0 %v26912_v59  ;;  %v26993_v58 = vld [vmem:[%s38719_s3 + $0x1c94] ss:$24 sps:$4 sm:$0xff]   ;;  %v26988_v59 = vld [vmem:[%s38719_s3 + $0x790] ss:$24 sps:$4 sm:$0xff]  }
 0x22e   : > { %2565 = vmatpush1.bf16.msra.mxu1 %v26907_v60  ;;  %v26991_v60 = vld [vmem:[%s38719_s3 + $0x1c90] ss:$24 sps:$4 sm:$0xff]  }
 0x22f   : > { %9040 = vmatpush1.bf16.msra.mxu0 %v26910_v61  ;;  %2566 = vmatprep.subr.bf16.mxu1 %v26915_v62  ;;  %v26996_v61 = vld [vmem:[%s38719_s3 + $0x7c4] ss:$24 sps:$4 sm:$0xff]  }
 0x230   : > { %9041 = vmatprep.subr.bf16.mxu0 %v26918_v63  ;;  %v26999_v62 = vld [vmem:[%s38719_s3 + $0x1cc4] ss:$24 sps:$4 sm:$0xff]   ;;  %v26994_v63 = vld [vmem:[%s38719_s3 + $0x7c0] ss:$24 sps:$4 sm:$0xff]  }
 0x232   : > { %2567 = vmatpush1.bf16.msra.mxu1 %v26913_v0  ;;  %v26997_v0 = vld [vmem:[%s38719_s3 + $0x1cc0] ss:$24 sps:$4 sm:$0xff]  }
 0x233   : > { %9042 = vmatpush1.bf16.msra.mxu0 %v26916_v1  ;;  %2568 = vmatprep.subr.bf16.mxu1 %v26921_v2  ;;  %v27002_v1 = vld [vmem:[%s38719_s3 + $0x7f4] ss:$24 sps:$4 sm:$0xff]  }
 0x234   : > { %9043 = vmatprep.subr.bf16.mxu0 %v26924_v3  ;;  %v27005_v2 = vld [vmem:[%s38719_s3 + $0x1cf4] ss:$24 sps:$4 sm:$0xff]   ;;  %v27000_v3 = vld [vmem:[%s38719_s3 + $0x7f0] ss:$24 sps:$4 sm:$0xff]  }
 0x236   : > { %2569 = vmatpush1.bf16.msra.mxu1 %v26919_v4  ;;  %v27003_v4 = vld [vmem:[%s38719_s3 + $0x1cf0] ss:$24 sps:$4 sm:$0xff]  }
 0x237   : > { %9044 = vmatpush1.bf16.msra.mxu0 %v26922_v5  ;;  %2570 = vmatprep.subr.bf16.mxu1 %v26927_v7  ;;  %v27008_v5 = vld [vmem:[%s38719_s3 + $0x824] ss:$24 sps:$4 sm:$0xff]  }
 0x238   : > { %9045 = vmatprep.subr.bf16.mxu0 %v26930_v8  ;;  %v27011_v7 = vld [vmem:[%s38719_s3 + $0x1d24] ss:$24 sps:$4 sm:$0xff]  }
 0x239   : > { %v2941_v8 = vld [vmem:[%s30450_s11] sm:$0xff] }
 0x23a   : > { %2571 = vmatpush1.bf16.msra.mxu1 %v26925_v9  ;;  %v27006_v9 = vld [vmem:[%s38719_s3 + $0x820] ss:$24 sps:$4 sm:$0xff]  }
 0x23b   : > { %9046 = vmatpush1.bf16.msra.mxu0 %v26928_v10  ;;  %2572 = vmatprep.subr.bf16.mxu1 %v26933_v11  ;;  %v27009_v10 = vld [vmem:[%s38719_s3 + $0x1d20] ss:$24 sps:$4 sm:$0xff]  }
 0x23c   : > { %9047 = vmatprep.subr.bf16.mxu0 %v26936_v12  ;;  %v2947_v11 = vld [vmem:[%s30450_s11 + $0x30] sm:$0xff] }
 0x23d   : > { %v27014_v12 = vld [vmem:[%s38719_s3 + $0x854] ss:$24 sps:$4 sm:$0xff]  }
 0x23e   : > { %2573 = vmatpush1.bf16.msra.mxu1 %v26931_v13  ;;  %v27017_v13 = vld [vmem:[%s38719_s3 + $0x1d54] ss:$24 sps:$4 sm:$0xff]  }
 0x23f   : > { %9048 = vmatpush1.bf16.msra.mxu0 %v26934_v14  ;;  %2585 = vmatprep.subr.bf16.mxu1 %v26939_v15  ;;  %v2957_v14 = vshrl.u32 %v2941_v8, 16  ;;  %v2960_v15 = vshll.u32 %v2941_v8, 16  ;;  %v27056_v8 = vld [vmem:[%s38719_s3 + $0x994] ss:$24 sps:$4 sm:$0xff]  }
 0x240   : > { %9189 = vmatprep.subr.bf16.mxu0 %v26945_v16  ;;  %v2999_v16 = vshrl.u32 %v2947_v11, 16 }
 0x241   : > { %2575 = vmatmul.mubr.bf16.vlgmr.msra.gmra.mrb[8].mxu1 %v30078_v22  ;;  %v27018_v22 = vld [vmem:[%s38719_s3 + $0x880] ss:$24 sps:$4 sm:$0xff]  }
 0x242   : > { %9050 = vmatmul.mubr.bf16.vlgmr.msra.gmra.mrb[0].mxu0 %v26940_v17  ;;  %2586 = vmatpush1.bf16.msra.mxu1 %v26937_v18  ;;  %v3002_v17 = vshll.u32 %v2947_v11, 16  ;;  %v27012_v18 = vld [vmem:[%s38719_s3 + $0x850] ss:$24 sps:$4 sm:$0xff]   ;;  %v27057_v11 = vld [vmem:[%s38719_s3 + $0x1ea0] ss:$24 sps:$4 sm:$0xff]  }
 0x243   : > { %9190 = vmatpush1.bf16.msra.mxu0 %v26943_v19  ;;  %2587 = vmatprep.subr.bf16.mxu1 %v26948_v20  ;;  %v27015_v19 = vld [vmem:[%s38719_s3 + $0x1d50] ss:$24 sps:$4 sm:$0xff]   ;;  %v27020_v20 = vld [vmem:[%s38719_s3 + $0x884] ss:$24 sps:$4 sm:$0xff]  }
 0x244   : > { %9191 = vmatprep.subr.bf16.mxu0 %v26951_v21  ;;  %2617 = vmatprep.mubr.bf16.mxu1 %v30079_v29  ;;  %v27023_v21 = vld [vmem:[%s38719_s3 + $0x1d84] ss:$24 sps:$4 sm:$0xff]   ;;  %v3004_v29 = vrot.slane %v3002_v17, 5 }
 0x245   : > { %9221 = vmatprep.mubr.bf16.mxu0 %v30080_v30  ;;  %v2944_v30 = vld [vmem:[%s30450_s11 + $0x18] sm:$0x11] }
 0x246   : > { %2588 = vmatpush1.bf16.msra.mxu1 %v26946_v23  ;;  %v27021_v23 = vld [vmem:[%s38719_s3 + $0x1d80] ss:$24 sps:$4 sm:$0xff]   ;;  %v27071_v17 = vld [vmem:[%s38719_s3 + $0x1f04] ss:$24 sps:$4 sm:$0xff]  }
 0x247   : > { %9192 = vmatpush1.bf16.msra.mxu0 %v26949_v24  ;;  %2589 = vmatprep.subr.bf16.mxu1 %v26954_v25  ;;  %v2959_v24 = vrot.slane %v2957_v14, 4  ;;  %v2962_v25 = vrot.slane %v2960_v15, 5  ;;  %v27060_v14 = vld [vmem:[%s38719_s3 + $0x9c0] ss:$24 sps:$4 sm:$0xff]   ;;  %v27063_v15 = vld [vmem:[%s38719_s3 + $0x1ed0] ss:$24 sps:$4 sm:$0xff]  }
 0x248   : > { %9193 = vmatprep.subr.bf16.mxu0 %v26957_v27  ;;  %v3001_v27 = vrot.slane %v2999_v16, 4  ;;  %v27068_v16 = vld [vmem:[%s38719_s3 + $0x9f4] ss:$24 sps:$4 sm:$0xff]  }
 0x24a   : > { %2590 = vmatpush1.bf16.msra.mxu1 %v26952_v31  ;;  %v2950_v31 = vld [vmem:[%s30450_s11 + $0x48] sm:$0x11] }
 0x24b   : > { %9194 = vmatpush1.bf16.msra.mxu0 %v26955_v32  ;;  %2591 = vmatprep.subr.bf16.mxu1 %v26960_v33  ;;  %v27026_v32 = vld [vmem:[%s38719_s3 + $0x8b4] ss:$24 sps:$4 sm:$0xff]  }
 0x24c   : > { %9195 = vmatprep.subr.bf16.mxu0 %v26963_v34  ;;  %v27029_v33 = vld [vmem:[%s38719_s3 + $0x1db4] ss:$24 sps:$4 sm:$0xff]   ;;  %v2963_v34 = vor.u32 %v2962_v25, %v2959_v24  ;;  %v27083_v25 = vld [vmem:[%s38719_s3 + $0x1f64] ss:$24 sps:$4 sm:$0xff]  }
 0x24d   : > { %v27080_v24 = vld [vmem:[%s38719_s3 + $0xa54] ss:$24 sps:$4 sm:$0xff]  }
 0x24e   : > { %2592 = vmatpush1.bf16.msra.mxu1 %v26958_v37  ;;  %v2966_v37 = vshll.u32 %v2944_v30, 16  ;;  %v27086_v30 = vld [vmem:[%s38719_s3 + $0xa84] ss:$24 sps:$4 sm:$0xff]  }
 0x24f   : > { %9196 = vmatpush1.bf16.msra.mxu0 %v26961_v38  ;;  %2593 = vmatprep.subr.bf16.mxu1 %v26966_v40  ;;  %v3005_v38 = vor.u32 %v3004_v29, %v3001_v27  ;;  %v3008_v40 = vshll.u32 %v2950_v31, 16  ;;  %v27078_v27 = vld [vmem:[%s38719_s3 + $0xa50] ss:$24 sps:$4 sm:$0xff]   ;;  %v27081_v29 = vld [vmem:[%s38719_s3 + $0x1f60] ss:$24 sps:$4 sm:$0xff]  }
 0x250   : > { %9197 = vmatprep.subr.bf16.mxu0 %v26969_v41  ;;  %v27024_v41 = vld [vmem:[%s38719_s3 + $0x8b0] ss:$24 sps:$4 sm:$0xff]   ;;  %v27089_v31 = vld [vmem:[%s38719_s3 + $0x1f94] ss:$24 sps:$4 sm:$0xff]  }
 0x252   : > { %2594 = vmatpush1.bf16.msra.mxu1 %v26964_v42  ;;  %v27027_v42 = vld [vmem:[%s38719_s3 + $0x1db0] ss:$24 sps:$4 sm:$0xff]  }
 0x253   : > { %9198 = vmatpush1.bf16.msra.mxu0 %v26967_v43  ;;  %2595 = vmatprep.subr.bf16.mxu1 %v26972_v44  ;;  %v27032_v43 = vld [vmem:[%s38719_s3 + $0x8e4] ss:$24 sps:$4 sm:$0xff]  }
 0x254   : > { %9199 = vmatprep.subr.bf16.mxu0 %v26975_v45  ;;  %v27035_v44 = vld [vmem:[%s38719_s3 + $0x1de4] ss:$24 sps:$4 sm:$0xff]   ;;  %v2964_v45 = vrot.slane %v2963_v34, 4  ;;  %v27092_v34 = vld [vmem:[%s38719_s3 + $0xab4] ss:$24 sps:$4 sm:$0xff]  }
 0x256   : > { %2596 = vmatpush1.bf16.msra.mxu1 %v26970_v46  ;;  %v2968_v46 = vrot.slane %v2966_v37, 5  ;;  %v27095_v37 = vld [vmem:[%s38719_s3 + $0x1fc4] ss:$24 sps:$4 sm:$0xff]  }
 0x257   : > { %9200 = vmatpush1.bf16.msra.mxu0 %v26973_v47  ;;  %2597 = vmatprep.subr.bf16.mxu1 %v26978_v48  ;;  %v3006_v47 = vrot.slane %v3005_v38, 4  ;;  %v3010_v48 = vrot.slane %v3008_v40, 5  ;;  %v27090_v38 = vld [vmem:[%s38719_s3 + $0xab0] ss:$24 sps:$4 sm:$0xff]   ;;  %v27093_v40 = vld [vmem:[%s38719_s3 + $0x1fc0] ss:$24 sps:$4 sm:$0xff]  }
 0x258   : > { %9201 = vmatprep.subr.bf16.mxu0 %v26981_v49  ;;  %v27030_v49 = vld [vmem:[%s38719_s3 + $0x8e0] ss:$24 sps:$4 sm:$0xff]  }
 0x25a   : > { %2598 = vmatpush1.bf16.msra.mxu1 %v26976_v50  ;;  %v27033_v50 = vld [vmem:[%s38719_s3 + $0x1de0] ss:$24 sps:$4 sm:$0xff]  }
 0x25b   : > { %9202 = vmatpush1.bf16.msra.mxu0 %v26979_v51  ;;  %2599 = vmatprep.subr.bf16.mxu1 %v26984_v52  ;;  %v27038_v52 = vld [vmem:[%s38719_s3 + $0x904] ss:$24 sps:$4 sm:$0xff]   ;;  %v29168_v51 = vld [vmem:[%s38719_s3 + $0x4534] ss:$24 sps:$4 sm:$0xff]  }
 0x25c   : > { %9203 = vmatprep.subr.bf16.mxu0 %v26987_v53  ;;  %v27041_v53 = vld [vmem:[%s38719_s3 + $0x1e14] ss:$24 sps:$4 sm:$0xff]  }
 0x25e   : > { %2600 = vmatpush1.bf16.msra.mxu1 %v26982_v55  ;;  %v32145_v55 = vsel %vm32133_vm5, %v2964_v45, %v2968_v46  ;;  %v27104_v45 = vld [vmem:[%s38719_s3 + $0xb14] ss:$24 sps:$4 sm:$0xff]   ;;  %v27107_v46 = vld [vmem:[%s38719_s3 + $0x2024] ss:$24 sps:$4 sm:$0xff]  }
 0x25f   : > { %9204 = vmatpush1.bf16.msra.mxu0 %v26985_v56  ;;  %2601 = vmatprep.subr.bf16.mxu1 %v26990_v57  ;;  %v32149_v56 = vsel %vm32133_vm5, %v3006_v47, %v3010_v48  ;;  %v27036_v57 = vld [vmem:[%s38719_s3 + $0x900] ss:$24 sps:$4 sm:$0xff]   ;;  %v2942_v47 = vld [vmem:[%s30450_s11 + $0x8] sm:$0xff] }
 0x260   : > { %9205 = vmatprep.subr.bf16.mxu0 %v26993_v58  ;;  %v27039_v58 = vld [vmem:[%s38719_s3 + $0x1e10] ss:$24 sps:$4 sm:$0xff]  }
 0x261   : > { %v27102_v48 = vld [vmem:[%s38719_s3 + $0xb10] ss:$24 sps:$4 sm:$0xff]  }
 0x262   : > { %2602 = vmatpush1.bf16.msra.mxu1 %v26988_v59  ;;  %v27044_v59 = vld [vmem:[%s38719_s3 + $0x934] ss:$24 sps:$4 sm:$0xff]  }
 0x263   : > { %9206 = vmatpush1.bf16.msra.mxu0 %v26991_v60  ;;  %2603 = vmatprep.subr.bf16.mxu1 %v26996_v61  ;;  %v27047_v60 = vld [vmem:[%s38719_s3 + $0x1e44] ss:$24 sps:$4 sm:$0xff]   ;;  %v32165_v61 = vcombine.high %v32145_v55, %v32149_v56 }
 0x264   : > { %9207 = vmatprep.subr.bf16.mxu0 %v26999_v62  ;;  %v30081_v62 = vld [vmem:[%s30450_s11 + $0x10] ss:$48 sps:$4 sm:$0xff]  }
 0x266   : > { %2604 = vmatpush1.bf16.msra.mxu1 %v26994_v63  ;;  %v30082_v63 = vld [vmem:[%s31193_s13] ss:$48 sps:$4 sm:$0xff]  }
 0x267   : > { %9208 = vmatpush1.bf16.msra.mxu0 %v26997_v0  ;;  %2605 = vmatprep.subr.bf16.mxu1 %v27002_v1  ;;  %v27042_v0 = vld [vmem:[%s38719_s3 + $0x930] ss:$24 sps:$4 sm:$0xff]   ;;  %v27045_v1 = vld [vmem:[%s38719_s3 + $0x1e40] ss:$24 sps:$4 sm:$0xff]  }
 0x268   : > { %9209 = vmatprep.subr.bf16.mxu0 %v27005_v2  ;;  %v27050_v2 = vld [vmem:[%s38719_s3 + $0x964] ss:$24 sps:$4 sm:$0xff]  }
 0x26a   : > { %2606 = vmatpush1.bf16.msra.mxu1 %v27000_v3  ;;  %v27053_v3 = vld [vmem:[%s38719_s3 + $0x1e74] ss:$24 sps:$4 sm:$0xff]  }
 0x26b   : > { %9210 = vmatpush1.bf16.msra.mxu0 %v27003_v4  ;;  %2607 = vmatprep.subr.bf16.mxu1 %v27008_v5  ;;  %v30083_v4 = vld [vmem:[%s31193_s13 + $0xc] ss:$48 sps:$4 sm:$0xff]  }
 0x26c   : > { %9211 = vmatprep.subr.bf16.mxu0 %v27011_v7  ;;  %v27048_v5 = vld [vmem:[%s38719_s3 + $0x960] ss:$24 sps:$4 sm:$0xff]   ;;  %v27051_v7 = vld [vmem:[%s38719_s3 + $0x1e70] ss:$24 sps:$4 sm:$0xff]  }
 0x26e   : > { %2608 = vmatpush1.bf16.msra.mxu1 %v27006_v9  ;;  %v27059_v9 = vld [vmem:[%s38719_s3 + $0x1ea4] ss:$24 sps:$4 sm:$0xff]  }
 0x26f   : > { %9212 = vmatpush1.bf16.msra.mxu0 %v27009_v10  ;;  %2609 = vmatprep.subr.bf16.mxu1 %v27014_v12  ;;  %v27054_v10 = vld [vmem:[%s38719_s3 + $0x990] ss:$24 sps:$4 sm:$0xff]   ;;  %v27062_v12 = vld [vmem:[%s38719_s3 + $0x9c4] ss:$24 sps:$4 sm:$0xff]  }
 0x270   : > { %9213 = vmatprep.subr.bf16.mxu0 %v27017_v13  ;;  %v27065_v13 = vld [vmem:[%s38719_s3 + $0x1ed4] ss:$24 sps:$4 sm:$0xff]  }
 0x272   : > { %2610 = vmatpush1.bf16.msra.mxu1 %v27012_v18  ;;  %v27066_v18 = vld [vmem:[%s38719_s3 + $0x9f0] ss:$24 sps:$4 sm:$0xff]  }
 0x273   : > { %9214 = vmatpush1.bf16.msra.mxu0 %v27015_v19  ;;  %2611 = vmatprep.subr.bf16.mxu1 %v27020_v20  ;;  %v27069_v19 = vld [vmem:[%s38719_s3 + $0x1f00] ss:$24 sps:$4 sm:$0xff]   ;;  %v27074_v20 = vld [vmem:[%s38719_s3 + $0xa24] ss:$24 sps:$4 sm:$0xff]  }
 0x274   : > { %9215 = vmatprep.subr.bf16.mxu0 %v27023_v21  ;;  %v27077_v21 = vld [vmem:[%s38719_s3 + $0x1f34] ss:$24 sps:$4 sm:$0xff]  }
 0x276   : > { %2612 = vmatpush1.bf16.msra.mxu1 %v27018_v22  ;;  %v27072_v22 = vld [vmem:[%s38719_s3 + $0xa20] ss:$24 sps:$4 sm:$0xff]  }
 0x277   : > { %9216 = vmatpush1.bf16.msra.mxu0 %v27021_v23  ;;  %2613 = vmatprep.subr.bf16.mxu1 %v27026_v32  ;;  %v27075_v23 = vld [vmem:[%s38719_s3 + $0x1f30] ss:$24 sps:$4 sm:$0xff]   ;;  %v27084_v32 = vld [vmem:[%s38719_s3 + $0xa80] ss:$24 sps:$4 sm:$0xff]  }
 0x278   : > { %9217 = vmatprep.subr.bf16.mxu0 %v27029_v33  ;;  %v27087_v33 = vld [vmem:[%s38719_s3 + $0x1f90] ss:$24 sps:$4 sm:$0xff]  }
 0x27a   : > { %2614 = vmatpush1.bf16.msra.mxu1 %v27024_v41  ;;  %v27098_v41 = vld [vmem:[%s38719_s3 + $0xae4] ss:$24 sps:$4 sm:$0xff]  }
 0x27b   : > { %9218 = vmatpush1.bf16.msra.mxu0 %v27027_v42  ;;  %2615 = vmatprep.subr.bf16.mxu1 %v27032_v43  ;;  %v27101_v42 = vld [vmem:[%s38719_s3 + $0x1ff4] ss:$24 sps:$4 sm:$0xff]   ;;  %v27096_v43 = vld [vmem:[%s38719_s3 + $0xae0] ss:$24 sps:$4 sm:$0xff]  }
 0x27c   : > { %9219 = vmatprep.subr.bf16.mxu0 %v27035_v44  ;;  %v27099_v44 = vld [vmem:[%s38719_s3 + $0x1ff0] ss:$24 sps:$4 sm:$0xff]  }
 0x27e   : > { %2616 = vmatpush1.bf16.msra.mxu1 %v27030_v49  ;;  %v27105_v49 = vld [vmem:[%s38719_s3 + $0x2020] ss:$24 sps:$4 sm:$0xff]  }
 0x27f   : > { %9220 = vmatpush1.bf16.msra.mxu0 %v27033_v50  ;;  %4516 = vmatprep.subr.bf16.mxu1 %v27038_v52  ;;  %v2948_v50 = vld [vmem:[%s30450_s11 + $0x38] sm:$0xff] }
 0x280   : > { %9232 = vmatprep.subr.bf16.mxu0 %v27041_v53  ;;  %v27110_v52 = vld [vmem:[%s38719_s3 + $0xb44] ss:$24 sps:$4 sm:$0xff]   ;;  %v27113_v53 = vld [vmem:[%s38719_s3 + $0x2054] ss:$24 sps:$4 sm:$0xff]  }
 0x281   : > { %2618 = vmatmul.mubr.bf16.vlgmr.msra.gmra.mrb[8].mxu1 %v30081_v62  ;;  %v27108_v62 = vld [vmem:[%s38719_s3 + $0xb40] ss:$24 sps:$4 sm:$0xff]  }
 0x282   : > { %9222 = vmatmul.mubr.bf16.vlgmr.msra.gmra.mrb[4].mxu0 %v30082_v63  ;;  %4517 = vmatpush1.bf16.msra.mxu1 %v27036_v57  ;;  %v2971_v57 = vshrl.u32 %v2942_v47, 16  ;;  %v27111_v63 = vld [vmem:[%s38719_s3 + $0x2050] ss:$24 sps:$4 sm:$0xff]  }
 0x283   : > { %9233 = vmatpush1.bf16.msra.mxu0 %v27039_v58  ;;  %4518 = vmatprep.subr.bf16.mxu1 %v27044_v59  ;;  %v2974_v58 = vshll.u32 %v2942_v47, 16  ;;  %v3013_v59 = vshrl.u32 %v2948_v50, 16  ;;  %v27147_v47 = vld [vmem:[%s38719_s3 + $0x2170] ss:$24 sps:$4 sm:$0xff]  }
 0x284   : > { %9234 = vmatprep.subr.bf16.mxu0 %v27047_v60  ;;  %4548 = vmatprep.mubr.bf16.mxu1 %v32165_v61  ;;  %v3016_v60 = vshll.u32 %v2948_v50, 16  ;;  %v27150_v50 = vld [vmem:[%s38719_s3 + $0xc90] ss:$24 sps:$4 sm:$0xff]  }
 0x285   : > { %9264 = vmatprep.mubr.bf16.mxu0 %v30083_v4  ;;  %v2973_v4 = vrot.slane %v2971_v57, 4  ;;  %v27161_v57 = vld [vmem:[%s38719_s3 + $0x21d4] ss:$24 sps:$4 sm:$0xff]  }
 0x286   : > { %4519 = vmatpush1.bf16.msra.mxu1 %v27042_v0  ;;  %v27116_v0 = vld [vmem:[%s38719_s3 + $0xb74] ss:$24 sps:$4 sm:$0xff]  }
 0x287   : > { %9235 = vmatpush1.bf16.msra.mxu0 %v27045_v1  ;;  %4520 = vmatprep.subr.bf16.mxu1 %v27050_v2  ;;  %v27119_v1 = vld [vmem:[%s38719_s3 + $0x2084] ss:$24 sps:$4 sm:$0xff]   ;;  %v27114_v2 = vld [vmem:[%s38719_s3 + $0xb70] ss:$24 sps:$4 sm:$0xff]  }
 0x288   : > { %9236 = vmatprep.subr.bf16.mxu0 %v27053_v3  ;;  %v27117_v3 = vld [vmem:[%s38719_s3 + $0x2080] ss:$24 sps:$4 sm:$0xff]  }
 0x28a   : > { %4521 = vmatpush1.bf16.msra.mxu1 %v27048_v5  ;;  %v2976_v5 = vrot.slane %v2974_v58, 5  ;;  %v27156_v58 = vld [vmem:[%s38719_s3 + $0xcc0] ss:$24 sps:$4 sm:$0xff]  }
 0x28b   : > { %9237 = vmatpush1.bf16.msra.mxu0 %v27051_v7  ;;  %4522 = vmatprep.subr.bf16.mxu1 %v27056_v8  ;;  %v3015_v7 = vrot.slane %v3013_v59, 4  ;;  %v3018_v8 = vrot.slane %v3016_v60, 5  ;;  %v27159_v59 = vld [vmem:[%s38719_s3 + $0x21d0] ss:$24 sps:$4 sm:$0xff]   ;;  %v27164_v60 = vld [vmem:[%s38719_s3 + $0xcf4] ss:$24 sps:$4 sm:$0xff]  }
 0x28c   : > { %9238 = vmatprep.subr.bf16.mxu0 %v27059_v9  ;;  %v2945_v9 = vld [vmem:[%s30450_s11 + $0x20] sm:$0x11] }
 0x28e   : > { %4523 = vmatpush1.bf16.msra.mxu1 %v27054_v10  ;;  %v2951_v10 = vld [vmem:[%s30450_s11 + $0x50] sm:$0x11] }
 0x28f   : > { %9239 = vmatpush1.bf16.msra.mxu0 %v27057_v11  ;;  %4524 = vmatprep.subr.bf16.mxu1 %v27062_v12  ;;  %v27122_v11 = vld [vmem:[%s38719_s3 + $0xba4] ss:$24 sps:$4 sm:$0xff]   ;;  %v27125_v12 = vld [vmem:[%s38719_s3 + $0x20b4] ss:$24 sps:$4 sm:$0xff]  }
 0x290   : > { %9240 = vmatprep.subr.bf16.mxu0 %v27065_v13  ;;  %v2977_v13 = vor.u32 %v2976_v5, %v2973_v4  ;;  %v27171_v4 = vld [vmem:[%s38719_s3 + $0x2230] ss:$24 sps:$4 sm:$0xff]   ;;  %v27176_v5 = vld [vmem:[%s38719_s3 + $0xd54] ss:$24 sps:$4 sm:$0xff]  }
 0x292   : > { %4525 = vmatpush1.bf16.msra.mxu1 %v27060_v14  ;;  %v2980_v14 = vshll.u32 %v2945_v9, 16  ;;  %v27177_v9 = vld [vmem:[%s38719_s3 + $0x2260] ss:$24 sps:$4 sm:$0xff]  }
 0x293   : > { %9241 = vmatpush1.bf16.msra.mxu0 %v27063_v15  ;;  %4526 = vmatprep.subr.bf16.mxu1 %v27068_v16  ;;  %v3019_v15 = vor.u32 %v3018_v8, %v3015_v7  ;;  %v3022_v16 = vshll.u32 %v2951_v10, 16  ;;  %v27179_v7 = vld [vmem:[%s38719_s3 + $0x2264] ss:$24 sps:$4 sm:$0xff]   ;;  %v27174_v8 = vld [vmem:[%s38719_s3 + $0xd50] ss:$24 sps:$4 sm:$0xff]  }
 0x294   : > { %9242 = vmatprep.subr.bf16.mxu0 %v27071_v17  ;;  %v27120_v17 = vld [vmem:[%s38719_s3 + $0xba0] ss:$24 sps:$4 sm:$0xff]   ;;  %v27182_v10 = vld [vmem:[%s38719_s3 + $0xd84] ss:$24 sps:$4 sm:$0xff]  }
 0x296   : > { %4527 = vmatpush1.bf16.msra.mxu1 %v27066_v18  ;;  %v27123_v18 = vld [vmem:[%s38719_s3 + $0x20b0] ss:$24 sps:$4 sm:$0xff]  }
 0x297   : > { %9243 = vmatpush1.bf16.msra.mxu0 %v27069_v19  ;;  %4528 = vmatprep.subr.bf16.mxu1 %v27074_v20  ;;  %v27128_v19 = vld [vmem:[%s38719_s3 + $0xbd4] ss:$24 sps:$4 sm:$0xff]   ;;  %v27131_v20 = vld [vmem:[%s38719_s3 + $0x20e4] ss:$24 sps:$4 sm:$0xff]  }
 0x298   : > { %9244 = vmatprep.subr.bf16.mxu0 %v27077_v21  ;;  %v2978_v21 = vrot.slane %v2977_v13, 4  ;;  %v27183_v13 = vld [vmem:[%s38719_s3 + $0x2290] ss:$24 sps:$4 sm:$0xff]  }
 0x29a   : > { %4529 = vmatpush1.bf16.msra.mxu1 %v27072_v22  ;;  %v2982_v22 = vrot.slane %v2980_v14, 5  ;;  %v27188_v14 = vld [vmem:[%s38719_s3 + $0xdb4] ss:$24 sps:$4 sm:$0xff]  }
 0x29b   : > { %9245 = vmatpush1.bf16.msra.mxu0 %v27075_v23  ;;  %4530 = vmatprep.subr.bf16.mxu1 %v27080_v24  ;;  %v3020_v23 = vrot.slane %v3019_v15, 4  ;;  %v3024_v24 = vrot.slane %v3022_v16, 5  ;;  %v27191_v15 = vld [vmem:[%s38719_s3 + $0x22c4] ss:$24 sps:$4 sm:$0xff]   ;;  %v27186_v16 = vld [vmem:[%s38719_s3 + $0xdb0] ss:$24 sps:$4 sm:$0xff]  }
 0x29c   : > { %9246 = vmatprep.subr.bf16.mxu0 %v27083_v25  ;;  %v27126_v25 = vld [vmem:[%s38719_s3 + $0xbd0] ss:$24 sps:$4 sm:$0xff]  }
 0x29e   : > { %4531 = vmatpush1.bf16.msra.mxu1 %v27078_v27  ;;  %v27129_v27 = vld [vmem:[%s38719_s3 + $0x20e0] ss:$24 sps:$4 sm:$0xff]  }
 0x29f   : > { %9247 = vmatpush1.bf16.msra.mxu0 %v27081_v29  ;;  %4532 = vmatprep.subr.bf16.mxu1 %v27086_v30  ;;  %v27134_v29 = vld [vmem:[%s38719_s3 + $0xc04] ss:$24 sps:$4 sm:$0xff]   ;;  %v27137_v30 = vld [vmem:[%s38719_s3 + $0x2114] ss:$24 sps:$4 sm:$0xff]  }
 0x2a0   : > { %9248 = vmatprep.subr.bf16.mxu0 %v27089_v31  ;;  %v32357_v31 = vcombine.low %v32145_v55, %v32149_v56  ;;  %v27140_v55 = vld [vmem:[%s38719_s3 + $0xc34] ss:$24 sps:$4 sm:$0xff]   ;;  %v27143_v56 = vld [vmem:[%s38719_s3 + $0x2144] ss:$24 sps:$4 sm:$0xff]  }
 0x2a2   : > { %4533 = vmatpush1.bf16.msra.mxu1 %v27084_v32  ;;  %v32361_v32 = vsel %vm32133_vm5, %v2978_v21, %v2982_v22  ;;  %v27195_v21 = vld [vmem:[%s38719_s3 + $0x22f0] ss:$24 sps:$4 sm:$0xff]   ;;  %v27200_v22 = vld [vmem:[%s38719_s3 + $0xe14] ss:$24 sps:$4 sm:$0xff]  }
 0x2a3   : > { %9249 = vmatpush1.bf16.msra.mxu0 %v27087_v33  ;;  %4534 = vmatprep.subr.bf16.mxu1 %v27092_v34  ;;  %v32365_v33 = vsel %vm32133_vm5, %v3020_v23, %v3024_v24  ;;  %v27132_v34 = vld [vmem:[%s38719_s3 + $0xc00] ss:$24 sps:$4 sm:$0xff]   ;;  %v27203_v23 = vld [vmem:[%s38719_s3 + $0x2324] ss:$24 sps:$4 sm:$0xff]  }
 0x2a4   : > { %9250 = vmatprep.subr.bf16.mxu0 %v27095_v37  ;;  %v27135_v37 = vld [vmem:[%s38719_s3 + $0x2110] ss:$24 sps:$4 sm:$0xff]  }
 0x2a5   : > { %v2943_v24 = vld [vmem:[%s30450_s11 + $0x10] sm:$0xff] }
 0x2a6   : > { %4535 = vmatpush1.bf16.msra.mxu1 %v27090_v38  ;;  %v32381_v38 = vcombine.high %v32361_v32, %v32365_v33 }
 0x2a7   : > { %9251 = vmatpush1.bf16.msra.mxu0 %v27093_v40  ;;  %4536 = vmatprep.subr.bf16.mxu1 %v27098_v41  ;;  %v30084_v40 = vld [vmem:[%s31193_s13 + $0x8] ss:$48 sps:$4 sm:$0xff]  }
 0x2a8   : > { %9252 = vmatprep.subr.bf16.mxu0 %v27101_v42  ;;  %v27138_v41 = vld [vmem:[%s38719_s3 + $0xc30] ss:$24 sps:$4 sm:$0xff]   ;;  %v27141_v42 = vld [vmem:[%s38719_s3 + $0x2140] ss:$24 sps:$4 sm:$0xff]  }
 0x2aa   : > { %4537 = vmatpush1.bf16.msra.mxu1 %v27096_v43  ;;  %v27146_v43 = vld [vmem:[%s38719_s3 + $0xc64] ss:$24 sps:$4 sm:$0xff]  }
 0x2ab   : > { %9253 = vmatpush1.bf16.msra.mxu0 %v27099_v44  ;;  %4538 = vmatprep.subr.bf16.mxu1 %v27104_v45  ;;  %v27149_v44 = vld [vmem:[%s38719_s3 + $0x2174] ss:$24 sps:$4 sm:$0xff]  }
 0x2ac   : > { %9254 = vmatprep.subr.bf16.mxu0 %v27107_v46  ;;  %v30085_v45 = vld [vmem:[%s31193_s13 + $0x14] ss:$48 sps:$4 sm:$0xff]  }
 0x2ad   : > { %v27144_v46 = vld [vmem:[%s38719_s3 + $0xc60] ss:$24 sps:$4 sm:$0xff]  }
 0x2ae   : > { %4539 = vmatpush1.bf16.msra.mxu1 %v27102_v48  ;;  %v27152_v48 = vld [vmem:[%s38719_s3 + $0xc94] ss:$24 sps:$4 sm:$0xff]  }
 0x2af   : > { %9255 = vmatpush1.bf16.msra.mxu0 %v27105_v49  ;;  %4540 = vmatprep.subr.bf16.mxu1 %v27110_v52  ;;  %v27155_v49 = vld [vmem:[%s38719_s3 + $0x21a4] ss:$24 sps:$4 sm:$0xff]   ;;  %v27153_v52 = vld [vmem:[%s38719_s3 + $0x21a0] ss:$24 sps:$4 sm:$0xff]  }
 0x2b0   : > { %9256 = vmatprep.subr.bf16.mxu0 %v27113_v53  ;;  %v27158_v53 = vld [vmem:[%s38719_s3 + $0xcc4] ss:$24 sps:$4 sm:$0xff]  }
 0x2b2   : > { %4541 = vmatpush1.bf16.msra.mxu1 %v27108_v62  ;;  %v27167_v62 = vld [vmem:[%s38719_s3 + $0x2204] ss:$24 sps:$4 sm:$0xff]  }
 0x2b3   : > { %9257 = vmatpush1.bf16.msra.mxu0 %v27111_v63  ;;  %4542 = vmatprep.subr.bf16.mxu1 %v27116_v0  ;;  %v27162_v63 = vld [vmem:[%s38719_s3 + $0xcf0] ss:$24 sps:$4 sm:$0xff]   ;;  %v27165_v0 = vld [vmem:[%s38719_s3 + $0x2200] ss:$24 sps:$4 sm:$0xff]  }
 0x2b4   : > { %9258 = vmatprep.subr.bf16.mxu0 %v27119_v1  ;;  %v27170_v1 = vld [vmem:[%s38719_s3 + $0xd24] ss:$24 sps:$4 sm:$0xff]  }
 0x2b6   : > { %4543 = vmatpush1.bf16.msra.mxu1 %v27114_v2  ;;  %v27173_v2 = vld [vmem:[%s38719_s3 + $0x2234] ss:$24 sps:$4 sm:$0xff]  }
 0x2b7   : > { %9259 = vmatpush1.bf16.msra.mxu0 %v27117_v3  ;;  %4544 = vmatprep.subr.bf16.mxu1 %v27122_v11  ;;  %v27168_v3 = vld [vmem:[%s38719_s3 + $0xd20] ss:$24 sps:$4 sm:$0xff]   ;;  %v27185_v11 = vld [vmem:[%s38719_s3 + $0x2294] ss:$24 sps:$4 sm:$0xff]  }
 0x2b8   : > { %9260 = vmatprep.subr.bf16.mxu0 %v27125_v12  ;;  %v27180_v12 = vld [vmem:[%s38719_s3 + $0xd80] ss:$24 sps:$4 sm:$0xff]  }
 0x2ba   : > { %4545 = vmatpush1.bf16.msra.mxu1 %v27120_v17  ;;  %v27189_v17 = vld [vmem:[%s38719_s3 + $0x22c0] ss:$24 sps:$4 sm:$0xff]  }
 0x2bb   : > { %9261 = vmatpush1.bf16.msra.mxu0 %v27123_v18  ;;  %4546 = vmatprep.subr.bf16.mxu1 %v27128_v19  ;;  %v27194_v18 = vld [vmem:[%s38719_s3 + $0xde4] ss:$24 sps:$4 sm:$0xff]   ;;  %v27197_v19 = vld [vmem:[%s38719_s3 + $0x22f4] ss:$24 sps:$4 sm:$0xff]  }
 0x2bc   : > { %9262 = vmatprep.subr.bf16.mxu0 %v27131_v20  ;;  %v27192_v20 = vld [vmem:[%s38719_s3 + $0xde0] ss:$24 sps:$4 sm:$0xff]  }
 0x2be   : > { %4547 = vmatpush1.bf16.msra.mxu1 %v27126_v25  ;;  %v2949_v25 = vld [vmem:[%s30450_s11 + $0x40] sm:$0xff] }
 0x2bf   : > { %9263 = vmatpush1.bf16.msra.mxu0 %v27129_v27  ;;  %4559 = vmatprep.subr.bf16.mxu1 %v27134_v29  ;;  %v9631_v27 = vld [vmem:[%s31193_s13] sm:$0xff] }
 0x2c0   : > { %9275 = vmatprep.subr.bf16.mxu0 %v27137_v30  ;;  %v27198_v29 = vld [vmem:[%s38719_s3 + $0xe10] ss:$24 sps:$4 sm:$0xff]   ;;  %v27201_v30 = vld [vmem:[%s38719_s3 + $0x2320] ss:$24 sps:$4 sm:$0xff]  }
 0x2c1   : > { %4549 = vmatmul.mubr.bf16.vlgmr.msra.gmra.mrb[0].mxu1 %v32357_v31 }
 0x2c2   : > { %9265 = vmatmul.mubr.bf16.vlgmr.msra.gmra.mrb[4].mxu0 %v30084_v40  ;;  %4560 = vmatpush1.bf16.msra.mxu1 %v27132_v34  ;;  %v2985_v34 = vshrl.u32 %v2943_v24, 16  ;;  %v2988_v40 = vshll.u32 %v2943_v24, 16 }
 0x2c3   : > { %9276 = vmatpush1.bf16.msra.mxu0 %v27135_v37  ;;  %4561 = vmatprep.subr.bf16.mxu1 %v27140_v55  ;;  %v9637_v37 = vld [vmem:[%s31193_s13 + $0x30] sm:$0xff]  ;;  %v27206_v55 = vld [vmem:[%s38719_s3 + $0xe44] ss:$24 sps:$4 sm:$0xff]  }
 0x2c4   : > { %9277 = vmatprep.subr.bf16.mxu0 %v27143_v56  ;;  %4591 = vmatprep.mubr.bf16.mxu1 %v32381_v38  ;;  %v27209_v56 = vld [vmem:[%s38719_s3 + $0x2354] ss:$24 sps:$4 sm:$0xff]  }
 0x2c5   : > { %9307 = vmatprep.mubr.bf16.mxu0 %v30085_v45  ;;  %v9644_v45 = vshrl.u32 %v9631_v27, 16 }
 0x2c6   : > { %4562 = vmatpush1.bf16.msra.mxu1 %v27138_v41  ;;  %v27204_v41 = vld [vmem:[%s38719_s3 + $0xe40] ss:$24 sps:$4 sm:$0xff]  }
 0x2c7   : > { %9278 = vmatpush1.bf16.msra.mxu0 %v27141_v42  ;;  %4563 = vmatprep.subr.bf16.mxu1 %v27146_v43  ;;  %v27207_v42 = vld [vmem:[%s38719_s3 + $0x2350] ss:$24 sps:$4 sm:$0xff]   ;;  %v3027_v43 = vshrl.u32 %v2949_v25, 16 }
 0x2c8   : > { %9279 = vmatprep.subr.bf16.mxu0 %v27149_v44  ;;  %v3030_v44 = vshll.u32 %v2949_v25, 16 }
 0x2ca   : > { %4564 = vmatpush1.bf16.msra.mxu1 %v27144_v46  ;;  %v9647_v46 = vshll.u32 %v9631_v27, 16 }
 0x2cb   : > { %9280 = vmatpush1.bf16.msra.mxu0 %v27147_v47  ;;  %4565 = vmatprep.subr.bf16.mxu1 %v27152_v48  ;;  %v9686_v47 = vshrl.u32 %v9637_v37, 16  ;;  %v9689_v48 = vshll.u32 %v9637_v37, 16  ;;  %v27225_v37 = vld [vmem:[%s38719_s3 + $0x23e0] ss:$24 sps:$4 sm:$0xff]  }
 0x2cc   : > { %9281 = vmatprep.subr.bf16.mxu0 %v27155_v49  ;;  %v27212_v49 = vld [vmem:[%s38719_s3 + $0xe74] ss:$24 sps:$4 sm:$0xff]  }
 0x2ce   : > { %4566 = vmatpush1.bf16.msra.mxu1 %v27150_v50  ;;  %v27215_v50 = vld [vmem:[%s38719_s3 + $0x2384] ss:$24 sps:$4 sm:$0xff]  }
 0x2cf   : > { %9282 = vmatpush1.bf16.msra.mxu0 %v27153_v52  ;;  %4567 = vmatprep.subr.bf16.mxu1 %v27158_v53  ;;  %v2987_v52 = vrot.slane %v2985_v34, 4  ;;  %v2946_v53 = vld [vmem:[%s30450_s11 + $0x28] sm:$0x11] }
 0x2d0   : > { %9283 = vmatprep.subr.bf16.mxu0 %v27161_v57  ;;  %v2952_v57 = vld [vmem:[%s30450_s11 + $0x58] sm:$0x11]  ;;  %v27222_v34 = vld [vmem:[%s38719_s3 + $0xed0] ss:$24 sps:$4 sm:$0xff]  }
 0x2d2   : > { %4568 = vmatpush1.bf16.msra.mxu1 %v27156_v58  ;;  %v2990_v58 = vrot.slane %v2988_v40, 5  ;;  %v32577_v40 = vcombine.low %v32361_v32, %v32365_v33  ;;  %v27228_v32 = vld [vmem:[%s38719_s3 + $0xf00] ss:$24 sps:$4 sm:$0xff]  }
 0x2d3   : > { %9284 = vmatpush1.bf16.msra.mxu0 %v27159_v59  ;;  %4569 = vmatprep.subr.bf16.mxu1 %v27164_v60  ;;  %v27210_v59 = vld [vmem:[%s38719_s3 + $0xe70] ss:$24 sps:$4 sm:$0xff]   ;;  %v27213_v60 = vld [vmem:[%s38719_s3 + $0x2380] ss:$24 sps:$4 sm:$0xff]  }
 0x2d4   : > { %9285 = vmatprep.subr.bf16.mxu0 %v27167_v62  ;;  %v3029_v62 = vrot.slane %v3027_v43, 4  ;;  %v27231_v33 = vld [vmem:[%s38719_s3 + $0x2400] ss:$24 sps:$4 sm:$0xff]  }
 0x2d6   : > { %4570 = vmatpush1.bf16.msra.mxu1 %v27162_v63  ;;  %v3032_v63 = vrot.slane %v3030_v44, 5 }
 0x2d7   : > { %9286 = vmatpush1.bf16.msra.mxu0 %v27165_v0  ;;  %4571 = vmatprep.subr.bf16.mxu1 %v27170_v1  ;;  %v9646_v0 = vrot.slane %v9644_v45, 4  ;;  %v9649_v1 = vrot.slane %v9647_v46, 5  ;;  %v27236_v45 = vld [vmem:[%s38719_s3 + $0xf34] ss:$24 sps:$4 sm:$0xff]  }
 0x2d8   : > { %9287 = vmatprep.subr.bf16.mxu0 %v27173_v2  ;;  %v9688_v2 = vrot.slane %v9686_v47, 4  ;;  %v27239_v46 = vld [vmem:[%s38719_s3 + $0x2434] ss:$24 sps:$4 sm:$0xff]  }
 0x2da   : > { %4572 = vmatpush1.bf16.msra.mxu1 %v27168_v3  ;;  %v9691_v3 = vrot.slane %v9689_v48, 5 }
 0x2db   : > { %9288 = vmatpush1.bf16.msra.mxu0 %v27171_v4  ;;  %4573 = vmatprep.subr.bf16.mxu1 %v27176_v5  ;;  %v9634_v4 = vld [vmem:[%s31193_s13 + $0x18] sm:$0x11]  ;;  %v9640_v5 = vld [vmem:[%s31193_s13 + $0x48] sm:$0x11] }
 0x2dc   : > { %9289 = vmatprep.subr.bf16.mxu0 %v27179_v7  ;;  %v27218_v7 = vld [vmem:[%s38719_s3 + $0xea4] ss:$24 sps:$4 sm:$0xff]  }
 0x2de   : > { %4574 = vmatpush1.bf16.msra.mxu1 %v27174_v8  ;;  %v27221_v8 = vld [vmem:[%s38719_s3 + $0x23b4] ss:$24 sps:$4 sm:$0xff]  }
 0x2df   : > { %9290 = vmatpush1.bf16.msra.mxu0 %v27177_v9  ;;  %4575 = vmatprep.subr.bf16.mxu1 %v27182_v10  ;;  %v2991_v9 = vor.u32 %v2990_v58, %v2987_v52  ;;  %v2994_v10 = vshll.u32 %v2946_v53, 16  ;;  %v27237_v52 = vld [vmem:[%s38719_s3 + $0x2430] ss:$24 sps:$4 sm:$0xff]   ;;  %v27242_v53 = vld [vmem:[%s38719_s3 + $0xf64] ss:$24 sps:$4 sm:$0xff]  }
 0x2e0   : > { %9291 = vmatprep.subr.bf16.mxu0 %v27185_v11  ;;  %v3033_v11 = vor.u32 %v3032_v63, %v3029_v62  ;;  %v27240_v58 = vld [vmem:[%s38719_s3 + $0xf60] ss:$24 sps:$4 sm:$0xff]   ;;  %v27251_v62 = vld [vmem:[%s38719_s3 + $0x2494] ss:$24 sps:$4 sm:$0xff]   ;;  %v27246_v63 = vld [vmem:[%s38719_s3 + $0xf90] ss:$24 sps:$4 sm:$0xff]  }
 0x2e2   : > { %4576 = vmatpush1.bf16.msra.mxu1 %v27180_v12  ;;  %v3036_v12 = vshll.u32 %v2952_v57, 16  ;;  %v27245_v57 = vld [vmem:[%s38719_s3 + $0x2464] ss:$24 sps:$4 sm:$0xff]  }
 0x2e3   : > { %9292 = vmatpush1.bf16.msra.mxu0 %v27183_v13  ;;  %4577 = vmatprep.subr.bf16.mxu1 %v27188_v14  ;;  %v9650_v13 = vor.u32 %v9649_v1, %v9646_v0  ;;  %v9653_v14 = vshll.u32 %v9634_v4, 16  ;;  %v27249_v0 = vld [vmem:[%s38719_s3 + $0x2490] ss:$24 sps:$4 sm:$0xff]   ;;  %v27254_v1 = vld [vmem:[%s38719_s3 + $0xfc4] ss:$24 sps:$4 sm:$0xff]  }
 0x2e4   : > { %9293 = vmatprep.subr.bf16.mxu0 %v27191_v15  ;;  %v9692_v15 = vor.u32 %v9691_v3, %v9688_v2  ;;  %v3038_v24 = vrot.slane %v3036_v12, 5  ;;  %v27257_v2 = vld [vmem:[%s38719_s3 + $0x24c4] ss:$24 sps:$4 sm:$0xff]   ;;  %v27252_v3 = vld [vmem:[%s38719_s3 + $0xfc0] ss:$24 sps:$4 sm:$0xff]  }
 0x2e5   : > { %v9651_v25 = vrot.slane %v9650_v13, 4  ;;  %v9655_v27 = vrot.slane %v9653_v14, 5  ;;  %v27255_v4 = vld [vmem:[%s38719_s3 + $0x24c0] ss:$24 sps:$4 sm:$0xff]   ;;  %v27272_v14 = vld [vmem:[%s38719_s3 + $0x1054] ss:$24 sps:$4 sm:$0xff]  }
 0x2e6   : > { %4578 = vmatpush1.bf16.msra.mxu1 %v27186_v16  ;;  %v9695_v16 = vshll.u32 %v9640_v5, 16  ;;  %v27260_v5 = vld [vmem:[%s38719_s3 + $0xff4] ss:$24 sps:$4 sm:$0xff]   ;;  %v27264_v12 = vld [vmem:[%s38719_s3 + $0x1020] ss:$24 sps:$4 sm:$0xff]  }
 0x2e7   : > { %9294 = vmatpush1.bf16.msra.mxu0 %v27189_v17  ;;  %4579 = vmatprep.subr.bf16.mxu1 %v27194_v18  ;;  %v27216_v17 = vld [vmem:[%s38719_s3 + $0xea0] ss:$24 sps:$4 sm:$0xff]   ;;  %v27219_v18 = vld [vmem:[%s38719_s3 + $0x23b0] ss:$24 sps:$4 sm:$0xff]   ;;  %v32589_v43 = vsel %vm32133_vm5, %v9651_v25, %v9655_v27  ;;  %v27290_v27 = vld [vmem:[%s38719_s3 + $0x10e4] ss:$24 sps:$4 sm:$0xff]  }
 0x2e8   : > { %9295 = vmatprep.subr.bf16.mxu0 %v27197_v19  ;;  %v27224_v19 = vld [vmem:[%s38719_s3 + $0xed4] ss:$24 sps:$4 sm:$0xff]   ;;  %v27267_v13 = vld [vmem:[%s38719_s3 + $0x2520] ss:$24 sps:$4 sm:$0xff]   ;;  %v27285_v25 = vld [vmem:[%s38719_s3 + $0x25b0] ss:$24 sps:$4 sm:$0xff]  }
 0x2ea   : > { %4580 = vmatpush1.bf16.msra.mxu1 %v27192_v20  ;;  %v27227_v20 = vld [vmem:[%s38719_s3 + $0x23e4] ss:$24 sps:$4 sm:$0xff]  }
 0x2eb   : > { %9296 = vmatpush1.bf16.msra.mxu0 %v27195_v21  ;;  %4581 = vmatprep.subr.bf16.mxu1 %v27200_v22  ;;  %v2992_v21 = vrot.slane %v2991_v9, 4  ;;  %v2996_v22 = vrot.slane %v2994_v10, 5  ;;  %v27261_v9 = vld [vmem:[%s38719_s3 + $0x24f0] ss:$24 sps:$4 sm:$0xff]   ;;  %v27266_v10 = vld [vmem:[%s38719_s3 + $0x1024] ss:$24 sps:$4 sm:$0xff]  }
 0x2ec   : > { %9297 = vmatprep.subr.bf16.mxu0 %v27203_v23  ;;  %v3034_v23 = vrot.slane %v3033_v11, 4  ;;  %v27269_v11 = vld [vmem:[%s38719_s3 + $0x2524] ss:$24 sps:$4 sm:$0xff]  }
 0x2ee   : > { %4582 = vmatpush1.bf16.msra.mxu1 %v27198_v29  ;;  %v9693_v29 = vrot.slane %v9692_v15, 4  ;;  %v27275_v15 = vld [vmem:[%s38719_s3 + $0x2554] ss:$24 sps:$4 sm:$0xff]  }
 0x2ef   : > { %9298 = vmatpush1.bf16.msra.mxu0 %v27201_v30  ;;  %4583 = vmatprep.subr.bf16.mxu1 %v27206_v55  ;;  %v9697_v30 = vrot.slane %v9695_v16, 5  ;;  %v27230_v55 = vld [vmem:[%s38719_s3 + $0xf04] ss:$24 sps:$4 sm:$0xff]   ;;  %v27270_v16 = vld [vmem:[%s38719_s3 + $0x1050] ss:$24 sps:$4 sm:$0xff]  }
 0x2f0   : > { %9299 = vmatprep.subr.bf16.mxu0 %v27209_v56  ;;  %v27233_v56 = vld [vmem:[%s38719_s3 + $0x2404] ss:$24 sps:$4 sm:$0xff]  }
 0x2f1   : > { %v32593_v44 = vsel %vm32133_vm5, %v9693_v29, %v9697_v30  ;;  %v27293_v29 = vld [vmem:[%s38719_s3 + $0x25e4] ss:$24 sps:$4 sm:$0xff]   ;;  %v27288_v30 = vld [vmem:[%s38719_s3 + $0x10e0] ss:$24 sps:$4 sm:$0xff]  }
 0x2f2   : > { %4584 = vmatpush1.bf16.msra.mxu1 %v27204_v41  ;;  %v32581_v41 = vsel %vm32133_vm5, %v2992_v21, %v2996_v22  ;;  %v32613_v48 = vcombine.high %v32589_v43, %v32593_v44  ;;  %v27279_v21 = vld [vmem:[%s38719_s3 + $0x2580] ss:$24 sps:$4 sm:$0xff]   ;;  %v27284_v22 = vld [vmem:[%s38719_s3 + $0x10b4] ss:$24 sps:$4 sm:$0xff]  }
 0x2f3   : > { %9300 = vmatpush1.bf16.msra.mxu0 %v27207_v42  ;;  %4585 = vmatprep.subr.bf16.mxu1 %v27212_v49  ;;  %v32585_v42 = vsel %vm32133_vm5, %v3034_v23, %v3038_v24  ;;  %v30086_v49 = vld [vmem:[%s31193_s13 + $0x10] ss:$48 sps:$4 sm:$0xff]  }
 0x2f4   : > { %9301 = vmatprep.subr.bf16.mxu0 %v27215_v50  ;;  %v32609_v47 = vcombine.high %v32581_v41, %v32585_v42  ;;  %v27234_v50 = vld [vmem:[%s38719_s3 + $0xf30] ss:$24 sps:$4 sm:$0xff]   ;;  %v27287_v23 = vld [vmem:[%s38719_s3 + $0x25b4] ss:$24 sps:$4 sm:$0xff]  }
 0x2f5   : > { %v27282_v24 = vld [vmem:[%s38719_s3 + $0x10b0] ss:$24 sps:$4 sm:$0xff]  }
 0x2f6   : > { %4586 = vmatpush1.bf16.msra.mxu1 %v27210_v59  ;;  %v27243_v59 = vld [vmem:[%s38719_s3 + $0x2460] ss:$24 sps:$4 sm:$0xff]  }
 0x2f7   : > { %9302 = vmatpush1.bf16.msra.mxu0 %v27213_v60  ;;  %4587 = vmatprep.subr.bf16.mxu1 %v27218_v7  ;;  %v27248_v60 = vld [vmem:[%s38719_s3 + $0xf94] ss:$24 sps:$4 sm:$0xff]  }
 0x2f8   : > { %9303 = vmatprep.subr.bf16.mxu0 %v27221_v8  ;;  %v27263_v7 = vld [vmem:[%s38719_s3 + $0x24f4] ss:$24 sps:$4 sm:$0xff]   ;;  %v27258_v8 = vld [vmem:[%s38719_s3 + $0xff0] ss:$24 sps:$4 sm:$0xff]  }
 0x2fa   : > { %4588 = vmatpush1.bf16.msra.mxu1 %v27216_v17  ;;  %v27273_v17 = vld [vmem:[%s38719_s3 + $0x2550] ss:$24 sps:$4 sm:$0xff]  }
 0x2fb   : > { %9304 = vmatpush1.bf16.msra.mxu0 %v27219_v18  ;;  %4589 = vmatprep.subr.bf16.mxu1 %v27224_v19  ;;  %v27278_v18 = vld [vmem:[%s38719_s3 + $0x1084] ss:$24 sps:$4 sm:$0xff]  }
 0x2fc   : > { %9305 = vmatprep.subr.bf16.mxu0 %v27227_v20  ;;  %v27281_v19 = vld [vmem:[%s38719_s3 + $0x2584] ss:$24 sps:$4 sm:$0xff]   ;;  %v27276_v20 = vld [vmem:[%s38719_s3 + $0x1080] ss:$24 sps:$4 sm:$0xff]  }
 0x2fe   : > { %4590 = vmatpush1.bf16.msra.mxu1 %v27222_v34  ;;  %v27291_v34 = vld [vmem:[%s38719_s3 + $0x25e0] ss:$24 sps:$4 sm:$0xff]  }
 0x2ff   : > { %9306 = vmatpush1.bf16.msra.mxu0 %v27225_v37  ;;  %4602 = vmatprep.subr.bf16.mxu1 %v27230_v55  ;;  %v27296_v37 = vld [vmem:[%s38719_s3 + $0x1114] ss:$24 sps:$4 sm:$0xff]  }
 0x300   : > { %11203 = vmatprep.subr.bf16.mxu0 %v27233_v56  ;;  %v27299_v55 = vld [vmem:[%s38719_s3 + $0x2614] ss:$24 sps:$4 sm:$0xff]  }
 0x301   : > { %4592 = vmatmul.mubr.bf16.vlgmr.msra.gmra.mrb[0].mxu1 %v32577_v40  ;;  %v9632_v56 = vld [vmem:[%s31193_s13 + $0x8] sm:$0xff] }
 0x302   : > { %9308 = vmatmul.mubr.bf16.vlgmr.msra.gmra.mrb[4].mxu0 %v30086_v49  ;;  %4603 = vmatpush1.bf16.msra.mxu1 %v27228_v32  ;;  %v27294_v32 = vld [vmem:[%s38719_s3 + $0x1110] ss:$24 sps:$4 sm:$0xff]   ;;  %v27305_v49 = vld [vmem:[%s38719_s3 + $0x2644] ss:$24 sps:$4 sm:$0xff]  }
 0x303   : > { %11204 = vmatpush1.bf16.msra.mxu0 %v27231_v33  ;;  %4604 = vmatprep.subr.bf16.mxu1 %v27236_v45  ;;  %v27297_v33 = vld [vmem:[%s38719_s3 + $0x2610] ss:$24 sps:$4 sm:$0xff]   ;;  %v9638_v45 = vld [vmem:[%s31193_s13 + $0x38] sm:$0xff] }
 0x304   : > { %11205 = vmatprep.subr.bf16.mxu0 %v27239_v46  ;;  %4634 = vmatprep.mubr.bf16.mxu1 %v32609_v47  ;;  %v27302_v46 = vld [vmem:[%s38719_s3 + $0x1144] ss:$24 sps:$4 sm:$0xff]  }
 0x305   : > { %11235 = vmatprep.mubr.bf16.mxu0 %v32613_v48 }
 0x306   : > { %4605 = vmatpush1.bf16.msra.mxu1 %v27234_v50  ;;  %v9658_v50 = vshrl.u32 %v9632_v56, 16 }
 0x307   : > { %11206 = vmatpush1.bf16.msra.mxu0 %v27237_v52  ;;  %4606 = vmatprep.subr.bf16.mxu1 %v27242_v53  ;;  %v9661_v52 = vshll.u32 %v9632_v56, 16  ;;  %v9700_v53 = vshrl.u32 %v9638_v45, 16  ;;  %v27333_v56 = vld [vmem:[%s38719_s3 + $0x2730] ss:$24 sps:$4 sm:$0xff]  }
 0x308   : > { %11207 = vmatprep.subr.bf16.mxu0 %v27245_v57  ;;  %v9703_v57 = vshll.u32 %v9638_v45, 16  ;;  %v27336_v45 = vld [vmem:[%s38719_s3 + $0x968] ss:$24 sps:$4 sm:$0xff]  }
 0x30a   : > { %4607 = vmatpush1.bf16.msra.mxu1 %v27240_v58  ;;  %v27300_v58 = vld [vmem:[%s38719_s3 + $0x1140] ss:$24 sps:$4 sm:$0xff]  }
 0x30b   : > { %11208 = vmatpush1.bf16.msra.mxu0 %v27243_v59  ;;  %4608 = vmatprep.subr.bf16.mxu1 %v27248_v60  ;;  %v27303_v59 = vld [vmem:[%s38719_s3 + $0x2640] ss:$24 sps:$4 sm:$0xff]   ;;  %v27308_v60 = vld [vmem:[%s38719_s3 + $0x1174] ss:$24 sps:$4 sm:$0xff]  }
 0x30c   : > { %11209 = vmatprep.subr.bf16.mxu0 %v27251_v62  ;;  %v27311_v62 = vld [vmem:[%s38719_s3 + $0x2674] ss:$24 sps:$4 sm:$0xff]  }
 0x30e   : > { %4609 = vmatpush1.bf16.msra.mxu1 %v27246_v63  ;;  %v27306_v63 = vld [vmem:[%s38719_s3 + $0x1170] ss:$24 sps:$4 sm:$0xff]  }
 0x30f   : > { %11210 = vmatpush1.bf16.msra.mxu0 %v27249_v0  ;;  %4610 = vmatprep.subr.bf16.mxu1 %v27254_v1  ;;  %v27309_v0 = vld [vmem:[%s38719_s3 + $0x2670] ss:$24 sps:$4 sm:$0xff]   ;;  %v9660_v1 = vrot.slane %v9658_v50, 4  ;;  %v27347_v50 = vld [vmem:[%s38719_s3 + $0x2794] ss:$24 sps:$4 sm:$0xff]  }
 0x310   : > { %11211 = vmatprep.subr.bf16.mxu0 %v27257_v2  ;;  %v9663_v2 = vrot.slane %v9661_v52, 5  ;;  %v27342_v52 = vld [vmem:[%s38719_s3 + $0x998] ss:$24 sps:$4 sm:$0xff]  }
 0x312   : > { %4611 = vmatpush1.bf16.msra.mxu1 %v27252_v3  ;;  %v9702_v3 = vrot.slane %v9700_v53, 4  ;;  %v27345_v53 = vld [vmem:[%s38719_s3 + $0x2790] ss:$24 sps:$4 sm:$0xff]  }
 0x313   : > { %11212 = vmatpush1.bf16.msra.mxu0 %v27255_v4  ;;  %4612 = vmatprep.subr.bf16.mxu1 %v27260_v5  ;;  %v9705_v4 = vrot.slane %v9703_v57, 5  ;;  %v9635_v5 = vld [vmem:[%s31193_s13 + $0x20] sm:$0x11] }
 0x314   : > { %11213 = vmatprep.subr.bf16.mxu0 %v27263_v7  ;;  %v9641_v7 = vld [vmem:[%s31193_s13 + $0x50] sm:$0x11]  ;;  %v27350_v57 = vld [vmem:[%s38719_s3 + $0x9cc] ss:$24 sps:$4 sm:$0xff]  }
 0x316   : > { %4613 = vmatpush1.bf16.msra.mxu1 %v27258_v8  ;;  %v27314_v8 = vld [vmem:[%s38719_s3 + $0x11a4] ss:$24 sps:$4 sm:$0xff]  }
 0x317   : > { %11214 = vmatpush1.bf16.msra.mxu0 %v27261_v9  ;;  %4614 = vmatprep.subr.bf16.mxu1 %v27266_v10  ;;  %v27317_v9 = vld [vmem:[%s38719_s3 + $0x26a4] ss:$24 sps:$4 sm:$0xff]   ;;  %v9664_v10 = vor.u32 %v9663_v2, %v9660_v1  ;;  %v27357_v1 = vld [vmem:[%s38719_s3 + $0x27f0] ss:$24 sps:$4 sm:$0xff]  }
 0x318   : > { %11215 = vmatprep.subr.bf16.mxu0 %v27269_v11  ;;  %v9667_v11 = vshll.u32 %v9635_v5, 16  ;;  %v27362_v2 = vld [vmem:[%s38719_s3 + $0xa2c] ss:$24 sps:$4 sm:$0xff]   ;;  %v27363_v5 = vld [vmem:[%s38719_s3 + $0x2820] ss:$24 sps:$4 sm:$0xff]  }
 0x31a   : > { %4615 = vmatpush1.bf16.msra.mxu1 %v27264_v12  ;;  %v9706_v12 = vor.u32 %v9705_v4, %v9702_v3  ;;  %v27365_v3 = vld [vmem:[%s38719_s3 + $0x2824] ss:$24 sps:$4 sm:$0xff]   ;;  %v27360_v4 = vld [vmem:[%s38719_s3 + $0xa28] ss:$24 sps:$4 sm:$0xff]  }
 0x31b   : > { %11216 = vmatpush1.bf16.msra.mxu0 %v27267_v13  ;;  %4616 = vmatprep.subr.bf16.mxu1 %v27272_v14  ;;  %v9709_v13 = vshll.u32 %v9641_v7, 16  ;;  %v27312_v14 = vld [vmem:[%s38719_s3 + $0x11a0] ss:$24 sps:$4 sm:$0xff]   ;;  %v27368_v7 = vld [vmem:[%s38719_s3 + $0xa5c] ss:$24 sps:$4 sm:$0xff]  }
 0x31c   : > { %11217 = vmatprep.subr.bf16.mxu0 %v27275_v15  ;;  %v27315_v15 = vld [vmem:[%s38719_s3 + $0x26a0] ss:$24 sps:$4 sm:$0xff]  }
 0x31e   : > { %4617 = vmatpush1.bf16.msra.mxu1 %v27270_v16  ;;  %v27320_v16 = vld [vmem:[%s38719_s3 + $0x11d4] ss:$24 sps:$4 sm:$0xff]  }
 0x31f   : > { %11218 = vmatpush1.bf16.msra.mxu0 %v27273_v17  ;;  %4618 = vmatprep.subr.bf16.mxu1 %v27278_v18  ;;  %v27323_v17 = vld [vmem:[%s38719_s3 + $0x26d4] ss:$24 sps:$4 sm:$0xff]   ;;  %v9665_v18 = vrot.slane %v9664_v10, 4  ;;  %v27369_v10 = vld [vmem:[%s38719_s3 + $0x2850] ss:$24 sps:$4 sm:$0xff]  }
 0x320   : > { %11219 = vmatprep.subr.bf16.mxu0 %v27281_v19  ;;  %v9669_v19 = vrot.slane %v9667_v11, 5  ;;  %v27374_v11 = vld [vmem:[%s38719_s3 + $0xa8c] ss:$24 sps:$4 sm:$0xff]  }
 0x322   : > { %4619 = vmatpush1.bf16.msra.mxu1 %v27276_v20  ;;  %v9707_v20 = vrot.slane %v9706_v12, 4  ;;  %v27377_v12 = vld [vmem:[%s38719_s3 + $0x2884] ss:$24 sps:$4 sm:$0xff]  }
 0x323   : > { %11220 = vmatpush1.bf16.msra.mxu0 %v27279_v21  ;;  %4620 = vmatprep.subr.bf16.mxu1 %v27284_v22  ;;  %v9711_v21 = vrot.slane %v9709_v13, 5  ;;  %v27318_v22 = vld [vmem:[%s38719_s3 + $0x11d0] ss:$24 sps:$4 sm:$0xff]  }
 0x324   : > { %11221 = vmatprep.subr.bf16.mxu0 %v27287_v23  ;;  %v27321_v23 = vld [vmem:[%s38719_s3 + $0x26d0] ss:$24 sps:$4 sm:$0xff]  }
 0x325   : > { %v27372_v13 = vld [vmem:[%s38719_s3 + $0xa88] ss:$24 sps:$4 sm:$0xff]  }
 0x326   : > { %4621 = vmatpush1.bf16.msra.mxu1 %v27282_v24  ;;  %v27326_v24 = vld [vmem:[%s38719_s3 + $0x90c] ss:$24 sps:$4 sm:$0xff]  }
 0x327   : > { %11222 = vmatpush1.bf16.msra.mxu0 %v27285_v25  ;;  %4622 = vmatprep.subr.bf16.mxu1 %v27290_v27  ;;  %v27329_v25 = vld [vmem:[%s38719_s3 + $0x2704] ss:$24 sps:$4 sm:$0xff]   ;;  %v32805_v27 = vcombine.low %v32581_v41, %v32585_v42  ;;  %v27327_v41 = vld [vmem:[%s38719_s3 + $0x2700] ss:$24 sps:$4 sm:$0xff]  }
 0x328   : > { %11223 = vmatprep.subr.bf16.mxu0 %v27293_v29  ;;  %v32809_v29 = vcombine.low %v32589_v43, %v32593_v44  ;;  %v27332_v42 = vld [vmem:[%s38719_s3 + $0x93c] ss:$24 sps:$4 sm:$0xff]  }
 0x329   : > { %v27335_v43 = vld [vmem:[%s38719_s3 + $0x2734] ss:$24 sps:$4 sm:$0xff]  }
 0x32a   : > { %4623 = vmatpush1.bf16.msra.mxu1 %v27288_v30  ;;  %v32813_v30 = vsel %vm32133_vm5, %v9665_v18, %v9669_v19  ;;  %v27381_v18 = vld [vmem:[%s38719_s3 + $0x28b0] ss:$24 sps:$4 sm:$0xff]   ;;  %v27386_v19 = vld [vmem:[%s38719_s3 + $0xaec] ss:$24 sps:$4 sm:$0xff]  }
 0x32b   : > { %11224 = vmatpush1.bf16.msra.mxu0 %v27291_v34  ;;  %4624 = vmatprep.subr.bf16.mxu1 %v27296_v37  ;;  %v32817_v34 = vsel %vm32133_vm5, %v9707_v20, %v9711_v21  ;;  %v27324_v37 = vld [vmem:[%s38719_s3 + $0x908] ss:$24 sps:$4 sm:$0xff]   ;;  %v27389_v20 = vld [vmem:[%s38719_s3 + $0x28e4] ss:$24 sps:$4 sm:$0xff]  }
 0x32c   : > { %11225 = vmatprep.subr.bf16.mxu0 %v27299_v55  ;;  %v32833_v44 = vcombine.high %v32813_v30, %v32817_v34  ;;  %v27330_v55 = vld [vmem:[%s38719_s3 + $0x938] ss:$24 sps:$4 sm:$0xff]   ;;  %v27384_v21 = vld [vmem:[%s38719_s3 + $0xae8] ss:$24 sps:$4 sm:$0xff]  }
 0x32e   : > { %4625 = vmatpush1.bf16.msra.mxu1 %v27294_v32  ;;  %v27338_v32 = vld [vmem:[%s38719_s3 + $0x96c] ss:$24 sps:$4 sm:$0xff]  }
 0x32f   : > { %11226 = vmatpush1.bf16.msra.mxu0 %v27297_v33  ;;  %4626 = vmatprep.subr.bf16.mxu1 %v27302_v46  ;;  %v27341_v33 = vld [vmem:[%s38719_s3 + $0x2764] ss:$24 sps:$4 sm:$0xff]   ;;  %v27339_v46 = vld [vmem:[%s38719_s3 + $0x2760] ss:$24 sps:$4 sm:$0xff]  }
 0x330   : > { %11227 = vmatprep.subr.bf16.mxu0 %v27305_v49  ;;  %v27344_v49 = vld [vmem:[%s38719_s3 + $0x99c] ss:$24 sps:$4 sm:$0xff]  }
 0x332   : > { %4627 = vmatpush1.bf16.msra.mxu1 %v27300_v58  ;;  %v27353_v58 = vld [vmem:[%s38719_s3 + $0x27c4] ss:$24 sps:$4 sm:$0xff]  }
 0x333   : > { %11228 = vmatpush1.bf16.msra.mxu0 %v27303_v59  ;;  %4628 = vmatprep.subr.bf16.mxu1 %v27308_v60  ;;  %v27348_v59 = vld [vmem:[%s38719_s3 + $0x9c8] ss:$24 sps:$4 sm:$0xff]  }
 0x334   : > { %11229 = vmatprep.subr.bf16.mxu0 %v27311_v62  ;;  %v27351_v60 = vld [vmem:[%s38719_s3 + $0x27c0] ss:$24 sps:$4 sm:$0xff]   ;;  %v27356_v62 = vld [vmem:[%s38719_s3 + $0x9fc] ss:$24 sps:$4 sm:$0xff]  }
 0x336   : > { %4629 = vmatpush1.bf16.msra.mxu1 %v27306_v63  ;;  %v27359_v63 = vld [vmem:[%s38719_s3 + $0x27f4] ss:$24 sps:$4 sm:$0xff]  }
 0x337   : > { %11230 = vmatpush1.bf16.msra.mxu0 %v27309_v0  ;;  %4630 = vmatprep.subr.bf16.mxu1 %v27314_v8  ;;  %v27354_v0 = vld [vmem:[%s38719_s3 + $0x9f8] ss:$24 sps:$4 sm:$0xff]   ;;  %v27371_v8 = vld [vmem:[%s38719_s3 + $0x2854] ss:$24 sps:$4 sm:$0xff]  }
 0x338   : > { %11231 = vmatprep.subr.bf16.mxu0 %v27317_v9  ;;  %v27366_v9 = vld [vmem:[%s38719_s3 + $0xa58] ss:$24 sps:$4 sm:$0xff]  }
 0x33a   : > { %4631 = vmatpush1.bf16.msra.mxu1 %v27312_v14  ;;  %v27375_v14 = vld [vmem:[%s38719_s3 + $0x2880] ss:$24 sps:$4 sm:$0xff]  }
 0x33b   : > { %11232 = vmatpush1.bf16.msra.mxu0 %v27315_v15  ;;  %4632 = vmatprep.subr.bf16.mxu1 %v27320_v16  ;;  %v27380_v15 = vld [vmem:[%s38719_s3 + $0xabc] ss:$24 sps:$4 sm:$0xff]  }
 0x33c   : > { %11233 = vmatprep.subr.bf16.mxu0 %v27323_v17  ;;  %v27383_v16 = vld [vmem:[%s38719_s3 + $0x28b4] ss:$24 sps:$4 sm:$0xff]   ;;  %v27378_v17 = vld [vmem:[%s38719_s3 + $0xab8] ss:$24 sps:$4 sm:$0xff]  }
 0x33e   : > { %4633 = vmatpush1.bf16.msra.mxu1 %v27318_v22  ;;  %v27387_v22 = vld [vmem:[%s38719_s3 + $0x28e0] ss:$24 sps:$4 sm:$0xff]  }
 0x33f   : > { %11234 = vmatpush1.bf16.msra.mxu0 %v27321_v23  ;;  %4645 = vmatprep.subr.bf16.mxu1 %v27326_v24  ;;  %v27392_v23 = vld [vmem:[%s38719_s3 + $0xb1c] ss:$24 sps:$4 sm:$0xff]  }
 0x340   : > { %11246 = vmatprep.subr.bf16.mxu0 %v27329_v25  ;;  %v27395_v24 = vld [vmem:[%s38719_s3 + $0x2914] ss:$24 sps:$4 sm:$0xff]  }
 0x341   : > { %4635 = vmatmul.mubr.bf16.vlgmr.msra.gmra.mrb[0].mxu1 %v32805_v27  ;;  %v9633_v25 = vld [vmem:[%s31193_s13 + $0x10] sm:$0xff] }
 0x342   : > { %11236 = vmatmul.mubr.bf16.vlgmr.msra.gmra.mrb[0].mxu0 %v32809_v29  ;;  %4646 = vmatpush1.bf16.msra.mxu1 %v27324_v37  ;;  %v27390_v37 = vld [vmem:[%s38719_s3 + $0xb18] ss:$24 sps:$4 sm:$0xff]  }
 0x343   : > { %11247 = vmatpush1.bf16.msra.mxu0 %v27327_v41  ;;  %4647 = vmatprep.subr.bf16.mxu1 %v27332_v42  ;;  %v27393_v41 = vld [vmem:[%s38719_s3 + $0x2910] ss:$24 sps:$4 sm:$0xff]  }
 0x344   : > { %11248 = vmatprep.subr.bf16.mxu0 %v27335_v43  ;;  %4677 = vmatprep.mubr.bf16.mxu1 %v32165_v61  ;;  %v9639_v42 = vld [vmem:[%s31193_s13 + $0x40] sm:$0xff] }
 0x345   : > { %11278 = vmatprep.mubr.bf16.mxu0 %v32833_v44  ;;  %v27398_v43 = vld [vmem:[%s38719_s3 + $0xb4c] ss:$24 sps:$4 sm:$0xff]  }
 0x346   : > { %4648 = vmatpush1.bf16.msra.mxu1 %v27330_v55  ;;  %v27401_v55 = vld [vmem:[%s38719_s3 + $0x2944] ss:$24 sps:$4 sm:$0xff]  }
 0x347   : > { %11249 = vmatpush1.bf16.msra.mxu0 %v27333_v56  ;;  %4649 = vmatprep.subr.bf16.mxu1 %v27338_v32  ;;  %v9672_v56 = vshrl.u32 %v9633_v25, 16  ;;  %v9675_v32 = vshll.u32 %v9633_v25, 16 }
 0x348   : > { %11250 = vmatprep.subr.bf16.mxu0 %v27341_v33  ;;  %v9714_v33 = vshrl.u32 %v9639_v42, 16 }
 0x34a   : > { %4650 = vmatpush1.bf16.msra.mxu1 %v27336_v45  ;;  %v9717_v45 = vshll.u32 %v9639_v42, 16  ;;  %v27434_v42 = vld [vmem:[%s38719_s3 + $0xc6c] ss:$24 sps:$4 sm:$0xff]  }
 0x34b   : > { %11251 = vmatpush1.bf16.msra.mxu0 %v27339_v46  ;;  %4651 = vmatprep.subr.bf16.mxu1 %v27344_v49  ;;  %v27396_v46 = vld [vmem:[%s38719_s3 + $0xb48] ss:$24 sps:$4 sm:$0xff]  }
 0x34c   : > { %11252 = vmatprep.subr.bf16.mxu0 %v27347_v50  ;;  %v27399_v49 = vld [vmem:[%s38719_s3 + $0x2940] ss:$24 sps:$4 sm:$0xff]   ;;  %v27404_v50 = vld [vmem:[%s38719_s3 + $0xb7c] ss:$24 sps:$4 sm:$0xff]  }
 0x34e   : > { %4652 = vmatpush1.bf16.msra.mxu1 %v27342_v52  ;;  %v27407_v52 = vld [vmem:[%s38719_s3 + $0x2974] ss:$24 sps:$4 sm:$0xff]  }
 0x34f   : > { %11253 = vmatpush1.bf16.msra.mxu0 %v27345_v53  ;;  %4653 = vmatprep.subr.bf16.mxu1 %v27350_v57  ;;  %v27402_v53 = vld [vmem:[%s38719_s3 + $0xb78] ss:$24 sps:$4 sm:$0xff]  }
 0x350   : > { %11254 = vmatprep.subr.bf16.mxu0 %v27353_v58  ;;  %v27405_v57 = vld [vmem:[%s38719_s3 + $0x2970] ss:$24 sps:$4 sm:$0xff]   ;;  %v9674_v58 = vrot.slane %v9672_v56, 4  ;;  %v27435_v56 = vld [vmem:[%s38719_s3 + $0x2a60] ss:$24 sps:$4 sm:$0xff]  }
 0x352   : > { %4654 = vmatpush1.bf16.msra.mxu1 %v27348_v59  ;;  %v9677_v59 = vrot.slane %v9675_v32, 5  ;;  %v27440_v32 = vld [vmem:[%s38719_s3 + $0xc9c] ss:$24 sps:$4 sm:$0xff]  }
 0x353   : > { %11255 = vmatpush1.bf16.msra.mxu0 %v27351_v60  ;;  %4655 = vmatprep.subr.bf16.mxu1 %v27356_v62  ;;  %v9716_v60 = vrot.slane %v9714_v33, 4  ;;  %v9719_v62 = vrot.slane %v9717_v45, 5  ;;  %v27443_v33 = vld [vmem:[%s38719_s3 + $0x2a94] ss:$24 sps:$4 sm:$0xff]   ;;  %v27438_v45 = vld [vmem:[%s38719_s3 + $0xc98] ss:$24 sps:$4 sm:$0xff]  }
 0x354   : > { %11256 = vmatprep.subr.bf16.mxu0 %v27359_v63  ;;  %v9636_v63 = vld [vmem:[%s31193_s13 + $0x28] sm:$0x11] }
 0x356   : > { %4656 = vmatpush1.bf16.msra.mxu1 %v27354_v0  ;;  %v9642_v0 = vld [vmem:[%s31193_s13 + $0x58] sm:$0x11] }
 0x357   : > { %11257 = vmatpush1.bf16.msra.mxu0 %v27357_v1  ;;  %4657 = vmatprep.subr.bf16.mxu1 %v27362_v2  ;;  %v27410_v1 = vld [vmem:[%s38719_s3 + $0xbac] ss:$24 sps:$4 sm:$0xff]  }
 0x358   : > { %11258 = vmatprep.subr.bf16.mxu0 %v27365_v3  ;;  %v27413_v2 = vld [vmem:[%s38719_s3 + $0x29a4] ss:$24 sps:$4 sm:$0xff]   ;;  %v9678_v3 = vor.u32 %v9677_v59, %v9674_v58  ;;  %v27455_v58 = vld [vmem:[%s38719_s3 + $0x2af4] ss:$24 sps:$4 sm:$0xff]   ;;  %v27450_v59 = vld [vmem:[%s38719_s3 + $0xcf8] ss:$24 sps:$4 sm:$0xff]  }
 0x35a   : > { %4658 = vmatpush1.bf16.msra.mxu1 %v27360_v4  ;;  %v9681_v4 = vshll.u32 %v9636_v63, 16  ;;  %v27461_v63 = vld [vmem:[%s38719_s3 + $0x2b24] ss:$24 sps:$4 sm:$0xff]  }
 0x35b   : > { %11259 = vmatpush1.bf16.msra.mxu0 %v27363_v5  ;;  %4659 = vmatprep.subr.bf16.mxu1 %v27368_v7  ;;  %v9720_v5 = vor.u32 %v9719_v62, %v9716_v60  ;;  %v9723_v7 = vshll.u32 %v9642_v0, 16  ;;  %v27453_v60 = vld [vmem:[%s38719_s3 + $0x2af0] ss:$24 sps:$4 sm:$0xff]   ;;  %v27458_v62 = vld [vmem:[%s38719_s3 + $0xd2c] ss:$24 sps:$4 sm:$0xff]  }
 0x35c   : > { %11260 = vmatprep.subr.bf16.mxu0 %v27371_v8  ;;  %v27408_v8 = vld [vmem:[%s38719_s3 + $0xba8] ss:$24 sps:$4 sm:$0xff]  }
 0x35d   : > { %v27456_v0 = vld [vmem:[%s38719_s3 + $0xd28] ss:$24 sps:$4 sm:$0xff]  }
 0x35e   : > { %4660 = vmatpush1.bf16.msra.mxu1 %v27366_v9  ;;  %v27411_v9 = vld [vmem:[%s38719_s3 + $0x29a0] ss:$24 sps:$4 sm:$0xff]  }
 0x35f   : > { %11261 = vmatpush1.bf16.msra.mxu0 %v27369_v10  ;;  %4661 = vmatprep.subr.bf16.mxu1 %v27374_v11  ;;  %v27416_v10 = vld [vmem:[%s38719_s3 + $0xbdc] ss:$24 sps:$4 sm:$0xff]  }
 0x360   : > { %11262 = vmatprep.subr.bf16.mxu0 %v27377_v12  ;;  %v27419_v11 = vld [vmem:[%s38719_s3 + $0x29d4] ss:$24 sps:$4 sm:$0xff]   ;;  %v9679_v12 = vrot.slane %v9678_v3, 4 }
 0x361   : > { %v27467_v3 = vld [vmem:[%s38719_s3 + $0x2b54] ss:$24 sps:$4 sm:$0xff]  }
 0x362   : > { %4662 = vmatpush1.bf16.msra.mxu1 %v27372_v13  ;;  %v9683_v13 = vrot.slane %v9681_v4, 5  ;;  %v27462_v4 = vld [vmem:[%s38719_s3 + $0xd58] ss:$24 sps:$4 sm:$0xff]  }
 0x363   : > { %11263 = vmatpush1.bf16.msra.mxu0 %v27375_v14  ;;  %4663 = vmatprep.subr.bf16.mxu1 %v27380_v15  ;;  %v9721_v14 = vrot.slane %v9720_v5, 4  ;;  %v9725_v15 = vrot.slane %v9723_v7, 5  ;;  %v27465_v5 = vld [vmem:[%s38719_s3 + $0x2b50] ss:$24 sps:$4 sm:$0xff]   ;;  %v27470_v7 = vld [vmem:[%s38719_s3 + $0xd8c] ss:$24 sps:$4 sm:$0xff]  }
 0x364   : > { %11264 = vmatprep.subr.bf16.mxu0 %v27383_v16  ;;  %v27414_v16 = vld [vmem:[%s38719_s3 + $0xbd8] ss:$24 sps:$4 sm:$0xff]  }
 0x366   : > { %4664 = vmatpush1.bf16.msra.mxu1 %v27378_v17  ;;  %v27417_v17 = vld [vmem:[%s38719_s3 + $0x29d0] ss:$24 sps:$4 sm:$0xff]  }
 0x367   : > { %11265 = vmatpush1.bf16.msra.mxu0 %v27381_v18  ;;  %4665 = vmatprep.subr.bf16.mxu1 %v27386_v19  ;;  %v27422_v18 = vld [vmem:[%s38719_s3 + $0xc0c] ss:$24 sps:$4 sm:$0xff]  }
 0x368   : > { %11266 = vmatprep.subr.bf16.mxu0 %v27389_v20  ;;  %v27425_v19 = vld [vmem:[%s38719_s3 + $0x2a04] ss:$24 sps:$4 sm:$0xff]   ;;  %v33025_v20 = vcombine.low %v32813_v30, %v32817_v34  ;;  %v27431_v34 = vld [vmem:[%s38719_s3 + $0x2a34] ss:$24 sps:$4 sm:$0xff]  }
 0x369   : > { %v27428_v30 = vld [vmem:[%s38719_s3 + $0xc3c] ss:$24 sps:$4 sm:$0xff]  }
 0x36a   : > { %4666 = vmatpush1.bf16.msra.mxu1 %v27384_v21  ;;  %v33029_v21 = vsel %vm32133_vm5, %v9679_v12, %v9683_v13  ;;  %v27479_v12 = vld [vmem:[%s38719_s3 + $0x2bb4] ss:$24 sps:$4 sm:$0xff]   ;;  %v27474_v13 = vld [vmem:[%s38719_s3 + $0xdb8] ss:$24 sps:$4 sm:$0xff]  }
 0x36b   : > { %11267 = vmatpush1.bf16.msra.mxu0 %v27387_v22  ;;  %4667 = vmatprep.subr.bf16.mxu1 %v27392_v23  ;;  %v33033_v22 = vsel %vm32133_vm5, %v9721_v14, %v9725_v15  ;;  %v27420_v23 = vld [vmem:[%s38719_s3 + $0xc08] ss:$24 sps:$4 sm:$0xff]   ;;  %v27482_v15 = vld [vmem:[%s38719_s3 + $0xdec] ss:$24 sps:$4 sm:$0xff]  }
 0x36c   : > { %11268 = vmatprep.subr.bf16.mxu0 %v27395_v24  ;;  %v27423_v24 = vld [vmem:[%s38719_s3 + $0x2a00] ss:$24 sps:$4 sm:$0xff]   ;;  %v33049_v25 = vcombine.high %v33029_v21, %v33033_v22  ;;  %v27477_v14 = vld [vmem:[%s38719_s3 + $0x2bb0] ss:$24 sps:$4 sm:$0xff]  }
 0x36e   : > { %4668 = vmatpush1.bf16.msra.mxu1 %v27390_v37  ;;  %v27426_v37 = vld [vmem:[%s38719_s3 + $0xc38] ss:$24 sps:$4 sm:$0xff]  }
 0x36f   : > { %11269 = vmatpush1.bf16.msra.mxu0 %v27393_v41  ;;  %4669 = vmatprep.subr.bf16.mxu1 %v27398_v43  ;;  %v27429_v41 = vld [vmem:[%s38719_s3 + $0x2a30] ss:$24 sps:$4 sm:$0xff]   ;;  %v27437_v43 = vld [vmem:[%s38719_s3 + $0x2a64] ss:$24 sps:$4 sm:$0xff]  }
 0x370   : > { %11270 = vmatprep.subr.bf16.mxu0 %v27401_v55  ;;  %v27432_v55 = vld [vmem:[%s38719_s3 + $0xc68] ss:$24 sps:$4 sm:$0xff]  }
 0x372   : > { %4670 = vmatpush1.bf16.msra.mxu1 %v27396_v46  ;;  %v27441_v46 = vld [vmem:[%s38719_s3 + $0x2a90] ss:$24 sps:$4 sm:$0xff]  }
 0x373   : > { %11271 = vmatpush1.bf16.msra.mxu0 %v27399_v49  ;;  %4671 = vmatprep.subr.bf16.mxu1 %v27404_v50  ;;  %v27446_v49 = vld [vmem:[%s38719_s3 + $0xccc] ss:$24 sps:$4 sm:$0xff]  }
 0x374   : > { %11272 = vmatprep.subr.bf16.mxu0 %v27407_v52  ;;  %v27449_v50 = vld [vmem:[%s38719_s3 + $0x2ac4] ss:$24 sps:$4 sm:$0xff]   ;;  %v27444_v52 = vld [vmem:[%s38719_s3 + $0xcc8] ss:$24 sps:$4 sm:$0xff]  }
 0x376   : > { %4672 = vmatpush1.bf16.msra.mxu1 %v27402_v53  ;;  %v27447_v53 = vld [vmem:[%s38719_s3 + $0x2ac0] ss:$24 sps:$4 sm:$0xff]  }
 0x377   : > { %11273 = vmatpush1.bf16.msra.mxu0 %v27405_v57  ;;  %4673 = vmatprep.subr.bf16.mxu1 %v27410_v1  ;;  %v27452_v57 = vld [vmem:[%s38719_s3 + $0xcfc] ss:$24 sps:$4 sm:$0xff]   ;;  %v27459_v1 = vld [vmem:[%s38719_s3 + $0x2b20] ss:$24 sps:$4 sm:$0xff]  }
 0x378   : > { %11274 = vmatprep.subr.bf16.mxu0 %v27413_v2  ;;  %v27464_v2 = vld [vmem:[%s38719_s3 + $0xd5c] ss:$24 sps:$4 sm:$0xff]  }
 0x37a   : > { %4674 = vmatpush1.bf16.msra.mxu1 %v27408_v8  ;;  %v27473_v8 = vld [vmem:[%s38719_s3 + $0x2b84] ss:$24 sps:$4 sm:$0xff]  }
 0x37b   : > { %11275 = vmatpush1.bf16.msra.mxu0 %v27411_v9  ;;  %4675 = vmatprep.subr.bf16.mxu1 %v27416_v10  ;;  %v27468_v9 = vld [vmem:[%s38719_s3 + $0xd88] ss:$24 sps:$4 sm:$0xff]  }
 0x37c   : > { %11276 = vmatprep.subr.bf16.mxu0 %v27419_v11  ;;  %v27471_v10 = vld [vmem:[%s38719_s3 + $0x2b80] ss:$24 sps:$4 sm:$0xff]   ;;  %v27476_v11 = vld [vmem:[%s38719_s3 + $0xdbc] ss:$24 sps:$4 sm:$0xff]  }
 0x37e   : > { %4676 = vmatpush1.bf16.msra.mxu1 %v27414_v16  ;;  %v27485_v16 = vld [vmem:[%s38719_s3 + $0x2be4] ss:$24 sps:$4 sm:$0xff]  }
 0x37f   : > { %11277 = vmatpush1.bf16.msra.mxu0 %v27417_v17  ;;  %4688 = vmatprep.subr.bf16.mxu1 %v27422_v18  ;;  %v27480_v17 = vld [vmem:[%s38719_s3 + $0xde8] ss:$24 sps:$4 sm:$0xff]  }
 0x380   : > { %11289 = vmatprep.subr.bf16.mxu0 %v27425_v19  ;;  %v27483_v18 = vld [vmem:[%s38719_s3 + $0x2be0] ss:$24 sps:$4 sm:$0xff]   ;;  %v27488_v19 = vld [vmem:[%s38719_s3 + $0xe1c] ss:$24 sps:$4 sm:$0xff]  }
 0x381   : > { %4678 = vmatmul.mubr.bf16.vlgmr.msra.gmra.mrb[4].mxu1 %v32357_v31 }
 0x382   : > { %11279 = vmatmul.mubr.bf16.vlgmr.msra.gmra.mrb[0].mxu0 %v33025_v20  ;;  %4689 = vmatpush1.bf16.msra.mxu1 %v27420_v23  ;;  %v27491_v23 = vld [vmem:[%s38719_s3 + $0x2c14] ss:$24 sps:$4 sm:$0xff]  }
 0x383   : > { %11290 = vmatpush1.bf16.msra.mxu0 %v27423_v24  ;;  %4690 = vmatprep.subr.bf16.mxu1 %v27428_v30  ;;  %v27486_v24 = vld [vmem:[%s38719_s3 + $0xe18] ss:$24 sps:$4 sm:$0xff]  }
 0x384   : > { %11291 = vmatprep.subr.bf16.mxu0 %v27431_v34  ;;  %4720 = vmatprep.mubr.bf16.mxu1 %v32381_v38  ;;  %v27489_v30 = vld [vmem:[%s38719_s3 + $0x2c10] ss:$24 sps:$4 sm:$0xff]   ;;  %v27494_v34 = vld [vmem:[%s38719_s3 + $0xe4c] ss:$24 sps:$4 sm:$0xff]  }
 0x385   : > { %11321 = vmatprep.mubr.bf16.mxu0 %v33049_v25 }
 0x386   : > { %4691 = vmatpush1.bf16.msra.mxu1 %v27426_v37  ;;  %v27497_v37 = vld [vmem:[%s38719_s3 + $0x2c44] ss:$24 sps:$4 sm:$0xff]  }
 0x387   : > { %11292 = vmatpush1.bf16.msra.mxu0 %v27429_v41  ;;  %4692 = vmatprep.subr.bf16.mxu1 %v27434_v42  ;;  %v27492_v41 = vld [vmem:[%s38719_s3 + $0xe48] ss:$24 sps:$4 sm:$0xff]  }
 0x388   : > { %11293 = vmatprep.subr.bf16.mxu0 %v27437_v43  ;;  %v27495_v42 = vld [vmem:[%s38719_s3 + $0x2c40] ss:$24 sps:$4 sm:$0xff]   ;;  %v27500_v43 = vld [vmem:[%s38719_s3 + $0xe7c] ss:$24 sps:$4 sm:$0xff]  }
 0x38a   : > { %4693 = vmatpush1.bf16.msra.mxu1 %v27432_v55  ;;  %v27503_v55 = vld [vmem:[%s38719_s3 + $0x2c74] ss:$24 sps:$4 sm:$0xff]  }
 0x38b   : > { %11294 = vmatpush1.bf16.msra.mxu0 %v27435_v56  ;;  %4694 = vmatprep.subr.bf16.mxu1 %v27440_v32  ;;  %v27498_v56 = vld [vmem:[%s38719_s3 + $0xe78] ss:$24 sps:$4 sm:$0xff]  }
 0x38c   : > { %11295 = vmatprep.subr.bf16.mxu0 %v27443_v33  ;;  %v27501_v32 = vld [vmem:[%s38719_s3 + $0x2c70] ss:$24 sps:$4 sm:$0xff]   ;;  %v27506_v33 = vld [vmem:[%s38719_s3 + $0xeac] ss:$24 sps:$4 sm:$0xff]  }
 0x38e   : > { %4695 = vmatpush1.bf16.msra.mxu1 %v27438_v45  ;;  %v27509_v45 = vld [vmem:[%s38719_s3 + $0x2ca4] ss:$24 sps:$4 sm:$0xff]  }
 0x38f   : > { %11296 = vmatpush1.bf16.msra.mxu0 %v27441_v46  ;;  %4696 = vmatprep.subr.bf16.mxu1 %v27446_v49  ;;  %v27504_v46 = vld [vmem:[%s38719_s3 + $0xea8] ss:$24 sps:$4 sm:$0xff]  }
 0x390   : > { %11297 = vmatprep.subr.bf16.mxu0 %v27449_v50  ;;  %v27507_v49 = vld [vmem:[%s38719_s3 + $0x2ca0] ss:$24 sps:$4 sm:$0xff]   ;;  %v27512_v50 = vld [vmem:[%s38719_s3 + $0xedc] ss:$24 sps:$4 sm:$0xff]  }
 0x392   : > { %4697 = vmatpush1.bf16.msra.mxu1 %v27444_v52  ;;  %v27515_v52 = vld [vmem:[%s38719_s3 + $0x2cd4] ss:$24 sps:$4 sm:$0xff]  }
 0x393   : > { %11298 = vmatpush1.bf16.msra.mxu0 %v27447_v53  ;;  %4698 = vmatprep.subr.bf16.mxu1 %v27452_v57  ;;  %v27510_v53 = vld [vmem:[%s38719_s3 + $0xed8] ss:$24 sps:$4 sm:$0xff]  }
 0x394   : > { %11299 = vmatprep.subr.bf16.mxu0 %v27455_v58  ;;  %v27513_v57 = vld [vmem:[%s38719_s3 + $0x2cd0] ss:$24 sps:$4 sm:$0xff]   ;;  %v27518_v58 = vld [vmem:[%s38719_s3 + $0xf0c] ss:$24 sps:$4 sm:$0xff]  }
 0x396   : > { %4699 = vmatpush1.bf16.msra.mxu1 %v27450_v59  ;;  %v27521_v59 = vld [vmem:[%s38719_s3 + $0x2414] ss:$24 sps:$4 sm:$0xff]  }
 0x397   : > { %11300 = vmatpush1.bf16.msra.mxu0 %v27453_v60  ;;  %4700 = vmatprep.subr.bf16.mxu1 %v27458_v62  ;;  %v33237_v60 = vcombine.low %v33029_v21, %v33033_v22  ;;  %v27516_v62 = vld [vmem:[%s38719_s3 + $0xf08] ss:$24 sps:$4 sm:$0xff]   ;;  %v27527_v21 = vld [vmem:[%s38719_s3 + $0x2444] ss:$24 sps:$4 sm:$0xff]   ;;  %v27522_v22 = vld [vmem:[%s38719_s3 + $0xf38] ss:$24 sps:$4 sm:$0xff]  }
 0x398   : > { %11301 = vmatprep.subr.bf16.mxu0 %v27461_v63  ;;  %v27519_v63 = vld [vmem:[%s38719_s3 + $0x2410] ss:$24 sps:$4 sm:$0xff]  }
 0x39a   : > { %4701 = vmatpush1.bf16.msra.mxu1 %v27456_v0  ;;  %v27524_v0 = vld [vmem:[%s38719_s3 + $0xf3c] ss:$24 sps:$4 sm:$0xff]  }
 0x39b   : > { %11302 = vmatpush1.bf16.msra.mxu0 %v27459_v1  ;;  %4702 = vmatprep.subr.bf16.mxu1 %v27464_v2  ;;  %v27525_v1 = vld [vmem:[%s38719_s3 + $0x2440] ss:$24 sps:$4 sm:$0xff]   ;;  %v27530_v2 = vld [vmem:[%s38719_s3 + $0xf6c] ss:$24 sps:$4 sm:$0xff]  }
 0x39c   : > { %11303 = vmatprep.subr.bf16.mxu0 %v27467_v3  ;;  %v27533_v3 = vld [vmem:[%s38719_s3 + $0x2474] ss:$24 sps:$4 sm:$0xff]  }
 0x39e   : > { %4703 = vmatpush1.bf16.msra.mxu1 %v27462_v4  ;;  %v27528_v4 = vld [vmem:[%s38719_s3 + $0xf68] ss:$24 sps:$4 sm:$0xff]  }
 0x39f   : > { %11304 = vmatpush1.bf16.msra.mxu0 %v27465_v5  ;;  %4704 = vmatprep.subr.bf16.mxu1 %v27470_v7  ;;  %v27531_v5 = vld [vmem:[%s38719_s3 + $0x2470] ss:$24 sps:$4 sm:$0xff]   ;;  %v27536_v7 = vld [vmem:[%s38719_s3 + $0xf9c] ss:$24 sps:$4 sm:$0xff]  }
 0x3a0   : > { %11305 = vmatprep.subr.bf16.mxu0 %v27473_v8  ;;  %v27539_v8 = vld [vmem:[%s38719_s3 + $0x24a4] ss:$24 sps:$4 sm:$0xff]  }
 0x3a2   : > { %4705 = vmatpush1.bf16.msra.mxu1 %v27468_v9  ;;  %v27534_v9 = vld [vmem:[%s38719_s3 + $0xf98] ss:$24 sps:$4 sm:$0xff]  }
 0x3a3   : > { %11306 = vmatpush1.bf16.msra.mxu0 %v27471_v10  ;;  %4706 = vmatprep.subr.bf16.mxu1 %v27476_v11  ;;  %v27537_v10 = vld [vmem:[%s38719_s3 + $0x24a0] ss:$24 sps:$4 sm:$0xff]   ;;  %v27542_v11 = vld [vmem:[%s38719_s3 + $0xfcc] ss:$24 sps:$4 sm:$0xff]  }
 0x3a4   : > { %11307 = vmatprep.subr.bf16.mxu0 %v27479_v12  ;;  %v27545_v12 = vld [vmem:[%s38719_s3 + $0x24d4] ss:$24 sps:$4 sm:$0xff]  }
 0x3a6   : > { %4707 = vmatpush1.bf16.msra.mxu1 %v27474_v13  ;;  %v27540_v13 = vld [vmem:[%s38719_s3 + $0xfc8] ss:$24 sps:$4 sm:$0xff]  }
 0x3a7   : > { %11308 = vmatpush1.bf16.msra.mxu0 %v27477_v14  ;;  %4708 = vmatprep.subr.bf16.mxu1 %v27482_v15  ;;  %v27543_v14 = vld [vmem:[%s38719_s3 + $0x24d0] ss:$24 sps:$4 sm:$0xff]   ;;  %v27548_v15 = vld [vmem:[%s38719_s3 + $0xffc] ss:$24 sps:$4 sm:$0xff]  }
 0x3a8   : > { %11309 = vmatprep.subr.bf16.mxu0 %v27485_v16  ;;  %v27551_v16 = vld [vmem:[%s38719_s3 + $0x2504] ss:$24 sps:$4 sm:$0xff]  }
 0x3aa   : > { %4709 = vmatpush1.bf16.msra.mxu1 %v27480_v17  ;;  %v27546_v17 = vld [vmem:[%s38719_s3 + $0xff8] ss:$24 sps:$4 sm:$0xff]  }
 0x3ab   : > { %11310 = vmatpush1.bf16.msra.mxu0 %v27483_v18  ;;  %4710 = vmatprep.subr.bf16.mxu1 %v27488_v19  ;;  %v27549_v18 = vld [vmem:[%s38719_s3 + $0x2500] ss:$24 sps:$4 sm:$0xff]   ;;  %v27554_v19 = vld [vmem:[%s38719_s3 + $0x102c] ss:$24 sps:$4 sm:$0xff]  }
 0x3ac   : > { %11311 = vmatprep.subr.bf16.mxu0 %v27491_v23  ;;  %v27557_v23 = vld [vmem:[%s38719_s3 + $0x2534] ss:$24 sps:$4 sm:$0xff]  }
 0x3ae   : > { %4711 = vmatpush1.bf16.msra.mxu1 %v27486_v24  ;;  %v27552_v24 = vld [vmem:[%s38719_s3 + $0x1028] ss:$24 sps:$4 sm:$0xff]  }
 0x3af   : > { %11312 = vmatpush1.bf16.msra.mxu0 %v27489_v30  ;;  %4712 = vmatprep.subr.bf16.mxu1 %v27494_v34  ;;  %v27555_v30 = vld [vmem:[%s38719_s3 + $0x2530] ss:$24 sps:$4 sm:$0xff]   ;;  %v27560_v34 = vld [vmem:[%s38719_s3 + $0x105c] ss:$24 sps:$4 sm:$0xff]  }
 0x3b0   : > { %11313 = vmatprep.subr.bf16.mxu0 %v27497_v37  ;;  %v27563_v37 = vld [vmem:[%s38719_s3 + $0x2564] ss:$24 sps:$4 sm:$0xff]  }
 0x3b2   : > { %4713 = vmatpush1.bf16.msra.mxu1 %v27492_v41  ;;  %v27558_v41 = vld [vmem:[%s38719_s3 + $0x1058] ss:$24 sps:$4 sm:$0xff]  }
 0x3b3   : > { %11314 = vmatpush1.bf16.msra.mxu0 %v27495_v42  ;;  %4714 = vmatprep.subr.bf16.mxu1 %v27500_v43  ;;  %v27561_v42 = vld [vmem:[%s38719_s3 + $0x2560] ss:$24 sps:$4 sm:$0xff]   ;;  %v27566_v43 = vld [vmem:[%s38719_s3 + $0x108c] ss:$24 sps:$4 sm:$0xff]  }
 0x3b4   : > { %11315 = vmatprep.subr.bf16.mxu0 %v27503_v55  ;;  %v27569_v55 = vld [vmem:[%s38719_s3 + $0x2594] ss:$24 sps:$4 sm:$0xff]  }
 0x3b6   : > { %4715 = vmatpush1.bf16.msra.mxu1 %v27498_v56  ;;  %v27564_v56 = vld [vmem:[%s38719_s3 + $0x1088] ss:$24 sps:$4 sm:$0xff]  }
 0x3b7   : > { %11316 = vmatpush1.bf16.msra.mxu0 %v27501_v32  ;;  %4716 = vmatprep.subr.bf16.mxu1 %v27506_v33  ;;  %v27567_v32 = vld [vmem:[%s38719_s3 + $0x2590] ss:$24 sps:$4 sm:$0xff]   ;;  %v27572_v33 = vld [vmem:[%s38719_s3 + $0x10bc] ss:$24 sps:$4 sm:$0xff]  }
 0x3b8   : > { %11317 = vmatprep.subr.bf16.mxu0 %v27509_v45  ;;  %v27575_v45 = vld [vmem:[%s38719_s3 + $0x25c4] ss:$24 sps:$4 sm:$0xff]  }
 0x3ba   : > { %4717 = vmatpush1.bf16.msra.mxu1 %v27504_v46  ;;  %v27570_v46 = vld [vmem:[%s38719_s3 + $0x10b8] ss:$24 sps:$4 sm:$0xff]  }
 0x3bb   : > { %11318 = vmatpush1.bf16.msra.mxu0 %v27507_v49  ;;  %4718 = vmatprep.subr.bf16.mxu1 %v27512_v50  ;;  %v27573_v49 = vld [vmem:[%s38719_s3 + $0x25c0] ss:$24 sps:$4 sm:$0xff]   ;;  %v27578_v50 = vld [vmem:[%s38719_s3 + $0x10ec] ss:$24 sps:$4 sm:$0xff]  }
 0x3bc   : > { %11319 = vmatprep.subr.bf16.mxu0 %v27515_v52  ;;  %v27581_v52 = vld [vmem:[%s38719_s3 + $0x25f4] ss:$24 sps:$4 sm:$0xff]  }
 0x3be   : > { %4719 = vmatpush1.bf16.msra.mxu1 %v27510_v53  ;;  %v27576_v53 = vld [vmem:[%s38719_s3 + $0x10e8] ss:$24 sps:$4 sm:$0xff]  }
 0x3bf   : > { %11320 = vmatpush1.bf16.msra.mxu0 %v27513_v57  ;;  %4731 = vmatprep.subr.bf16.mxu1 %v27518_v58  ;;  %v27579_v57 = vld [vmem:[%s38719_s3 + $0x25f0] ss:$24 sps:$4 sm:$0xff]   ;;  %v27584_v58 = vld [vmem:[%s38719_s3 + $0x111c] ss:$24 sps:$4 sm:$0xff]  }
 0x3c0   : > { %11461 = vmatprep.subr.bf16.mxu0 %v27521_v59  ;;  %v27587_v59 = vld [vmem:[%s38719_s3 + $0x2624] ss:$24 sps:$4 sm:$0xff]  }
 0x3c1   : > { %4721 = vmatmul.mubr.bf16.vlgmr.msra.gmra.mrb[4].mxu1 %v32577_v40 }
 0x3c2   : > { %11322 = vmatmul.mubr.bf16.vlgmr.msra.gmra.mrb[0].mxu0 %v33237_v60  ;;  %4732 = vmatpush1.bf16.msra.mxu1 %v27516_v62  ;;  %v27582_v62 = vld [vmem:[%s38719_s3 + $0x1118] ss:$24 sps:$4 sm:$0xff]  }
 0x3c3   : > { %11462 = vmatpush1.bf16.msra.mxu0 %v27519_v63  ;;  %4733 = vmatprep.subr.bf16.mxu1 %v27524_v0  ;;  %v27585_v63 = vld [vmem:[%s38719_s3 + $0x2620] ss:$24 sps:$4 sm:$0xff]   ;;  %v27590_v0 = vld [vmem:[%s38719_s3 + $0x114c] ss:$24 sps:$4 sm:$0xff]  }
 0x3c4   : > { %11463 = vmatprep.subr.bf16.mxu0 %v27527_v21  ;;  %4763 = vmatprep.mubr.bf16.mxu1 %v32609_v47  ;;  %v27593_v21 = vld [vmem:[%s38719_s3 + $0x2654] ss:$24 sps:$4 sm:$0xff]  }
 0x3c5   : > { %11493 = vmatprep.mubr.bf16.mxu0 %v32613_v48 }
 0x3c6   : > { %4734 = vmatpush1.bf16.msra.mxu1 %v27522_v22  ;;  %v27588_v22 = vld [vmem:[%s38719_s3 + $0x1148] ss:$24 sps:$4 sm:$0xff]  }
 0x3c7   : > { %11464 = vmatpush1.bf16.msra.mxu0 %v27525_v1  ;;  %4735 = vmatprep.subr.bf16.mxu1 %v27530_v2  ;;  %v27591_v1 = vld [vmem:[%s38719_s3 + $0x2650] ss:$24 sps:$4 sm:$0xff]   ;;  %v27596_v2 = vld [vmem:[%s38719_s3 + $0x117c] ss:$24 sps:$4 sm:$0xff]  }
 0x3c8   : > { %11465 = vmatprep.subr.bf16.mxu0 %v27533_v3  ;;  %v27599_v3 = vld [vmem:[%s38719_s3 + $0x2684] ss:$24 sps:$4 sm:$0xff]  }
 0x3ca   : > { %4736 = vmatpush1.bf16.msra.mxu1 %v27528_v4  ;;  %v27594_v4 = vld [vmem:[%s38719_s3 + $0x1178] ss:$24 sps:$4 sm:$0xff]  }
 0x3cb   : > { %11466 = vmatpush1.bf16.msra.mxu0 %v27531_v5  ;;  %4737 = vmatprep.subr.bf16.mxu1 %v27536_v7  ;;  %v27597_v5 = vld [vmem:[%s38719_s3 + $0x2680] ss:$24 sps:$4 sm:$0xff]   ;;  %v27602_v7 = vld [vmem:[%s38719_s3 + $0x11ac] ss:$24 sps:$4 sm:$0xff]  }
 0x3cc   : > { %11467 = vmatprep.subr.bf16.mxu0 %v27539_v8  ;;  %v27605_v8 = vld [vmem:[%s38719_s3 + $0x26b4] ss:$24 sps:$4 sm:$0xff]  }
 0x3ce   : > { %4738 = vmatpush1.bf16.msra.mxu1 %v27534_v9  ;;  %v27600_v9 = vld [vmem:[%s38719_s3 + $0x11a8] ss:$24 sps:$4 sm:$0xff]  }
 0x3cf   : > { %11468 = vmatpush1.bf16.msra.mxu0 %v27537_v10  ;;  %4739 = vmatprep.subr.bf16.mxu1 %v27542_v11  ;;  %v27603_v10 = vld [vmem:[%s38719_s3 + $0x26b0] ss:$24 sps:$4 sm:$0xff]   ;;  %v27608_v11 = vld [vmem:[%s38719_s3 + $0x11dc] ss:$24 sps:$4 sm:$0xff]  }
 0x3d0   : > { %11469 = vmatprep.subr.bf16.mxu0 %v27545_v12  ;;  %v27611_v12 = vld [vmem:[%s38719_s3 + $0x26e4] ss:$24 sps:$4 sm:$0xff]  }
 0x3d2   : > { %4740 = vmatpush1.bf16.msra.mxu1 %v27540_v13  ;;  %v27606_v13 = vld [vmem:[%s38719_s3 + $0x11d8] ss:$24 sps:$4 sm:$0xff]  }
 0x3d3   : > { %11470 = vmatpush1.bf16.msra.mxu0 %v27543_v14  ;;  %4741 = vmatprep.subr.bf16.mxu1 %v27548_v15  ;;  %v27609_v14 = vld [vmem:[%s38719_s3 + $0x26e0] ss:$24 sps:$4 sm:$0xff]   ;;  %v27614_v15 = vld [vmem:[%s38719_s3 + $0x914] ss:$24 sps:$4 sm:$0xff]  }
 0x3d4   : > { %11471 = vmatprep.subr.bf16.mxu0 %v27551_v16  ;;  %v27617_v16 = vld [vmem:[%s38719_s3 + $0x2714] ss:$24 sps:$4 sm:$0xff]  }
 0x3d6   : > { %4742 = vmatpush1.bf16.msra.mxu1 %v27546_v17  ;;  %v27612_v17 = vld [vmem:[%s38719_s3 + $0x910] ss:$24 sps:$4 sm:$0xff]  }
 0x3d7   : > { %11472 = vmatpush1.bf16.msra.mxu0 %v27549_v18  ;;  %4743 = vmatprep.subr.bf16.mxu1 %v27554_v19  ;;  %v27615_v18 = vld [vmem:[%s38719_s3 + $0x2710] ss:$24 sps:$4 sm:$0xff]   ;;  %v27620_v19 = vld [vmem:[%s38719_s3 + $0x944] ss:$24 sps:$4 sm:$0xff]  }
 0x3d8   : > { %11473 = vmatprep.subr.bf16.mxu0 %v27557_v23  ;;  %v27623_v23 = vld [vmem:[%s38719_s3 + $0x2744] ss:$24 sps:$4 sm:$0xff]  }
 0x3da   : > { %4744 = vmatpush1.bf16.msra.mxu1 %v27552_v24  ;;  %v27618_v24 = vld [vmem:[%s38719_s3 + $0x940] ss:$24 sps:$4 sm:$0xff]  }
 0x3db   : > { %11474 = vmatpush1.bf16.msra.mxu0 %v27555_v30  ;;  %4745 = vmatprep.subr.bf16.mxu1 %v27560_v34  ;;  %v27621_v30 = vld [vmem:[%s38719_s3 + $0x2740] ss:$24 sps:$4 sm:$0xff]   ;;  %v27626_v34 = vld [vmem:[%s38719_s3 + $0x974] ss:$24 sps:$4 sm:$0xff]  }
 0x3dc   : > { %11475 = vmatprep.subr.bf16.mxu0 %v27563_v37  ;;  %v27629_v37 = vld [vmem:[%s38719_s3 + $0x2774] ss:$24 sps:$4 sm:$0xff]  }
 0x3de   : > { %4746 = vmatpush1.bf16.msra.mxu1 %v27558_v41  ;;  %v27624_v41 = vld [vmem:[%s38719_s3 + $0x970] ss:$24 sps:$4 sm:$0xff]  }
 0x3df   : > { %11476 = vmatpush1.bf16.msra.mxu0 %v27561_v42  ;;  %4747 = vmatprep.subr.bf16.mxu1 %v27566_v43  ;;  %v27627_v42 = vld [vmem:[%s38719_s3 + $0x2770] ss:$24 sps:$4 sm:$0xff]   ;;  %v27632_v43 = vld [vmem:[%s38719_s3 + $0x9a4] ss:$24 sps:$4 sm:$0xff]  }
 0x3e0   : > { %11477 = vmatprep.subr.bf16.mxu0 %v27569_v55  ;;  %v27630_v55 = vld [vmem:[%s38719_s3 + $0x9a0] ss:$24 sps:$4 sm:$0xff]  }
 0x3e2   : > { %4748 = vmatpush1.bf16.msra.mxu1 %v27564_v56  ;;  %v27633_v56 = vld [vmem:[%s38719_s3 + $0x27a0] ss:$24 sps:$4 sm:$0xff]  }
 0x3e3   : > { %11478 = vmatpush1.bf16.msra.mxu0 %v27567_v32  ;;  %4749 = vmatprep.subr.bf16.mxu1 %v27572_v33  ;;  %v27638_v32 = vld [vmem:[%s38719_s3 + $0x9d4] ss:$24 sps:$4 sm:$0xff]  }
 0x3e4   : > { %11479 = vmatprep.subr.bf16.mxu0 %v27575_v45  ;;  %v27641_v33 = vld [vmem:[%s38719_s3 + $0x27d4] ss:$24 sps:$4 sm:$0xff]   ;;  %v27636_v45 = vld [vmem:[%s38719_s3 + $0x9d0] ss:$24 sps:$4 sm:$0xff]  }
 0x3e6   : > { %4750 = vmatpush1.bf16.msra.mxu1 %v27570_v46  ;;  %v27639_v46 = vld [vmem:[%s38719_s3 + $0x27d0] ss:$24 sps:$4 sm:$0xff]  }
 0x3e7   : > { %11480 = vmatpush1.bf16.msra.mxu0 %v27573_v49  ;;  %4751 = vmatprep.subr.bf16.mxu1 %v27578_v50  ;;  %v27644_v49 = vld [vmem:[%s38719_s3 + $0xa04] ss:$24 sps:$4 sm:$0xff]  }
 0x3e8   : > { %11481 = vmatprep.subr.bf16.mxu0 %v27581_v52  ;;  %v27647_v50 = vld [vmem:[%s38719_s3 + $0x2804] ss:$24 sps:$4 sm:$0xff]   ;;  %v27642_v52 = vld [vmem:[%s38719_s3 + $0xa00] ss:$24 sps:$4 sm:$0xff]  }
 0x3ea   : > { %4752 = vmatpush1.bf16.msra.mxu1 %v27576_v53  ;;  %v27645_v53 = vld [vmem:[%s38719_s3 + $0x2800] ss:$24 sps:$4 sm:$0xff]  }
 0x3eb   : > { %11482 = vmatpush1.bf16.msra.mxu0 %v27579_v57  ;;  %4753 = vmatprep.subr.bf16.mxu1 %v27584_v58  ;;  %v27650_v57 = vld [vmem:[%s38719_s3 + $0xa34] ss:$24 sps:$4 sm:$0xff]  }
 0x3ec   : > { %11483 = vmatprep.subr.bf16.mxu0 %v27587_v59  ;;  %v27653_v58 = vld [vmem:[%s38719_s3 + $0x2834] ss:$24 sps:$4 sm:$0xff]   ;;  %v27648_v59 = vld [vmem:[%s38719_s3 + $0xa30] ss:$24 sps:$4 sm:$0xff]  }
 0x3ee   : > { %4754 = vmatpush1.bf16.msra.mxu1 %v27582_v62  ;;  %v27651_v62 = vld [vmem:[%s38719_s3 + $0x2830] ss:$24 sps:$4 sm:$0xff]  }
 0x3ef   : > { %11484 = vmatpush1.bf16.msra.mxu0 %v27585_v63  ;;  %4755 = vmatprep.subr.bf16.mxu1 %v27590_v0  ;;  %v27656_v63 = vld [vmem:[%s38719_s3 + $0xa64] ss:$24 sps:$4 sm:$0xff]  }
 0x3f0   : > { %11485 = vmatprep.subr.bf16.mxu0 %v27593_v21  ;;  %v27659_v0 = vld [vmem:[%s38719_s3 + $0x2864] ss:$24 sps:$4 sm:$0xff]   ;;  %v27654_v21 = vld [vmem:[%s38719_s3 + $0xa60] ss:$24 sps:$4 sm:$0xff]  }
 0x3f2   : > { %4756 = vmatpush1.bf16.msra.mxu1 %v27588_v22  ;;  %v27657_v22 = vld [vmem:[%s38719_s3 + $0x2860] ss:$24 sps:$4 sm:$0xff]  }
 0x3f3   : > { %11486 = vmatpush1.bf16.msra.mxu0 %v27591_v1  ;;  %4757 = vmatprep.subr.bf16.mxu1 %v27596_v2  ;;  %v27662_v1 = vld [vmem:[%s38719_s3 + $0xa94] ss:$24 sps:$4 sm:$0xff]  }
 0x3f4   : > { %11487 = vmatprep.subr.bf16.mxu0 %v27599_v3  ;;  %v27665_v2 = vld [vmem:[%s38719_s3 + $0x2894] ss:$24 sps:$4 sm:$0xff]   ;;  %v27660_v3 = vld [vmem:[%s38719_s3 + $0xa90] ss:$24 sps:$4 sm:$0xff]  }
 0x3f6   : > { %4758 = vmatpush1.bf16.msra.mxu1 %v27594_v4  ;;  %v27663_v4 = vld [vmem:[%s38719_s3 + $0x2890] ss:$24 sps:$4 sm:$0xff]  }
 0x3f7   : > { %11488 = vmatpush1.bf16.msra.mxu0 %v27597_v5  ;;  %4759 = vmatprep.subr.bf16.mxu1 %v27602_v7  ;;  %v27668_v5 = vld [vmem:[%s38719_s3 + $0xac4] ss:$24 sps:$4 sm:$0xff]  }
 0x3f8   : > { %11489 = vmatprep.subr.bf16.mxu0 %v27605_v8  ;;  %v27671_v7 = vld [vmem:[%s38719_s3 + $0x28c4] ss:$24 sps:$4 sm:$0xff]   ;;  %v27666_v8 = vld [vmem:[%s38719_s3 + $0xac0] ss:$24 sps:$4 sm:$0xff]  }
 0x3fa   : > { %4760 = vmatpush1.bf16.msra.mxu1 %v27600_v9  ;;  %v27669_v9 = vld [vmem:[%s38719_s3 + $0x28c0] ss:$24 sps:$4 sm:$0xff]  }
 0x3fb   : > { %11490 = vmatpush1.bf16.msra.mxu0 %v27603_v10  ;;  %4761 = vmatprep.subr.bf16.mxu1 %v27608_v11  ;;  %v27674_v10 = vld [vmem:[%s38719_s3 + $0xaf4] ss:$24 sps:$4 sm:$0xff]  }
 0x3fc   : > { %11491 = vmatprep.subr.bf16.mxu0 %v27611_v12  ;;  %v27677_v11 = vld [vmem:[%s38719_s3 + $0x28f4] ss:$24 sps:$4 sm:$0xff]   ;;  %v27672_v12 = vld [vmem:[%s38719_s3 + $0xaf0] ss:$24 sps:$4 sm:$0xff]  }
 0x3fe   : > { %4762 = vmatpush1.bf16.msra.mxu1 %v27606_v13  ;;  %v27675_v13 = vld [vmem:[%s38719_s3 + $0x28f0] ss:$24 sps:$4 sm:$0xff]  }
 0x3ff   : > { %11492 = vmatpush1.bf16.msra.mxu0 %v27609_v14  ;;  %4774 = vmatprep.subr.bf16.mxu1 %v27614_v15  ;;  %v27680_v14 = vld [vmem:[%s38719_s3 + $0xb24] ss:$24 sps:$4 sm:$0xff]  }
 0x400   : > { %11504 = vmatprep.subr.bf16.mxu0 %v27617_v16  ;;  %v27683_v15 = vld [vmem:[%s38719_s3 + $0x2924] ss:$24 sps:$4 sm:$0xff]   ;;  %v27678_v16 = vld [vmem:[%s38719_s3 + $0xb20] ss:$24 sps:$4 sm:$0xff]  }
 0x401   : > { %4764 = vmatmul.mubr.bf16.vlgmr.msra.gmra.mrb[4].mxu1 %v32805_v27 }
 0x402   : > { %11494 = vmatmul.mubr.bf16.vlgmr.msra.gmra.mrb[4].mxu0 %v32809_v29  ;;  %4775 = vmatpush1.bf16.msra.mxu1 %v27612_v17  ;;  %v27681_v17 = vld [vmem:[%s38719_s3 + $0x2920] ss:$24 sps:$4 sm:$0xff]  }
 0x403   : > { %11505 = vmatpush1.bf16.msra.mxu0 %v27615_v18  ;;  %4776 = vmatprep.subr.bf16.mxu1 %v27620_v19  ;;  %v27686_v18 = vld [vmem:[%s38719_s3 + $0xb54] ss:$24 sps:$4 sm:$0xff]  }
 0x404   : > { %11506 = vmatprep.subr.bf16.mxu0 %v27623_v23  ;;  %4806 = vmatprep.mubr.bf16.mxu1 %v32165_v61  ;;  %v27635_v61 = vld [vmem:[%s38719_s3 + $0x27a4] ss:$24 sps:$4 sm:$0xff]   ;;  %v27689_v19 = vld [vmem:[%s38719_s3 + $0x2954] ss:$24 sps:$4 sm:$0xff]   ;;  %v27684_v23 = vld [vmem:[%s38719_s3 + $0xb50] ss:$24 sps:$4 sm:$0xff]  }
 0x405   : > { %11536 = vmatprep.mubr.bf16.mxu0 %v32833_v44 }
 0x406   : > { %4777 = vmatpush1.bf16.msra.mxu1 %v27618_v24  ;;  %v27687_v24 = vld [vmem:[%s38719_s3 + $0x2950] ss:$24 sps:$4 sm:$0xff]  }
 0x407   : > { %11507 = vmatpush1.bf16.msra.mxu0 %v27621_v30  ;;  %4778 = vmatprep.subr.bf16.mxu1 %v27626_v34  ;;  %v27692_v30 = vld [vmem:[%s38719_s3 + $0xb84] ss:$24 sps:$4 sm:$0xff]  }
 0x408   : > { %11508 = vmatprep.subr.bf16.mxu0 %v27629_v37  ;;  %v27695_v34 = vld [vmem:[%s38719_s3 + $0x2984] ss:$24 sps:$4 sm:$0xff]   ;;  %v27690_v37 = vld [vmem:[%s38719_s3 + $0xb80] ss:$24 sps:$4 sm:$0xff]  }
 0x40a   : > { %4779 = vmatpush1.bf16.msra.mxu1 %v27624_v41  ;;  %v27693_v41 = vld [vmem:[%s38719_s3 + $0x2980] ss:$24 sps:$4 sm:$0xff]  }
 0x40b   : > { %11509 = vmatpush1.bf16.msra.mxu0 %v27627_v42  ;;  %4780 = vmatprep.subr.bf16.mxu1 %v27632_v43  ;;  %v27698_v42 = vld [vmem:[%s38719_s3 + $0xbb4] ss:$24 sps:$4 sm:$0xff]  }
 0x40c   : > { %11510 = vmatprep.subr.bf16.mxu0 %v27635_v61  ;;  %v27701_v43 = vld [vmem:[%s38719_s3 + $0x29b4] ss:$24 sps:$4 sm:$0xff]   ;;  %v27696_v61 = vld [vmem:[%s38719_s3 + $0xbb0] ss:$24 sps:$4 sm:$0xff]  }
 0x40e   : > { %4781 = vmatpush1.bf16.msra.mxu1 %v27630_v55  ;;  %v27699_v55 = vld [vmem:[%s38719_s3 + $0x29b0] ss:$24 sps:$4 sm:$0xff]  }
 0x40f   : > { %11511 = vmatpush1.bf16.msra.mxu0 %v27633_v56  ;;  %4782 = vmatprep.subr.bf16.mxu1 %v27638_v32  ;;  %v27704_v56 = vld [vmem:[%s38719_s3 + $0xbe4] ss:$24 sps:$4 sm:$0xff]  }
 0x410   : > { %11512 = vmatprep.subr.bf16.mxu0 %v27641_v33  ;;  %v27707_v32 = vld [vmem:[%s38719_s3 + $0x29e4] ss:$24 sps:$4 sm:$0xff]   ;;  %v27702_v33 = vld [vmem:[%s38719_s3 + $0xbe0] ss:$24 sps:$4 sm:$0xff]  }
 0x412   : > { %4783 = vmatpush1.bf16.msra.mxu1 %v27636_v45  ;;  %v27705_v45 = vld [vmem:[%s38719_s3 + $0x29e0] ss:$24 sps:$4 sm:$0xff]  }
 0x413   : > { %11513 = vmatpush1.bf16.msra.mxu0 %v27639_v46  ;;  %4784 = vmatprep.subr.bf16.mxu1 %v27644_v49  ;;  %v27710_v46 = vld [vmem:[%s38719_s3 + $0xc14] ss:$24 sps:$4 sm:$0xff]  }
 0x414   : > { %11514 = vmatprep.subr.bf16.mxu0 %v27647_v50  ;;  %v27713_v49 = vld [vmem:[%s38719_s3 + $0x2a14] ss:$24 sps:$4 sm:$0xff]   ;;  %v27708_v50 = vld [vmem:[%s38719_s3 + $0xc10] ss:$24 sps:$4 sm:$0xff]  }
 0x416   : > { %4785 = vmatpush1.bf16.msra.mxu1 %v27642_v52  ;;  %v27711_v52 = vld [vmem:[%s38719_s3 + $0x2a10] ss:$24 sps:$4 sm:$0xff]  }
 0x417   : > { %11515 = vmatpush1.bf16.msra.mxu0 %v27645_v53  ;;  %4786 = vmatprep.subr.bf16.mxu1 %v27650_v57  ;;  %v27716_v53 = vld [vmem:[%s38719_s3 + $0xc44] ss:$24 sps:$4 sm:$0xff]  }
 0x418   : > { %11516 = vmatprep.subr.bf16.mxu0 %v27653_v58  ;;  %v27719_v57 = vld [vmem:[%s38719_s3 + $0x2a44] ss:$24 sps:$4 sm:$0xff]   ;;  %v27714_v58 = vld [vmem:[%s38719_s3 + $0xc40] ss:$24 sps:$4 sm:$0xff]  }
 0x41a   : > { %4787 = vmatpush1.bf16.msra.mxu1 %v27648_v59  ;;  %v27717_v59 = vld [vmem:[%s38719_s3 + $0x2a40] ss:$24 sps:$4 sm:$0xff]  }
 0x41b   : > { %11517 = vmatpush1.bf16.msra.mxu0 %v27651_v62  ;;  %4788 = vmatprep.subr.bf16.mxu1 %v27656_v63  ;;  %v27722_v62 = vld [vmem:[%s38719_s3 + $0xc74] ss:$24 sps:$4 sm:$0xff]   ;;  %v27720_v63 = vld [vmem:[%s38719_s3 + $0xc70] ss:$24 sps:$4 sm:$0xff]  }
 0x41c   : > { %11518 = vmatprep.subr.bf16.mxu0 %v27659_v0  ;;  %v27723_v0 = vld [vmem:[%s38719_s3 + $0x2a70] ss:$24 sps:$4 sm:$0xff]  }
 0x41e   : > { %4789 = vmatpush1.bf16.msra.mxu1 %v27654_v21  ;;  %v27728_v21 = vld [vmem:[%s38719_s3 + $0xca4] ss:$24 sps:$4 sm:$0xff]  }
 0x41f   : > { %11519 = vmatpush1.bf16.msra.mxu0 %v27657_v22  ;;  %4790 = vmatprep.subr.bf16.mxu1 %v27662_v1  ;;  %v27726_v22 = vld [vmem:[%s38719_s3 + $0xca0] ss:$24 sps:$4 sm:$0xff]  }
 0x420   : > { %11520 = vmatprep.subr.bf16.mxu0 %v27665_v2  ;;  %v27729_v1 = vld [vmem:[%s38719_s3 + $0x2aa0] ss:$24 sps:$4 sm:$0xff]   ;;  %v27734_v2 = vld [vmem:[%s38719_s3 + $0xcd4] ss:$24 sps:$4 sm:$0xff]  }
 0x422   : > { %4791 = vmatpush1.bf16.msra.mxu1 %v27660_v3  ;;  %v27737_v3 = vld [vmem:[%s38719_s3 + $0x2ad4] ss:$24 sps:$4 sm:$0xff]  }
 0x423   : > { %11521 = vmatpush1.bf16.msra.mxu0 %v27663_v4  ;;  %4792 = vmatprep.subr.bf16.mxu1 %v27668_v5  ;;  %v27732_v4 = vld [vmem:[%s38719_s3 + $0xcd0] ss:$24 sps:$4 sm:$0xff]  }
 0x424   : > { %11522 = vmatprep.subr.bf16.mxu0 %v27671_v7  ;;  %v27735_v5 = vld [vmem:[%s38719_s3 + $0x2ad0] ss:$24 sps:$4 sm:$0xff]   ;;  %v27740_v7 = vld [vmem:[%s38719_s3 + $0xd04] ss:$24 sps:$4 sm:$0xff]  }
 0x426   : > { %4793 = vmatpush1.bf16.msra.mxu1 %v27666_v8  ;;  %v27743_v8 = vld [vmem:[%s38719_s3 + $0x2b04] ss:$24 sps:$4 sm:$0xff]  }
 0x427   : > { %11523 = vmatpush1.bf16.msra.mxu0 %v27669_v9  ;;  %4794 = vmatprep.subr.bf16.mxu1 %v27674_v10  ;;  %v27738_v9 = vld [vmem:[%s38719_s3 + $0xd00] ss:$24 sps:$4 sm:$0xff]  }
 0x428   : > { %11524 = vmatprep.subr.bf16.mxu0 %v27677_v11  ;;  %v27741_v10 = vld [vmem:[%s38719_s3 + $0x2b00] ss:$24 sps:$4 sm:$0xff]   ;;  %v27746_v11 = vld [vmem:[%s38719_s3 + $0xd34] ss:$24 sps:$4 sm:$0xff]  }
 0x42a   : > { %4795 = vmatpush1.bf16.msra.mxu1 %v27672_v12  ;;  %v27749_v12 = vld [vmem:[%s38719_s3 + $0x2b34] ss:$24 sps:$4 sm:$0xff]  }
 0x42b   : > { %11525 = vmatpush1.bf16.msra.mxu0 %v27675_v13  ;;  %4796 = vmatprep.subr.bf16.mxu1 %v27680_v14  ;;  %v27744_v13 = vld [vmem:[%s38719_s3 + $0xd30] ss:$24 sps:$4 sm:$0xff]  }
 0x42c   : > { %11526 = vmatprep.subr.bf16.mxu0 %v27683_v15  ;;  %v27747_v14 = vld [vmem:[%s38719_s3 + $0x2b30] ss:$24 sps:$4 sm:$0xff]   ;;  %v27752_v15 = vld [vmem:[%s38719_s3 + $0xd64] ss:$24 sps:$4 sm:$0xff]  }
 0x42e   : > { %4797 = vmatpush1.bf16.msra.mxu1 %v27678_v16  ;;  %v27755_v16 = vld [vmem:[%s38719_s3 + $0x2b64] ss:$24 sps:$4 sm:$0xff]  }
 0x42f   : > { %11527 = vmatpush1.bf16.msra.mxu0 %v27681_v17  ;;  %4798 = vmatprep.subr.bf16.mxu1 %v27686_v18  ;;  %v27750_v17 = vld [vmem:[%s38719_s3 + $0xd60] ss:$24 sps:$4 sm:$0xff]  }
 0x430   : > { %11528 = vmatprep.subr.bf16.mxu0 %v27689_v19  ;;  %v27753_v18 = vld [vmem:[%s38719_s3 + $0x2b60] ss:$24 sps:$4 sm:$0xff]   ;;  %v27758_v19 = vld [vmem:[%s38719_s3 + $0xd94] ss:$24 sps:$4 sm:$0xff]  }
 0x432   : > { %4799 = vmatpush1.bf16.msra.mxu1 %v27684_v23  ;;  %v27761_v23 = vld [vmem:[%s38719_s3 + $0x2b94] ss:$24 sps:$4 sm:$0xff]  }
 0x433   : > { %11529 = vmatpush1.bf16.msra.mxu0 %v27687_v24  ;;  %4800 = vmatprep.subr.bf16.mxu1 %v27692_v30  ;;  %v27756_v24 = vld [vmem:[%s38719_s3 + $0xd90] ss:$24 sps:$4 sm:$0xff]  }
 0x434   : > { %11530 = vmatprep.subr.bf16.mxu0 %v27695_v34  ;;  %v27759_v30 = vld [vmem:[%s38719_s3 + $0x2b90] ss:$24 sps:$4 sm:$0xff]   ;;  %v27764_v34 = vld [vmem:[%s38719_s3 + $0xdc4] ss:$24 sps:$4 sm:$0xff]  }
 0x436   : > { %4801 = vmatpush1.bf16.msra.mxu1 %v27690_v37  ;;  %v27767_v37 = vld [vmem:[%s38719_s3 + $0x2bc4] ss:$24 sps:$4 sm:$0xff]  }
 0x437   : > { %11531 = vmatpush1.bf16.msra.mxu0 %v27693_v41  ;;  %4802 = vmatprep.subr.bf16.mxu1 %v27698_v42  ;;  %v27762_v41 = vld [vmem:[%s38719_s3 + $0xdc0] ss:$24 sps:$4 sm:$0xff]  }
 0x438   : > { %11532 = vmatprep.subr.bf16.mxu0 %v27701_v43  ;;  %v27765_v42 = vld [vmem:[%s38719_s3 + $0x2bc0] ss:$24 sps:$4 sm:$0xff]   ;;  %v27770_v43 = vld [vmem:[%s38719_s3 + $0xdf4] ss:$24 sps:$4 sm:$0xff]  }
 0x43a   : > { %4803 = vmatpush1.bf16.msra.mxu1 %v27696_v61  ;;  %v27773_v61 = vld [vmem:[%s38719_s3 + $0x2bf4] ss:$24 sps:$4 sm:$0xff]  }
 0x43b   : > { %11533 = vmatpush1.bf16.msra.mxu0 %v27699_v55  ;;  %4804 = vmatprep.subr.bf16.mxu1 %v27704_v56  ;;  %v27768_v55 = vld [vmem:[%s38719_s3 + $0xdf0] ss:$24 sps:$4 sm:$0xff]  }
 0x43c   : > { %11534 = vmatprep.subr.bf16.mxu0 %v27707_v32  ;;  %v27771_v56 = vld [vmem:[%s38719_s3 + $0x2bf0] ss:$24 sps:$4 sm:$0xff]   ;;  %v27776_v32 = vld [vmem:[%s38719_s3 + $0xe24] ss:$24 sps:$4 sm:$0xff]  }
 0x43e   : > { %4805 = vmatpush1.bf16.msra.mxu1 %v27702_v33  ;;  %v27779_v33 = vld [vmem:[%s38719_s3 + $0x2c24] ss:$24 sps:$4 sm:$0xff]  }
 0x43f   : > { %11535 = vmatpush1.bf16.msra.mxu0 %v27705_v45  ;;  %4817 = vmatprep.subr.bf16.mxu1 %v27710_v46  ;;  %v27774_v45 = vld [vmem:[%s38719_s3 + $0xe20] ss:$24 sps:$4 sm:$0xff]  }
 0x440   : > { %11547 = vmatprep.subr.bf16.mxu0 %v27713_v49  ;;  %v27777_v46 = vld [vmem:[%s38719_s3 + $0x2c20] ss:$24 sps:$4 sm:$0xff]   ;;  %v27782_v49 = vld [vmem:[%s38719_s3 + $0xe54] ss:$24 sps:$4 sm:$0xff]  }
 0x441   : > { %4807 = vmatmul.mubr.bf16.vlgmr.msra.gmra.mrb[8].mxu1 %v32357_v31  ;;  %v27725_v31 = vld [vmem:[%s38719_s3 + $0x2a74] ss:$24 sps:$4 sm:$0xff]  }
 0x442   : > { %11537 = vmatmul.mubr.bf16.vlgmr.msra.gmra.mrb[4].mxu0 %v33025_v20  ;;  %4818 = vmatpush1.bf16.msra.mxu1 %v27708_v50  ;;  %v27785_v50 = vld [vmem:[%s38719_s3 + $0x2c54] ss:$24 sps:$4 sm:$0xff]  }
 0x443   : > { %11548 = vmatpush1.bf16.msra.mxu0 %v27711_v52  ;;  %4819 = vmatprep.subr.bf16.mxu1 %v27716_v53  ;;  %v27780_v52 = vld [vmem:[%s38719_s3 + $0xe50] ss:$24 sps:$4 sm:$0xff]  }
 0x444   : > { %11549 = vmatprep.subr.bf16.mxu0 %v27719_v57  ;;  %4849 = vmatprep.mubr.bf16.mxu1 %v32381_v38  ;;  %v27731_v38 = vld [vmem:[%s38719_s3 + $0x2aa4] ss:$24 sps:$4 sm:$0xff]   ;;  %v27783_v53 = vld [vmem:[%s38719_s3 + $0x2c50] ss:$24 sps:$4 sm:$0xff]  }
 0x445   : > { %11579 = vmatprep.mubr.bf16.mxu0 %v33049_v25  ;;  %v27788_v57 = vld [vmem:[%s38719_s3 + $0xe84] ss:$24 sps:$4 sm:$0xff]  }
 0x446   : > { %4820 = vmatpush1.bf16.msra.mxu1 %v27714_v58  ;;  %v27791_v58 = vld [vmem:[%s38719_s3 + $0x2c84] ss:$24 sps:$4 sm:$0xff]  }
 0x447   : > { %11550 = vmatpush1.bf16.msra.mxu0 %v27717_v59  ;;  %4821 = vmatprep.subr.bf16.mxu1 %v27722_v62  ;;  %v27786_v59 = vld [vmem:[%s38719_s3 + $0xe80] ss:$24 sps:$4 sm:$0xff]  }
 0x448   : > { %11551 = vmatprep.subr.bf16.mxu0 %v27725_v31  ;;  %v27789_v62 = vld [vmem:[%s38719_s3 + $0x2c80] ss:$24 sps:$4 sm:$0xff]   ;;  %v27794_v31 = vld [vmem:[%s38719_s3 + $0xeb4] ss:$24 sps:$4 sm:$0xff]  }
 0x44a   : > { %4822 = vmatpush1.bf16.msra.mxu1 %v27720_v63  ;;  %v27797_v63 = vld [vmem:[%s38719_s3 + $0x2cb4] ss:$24 sps:$4 sm:$0xff]  }
 0x44b   : > { %11552 = vmatpush1.bf16.msra.mxu0 %v27723_v0  ;;  %4823 = vmatprep.subr.bf16.mxu1 %v27728_v21  ;;  %v11903_v0 = vld [vmem:[%s31193_s13] sm:$0xee] }
 0x44c   : > { %11553 = vmatprep.subr.bf16.mxu0 %v27731_v38  ;;  %v27792_v21 = vld [vmem:[%s38719_s3 + $0xeb0] ss:$24 sps:$4 sm:$0xff]  }
 0x44d   : > { %v27795_v38 = vld [vmem:[%s38719_s3 + $0x2cb0] ss:$24 sps:$4 sm:$0xff]  }
 0x44e   : > { %4824 = vmatpush1.bf16.msra.mxu1 %v27726_v22  ;;  %v11906_v22 = vld [vmem:[%s31193_s13 + $0x18] sm:$0x11] }
 0x44f   : > { %11554 = vmatpush1.bf16.msra.mxu0 %v27729_v1  ;;  %4825 = vmatprep.subr.bf16.mxu1 %v27734_v2  ;;  %v11909_v1 = vld [vmem:[%s31193_s13 + $0x30] sm:$0xee]  ;;  %v11912_v2 = vld [vmem:[%s31193_s13 + $0x48] sm:$0x11] }
 0x450   : > { %11555 = vmatprep.subr.bf16.mxu0 %v27737_v3  ;;  %v27800_v3 = vld [vmem:[%s38719_s3 + $0xee4] ss:$24 sps:$4 sm:$0xff]  }
 0x452   : > { %4826 = vmatpush1.bf16.msra.mxu1 %v27732_v4  ;;  %v27803_v4 = vld [vmem:[%s38719_s3 + $0x2ce4] ss:$24 sps:$4 sm:$0xff]  }
 0x453   : > { %11556 = vmatpush1.bf16.msra.mxu0 %v27735_v5  ;;  %4827 = vmatprep.subr.bf16.mxu1 %v27740_v7  ;;  %v23721_v5 = vrot.slane %v11903_v0, 9  ;;  %v11929_v7 = vrot.slane %v11906_v22, 5  ;;  %v27854_v0 = vld [vmem:[%s38719_s3 + $0x1094] ss:$24 sps:$4 sm:$0xff]   ;;  %v27855_v22 = vld [vmem:[%s38719_s3 + $0x2e80] ss:$24 sps:$4 sm:$0xff]  }
 0x454   : > { %11557 = vmatprep.subr.bf16.mxu0 %v27743_v8  ;;  %v23724_v8 = vrot.slane %v11909_v1, 9  ;;  %v27860_v1 = vld [vmem:[%s38719_s3 + $0x10c4] ss:$24 sps:$4 sm:$0xff]  }
 0x456   : > { %4828 = vmatpush1.bf16.msra.mxu1 %v27738_v9  ;;  %v11941_v9 = vrot.slane %v11912_v2, 5  ;;  %v27863_v2 = vld [vmem:[%s38719_s3 + $0x2eb4] ss:$24 sps:$4 sm:$0xff]  }
 0x457   : > { %11558 = vmatpush1.bf16.msra.mxu0 %v27741_v10  ;;  %4829 = vmatprep.subr.bf16.mxu1 %v27746_v11  ;;  %v27798_v10 = vld [vmem:[%s38719_s3 + $0xee0] ss:$24 sps:$4 sm:$0xff]  }
 0x458   : > { %11559 = vmatprep.subr.bf16.mxu0 %v27749_v12  ;;  %v27801_v11 = vld [vmem:[%s38719_s3 + $0x2ce0] ss:$24 sps:$4 sm:$0xff]   ;;  %v27806_v12 = vld [vmem:[%s38719_s3 + $0xf14] ss:$24 sps:$4 sm:$0xff]  }
 0x45a   : > { %4830 = vmatpush1.bf16.msra.mxu1 %v27744_v13  ;;  %v27809_v13 = vld [vmem:[%s38719_s3 + $0x2d04] ss:$24 sps:$4 sm:$0xff]  }
 0x45b   : > { %11560 = vmatpush1.bf16.msra.mxu0 %v27747_v14  ;;  %4831 = vmatprep.subr.bf16.mxu1 %v27752_v15  ;;  %v27804_v14 = vld [vmem:[%s38719_s3 + $0xf10] ss:$24 sps:$4 sm:$0xff]   ;;  %v27807_v15 = vld [vmem:[%s38719_s3 + $0x2d00] ss:$24 sps:$4 sm:$0xff]  }
 0x45c   : > { %11561 = vmatprep.subr.bf16.mxu0 %v27755_v16  ;;  %v33839_v16 = vsel %vm30463_vm2, %v23721_v5, %v11929_v7  ;;  %v27866_v5 = vld [vmem:[%s38719_s3 + $0x10f4] ss:$24 sps:$4 sm:$0xff]   ;;  %v27869_v7 = vld [vmem:[%s38719_s3 + $0x2ee4] ss:$24 sps:$4 sm:$0xff]  }
 0x45e   : > { %4832 = vmatpush1.bf16.msra.mxu1 %v27750_v17  ;;  %v33843_v17 = vsel %vm30463_vm2, %v23724_v8, %v11941_v9  ;;  %v27864_v8 = vld [vmem:[%s38719_s3 + $0x10f0] ss:$24 sps:$4 sm:$0xff]   ;;  %v27867_v9 = vld [vmem:[%s38719_s3 + $0x2ee0] ss:$24 sps:$4 sm:$0xff]  }
 0x45f   : > { %11562 = vmatpush1.bf16.msra.mxu0 %v27753_v18  ;;  %4833 = vmatprep.subr.bf16.mxu1 %v27758_v19  ;;  %v27812_v18 = vld [vmem:[%s38719_s3 + $0xf44] ss:$24 sps:$4 sm:$0xff]   ;;  %v27815_v19 = vld [vmem:[%s38719_s3 + $0x2d34] ss:$24 sps:$4 sm:$0xff]  }
 0x460   : > { %11563 = vmatprep.subr.bf16.mxu0 %v27761_v23  ;;  %v33853_v23 = vcombine.high %v33839_v16, %v33843_v17 }
 0x462   : > { %4834 = vmatpush1.bf16.msra.mxu1 %v27756_v24  ;;  %v27810_v24 = vld [vmem:[%s38719_s3 + $0xf40] ss:$24 sps:$4 sm:$0xff]  }
 0x463   : > { %11564 = vmatpush1.bf16.msra.mxu0 %v27759_v30  ;;  %4835 = vmatprep.subr.bf16.mxu1 %v27764_v34  ;;  %v27813_v30 = vld [vmem:[%s38719_s3 + $0x2d30] ss:$24 sps:$4 sm:$0xff]   ;;  %v27818_v34 = vld [vmem:[%s38719_s3 + $0xf74] ss:$24 sps:$4 sm:$0xff]  }
 0x464   : > { %11565 = vmatprep.subr.bf16.mxu0 %v27767_v37  ;;  %v27816_v37 = vld [vmem:[%s38719_s3 + $0xf70] ss:$24 sps:$4 sm:$0xff]  }
 0x466   : > { %4836 = vmatpush1.bf16.msra.mxu1 %v27762_v41  ;;  %v27819_v41 = vld [vmem:[%s38719_s3 + $0x2d60] ss:$24 sps:$4 sm:$0xff]  }
 0x467   : > { %11566 = vmatpush1.bf16.msra.mxu0 %v27765_v42  ;;  %4837 = vmatprep.subr.bf16.mxu1 %v27770_v43  ;;  %v27824_v42 = vld [vmem:[%s38719_s3 + $0xfa4] ss:$24 sps:$4 sm:$0xff]   ;;  %v27822_v43 = vld [vmem:[%s38719_s3 + $0xfa0] ss:$24 sps:$4 sm:$0xff]  }
 0x468   : > { %11567 = vmatprep.subr.bf16.mxu0 %v27773_v61  ;;  %v27825_v61 = vld [vmem:[%s38719_s3 + $0x2d90] ss:$24 sps:$4 sm:$0xff]  }
 0x46a   : > { %4838 = vmatpush1.bf16.msra.mxu1 %v27768_v55  ;;  %v27830_v55 = vld [vmem:[%s38719_s3 + $0xfd4] ss:$24 sps:$4 sm:$0xff]  }
 0x46b   : > { %11568 = vmatpush1.bf16.msra.mxu0 %v27771_v56  ;;  %4839 = vmatprep.subr.bf16.mxu1 %v27776_v32  ;;  %v27833_v56 = vld [vmem:[%s38719_s3 + $0x2dc4] ss:$24 sps:$4 sm:$0xff]   ;;  %v27828_v32 = vld [vmem:[%s38719_s3 + $0xfd0] ss:$24 sps:$4 sm:$0xff]  }
 0x46c   : > { %11569 = vmatprep.subr.bf16.mxu0 %v27779_v33  ;;  %v27831_v33 = vld [vmem:[%s38719_s3 + $0x2dc0] ss:$24 sps:$4 sm:$0xff]  }
 0x46e   : > { %4840 = vmatpush1.bf16.msra.mxu1 %v27774_v45  ;;  %v27836_v45 = vld [vmem:[%s38719_s3 + $0x1004] ss:$24 sps:$4 sm:$0xff]  }
 0x46f   : > { %11570 = vmatpush1.bf16.msra.mxu0 %v27777_v46  ;;  %4841 = vmatprep.subr.bf16.mxu1 %v27782_v49  ;;  %v27839_v46 = vld [vmem:[%s38719_s3 + $0x2df4] ss:$24 sps:$4 sm:$0xff]   ;;  %v27834_v49 = vld [vmem:[%s38719_s3 + $0x1000] ss:$24 sps:$4 sm:$0xff]  }
 0x470   : > { %11571 = vmatprep.subr.bf16.mxu0 %v27785_v50  ;;  %v27837_v50 = vld [vmem:[%s38719_s3 + $0x2df0] ss:$24 sps:$4 sm:$0xff]  }
 0x472   : > { %4842 = vmatpush1.bf16.msra.mxu1 %v27780_v52  ;;  %v27842_v52 = vld [vmem:[%s38719_s3 + $0x1034] ss:$24 sps:$4 sm:$0xff]  }
 0x473   : > { %11572 = vmatpush1.bf16.msra.mxu0 %v27783_v53  ;;  %4843 = vmatprep.subr.bf16.mxu1 %v27788_v57  ;;  %v27845_v53 = vld [vmem:[%s38719_s3 + $0x2e24] ss:$24 sps:$4 sm:$0xff]   ;;  %v27840_v57 = vld [vmem:[%s38719_s3 + $0x1030] ss:$24 sps:$4 sm:$0xff]  }
 0x474   : > { %11573 = vmatprep.subr.bf16.mxu0 %v27791_v58  ;;  %v27843_v58 = vld [vmem:[%s38719_s3 + $0x2e20] ss:$24 sps:$4 sm:$0xff]  }
 0x476   : > { %4844 = vmatpush1.bf16.msra.mxu1 %v27786_v59  ;;  %v27848_v59 = vld [vmem:[%s38719_s3 + $0x1064] ss:$24 sps:$4 sm:$0xff]  }
 0x477   : > { %11574 = vmatpush1.bf16.msra.mxu0 %v27789_v62  ;;  %4845 = vmatprep.subr.bf16.mxu1 %v27794_v31  ;;  %v27851_v62 = vld [vmem:[%s38719_s3 + $0x2e54] ss:$24 sps:$4 sm:$0xff]   ;;  %v27846_v31 = vld [vmem:[%s38719_s3 + $0x1060] ss:$24 sps:$4 sm:$0xff]  }
 0x478   : > { %11575 = vmatprep.subr.bf16.mxu0 %v27797_v63  ;;  %v27849_v63 = vld [vmem:[%s38719_s3 + $0x2e50] ss:$24 sps:$4 sm:$0xff]  }
 0x47a   : > { %4846 = vmatpush1.bf16.msra.mxu1 %v27792_v21  ;;  %v27857_v21 = vld [vmem:[%s38719_s3 + $0x2e84] ss:$24 sps:$4 sm:$0xff]  }
 0x47b   : > { %11576 = vmatpush1.bf16.msra.mxu0 %v27795_v38  ;;  %4847 = vmatprep.subr.bf16.mxu1 %v27800_v3  ;;  %v27852_v38 = vld [vmem:[%s38719_s3 + $0x1090] ss:$24 sps:$4 sm:$0xff]   ;;  %v27858_v3 = vld [vmem:[%s38719_s3 + $0x10c0] ss:$24 sps:$4 sm:$0xff]  }
 0x47c   : > { %11577 = vmatprep.subr.bf16.mxu0 %v27803_v4  ;;  %v27861_v4 = vld [vmem:[%s38719_s3 + $0x2eb0] ss:$24 sps:$4 sm:$0xff]  }
 0x47e   : > { %4848 = vmatpush1.bf16.msra.mxu1 %v27798_v10  ;;  %v27872_v10 = vld [vmem:[%s38719_s3 + $0x1124] ss:$24 sps:$4 sm:$0xff]  }
 0x47f   : > { %11578 = vmatpush1.bf16.msra.mxu0 %v27801_v11  ;;  %4860 = vmatprep.subr.bf16.mxu1 %v27806_v12  ;;  %v27875_v11 = vld [vmem:[%s38719_s3 + $0x2f14] ss:$24 sps:$4 sm:$0xff]   ;;  %v27870_v12 = vld [vmem:[%s38719_s3 + $0x1120] ss:$24 sps:$4 sm:$0xff]  }
 0x480   : > { %13427 = vmatprep.subr.bf16.mxu0 %v27809_v13  ;;  %v27873_v13 = vld [vmem:[%s38719_s3 + $0x2f10] ss:$24 sps:$4 sm:$0xff]  }
 0x481   : > { %4850 = vmatmul.mubr.bf16.vlgmr.msra.gmra.mrb[8].mxu1 %v32577_v40  ;;  %v27821_v40 = vld [vmem:[%s38719_s3 + $0x2d64] ss:$24 sps:$4 sm:$0xff]  }
 0x482   : > { %11580 = vmatmul.mubr.bf16.vlgmr.msra.gmra.mrb[4].mxu0 %v33237_v60  ;;  %4861 = vmatpush1.bf16.msra.mxu1 %v27804_v14  ;;  %v27878_v14 = vld [vmem:[%s38719_s3 + $0x1154] ss:$24 sps:$4 sm:$0xff]  }
 0x483   : > { %13428 = vmatpush1.bf16.msra.mxu0 %v27807_v15  ;;  %4862 = vmatprep.subr.bf16.mxu1 %v27812_v18  ;;  %v27881_v15 = vld [vmem:[%s38719_s3 + $0x2f44] ss:$24 sps:$4 sm:$0xff]   ;;  %v27876_v18 = vld [vmem:[%s38719_s3 + $0x1150] ss:$24 sps:$4 sm:$0xff]  }
 0x484   : > { %13429 = vmatprep.subr.bf16.mxu0 %v27815_v19  ;;  %4892 = vmatprep.mubr.bf16.mxu1 %v32609_v47  ;;  %v27827_v47 = vld [vmem:[%s38719_s3 + $0x2d94] ss:$24 sps:$4 sm:$0xff]   ;;  %v27879_v19 = vld [vmem:[%s38719_s3 + $0x2f40] ss:$24 sps:$4 sm:$0xff]  }
 0x485   : > { %13459 = vmatprep.mubr.bf16.mxu0 %v33853_v23 }
 0x486   : > { %4863 = vmatpush1.bf16.msra.mxu1 %v27810_v24  ;;  %v27884_v24 = vld [vmem:[%s38719_s3 + $0x1184] ss:$24 sps:$4 sm:$0xff]  }
 0x487   : > { %13430 = vmatpush1.bf16.msra.mxu0 %v27813_v30  ;;  %4864 = vmatprep.subr.bf16.mxu1 %v27818_v34  ;;  %v27887_v30 = vld [vmem:[%s38719_s3 + $0x2f74] ss:$24 sps:$4 sm:$0xff]   ;;  %v27882_v34 = vld [vmem:[%s38719_s3 + $0x1180] ss:$24 sps:$4 sm:$0xff]  }
 0x488   : > { %13431 = vmatprep.subr.bf16.mxu0 %v27821_v40  ;;  %v27885_v40 = vld [vmem:[%s38719_s3 + $0x2f70] ss:$24 sps:$4 sm:$0xff]  }
 0x48a   : > { %4865 = vmatpush1.bf16.msra.mxu1 %v27816_v37  ;;  %v27890_v37 = vld [vmem:[%s38719_s3 + $0x11b4] ss:$24 sps:$4 sm:$0xff]  }
 0x48b   : > { %13432 = vmatpush1.bf16.msra.mxu0 %v27819_v41  ;;  %4866 = vmatprep.subr.bf16.mxu1 %v27824_v42  ;;  %v27893_v41 = vld [vmem:[%s38719_s3 + $0x2fa4] ss:$24 sps:$4 sm:$0xff]   ;;  %v11904_v42 = vld [vmem:[%s31193_s13 + $0x8] sm:$0xee] }
 0x48c   : > { %13433 = vmatprep.subr.bf16.mxu0 %v27827_v47  ;;  %v27888_v47 = vld [vmem:[%s38719_s3 + $0x11b0] ss:$24 sps:$4 sm:$0xff]  }
 0x48e   : > { %4867 = vmatpush1.bf16.msra.mxu1 %v27822_v43  ;;  %v27891_v43 = vld [vmem:[%s38719_s3 + $0x2fa0] ss:$24 sps:$4 sm:$0xff]  }
 0x48f   : > { %13434 = vmatpush1.bf16.msra.mxu0 %v27825_v61  ;;  %4868 = vmatprep.subr.bf16.mxu1 %v27830_v55  ;;  %v11907_v61 = vld [vmem:[%s31193_s13 + $0x20] sm:$0x11]  ;;  %v11910_v55 = vld [vmem:[%s31193_s13 + $0x38] sm:$0xee] }
 0x490   : > { %13435 = vmatprep.subr.bf16.mxu0 %v27833_v56  ;;  %v11913_v56 = vld [vmem:[%s31193_s13 + $0x50] sm:$0x11] }
 0x492   : > { %4869 = vmatpush1.bf16.msra.mxu1 %v27828_v32  ;;  %v27896_v32 = vld [vmem:[%s38719_s3 + $0x11e4] ss:$24 sps:$4 sm:$0xff]  }
 0x493   : > { %13436 = vmatpush1.bf16.msra.mxu0 %v27831_v33  ;;  %4870 = vmatprep.subr.bf16.mxu1 %v27836_v45  ;;  %v27899_v33 = vld [vmem:[%s38719_s3 + $0x2fd4] ss:$24 sps:$4 sm:$0xff]   ;;  %v23722_v45 = vrot.slane %v11904_v42, 9  ;;  %v27945_v42 = vld [vmem:[%s38719_s3 + $0x3150] ss:$24 sps:$4 sm:$0xff]  }
 0x494   : > { %13437 = vmatprep.subr.bf16.mxu0 %v27839_v46  ;;  %v11933_v46 = vrot.slane %v11907_v61, 5  ;;  %v27948_v61 = vld [vmem:[%s38719_s3 + $0x1380] ss:$24 sps:$4 sm:$0xff]  }
 0x496   : > { %4871 = vmatpush1.bf16.msra.mxu1 %v27834_v49  ;;  %v23725_v49 = vrot.slane %v11910_v55, 9  ;;  %v27951_v55 = vld [vmem:[%s38719_s3 + $0x3180] ss:$24 sps:$4 sm:$0xff]  }
 0x497   : > { %13438 = vmatpush1.bf16.msra.mxu0 %v27837_v50  ;;  %4872 = vmatprep.subr.bf16.mxu1 %v27842_v52  ;;  %v11945_v50 = vrot.slane %v11913_v56, 5  ;;  %v27894_v52 = vld [vmem:[%s38719_s3 + $0x11e0] ss:$24 sps:$4 sm:$0xff]   ;;  %v27956_v56 = vld [vmem:[%s38719_s3 + $0x13b4] ss:$24 sps:$4 sm:$0xff]  }
 0x498   : > { %13439 = vmatprep.subr.bf16.mxu0 %v27845_v53  ;;  %v27897_v53 = vld [vmem:[%s38719_s3 + $0x2fd0] ss:$24 sps:$4 sm:$0xff]  }
 0x49a   : > { %4873 = vmatpush1.bf16.msra.mxu1 %v27840_v57  ;;  %v27902_v57 = vld [vmem:[%s38719_s3 + $0x1204] ss:$24 sps:$4 sm:$0xff]  }
 0x49b   : > { %13440 = vmatpush1.bf16.msra.mxu0 %v27843_v58  ;;  %4874 = vmatprep.subr.bf16.mxu1 %v27848_v59  ;;  %v27905_v58 = vld [vmem:[%s38719_s3 + $0x3004] ss:$24 sps:$4 sm:$0xff]   ;;  %v34045_v59 = vcombine.low %v33839_v16, %v33843_v17  ;;  %v27908_v16 = vld [vmem:[%s38719_s3 + $0x1234] ss:$24 sps:$4 sm:$0xff]  }
 0x49c   : > { %13441 = vmatprep.subr.bf16.mxu0 %v27851_v62  ;;  %v34049_v62 = vsel %vm30463_vm2, %v23722_v45, %v11933_v46  ;;  %v27911_v17 = vld [vmem:[%s38719_s3 + $0x3034] ss:$24 sps:$4 sm:$0xff]   ;;  %v27957_v45 = vld [vmem:[%s38719_s3 + $0x31b0] ss:$24 sps:$4 sm:$0xff]   ;;  %v27962_v46 = vld [vmem:[%s38719_s3 + $0x13e4] ss:$24 sps:$4 sm:$0xff]  }
 0x49e   : > { %4875 = vmatpush1.bf16.msra.mxu1 %v27846_v31  ;;  %v34053_v31 = vsel %vm30463_vm2, %v23725_v49, %v11945_v50  ;;  %v27965_v49 = vld [vmem:[%s38719_s3 + $0x31e4] ss:$24 sps:$4 sm:$0xff]   ;;  %v27960_v50 = vld [vmem:[%s38719_s3 + $0x13e0] ss:$24 sps:$4 sm:$0xff]  }
 0x49f   : > { %13442 = vmatpush1.bf16.msra.mxu0 %v27849_v63  ;;  %4876 = vmatprep.subr.bf16.mxu1 %v27854_v0  ;;  %v27900_v63 = vld [vmem:[%s38719_s3 + $0x1200] ss:$24 sps:$4 sm:$0xff]  }
 0x4a0   : > { %13443 = vmatprep.subr.bf16.mxu0 %v27857_v21  ;;  %v27903_v0 = vld [vmem:[%s38719_s3 + $0x3000] ss:$24 sps:$4 sm:$0xff]   ;;  %v34069_v21 = vcombine.high %v34049_v62, %v34053_v31 }
 0x4a2   : > { %4877 = vmatpush1.bf16.msra.mxu1 %v27852_v38  ;;  %v27906_v38 = vld [vmem:[%s38719_s3 + $0x1230] ss:$24 sps:$4 sm:$0xff]  }
 0x4a3   : > { %13444 = vmatpush1.bf16.msra.mxu0 %v27855_v22  ;;  %4878 = vmatprep.subr.bf16.mxu1 %v27860_v1  ;;  %v27909_v22 = vld [vmem:[%s38719_s3 + $0x3030] ss:$24 sps:$4 sm:$0xff]   ;;  %v27914_v1 = vld [vmem:[%s38719_s3 + $0x1264] ss:$24 sps:$4 sm:$0xff]  }
 0x4a4   : > { %13445 = vmatprep.subr.bf16.mxu0 %v27863_v2  ;;  %v27912_v2 = vld [vmem:[%s38719_s3 + $0x1260] ss:$24 sps:$4 sm:$0xff]  }
 0x4a6   : > { %4879 = vmatpush1.bf16.msra.mxu1 %v27858_v3  ;;  %v27915_v3 = vld [vmem:[%s38719_s3 + $0x3060] ss:$24 sps:$4 sm:$0xff]  }
 0x4a7   : > { %13446 = vmatpush1.bf16.msra.mxu0 %v27861_v4  ;;  %4880 = vmatprep.subr.bf16.mxu1 %v27866_v5  ;;  %v27920_v4 = vld [vmem:[%s38719_s3 + $0x1294] ss:$24 sps:$4 sm:$0xff]  }
 0x4a8   : > { %13447 = vmatprep.subr.bf16.mxu0 %v27869_v7  ;;  %v27923_v5 = vld [vmem:[%s38719_s3 + $0x3094] ss:$24 sps:$4 sm:$0xff]   ;;  %v27918_v7 = vld [vmem:[%s38719_s3 + $0x1290] ss:$24 sps:$4 sm:$0xff]  }
 0x4aa   : > { %4881 = vmatpush1.bf16.msra.mxu1 %v27864_v8  ;;  %v27921_v8 = vld [vmem:[%s38719_s3 + $0x3090] ss:$24 sps:$4 sm:$0xff]  }
 0x4ab   : > { %13448 = vmatpush1.bf16.msra.mxu0 %v27867_v9  ;;  %4882 = vmatprep.subr.bf16.mxu1 %v27872_v10  ;;  %v27926_v9 = vld [vmem:[%s38719_s3 + $0x12c4] ss:$24 sps:$4 sm:$0xff]  }
 0x4ac   : > { %13449 = vmatprep.subr.bf16.mxu0 %v27875_v11  ;;  %v27929_v10 = vld [vmem:[%s38719_s3 + $0x30c4] ss:$24 sps:$4 sm:$0xff]   ;;  %v27924_v11 = vld [vmem:[%s38719_s3 + $0x12c0] ss:$24 sps:$4 sm:$0xff]  }
 0x4ae   : > { %4883 = vmatpush1.bf16.msra.mxu1 %v27870_v12  ;;  %v27927_v12 = vld [vmem:[%s38719_s3 + $0x30c0] ss:$24 sps:$4 sm:$0xff]  }
 0x4af   : > { %13450 = vmatpush1.bf16.msra.mxu0 %v27873_v13  ;;  %4884 = vmatprep.subr.bf16.mxu1 %v27878_v14  ;;  %v27932_v13 = vld [vmem:[%s38719_s3 + $0x12f4] ss:$24 sps:$4 sm:$0xff]  }
 0x4b0   : > { %13451 = vmatprep.subr.bf16.mxu0 %v27881_v15  ;;  %v27935_v14 = vld [vmem:[%s38719_s3 + $0x30f4] ss:$24 sps:$4 sm:$0xff]   ;;  %v27930_v15 = vld [vmem:[%s38719_s3 + $0x12f0] ss:$24 sps:$4 sm:$0xff]  }
 0x4b2   : > { %4885 = vmatpush1.bf16.msra.mxu1 %v27876_v18  ;;  %v27933_v18 = vld [vmem:[%s38719_s3 + $0x30f0] ss:$24 sps:$4 sm:$0xff]  }
 0x4b3   : > { %13452 = vmatpush1.bf16.msra.mxu0 %v27879_v19  ;;  %4886 = vmatprep.subr.bf16.mxu1 %v27884_v24  ;;  %v27938_v19 = vld [vmem:[%s38719_s3 + $0x1324] ss:$24 sps:$4 sm:$0xff]  }
 0x4b4   : > { %13453 = vmatprep.subr.bf16.mxu0 %v27887_v30  ;;  %v27941_v24 = vld [vmem:[%s38719_s3 + $0x3124] ss:$24 sps:$4 sm:$0xff]   ;;  %v27936_v30 = vld [vmem:[%s38719_s3 + $0x1320] ss:$24 sps:$4 sm:$0xff]  }
 0x4b6   : > { %4887 = vmatpush1.bf16.msra.mxu1 %v27882_v34  ;;  %v27939_v34 = vld [vmem:[%s38719_s3 + $0x3120] ss:$24 sps:$4 sm:$0xff]  }
 0x4b7   : > { %13454 = vmatpush1.bf16.msra.mxu0 %v27885_v40  ;;  %4888 = vmatprep.subr.bf16.mxu1 %v27890_v37  ;;  %v27944_v40 = vld [vmem:[%s38719_s3 + $0x1354] ss:$24 sps:$4 sm:$0xff]  }
 0x4b8   : > { %13455 = vmatprep.subr.bf16.mxu0 %v27893_v41  ;;  %v27947_v37 = vld [vmem:[%s38719_s3 + $0x3154] ss:$24 sps:$4 sm:$0xff]   ;;  %v27942_v41 = vld [vmem:[%s38719_s3 + $0x1350] ss:$24 sps:$4 sm:$0xff]  }
 0x4ba   : > { %4889 = vmatpush1.bf16.msra.mxu1 %v27888_v47  ;;  %v27950_v47 = vld [vmem:[%s38719_s3 + $0x1384] ss:$24 sps:$4 sm:$0xff]  }
 0x4bb   : > { %13456 = vmatpush1.bf16.msra.mxu0 %v27891_v43  ;;  %4890 = vmatprep.subr.bf16.mxu1 %v27896_v32  ;;  %v27953_v43 = vld [vmem:[%s38719_s3 + $0x3184] ss:$24 sps:$4 sm:$0xff]   ;;  %v27959_v32 = vld [vmem:[%s38719_s3 + $0x31b4] ss:$24 sps:$4 sm:$0xff]  }
 0x4bc   : > { %13457 = vmatprep.subr.bf16.mxu0 %v27899_v33  ;;  %v27954_v33 = vld [vmem:[%s38719_s3 + $0x13b0] ss:$24 sps:$4 sm:$0xff]  }
 0x4be   : > { %4891 = vmatpush1.bf16.msra.mxu1 %v27894_v52  ;;  %v27963_v52 = vld [vmem:[%s38719_s3 + $0x31e0] ss:$24 sps:$4 sm:$0xff]  }
 0x4bf   : > { %13458 = vmatpush1.bf16.msra.mxu0 %v27897_v53  ;;  %6743 = vmatprep.subr.bf16.mxu1 %v27902_v57  ;;  %v27968_v53 = vld [vmem:[%s38719_s3 + $0x1414] ss:$24 sps:$4 sm:$0xff]  }
 0x4c0   : > { %13470 = vmatprep.subr.bf16.mxu0 %v27905_v58  ;;  %v27971_v57 = vld [vmem:[%s38719_s3 + $0x3214] ss:$24 sps:$4 sm:$0xff]   ;;  %v27966_v58 = vld [vmem:[%s38719_s3 + $0x1410] ss:$24 sps:$4 sm:$0xff]  }
 0x4c1   : > { %4893 = vmatmul.mubr.bf16.vlgmr.msra.gmra.mrb[8].mxu1 %v32805_v27  ;;  %v27917_v27 = vld [vmem:[%s38719_s3 + $0x3064] ss:$24 sps:$4 sm:$0xff]  }
 0x4c2   : > { %13460 = vmatmul.mubr.bf16.vlgmr.msra.gmra.mrb[0].mxu0 %v34045_v59  ;;  %6744 = vmatpush1.bf16.msra.mxu1 %v27900_v63  ;;  %v27969_v63 = vld [vmem:[%s38719_s3 + $0x3210] ss:$24 sps:$4 sm:$0xff]  }
 0x4c3   : > { %13471 = vmatpush1.bf16.msra.mxu0 %v27903_v0  ;;  %6745 = vmatprep.subr.bf16.mxu1 %v27908_v16  ;;  %v27974_v0 = vld [vmem:[%s38719_s3 + $0x1444] ss:$24 sps:$4 sm:$0xff]  }
 0x4c4   : > { %13472 = vmatprep.subr.bf16.mxu0 %v27911_v17  ;;  %6775 = vmatprep.mubr.bf16.mxu1 %v30805_v35  ;;  %v27977_v16 = vld [vmem:[%s38719_s3 + $0x3244] ss:$24 sps:$4 sm:$0xff]   ;;  %v27972_v17 = vld [vmem:[%s38719_s3 + $0x1440] ss:$24 sps:$4 sm:$0xff]  }
 0x4c5   : > { %13502 = vmatprep.mubr.bf16.mxu0 %v34069_v21 }
 0x4c6   : > { %6746 = vmatpush1.bf16.msra.mxu1 %v27906_v38  ;;  %v27975_v38 = vld [vmem:[%s38719_s3 + $0x3240] ss:$24 sps:$4 sm:$0xff]  }
 0x4c7   : > { %13473 = vmatpush1.bf16.msra.mxu0 %v27909_v22  ;;  %6747 = vmatprep.subr.bf16.mxu1 %v27914_v1  ;;  %v27980_v22 = vld [vmem:[%s38719_s3 + $0x1474] ss:$24 sps:$4 sm:$0xff]  }
 0x4c8   : > { %13474 = vmatprep.subr.bf16.mxu0 %v27917_v27  ;;  %v27983_v1 = vld [vmem:[%s38719_s3 + $0x3274] ss:$24 sps:$4 sm:$0xff]   ;;  %v27978_v27 = vld [vmem:[%s38719_s3 + $0x1470] ss:$24 sps:$4 sm:$0xff]  }
 0x4ca   : > { %6748 = vmatpush1.bf16.msra.mxu1 %v27912_v2  ;;  %v27981_v2 = vld [vmem:[%s38719_s3 + $0x3270] ss:$24 sps:$4 sm:$0xff]  }
 0x4cb   : > { %13475 = vmatpush1.bf16.msra.mxu0 %v27915_v3  ;;  %6749 = vmatprep.subr.bf16.mxu1 %v27920_v4  ;;  %v27986_v3 = vld [vmem:[%s38719_s3 + $0x14a4] ss:$24 sps:$4 sm:$0xff]  }
 0x4cc   : > { %13476 = vmatprep.subr.bf16.mxu0 %v27923_v5  ;;  %v27989_v4 = vld [vmem:[%s38719_s3 + $0x32a4] ss:$24 sps:$4 sm:$0xff]   ;;  %v11905_v5 = vld [vmem:[%s31193_s13 + $0x10] sm:$0xee] }
 0x4ce   : > { %6750 = vmatpush1.bf16.msra.mxu1 %v27918_v7  ;;  %v27984_v7 = vld [vmem:[%s38719_s3 + $0x14a0] ss:$24 sps:$4 sm:$0xff]  }
 0x4cf   : > { %13477 = vmatpush1.bf16.msra.mxu0 %v27921_v8  ;;  %6751 = vmatprep.subr.bf16.mxu1 %v27926_v9  ;;  %v27987_v8 = vld [vmem:[%s38719_s3 + $0x32a0] ss:$24 sps:$4 sm:$0xff]   ;;  %v11908_v9 = vld [vmem:[%s31193_s13 + $0x28] sm:$0x11] }
 0x4d0   : > { %13478 = vmatprep.subr.bf16.mxu0 %v27929_v10  ;;  %v11911_v10 = vld [vmem:[%s31193_s13 + $0x40] sm:$0xee] }
 0x4d2   : > { %6752 = vmatpush1.bf16.msra.mxu1 %v27924_v11  ;;  %v11914_v11 = vld [vmem:[%s31193_s13 + $0x58] sm:$0x11] }
 0x4d3   : > { %13479 = vmatpush1.bf16.msra.mxu0 %v27927_v12  ;;  %6753 = vmatprep.subr.bf16.mxu1 %v27932_v13  ;;  %v27992_v12 = vld [vmem:[%s38719_s3 + $0x14d4] ss:$24 sps:$4 sm:$0xff]  }
 0x4d4   : > { %13480 = vmatprep.subr.bf16.mxu0 %v27935_v14  ;;  %v27995_v13 = vld [vmem:[%s38719_s3 + $0x32d4] ss:$24 sps:$4 sm:$0xff]   ;;  %v23723_v14 = vrot.slane %v11905_v5, 9  ;;  %v28038_v5 = vld [vmem:[%s38719_s3 + $0x1358] ss:$24 sps:$4 sm:$0xff]  }
 0x4d6   : > { %6754 = vmatpush1.bf16.msra.mxu1 %v27930_v15  ;;  %v11937_v15 = vrot.slane %v11908_v9, 5  ;;  %v28049_v9 = vld [vmem:[%s38719_s3 + $0x3484] ss:$24 sps:$4 sm:$0xff]  }
 0x4d7   : > { %13481 = vmatpush1.bf16.msra.mxu0 %v27933_v18  ;;  %6755 = vmatprep.subr.bf16.mxu1 %v27938_v19  ;;  %v23726_v18 = vrot.slane %v11911_v10, 9  ;;  %v11949_v19 = vrot.slane %v11914_v11, 5  ;;  %v28044_v10 = vld [vmem:[%s38719_s3 + $0x1388] ss:$24 sps:$4 sm:$0xff]  }
 0x4d8   : > { %13482 = vmatprep.subr.bf16.mxu0 %v27941_v24  ;;  %v27990_v24 = vld [vmem:[%s38719_s3 + $0x14d0] ss:$24 sps:$4 sm:$0xff]   ;;  %v28047_v11 = vld [vmem:[%s38719_s3 + $0x3480] ss:$24 sps:$4 sm:$0xff]  }
 0x4da   : > { %6756 = vmatpush1.bf16.msra.mxu1 %v27936_v30  ;;  %v27993_v30 = vld [vmem:[%s38719_s3 + $0x32d0] ss:$24 sps:$4 sm:$0xff]  }
 0x4db   : > { %13483 = vmatpush1.bf16.msra.mxu0 %v27939_v34  ;;  %6757 = vmatprep.subr.bf16.mxu1 %v27944_v40  ;;  %v27998_v34 = vld [vmem:[%s38719_s3 + $0x120c] ss:$24 sps:$4 sm:$0xff]  }
 0x4dc   : > { %13484 = vmatprep.subr.bf16.mxu0 %v27947_v37  ;;  %v28001_v40 = vld [vmem:[%s38719_s3 + $0x3304] ss:$24 sps:$4 sm:$0xff]   ;;  %v34261_v37 = vcombine.low %v34049_v62, %v34053_v31  ;;  %v28007_v31 = vld [vmem:[%s38719_s3 + $0x3334] ss:$24 sps:$4 sm:$0xff]  }
 0x4dd   : > { %v28004_v62 = vld [vmem:[%s38719_s3 + $0x123c] ss:$24 sps:$4 sm:$0xff]  }
 0x4de   : > { %6758 = vmatpush1.bf16.msra.mxu1 %v27942_v41  ;;  %v34265_v41 = vsel %vm30463_vm2, %v23723_v14, %v11937_v15  ;;  %v28050_v14 = vld [vmem:[%s38719_s3 + $0x13b8] ss:$24 sps:$4 sm:$0xff]  }
 0x4df   : > { %13485 = vmatpush1.bf16.msra.mxu0 %v27945_v42  ;;  %6759 = vmatprep.subr.bf16.mxu1 %v27950_v47  ;;  %v34269_v42 = vsel %vm30463_vm2, %v23726_v18, %v11949_v19  ;;  %v27996_v47 = vld [vmem:[%s38719_s3 + $0x1208] ss:$24 sps:$4 sm:$0xff]   ;;  %v28058_v18 = vld [vmem:[%s38719_s3 + $0x13ec] ss:$24 sps:$4 sm:$0xff]  }
 0x4e0   : > { %13486 = vmatprep.subr.bf16.mxu0 %v27953_v43  ;;  %v27999_v43 = vld [vmem:[%s38719_s3 + $0x3300] ss:$24 sps:$4 sm:$0xff]   ;;  %v28053_v15 = vld [vmem:[%s38719_s3 + $0x34b0] ss:$24 sps:$4 sm:$0xff]   ;;  %v28061_v19 = vld [vmem:[%s38719_s3 + $0x34e4] ss:$24 sps:$4 sm:$0xff]  }
 0x4e2   : > { %6760 = vmatpush1.bf16.msra.mxu1 %v27948_v61  ;;  %v34285_v61 = vcombine.high %v34265_v41, %v34269_v42 }
 0x4e3   : > { %13487 = vmatpush1.bf16.msra.mxu0 %v27951_v55  ;;  %6761 = vmatprep.subr.bf16.mxu1 %v27956_v56  ;;  %v28002_v55 = vld [vmem:[%s38719_s3 + $0x1238] ss:$24 sps:$4 sm:$0xff]  }
 0x4e4   : > { %13488 = vmatprep.subr.bf16.mxu0 %v27959_v32  ;;  %v28005_v56 = vld [vmem:[%s38719_s3 + $0x3330] ss:$24 sps:$4 sm:$0xff]   ;;  %v28010_v32 = vld [vmem:[%s38719_s3 + $0x126c] ss:$24 sps:$4 sm:$0xff]  }
 0x4e6   : > { %6762 = vmatpush1.bf16.msra.mxu1 %v27954_v33  ;;  %v28013_v33 = vld [vmem:[%s38719_s3 + $0x3364] ss:$24 sps:$4 sm:$0xff]  }
 0x4e7   : > { %13489 = vmatpush1.bf16.msra.mxu0 %v27957_v45  ;;  %6763 = vmatprep.subr.bf16.mxu1 %v27962_v46  ;;  %v28008_v45 = vld [vmem:[%s38719_s3 + $0x1268] ss:$24 sps:$4 sm:$0xff]  }
 0x4e8   : > { %13490 = vmatprep.subr.bf16.mxu0 %v27965_v49  ;;  %v28011_v46 = vld [vmem:[%s38719_s3 + $0x3360] ss:$24 sps:$4 sm:$0xff]   ;;  %v28016_v49 = vld [vmem:[%s38719_s3 + $0x129c] ss:$24 sps:$4 sm:$0xff]  }
 0x4ea   : > { %6764 = vmatpush1.bf16.msra.mxu1 %v27960_v50  ;;  %v28014_v50 = vld [vmem:[%s38719_s3 + $0x1298] ss:$24 sps:$4 sm:$0xff]  }
 0x4eb   : > { %13491 = vmatpush1.bf16.msra.mxu0 %v27963_v52  ;;  %6765 = vmatprep.subr.bf16.mxu1 %v27968_v53  ;;  %v28017_v52 = vld [vmem:[%s38719_s3 + $0x3390] ss:$24 sps:$4 sm:$0xff]   ;;  %v28022_v53 = vld [vmem:[%s38719_s3 + $0x12cc] ss:$24 sps:$4 sm:$0xff]  }
 0x4ec   : > { %13492 = vmatprep.subr.bf16.mxu0 %v27971_v57  ;;  %v28025_v57 = vld [vmem:[%s38719_s3 + $0x33c4] ss:$24 sps:$4 sm:$0xff]  }
 0x4ee   : > { %6766 = vmatpush1.bf16.msra.mxu1 %v27966_v58  ;;  %v28020_v58 = vld [vmem:[%s38719_s3 + $0x12c8] ss:$24 sps:$4 sm:$0xff]  }
 0x4ef   : > { %13493 = vmatpush1.bf16.msra.mxu0 %v27969_v63  ;;  %6767 = vmatprep.subr.bf16.mxu1 %v27974_v0  ;;  %v28023_v63 = vld [vmem:[%s38719_s3 + $0x33c0] ss:$24 sps:$4 sm:$0xff]   ;;  %v28028_v0 = vld [vmem:[%s38719_s3 + $0x12fc] ss:$24 sps:$4 sm:$0xff]  }
 0x4f0   : > { %13494 = vmatprep.subr.bf16.mxu0 %v27977_v16  ;;  %v28031_v16 = vld [vmem:[%s38719_s3 + $0x33f4] ss:$24 sps:$4 sm:$0xff]  }
 0x4f2   : > { %6768 = vmatpush1.bf16.msra.mxu1 %v27972_v17  ;;  %v28026_v17 = vld [vmem:[%s38719_s3 + $0x12f8] ss:$24 sps:$4 sm:$0xff]  }
 0x4f3   : > { %13495 = vmatpush1.bf16.msra.mxu0 %v27975_v38  ;;  %6769 = vmatprep.subr.bf16.mxu1 %v27980_v22  ;;  %v28029_v38 = vld [vmem:[%s38719_s3 + $0x33f0] ss:$24 sps:$4 sm:$0xff]   ;;  %v28034_v22 = vld [vmem:[%s38719_s3 + $0x132c] ss:$24 sps:$4 sm:$0xff]  }
 0x4f4   : > { %13496 = vmatprep.subr.bf16.mxu0 %v27983_v1  ;;  %v28037_v1 = vld [vmem:[%s38719_s3 + $0x3424] ss:$24 sps:$4 sm:$0xff]  }
 0x4f6   : > { %6770 = vmatpush1.bf16.msra.mxu1 %v27978_v27  ;;  %v28032_v27 = vld [vmem:[%s38719_s3 + $0x1328] ss:$24 sps:$4 sm:$0xff]  }
 0x4f7   : > { %13497 = vmatpush1.bf16.msra.mxu0 %v27981_v2  ;;  %6771 = vmatprep.subr.bf16.mxu1 %v27986_v3  ;;  %v28035_v2 = vld [vmem:[%s38719_s3 + $0x3420] ss:$24 sps:$4 sm:$0xff]   ;;  %v28040_v3 = vld [vmem:[%s38719_s3 + $0x135c] ss:$24 sps:$4 sm:$0xff]  }
 0x4f8   : > { %13498 = vmatprep.subr.bf16.mxu0 %v27989_v4  ;;  %v28043_v4 = vld [vmem:[%s38719_s3 + $0x3454] ss:$24 sps:$4 sm:$0xff]  }
 0x4fa   : > { %6772 = vmatpush1.bf16.msra.mxu1 %v27984_v7  ;;  %v28041_v7 = vld [vmem:[%s38719_s3 + $0x3450] ss:$24 sps:$4 sm:$0xff]  }
 0x4fb   : > { %13499 = vmatpush1.bf16.msra.mxu0 %v27987_v8  ;;  %6773 = vmatprep.subr.bf16.mxu1 %v27992_v12  ;;  %v28046_v8 = vld [vmem:[%s38719_s3 + $0x138c] ss:$24 sps:$4 sm:$0xff]   ;;  %v28052_v12 = vld [vmem:[%s38719_s3 + $0x13bc] ss:$24 sps:$4 sm:$0xff]  }
 0x4fc   : > { %13500 = vmatprep.subr.bf16.mxu0 %v27995_v13  ;;  %v28055_v13 = vld [vmem:[%s38719_s3 + $0x34b4] ss:$24 sps:$4 sm:$0xff]  }
 0x4fe   : > { %6774 = vmatpush1.bf16.msra.mxu1 %v27990_v24  ;;  %v28056_v24 = vld [vmem:[%s38719_s3 + $0x13e8] ss:$24 sps:$4 sm:$0xff]  }
 0x4ff   : > { %13501 = vmatpush1.bf16.msra.mxu0 %v27993_v30  ;;  %6872 = vmatprep.subr.bf16.mxu1 %v27998_v34  ;;  %v28059_v30 = vld [vmem:[%s38719_s3 + $0x34e0] ss:$24 sps:$4 sm:$0xff]   ;;  %v28064_v34 = vld [vmem:[%s38719_s3 + $0x141c] ss:$24 sps:$4 sm:$0xff]  }
 0x500   : > { %13513 = vmatprep.subr.bf16.mxu0 %v28001_v40  ;;  %v28067_v40 = vld [vmem:[%s38719_s3 + $0x3514] ss:$24 sps:$4 sm:$0xff]  }
 0x501   : > { %6776 = vmatmul.mubr.bf16.vlgmr.msra.gmra.mrb[0].mxu1 %v30958_v26 }
 0x502   : > { %13503 = vmatmul.mubr.bf16.vlgmr.msra.gmra.mrb[0].mxu0 %v34261_v37  ;;  %6873 = vmatpush1.bf16.msra.mxu1 %v27996_v47  ;;  %v28062_v47 = vld [vmem:[%s38719_s3 + $0x1418] ss:$24 sps:$4 sm:$0xff]  }
 0x503   : > { %13514 = vmatpush1.bf16.msra.mxu0 %v27999_v43  ;;  %6874 = vmatprep.subr.bf16.mxu1 %v28004_v62  ;;  %v28065_v43 = vld [vmem:[%s38719_s3 + $0x3510] ss:$24 sps:$4 sm:$0xff]   ;;  %v28070_v62 = vld [vmem:[%s38719_s3 + $0x144c] ss:$24 sps:$4 sm:$0xff]  }
 0x504   : > { %13515 = vmatprep.subr.bf16.mxu0 %v28007_v31  ;;  %6904 = vmatprep.mubr.bf16.mxu1 %v30805_v35  ;;  %v28019_v35 = vld [vmem:[%s38719_s3 + $0x3394] ss:$24 sps:$4 sm:$0xff]   ;;  %v28073_v31 = vld [vmem:[%s38719_s3 + $0x3544] ss:$24 sps:$4 sm:$0xff]  }
 0x505   : > { %13545 = vmatprep.mubr.bf16.mxu0 %v34285_v61 }
 0x506   : > { %6875 = vmatpush1.bf16.msra.mxu1 %v28002_v55  ;;  %v28068_v55 = vld [vmem:[%s38719_s3 + $0x1448] ss:$24 sps:$4 sm:$0xff]  }
 0x507   : > { %13516 = vmatpush1.bf16.msra.mxu0 %v28005_v56  ;;  %6876 = vmatprep.subr.bf16.mxu1 %v28010_v32  ;;  %v28071_v56 = vld [vmem:[%s38719_s3 + $0x3540] ss:$24 sps:$4 sm:$0xff]   ;;  %v28076_v32 = vld [vmem:[%s38719_s3 + $0x147c] ss:$24 sps:$4 sm:$0xff]  }
 0x508   : > { %13517 = vmatprep.subr.bf16.mxu0 %v28013_v33  ;;  %v28079_v33 = vld [vmem:[%s38719_s3 + $0x3574] ss:$24 sps:$4 sm:$0xff]  }
 0x50a   : > { %6877 = vmatpush1.bf16.msra.mxu1 %v28008_v45  ;;  %v28074_v45 = vld [vmem:[%s38719_s3 + $0x1478] ss:$24 sps:$4 sm:$0xff]  }
 0x50b   : > { %13518 = vmatpush1.bf16.msra.mxu0 %v28011_v46  ;;  %6878 = vmatprep.subr.bf16.mxu1 %v28016_v49  ;;  %v28077_v46 = vld [vmem:[%s38719_s3 + $0x3570] ss:$24 sps:$4 sm:$0xff]   ;;  %v28082_v49 = vld [vmem:[%s38719_s3 + $0x14ac] ss:$24 sps:$4 sm:$0xff]  }
 0x50c   : > { %13519 = vmatprep.subr.bf16.mxu0 %v28019_v35  ;;  %v28085_v35 = vld [vmem:[%s38719_s3 + $0x35a4] ss:$24 sps:$4 sm:$0xff]  }
 0x50e   : > { %6879 = vmatpush1.bf16.msra.mxu1 %v28014_v50  ;;  %v28080_v50 = vld [vmem:[%s38719_s3 + $0x14a8] ss:$24 sps:$4 sm:$0xff]  }
 0x50f   : > { %13520 = vmatpush1.bf16.msra.mxu0 %v28017_v52  ;;  %6880 = vmatprep.subr.bf16.mxu1 %v28022_v53  ;;  %v28083_v52 = vld [vmem:[%s38719_s3 + $0x35a0] ss:$24 sps:$4 sm:$0xff]   ;;  %v28088_v53 = vld [vmem:[%s38719_s3 + $0x14dc] ss:$24 sps:$4 sm:$0xff]  }
 0x510   : > { %13521 = vmatprep.subr.bf16.mxu0 %v28025_v57  ;;  %v28091_v57 = vld [vmem:[%s38719_s3 + $0x35d4] ss:$24 sps:$4 sm:$0xff]  }
 0x512   : > { %6881 = vmatpush1.bf16.msra.mxu1 %v28020_v58  ;;  %v28086_v58 = vld [vmem:[%s38719_s3 + $0x14d8] ss:$24 sps:$4 sm:$0xff]  }
 0x513   : > { %13522 = vmatpush1.bf16.msra.mxu0 %v28023_v63  ;;  %6882 = vmatprep.subr.bf16.mxu1 %v28028_v0  ;;  %v28089_v63 = vld [vmem:[%s38719_s3 + $0x35d0] ss:$24 sps:$4 sm:$0xff]   ;;  %v28094_v0 = vld [vmem:[%s38719_s3 + $0x150c] ss:$24 sps:$4 sm:$0xff]  }
 0x514   : > { %13523 = vmatprep.subr.bf16.mxu0 %v28031_v16  ;;  %v28097_v16 = vld [vmem:[%s38719_s3 + $0x2d14] ss:$24 sps:$4 sm:$0xff]  }
 0x516   : > { %6883 = vmatpush1.bf16.msra.mxu1 %v28026_v17  ;;  %v34473_v17 = vcombine.low %v34265_v41, %v34269_v42  ;;  %v28103_v41 = vld [vmem:[%s38719_s3 + $0x2d44] ss:$24 sps:$4 sm:$0xff]   ;;  %v28098_v42 = vld [vmem:[%s38719_s3 + $0x1538] ss:$24 sps:$4 sm:$0xff]  }
 0x517   : > { %13524 = vmatpush1.bf16.msra.mxu0 %v28029_v38  ;;  %6884 = vmatprep.subr.bf16.mxu1 %v28034_v22  ;;  %v28092_v38 = vld [vmem:[%s38719_s3 + $0x1508] ss:$24 sps:$4 sm:$0xff]  }
 0x518   : > { %13525 = vmatprep.subr.bf16.mxu0 %v28037_v1  ;;  %v28095_v22 = vld [vmem:[%s38719_s3 + $0x2d10] ss:$24 sps:$4 sm:$0xff]   ;;  %v28100_v1 = vld [vmem:[%s38719_s3 + $0x153c] ss:$24 sps:$4 sm:$0xff]  }
 0x51a   : > { %6885 = vmatpush1.bf16.msra.mxu1 %v28032_v27  ;;  %v28101_v27 = vld [vmem:[%s38719_s3 + $0x2d40] ss:$24 sps:$4 sm:$0xff]  }
 0x51b   : > { %13526 = vmatpush1.bf16.msra.mxu0 %v28035_v2  ;;  %6886 = vmatprep.subr.bf16.mxu1 %v28040_v3  ;;  %v28106_v2 = vld [vmem:[%s38719_s3 + $0x156c] ss:$24 sps:$4 sm:$0xff]   ;;  %v28104_v3 = vld [vmem:[%s38719_s3 + $0x1568] ss:$24 sps:$4 sm:$0xff]  }
 0x51c   : > { %13527 = vmatprep.subr.bf16.mxu0 %v28043_v4  ;;  %v28107_v4 = vld [vmem:[%s38719_s3 + $0x2d70] ss:$24 sps:$4 sm:$0xff]  }
 0x51e   : > { %6887 = vmatpush1.bf16.msra.mxu1 %v28038_v5  ;;  %v28112_v5 = vld [vmem:[%s38719_s3 + $0x159c] ss:$24 sps:$4 sm:$0xff]  }
 0x51f   : > { %13528 = vmatpush1.bf16.msra.mxu0 %v28041_v7  ;;  %6888 = vmatprep.subr.bf16.mxu1 %v28046_v8  ;;  %v28110_v7 = vld [vmem:[%s38719_s3 + $0x1598] ss:$24 sps:$4 sm:$0xff]  }
 0x520   : > { %13529 = vmatprep.subr.bf16.mxu0 %v28049_v9  ;;  %v28113_v8 = vld [vmem:[%s38719_s3 + $0x2da0] ss:$24 sps:$4 sm:$0xff]   ;;  %v28118_v9 = vld [vmem:[%s38719_s3 + $0x15cc] ss:$24 sps:$4 sm:$0xff]  }
 0x522   : > { %6889 = vmatpush1.bf16.msra.mxu1 %v28044_v10  ;;  %v28121_v10 = vld [vmem:[%s38719_s3 + $0x2dd4] ss:$24 sps:$4 sm:$0xff]  }
 0x523   : > { %13530 = vmatpush1.bf16.msra.mxu0 %v28047_v11  ;;  %6890 = vmatprep.subr.bf16.mxu1 %v28052_v12  ;;  %v28116_v11 = vld [vmem:[%s38719_s3 + $0x15c8] ss:$24 sps:$4 sm:$0xff]  }
 0x524   : > { %13531 = vmatprep.subr.bf16.mxu0 %v28055_v13  ;;  %v28119_v12 = vld [vmem:[%s38719_s3 + $0x2dd0] ss:$24 sps:$4 sm:$0xff]   ;;  %v28124_v13 = vld [vmem:[%s38719_s3 + $0x15fc] ss:$24 sps:$4 sm:$0xff]  }
 0x526   : > { %6891 = vmatpush1.bf16.msra.mxu1 %v28050_v14  ;;  %v28127_v14 = vld [vmem:[%s38719_s3 + $0x2e04] ss:$24 sps:$4 sm:$0xff]  }
 0x527   : > { %13532 = vmatpush1.bf16.msra.mxu0 %v28053_v15  ;;  %6892 = vmatprep.subr.bf16.mxu1 %v28058_v18  ;;  %v28122_v15 = vld [vmem:[%s38719_s3 + $0x15f8] ss:$24 sps:$4 sm:$0xff]  }
 0x528   : > { %13533 = vmatprep.subr.bf16.mxu0 %v28061_v19  ;;  %v28125_v18 = vld [vmem:[%s38719_s3 + $0x2e00] ss:$24 sps:$4 sm:$0xff]   ;;  %v28130_v19 = vld [vmem:[%s38719_s3 + $0x162c] ss:$24 sps:$4 sm:$0xff]  }
 0x52a   : > { %6893 = vmatpush1.bf16.msra.mxu1 %v28056_v24  ;;  %v28133_v24 = vld [vmem:[%s38719_s3 + $0x2e34] ss:$24 sps:$4 sm:$0xff]  }
 0x52b   : > { %13534 = vmatpush1.bf16.msra.mxu0 %v28059_v30  ;;  %6894 = vmatprep.subr.bf16.mxu1 %v28064_v34  ;;  %v28128_v30 = vld [vmem:[%s38719_s3 + $0x1628] ss:$24 sps:$4 sm:$0xff]  }
 0x52c   : > { %13535 = vmatprep.subr.bf16.mxu0 %v28067_v40  ;;  %v28131_v34 = vld [vmem:[%s38719_s3 + $0x2e30] ss:$24 sps:$4 sm:$0xff]   ;;  %v28136_v40 = vld [vmem:[%s38719_s3 + $0x165c] ss:$24 sps:$4 sm:$0xff]  }
 0x52e   : > { %6895 = vmatpush1.bf16.msra.mxu1 %v28062_v47  ;;  %v28139_v47 = vld [vmem:[%s38719_s3 + $0x2e64] ss:$24 sps:$4 sm:$0xff]  }
 0x52f   : > { %13536 = vmatpush1.bf16.msra.mxu0 %v28065_v43  ;;  %6896 = vmatprep.subr.bf16.mxu1 %v28070_v62  ;;  %v28134_v43 = vld [vmem:[%s38719_s3 + $0x1658] ss:$24 sps:$4 sm:$0xff]  }
 0x530   : > { %13537 = vmatprep.subr.bf16.mxu0 %v28073_v31  ;;  %v28137_v62 = vld [vmem:[%s38719_s3 + $0x2e60] ss:$24 sps:$4 sm:$0xff]   ;;  %v28142_v31 = vld [vmem:[%s38719_s3 + $0x168c] ss:$24 sps:$4 sm:$0xff]  }
 0x532   : > { %6897 = vmatpush1.bf16.msra.mxu1 %v28068_v55  ;;  %v28145_v55 = vld [vmem:[%s38719_s3 + $0x2e94] ss:$24 sps:$4 sm:$0xff]  }
 0x533   : > { %13538 = vmatpush1.bf16.msra.mxu0 %v28071_v56  ;;  %6898 = vmatprep.subr.bf16.mxu1 %v28076_v32  ;;  %v28140_v56 = vld [vmem:[%s38719_s3 + $0x1688] ss:$24 sps:$4 sm:$0xff]  }
 0x534   : > { %13539 = vmatprep.subr.bf16.mxu0 %v28079_v33  ;;  %v28143_v32 = vld [vmem:[%s38719_s3 + $0x2e90] ss:$24 sps:$4 sm:$0xff]   ;;  %v28148_v33 = vld [vmem:[%s38719_s3 + $0x16bc] ss:$24 sps:$4 sm:$0xff]  }
 0x536   : > { %6899 = vmatpush1.bf16.msra.mxu1 %v28074_v45  ;;  %v28151_v45 = vld [vmem:[%s38719_s3 + $0x2ec4] ss:$24 sps:$4 sm:$0xff]  }
 0x537   : > { %13540 = vmatpush1.bf16.msra.mxu0 %v28077_v46  ;;  %6900 = vmatprep.subr.bf16.mxu1 %v28082_v49  ;;  %v28146_v46 = vld [vmem:[%s38719_s3 + $0x16b8] ss:$24 sps:$4 sm:$0xff]  }
 0x538   : > { %13541 = vmatprep.subr.bf16.mxu0 %v28085_v35  ;;  %v28149_v49 = vld [vmem:[%s38719_s3 + $0x2ec0] ss:$24 sps:$4 sm:$0xff]   ;;  %v28154_v35 = vld [vmem:[%s38719_s3 + $0x16ec] ss:$24 sps:$4 sm:$0xff]  }
 0x53a   : > { %6901 = vmatpush1.bf16.msra.mxu1 %v28080_v50  ;;  %v28157_v50 = vld [vmem:[%s38719_s3 + $0x2ef4] ss:$24 sps:$4 sm:$0xff]  }
 0x53b   : > { %13542 = vmatpush1.bf16.msra.mxu0 %v28083_v52  ;;  %6902 = vmatprep.subr.bf16.mxu1 %v28088_v53  ;;  %v28152_v52 = vld [vmem:[%s38719_s3 + $0x16e8] ss:$24 sps:$4 sm:$0xff]  }
 0x53c   : > { %13543 = vmatprep.subr.bf16.mxu0 %v28091_v57  ;;  %v28155_v53 = vld [vmem:[%s38719_s3 + $0x2ef0] ss:$24 sps:$4 sm:$0xff]   ;;  %v28160_v57 = vld [vmem:[%s38719_s3 + $0x171c] ss:$24 sps:$4 sm:$0xff]  }
 0x53e   : > { %6903 = vmatpush1.bf16.msra.mxu1 %v28086_v58  ;;  %v28163_v58 = vld [vmem:[%s38719_s3 + $0x2f24] ss:$24 sps:$4 sm:$0xff]  }
 0x53f   : > { %13544 = vmatpush1.bf16.msra.mxu0 %v28089_v63  ;;  %6915 = vmatprep.subr.bf16.mxu1 %v28094_v0  ;;  %v28158_v63 = vld [vmem:[%s38719_s3 + $0x1718] ss:$24 sps:$4 sm:$0xff]  }
 0x540   : > { %13685 = vmatprep.subr.bf16.mxu0 %v28097_v16  ;;  %v28161_v0 = vld [vmem:[%s38719_s3 + $0x2f20] ss:$24 sps:$4 sm:$0xff]   ;;  %v28166_v16 = vld [vmem:[%s38719_s3 + $0x174c] ss:$24 sps:$4 sm:$0xff]  }
 0x541   : > { %6905 = vmatmul.mubr.bf16.vlgmr.msra.gmra.mrb[4].mxu1 %v30958_v26  ;;  %v28109_v26 = vld [vmem:[%s38719_s3 + $0x2d74] ss:$24 sps:$4 sm:$0xff]  }
 0x542   : > { %13546 = vmatmul.mubr.bf16.vlgmr.msra.gmra.mrb[0].mxu0 %v34473_v17  ;;  %6916 = vmatpush1.bf16.msra.mxu1 %v28092_v38  ;;  %v28169_v38 = vld [vmem:[%s38719_s3 + $0x2f54] ss:$24 sps:$4 sm:$0xff]  }
 0x543   : > { %13686 = vmatpush1.bf16.msra.mxu0 %v28095_v22  ;;  %6917 = vmatprep.subr.bf16.mxu1 %v28100_v1  ;;  %v28164_v22 = vld [vmem:[%s38719_s3 + $0x1748] ss:$24 sps:$4 sm:$0xff]  }
 0x544   : > { %13687 = vmatprep.subr.bf16.mxu0 %v28103_v41  ;;  %6947 = vmatprep.mubr.bf16.mxu1 %v30483_v39  ;;  %v28115_v39 = vld [vmem:[%s38719_s3 + $0x2da4] ss:$24 sps:$4 sm:$0xff]   ;;  %v28167_v1 = vld [vmem:[%s38719_s3 + $0x2f50] ss:$24 sps:$4 sm:$0xff]  }
 0x545   : > { %13717 = vmatprep.mubr.bf16.mxu0 %v33853_v23  ;;  %v28172_v41 = vld [vmem:[%s38719_s3 + $0x177c] ss:$24 sps:$4 sm:$0xff]  }
 0x546   : > { %6918 = vmatpush1.bf16.msra.mxu1 %v28098_v42  ;;  %v28175_v42 = vld [vmem:[%s38719_s3 + $0x2f84] ss:$24 sps:$4 sm:$0xff]  }
 0x547   : > { %13688 = vmatpush1.bf16.msra.mxu0 %v28101_v27  ;;  %6919 = vmatprep.subr.bf16.mxu1 %v28106_v2  ;;  %v28170_v27 = vld [vmem:[%s38719_s3 + $0x1778] ss:$24 sps:$4 sm:$0xff]  }
 0x548   : > { %13689 = vmatprep.subr.bf16.mxu0 %v28109_v26  ;;  %v28173_v2 = vld [vmem:[%s38719_s3 + $0x2f80] ss:$24 sps:$4 sm:$0xff]   ;;  %v28178_v26 = vld [vmem:[%s38719_s3 + $0x17ac] ss:$24 sps:$4 sm:$0xff]  }
 0x54a   : > { %6920 = vmatpush1.bf16.msra.mxu1 %v28104_v3  ;;  %v28181_v3 = vld [vmem:[%s38719_s3 + $0x2fb4] ss:$24 sps:$4 sm:$0xff]  }
 0x54b   : > { %13690 = vmatpush1.bf16.msra.mxu0 %v28107_v4  ;;  %6921 = vmatprep.subr.bf16.mxu1 %v28112_v5  ;;  %v28176_v4 = vld [vmem:[%s38719_s3 + $0x17a8] ss:$24 sps:$4 sm:$0xff]  }
 0x54c   : > { %13691 = vmatprep.subr.bf16.mxu0 %v28115_v39  ;;  %v28179_v5 = vld [vmem:[%s38719_s3 + $0x2fb0] ss:$24 sps:$4 sm:$0xff]   ;;  %v28184_v39 = vld [vmem:[%s38719_s3 + $0x17dc] ss:$24 sps:$4 sm:$0xff]  }
 0x54e   : > { %6922 = vmatpush1.bf16.msra.mxu1 %v28110_v7  ;;  %v28187_v7 = vld [vmem:[%s38719_s3 + $0x2fe4] ss:$24 sps:$4 sm:$0xff]  }
 0x54f   : > { %13692 = vmatpush1.bf16.msra.mxu0 %v28113_v8  ;;  %6923 = vmatprep.subr.bf16.mxu1 %v28118_v9  ;;  %v28182_v8 = vld [vmem:[%s38719_s3 + $0x17d8] ss:$24 sps:$4 sm:$0xff]  }
 0x550   : > { %13693 = vmatprep.subr.bf16.mxu0 %v28121_v10  ;;  %v28185_v9 = vld [vmem:[%s38719_s3 + $0x2fe0] ss:$24 sps:$4 sm:$0xff]   ;;  %v28190_v10 = vld [vmem:[%s38719_s3 + $0x180c] ss:$24 sps:$4 sm:$0xff]  }
 0x552   : > { %6924 = vmatpush1.bf16.msra.mxu1 %v28116_v11  ;;  %v28193_v11 = vld [vmem:[%s38719_s3 + $0x3014] ss:$24 sps:$4 sm:$0xff]  }
 0x553   : > { %13694 = vmatpush1.bf16.msra.mxu0 %v28119_v12  ;;  %6925 = vmatprep.subr.bf16.mxu1 %v28124_v13  ;;  %v28188_v12 = vld [vmem:[%s38719_s3 + $0x1808] ss:$24 sps:$4 sm:$0xff]  }
 0x554   : > { %13695 = vmatprep.subr.bf16.mxu0 %v28127_v14  ;;  %v28191_v13 = vld [vmem:[%s38719_s3 + $0x3010] ss:$24 sps:$4 sm:$0xff]   ;;  %v28196_v14 = vld [vmem:[%s38719_s3 + $0x183c] ss:$24 sps:$4 sm:$0xff]  }
 0x556   : > { %6926 = vmatpush1.bf16.msra.mxu1 %v28122_v15  ;;  %v28199_v15 = vld [vmem:[%s38719_s3 + $0x3044] ss:$24 sps:$4 sm:$0xff]  }
 0x557   : > { %13696 = vmatpush1.bf16.msra.mxu0 %v28125_v18  ;;  %6927 = vmatprep.subr.bf16.mxu1 %v28130_v19  ;;  %v28194_v18 = vld [vmem:[%s38719_s3 + $0x1838] ss:$24 sps:$4 sm:$0xff]  }
 0x558   : > { %13697 = vmatprep.subr.bf16.mxu0 %v28133_v24  ;;  %v28197_v19 = vld [vmem:[%s38719_s3 + $0x3040] ss:$24 sps:$4 sm:$0xff]   ;;  %v28202_v24 = vld [vmem:[%s38719_s3 + $0x186c] ss:$24 sps:$4 sm:$0xff]  }
 0x55a   : > { %6928 = vmatpush1.bf16.msra.mxu1 %v28128_v30  ;;  %v28200_v30 = vld [vmem:[%s38719_s3 + $0x1868] ss:$24 sps:$4 sm:$0xff]  }
 0x55b   : > { %13698 = vmatpush1.bf16.msra.mxu0 %v28131_v34  ;;  %6929 = vmatprep.subr.bf16.mxu1 %v28136_v40  ;;  %v28203_v34 = vld [vmem:[%s38719_s3 + $0x3070] ss:$24 sps:$4 sm:$0xff]   ;;  %v28208_v40 = vld [vmem:[%s38719_s3 + $0x189c] ss:$24 sps:$4 sm:$0xff]  }
 0x55c   : > { %13699 = vmatprep.subr.bf16.mxu0 %v28139_v47  ;;  %v28206_v47 = vld [vmem:[%s38719_s3 + $0x1898] ss:$24 sps:$4 sm:$0xff]  }
 0x55e   : > { %6930 = vmatpush1.bf16.msra.mxu1 %v28134_v43  ;;  %v28209_v43 = vld [vmem:[%s38719_s3 + $0x30a0] ss:$24 sps:$4 sm:$0xff]  }
 0x55f   : > { %13700 = vmatpush1.bf16.msra.mxu0 %v28137_v62  ;;  %6931 = vmatprep.subr.bf16.mxu1 %v28142_v31  ;;  %v28214_v62 = vld [vmem:[%s38719_s3 + $0x18cc] ss:$24 sps:$4 sm:$0xff]  }
 0x560   : > { %13701 = vmatprep.subr.bf16.mxu0 %v28145_v55  ;;  %v28217_v31 = vld [vmem:[%s38719_s3 + $0x30d4] ss:$24 sps:$4 sm:$0xff]   ;;  %v28212_v55 = vld [vmem:[%s38719_s3 + $0x18c8] ss:$24 sps:$4 sm:$0xff]  }
 0x562   : > { %6932 = vmatpush1.bf16.msra.mxu1 %v28140_v56  ;;  %v28215_v56 = vld [vmem:[%s38719_s3 + $0x30d0] ss:$24 sps:$4 sm:$0xff]  }
 0x563   : > { %13702 = vmatpush1.bf16.msra.mxu0 %v28143_v32  ;;  %6933 = vmatprep.subr.bf16.mxu1 %v28148_v33  ;;  %v28220_v32 = vld [vmem:[%s38719_s3 + $0x18fc] ss:$24 sps:$4 sm:$0xff]  }
 0x564   : > { %13703 = vmatprep.subr.bf16.mxu0 %v28151_v45  ;;  %v28223_v33 = vld [vmem:[%s38719_s3 + $0x3104] ss:$24 sps:$4 sm:$0xff]   ;;  %v28218_v45 = vld [vmem:[%s38719_s3 + $0x18f8] ss:$24 sps:$4 sm:$0xff]  }
 0x566   : > { %6934 = vmatpush1.bf16.msra.mxu1 %v28146_v46  ;;  %v28221_v46 = vld [vmem:[%s38719_s3 + $0x3100] ss:$24 sps:$4 sm:$0xff]  }
 0x567   : > { %13704 = vmatpush1.bf16.msra.mxu0 %v28149_v49  ;;  %6935 = vmatprep.subr.bf16.mxu1 %v28154_v35  ;;  %v28226_v49 = vld [vmem:[%s38719_s3 + $0x192c] ss:$24 sps:$4 sm:$0xff]  }
 0x568   : > { %13705 = vmatprep.subr.bf16.mxu0 %v28157_v50  ;;  %v28229_v35 = vld [vmem:[%s38719_s3 + $0x3134] ss:$24 sps:$4 sm:$0xff]  }
 0x56a   : > { %6936 = vmatpush1.bf16.msra.mxu1 %v28152_v52 }
 0x56b   : > { %13706 = vmatpush1.bf16.msra.mxu0 %v28155_v53  ;;  %6937 = vmatprep.subr.bf16.mxu1 %v28160_v57  ;;  %v28224_v57 = vld [vmem:[%s38719_s3 + $0x1928] ss:$24 sps:$4 sm:$0xff]  }
 0x56c   : > { %13707 = vmatprep.subr.bf16.mxu0 %v28163_v58  ;;  %v28227_v58 = vld [vmem:[%s38719_s3 + $0x3130] ss:$24 sps:$4 sm:$0xff]  }
 0x56e   : > { %6938 = vmatpush1.bf16.msra.mxu1 %v28158_v63 }
 0x56f   : > { %13708 = vmatpush1.bf16.msra.mxu0 %v28161_v0  ;;  %6939 = vmatprep.subr.bf16.mxu1 %v28166_v16  ;;  %v28232_v0 = vld [vmem:[%s38719_s3 + $0x195c] ss:$24 sps:$4 sm:$0xff]  }
 0x570   : > { %13709 = vmatprep.subr.bf16.mxu0 %v28169_v38  ;;  %v28235_v16 = vld [vmem:[%s38719_s3 + $0x3164] ss:$24 sps:$4 sm:$0xff]   ;;  %v28230_v38 = vld [vmem:[%s38719_s3 + $0x1958] ss:$24 sps:$4 sm:$0xff]  }
 0x572   : > { %6940 = vmatpush1.bf16.msra.mxu1 %v28164_v22  ;;  %v28233_v22 = vld [vmem:[%s38719_s3 + $0x3160] ss:$24 sps:$4 sm:$0xff]  }
 0x573   : > { %13710 = vmatpush1.bf16.msra.mxu0 %v28167_v1  ;;  %6941 = vmatprep.subr.bf16.mxu1 %v28172_v41  ;;  %v28238_v1 = vld [vmem:[%s38719_s3 + $0x198c] ss:$24 sps:$4 sm:$0xff]  }
 0x574   : > { %13711 = vmatprep.subr.bf16.mxu0 %v28175_v42  ;;  %v28241_v41 = vld [vmem:[%s38719_s3 + $0x3194] ss:$24 sps:$4 sm:$0xff]   ;;  %v28236_v42 = vld [vmem:[%s38719_s3 + $0x1988] ss:$24 sps:$4 sm:$0xff]  }
 0x576   : > { %6942 = vmatpush1.bf16.msra.mxu1 %v28170_v27  ;;  %v28239_v27 = vld [vmem:[%s38719_s3 + $0x3190] ss:$24 sps:$4 sm:$0xff]  }
 0x577   : > { %13712 = vmatpush1.bf16.msra.mxu0 %v28173_v2  ;;  %6943 = vmatprep.subr.bf16.mxu1 %v28178_v26  ;;  %v28244_v2 = vld [vmem:[%s38719_s3 + $0x19bc] ss:$24 sps:$4 sm:$0xff]  }
 0x578   : > { %13713 = vmatprep.subr.bf16.mxu0 %v28181_v3  ;;  %v28247_v26 = vld [vmem:[%s38719_s3 + $0x31c4] ss:$24 sps:$4 sm:$0xff]   ;;  %v28242_v3 = vld [vmem:[%s38719_s3 + $0x19b8] ss:$24 sps:$4 sm:$0xff]  }
 0x57a   : > { %6944 = vmatpush1.bf16.msra.mxu1 %v28176_v4  ;;  %v28245_v4 = vld [vmem:[%s38719_s3 + $0x31c0] ss:$24 sps:$4 sm:$0xff]  }
 0x57b   : > { %13714 = vmatpush1.bf16.msra.mxu0 %v28179_v5  ;;  %6945 = vmatprep.subr.bf16.mxu1 %v28184_v39  ;;  %v28250_v5 = vld [vmem:[%s38719_s3 + $0x19ec] ss:$24 sps:$4 sm:$0xff]  }
 0x57c   : > { %13715 = vmatprep.subr.bf16.mxu0 %v28187_v7  ;;  %v28253_v39 = vld [vmem:[%s38719_s3 + $0x31f4] ss:$24 sps:$4 sm:$0xff]   ;;  %v28248_v7 = vld [vmem:[%s38719_s3 + $0x19e8] ss:$24 sps:$4 sm:$0xff]  }
 0x57e   : > { %6946 = vmatpush1.bf16.msra.mxu1 %v28182_v8  ;;  %v28251_v8 = vld [vmem:[%s38719_s3 + $0x31f0] ss:$24 sps:$4 sm:$0xff]  }
 0x57f   : > { %13716 = vmatpush1.bf16.msra.mxu0 %v28185_v9  ;;  %6958 = vmatprep.subr.bf16.mxu1 %v28190_v10  ;;  %v28256_v9 = vld [vmem:[%s38719_s3 + $0x1a1c] ss:$24 sps:$4 sm:$0xff]  }
 0x580   : > { %13728 = vmatprep.subr.bf16.mxu0 %v28193_v11  ;;  %v28259_v10 = vld [vmem:[%s38719_s3 + $0x3224] ss:$24 sps:$4 sm:$0xff]   ;;  %v28254_v11 = vld [vmem:[%s38719_s3 + $0x1a18] ss:$24 sps:$4 sm:$0xff]  }
 0x581   : > { %6948 = vmatmul.mubr.bf16.vlgmr.msra.gmra.mrb[4].mxu1 %v30526_v54  ;;  %v28205_v54 = vld [vmem:[%s38719_s3 + $0x3074] ss:$24 sps:$4 sm:$0xff]  }
 0x582   : > { %13718 = vmatmul.mubr.bf16.vlgmr.msra.gmra.mrb[4].mxu0 %v34045_v59  ;;  %6959 = vmatpush1.bf16.msra.mxu1 %v28188_v12  ;;  %v28257_v12 = vld [vmem:[%s38719_s3 + $0x3220] ss:$24 sps:$4 sm:$0xff]  }
 0x583   : > { %13729 = vmatpush1.bf16.msra.mxu0 %v28191_v13  ;;  %6960 = vmatprep.subr.bf16.mxu1 %v28196_v14  ;;  %v28262_v13 = vld [vmem:[%s38719_s3 + $0x1a4c] ss:$24 sps:$4 sm:$0xff]  }
 0x584   : > { %13730 = vmatprep.subr.bf16.mxu0 %v28199_v15  ;;  %6990 = vmatprep.mubr.bf16.mxu1 %v30643_v36  ;;  %v28211_v36 = vld [vmem:[%s38719_s3 + $0x30a4] ss:$24 sps:$4 sm:$0xff]   ;;  %v28265_v14 = vld [vmem:[%s38719_s3 + $0x3254] ss:$24 sps:$4 sm:$0xff]   ;;  %v28260_v15 = vld [vmem:[%s38719_s3 + $0x1a48] ss:$24 sps:$4 sm:$0xff]  }
 0x585   : > { %13760 = vmatprep.mubr.bf16.mxu0 %v34069_v21 }
 0x586   : > { %6961 = vmatpush1.bf16.msra.mxu1 %v28194_v18  ;;  %v28263_v18 = vld [vmem:[%s38719_s3 + $0x3250] ss:$24 sps:$4 sm:$0xff]  }
 0x587   : > { %13731 = vmatpush1.bf16.msra.mxu0 %v28197_v19  ;;  %6962 = vmatprep.subr.bf16.mxu1 %v28202_v24  ;;  %v28268_v19 = vld [vmem:[%s38719_s3 + $0x1a7c] ss:$24 sps:$4 sm:$0xff]  }
 0x588   : > { %13732 = vmatprep.subr.bf16.mxu0 %v28205_v54  ;;  %v28271_v24 = vld [vmem:[%s38719_s3 + $0x3284] ss:$24 sps:$4 sm:$0xff]   ;;  %v28266_v54 = vld [vmem:[%s38719_s3 + $0x1a78] ss:$24 sps:$4 sm:$0xff]  }
 0x58a   : > { %6963 = vmatpush1.bf16.msra.mxu1 %v28200_v30  ;;  %v28269_v30 = vld [vmem:[%s38719_s3 + $0x3280] ss:$24 sps:$4 sm:$0xff]  }
 0x58b   : > { %13733 = vmatpush1.bf16.msra.mxu0 %v28203_v34  ;;  %6964 = vmatprep.subr.bf16.mxu1 %v28208_v40  ;;  %v28274_v34 = vld [vmem:[%s38719_s3 + $0x1aac] ss:$24 sps:$4 sm:$0xff]  }
 0x58c   : > { %13734 = vmatprep.subr.bf16.mxu0 %v28211_v36  ;;  %v28277_v40 = vld [vmem:[%s38719_s3 + $0x32b4] ss:$24 sps:$4 sm:$0xff]   ;;  %v28272_v36 = vld [vmem:[%s38719_s3 + $0x1aa8] ss:$24 sps:$4 sm:$0xff]  }
 0x58e   : > { %6965 = vmatpush1.bf16.msra.mxu1 %v28206_v47  ;;  %v28275_v47 = vld [vmem:[%s38719_s3 + $0x32b0] ss:$24 sps:$4 sm:$0xff]  }
 0x58f   : > { %13735 = vmatpush1.bf16.msra.mxu0 %v28209_v43  ;;  %6966 = vmatprep.subr.bf16.mxu1 %v28214_v62  ;;  %v28280_v43 = vld [vmem:[%s38719_s3 + $0x1adc] ss:$24 sps:$4 sm:$0xff]  }
 0x590   : > { %13736 = vmatprep.subr.bf16.mxu0 %v28217_v31  ;;  %v28283_v62 = vld [vmem:[%s38719_s3 + $0x32e4] ss:$24 sps:$4 sm:$0xff]   ;;  %v28278_v31 = vld [vmem:[%s38719_s3 + $0x1ad8] ss:$24 sps:$4 sm:$0xff]  }
 0x592   : > { %6967 = vmatpush1.bf16.msra.mxu1 %v28212_v55  ;;  %v28281_v55 = vld [vmem:[%s38719_s3 + $0x32e0] ss:$24 sps:$4 sm:$0xff]  }
 0x593   : > { %13737 = vmatpush1.bf16.msra.mxu0 %v28215_v56  ;;  %6968 = vmatprep.subr.bf16.mxu1 %v28220_v32  ;;  %v28286_v56 = vld [vmem:[%s38719_s3 + $0x1b0c] ss:$24 sps:$4 sm:$0xff]  }
 0x594   : > { %13738 = vmatprep.subr.bf16.mxu0 %v28223_v33  ;;  %v34747_v50 = vpop.f32.mrb[8].mxu1  ;;  %v28289_v32 = vld [vmem:[%s38719_s3 + $0x3314] ss:$24 sps:$4 sm:$0xff]   ;;  %v28284_v33 = vld [vmem:[%s38719_s3 + $0x1b08] ss:$24 sps:$4 sm:$0xff]  }
 0x595   : > { %v34749_v52 = vpop.f32.mrb[9].mxu1 }
 0x596   : > { %v34751_v53 = vpop.f32.mrb[10].mxu1  ;;  %6969 = vmatpush1.bf16.msra.mxu1 %v28218_v45  ;;  %v28287_v45 = vld [vmem:[%s38719_s3 + $0x3310] ss:$24 sps:$4 sm:$0xff]  }
 0x597   : > { %13739 = vmatpush1.bf16.msra.mxu0 %v28221_v46  ;;  %v34759_v63 = vpop.f32.mrb[11].mxu1  ;;  %6970 = vmatprep.subr.bf16.mxu1 %v28226_v49  ;;  %v28292_v46 = vld [vmem:[%s38719_s3 + $0x1b3c] ss:$24 sps:$4 sm:$0xff]  }
 0x598   : > { %13740 = vmatprep.subr.bf16.mxu0 %v28229_v35  ;;  %v28295_v49 = vld [vmem:[%s38719_s3 + $0x3344] ss:$24 sps:$4 sm:$0xff]   ;;  %v28290_v35 = vld [vmem:[%s38719_s3 + $0x1b38] ss:$24 sps:$4 sm:$0xff]  }
 0x59a   : > { %6971 = vmatpush1.bf16.msra.mxu1 %v28224_v57  ;;  %v28293_v57 = vld [vmem:[%s38719_s3 + $0x3340] ss:$24 sps:$4 sm:$0xff]  }
 0x59b   : > { %13741 = vmatpush1.bf16.msra.mxu0 %v28227_v58  ;;  %6972 = vmatprep.subr.bf16.mxu1 %v28232_v0  ;;  %v28298_v58 = vld [vmem:[%s38719_s3 + $0x1b6c] ss:$24 sps:$4 sm:$0xff]  }
 0x59c   : > { %13742 = vmatprep.subr.bf16.mxu0 %v28235_v16  ;;  %v30087_v0 = vld [vmem:[%s31193_s13 + $0x4] ss:$48 sps:$4 sm:$0xff]  }
 0x59d   : > { %v28296_v16 = vld [vmem:[%s38719_s3 + $0x1b68] ss:$24 sps:$4 sm:$0xff]  }
 0x59e   : > { %6973 = vmatpush1.bf16.msra.mxu1 %v28230_v38  ;;  %v28299_v38 = vld [vmem:[%s38719_s3 + $0x3370] ss:$24 sps:$4 sm:$0xff]  }
 0x59f   : > { %13743 = vmatpush1.bf16.msra.mxu0 %v28233_v22  ;;  %6974 = vmatprep.subr.bf16.mxu1 %v28238_v1  ;;  %v28304_v22 = vld [vmem:[%s38719_s3 + $0x1b9c] ss:$24 sps:$4 sm:$0xff]  }
 0x5a0   : > { %13744 = vmatprep.subr.bf16.mxu0 %v28241_v41  ;;  %v28307_v1 = vld [vmem:[%s38719_s3 + $0x33a4] ss:$24 sps:$4 sm:$0xff]   ;;  %v28302_v41 = vld [vmem:[%s38719_s3 + $0x1b98] ss:$24 sps:$4 sm:$0xff]  }
 0x5a2   : > { %6975 = vmatpush1.bf16.msra.mxu1 %v28236_v42  ;;  %v28305_v42 = vld [vmem:[%s38719_s3 + $0x33a0] ss:$24 sps:$4 sm:$0xff]  }
 0x5a3   : > { %13745 = vmatpush1.bf16.msra.mxu0 %v28239_v27  ;;  %6976 = vmatprep.subr.bf16.mxu1 %v28244_v2  ;;  %v28310_v27 = vld [vmem:[%s38719_s3 + $0x1bcc] ss:$24 sps:$4 sm:$0xff]  }
 0x5a4   : > { %13746 = vmatprep.subr.bf16.mxu0 %v28247_v26  ;;  %v28313_v2 = vld [vmem:[%s38719_s3 + $0x33d4] ss:$24 sps:$4 sm:$0xff]   ;;  %v28308_v26 = vld [vmem:[%s38719_s3 + $0x1bc8] ss:$24 sps:$4 sm:$0xff]  }
 0x5a6   : > { %6977 = vmatpush1.bf16.msra.mxu1 %v28242_v3  ;;  %v28311_v3 = vld [vmem:[%s38719_s3 + $0x33d0] ss:$24 sps:$4 sm:$0xff]  }
 0x5a7   : > { %13747 = vmatpush1.bf16.msra.mxu0 %v28245_v4  ;;  %6978 = vmatprep.subr.bf16.mxu1 %v28250_v5  ;;  %v28316_v4 = vld [vmem:[%s38719_s3 + $0x1bfc] ss:$24 sps:$4 sm:$0xff]  }
 0x5a8   : > { %13748 = vmatprep.subr.bf16.mxu0 %v28253_v39  ;;  %v28319_v5 = vld [vmem:[%s38719_s3 + $0x3404] ss:$24 sps:$4 sm:$0xff]   ;;  %v28314_v39 = vld [vmem:[%s38719_s3 + $0x1bf8] ss:$24 sps:$4 sm:$0xff]  }
 0x5aa   : > { %6979 = vmatpush1.bf16.msra.mxu1 %v28248_v7  ;;  %v28317_v7 = vld [vmem:[%s38719_s3 + $0x3400] ss:$24 sps:$4 sm:$0xff]  }
 0x5ab   : > { %13749 = vmatpush1.bf16.msra.mxu0 %v28251_v8  ;;  %6980 = vmatprep.subr.bf16.mxu1 %v28256_v9  ;;  %v28322_v8 = vld [vmem:[%s38719_s3 + $0x1c2c] ss:$24 sps:$4 sm:$0xff]  }
 0x5ac   : > { %13750 = vmatprep.subr.bf16.mxu0 %v28259_v10  ;;  %v28325_v9 = vld [vmem:[%s38719_s3 + $0x3434] ss:$24 sps:$4 sm:$0xff]  }
 0x5ae   : > { %6981 = vmatpush1.bf16.msra.mxu1 %v28254_v11 }
 0x5af   : > { %13751 = vmatpush1.bf16.msra.mxu0 %v28257_v12  ;;  %6982 = vmatprep.subr.bf16.mxu1 %v28262_v13  ;;  %v28320_v13 = vld [vmem:[%s38719_s3 + $0x1c28] ss:$24 sps:$4 sm:$0xff]  }
 0x5b0   : > { %13752 = vmatprep.subr.bf16.mxu0 %v28265_v14  ;;  %v28323_v14 = vld [vmem:[%s38719_s3 + $0x3430] ss:$24 sps:$4 sm:$0xff]  }
 0x5b2   : > { %6983 = vmatpush1.bf16.msra.mxu1 %v28260_v15 }
 0x5b3   : > { %13753 = vmatpush1.bf16.msra.mxu0 %v28263_v18  ;;  %6984 = vmatprep.subr.bf16.mxu1 %v28268_v19  ;;  %v28328_v18 = vld [vmem:[%s38719_s3 + $0x1c5c] ss:$24 sps:$4 sm:$0xff]  }
 0x5b4   : > { %13754 = vmatprep.subr.bf16.mxu0 %v28271_v24  ;;  %v28331_v19 = vld [vmem:[%s38719_s3 + $0x3464] ss:$24 sps:$4 sm:$0xff]   ;;  %v28326_v24 = vld [vmem:[%s38719_s3 + $0x1c58] ss:$24 sps:$4 sm:$0xff]  }
 0x5b6   : > { %6985 = vmatpush1.bf16.msra.mxu1 %v28266_v54  ;;  %v28329_v54 = vld [vmem:[%s38719_s3 + $0x3460] ss:$24 sps:$4 sm:$0xff]  }
 0x5b7   : > { %13755 = vmatpush1.bf16.msra.mxu0 %v28269_v30  ;;  %6986 = vmatprep.subr.bf16.mxu1 %v28274_v34  ;;  %v28334_v30 = vld [vmem:[%s38719_s3 + $0x1c8c] ss:$24 sps:$4 sm:$0xff]  }
 0x5b8   : > { %13756 = vmatprep.subr.bf16.mxu0 %v28277_v40  ;;  %v28337_v34 = vld [vmem:[%s38719_s3 + $0x3494] ss:$24 sps:$4 sm:$0xff]   ;;  %v28332_v40 = vld [vmem:[%s38719_s3 + $0x1c88] ss:$24 sps:$4 sm:$0xff]  }
 0x5ba   : > { %6987 = vmatpush1.bf16.msra.mxu1 %v28272_v36  ;;  %v28335_v36 = vld [vmem:[%s38719_s3 + $0x3490] ss:$24 sps:$4 sm:$0xff]  }
 0x5bb   : > { %13757 = vmatpush1.bf16.msra.mxu0 %v28275_v47  ;;  %6988 = vmatprep.subr.bf16.mxu1 %v28280_v43  ;;  %v28340_v47 = vld [vmem:[%s38719_s3 + $0x1cbc] ss:$24 sps:$4 sm:$0xff]  }
 0x5bc   : > { %13758 = vmatprep.subr.bf16.mxu0 %v28283_v62  ;;  %v28343_v43 = vld [vmem:[%s38719_s3 + $0x34c4] ss:$24 sps:$4 sm:$0xff]   ;;  %v28338_v62 = vld [vmem:[%s38719_s3 + $0x1cb8] ss:$24 sps:$4 sm:$0xff]  }
 0x5be   : > { %6989 = vmatpush1.bf16.msra.mxu1 %v28278_v31  ;;  %v28341_v31 = vld [vmem:[%s38719_s3 + $0x34c0] ss:$24 sps:$4 sm:$0xff]  }
 0x5bf   : > { %13759 = vmatpush1.bf16.msra.mxu0 %v28281_v55  ;;  %9060 = vmatprep.subr.bf16.mxu1 %v28286_v56  ;;  %v28346_v55 = vld [vmem:[%s38719_s3 + $0x1cec] ss:$24 sps:$4 sm:$0xff]  }
 0x5c0   : > { %13771 = vmatprep.subr.bf16.mxu0 %v28289_v32  ;;  %v28349_v56 = vld [vmem:[%s38719_s3 + $0x34f4] ss:$24 sps:$4 sm:$0xff]   ;;  %v28344_v32 = vld [vmem:[%s38719_s3 + $0x1ce8] ss:$24 sps:$4 sm:$0xff]  }
 0x5c1   : > { %6991 = vmatmul.mubr.bf16.vlgmr.msra.gmra.mrb[4].mxu1 %v30739_v6  ;;  %v28301_v6 = vld [vmem:[%s38719_s3 + $0x3374] ss:$24 sps:$4 sm:$0xff]  }
 0x5c2   : > { %13761 = vmatmul.mubr.bf16.vlgmr.msra.gmra.mrb[4].mxu0 %v34261_v37  ;;  %9061 = vmatpush1.bf16.msra.mxu1 %v28284_v33  ;;  %v28347_v33 = vld [vmem:[%s38719_s3 + $0x34f0] ss:$24 sps:$4 sm:$0xff]  }
 0x5c3   : > { %13772 = vmatpush1.bf16.msra.mxu0 %v28287_v45  ;;  %9062 = vmatprep.subr.bf16.mxu1 %v28292_v46  ;;  %v28352_v45 = vld [vmem:[%s38719_s3 + $0x1d1c] ss:$24 sps:$4 sm:$0xff]  }
 0x5c4   : > { %13773 = vmatprep.subr.bf16.mxu0 %v28295_v49  ;;  %9092 = vmatprep.mubr.bf16.mxu1 %v30087_v0  ;;  %v28355_v46 = vld [vmem:[%s38719_s3 + $0x3524] ss:$24 sps:$4 sm:$0xff]   ;;  %v28350_v49 = vld [vmem:[%s38719_s3 + $0x1d18] ss:$24 sps:$4 sm:$0xff]  }
 0x5c5   : > { %13803 = vmatprep.mubr.bf16.mxu0 %v34285_v61  ;;  %v28359_v0 = vld [vmem:[%s38719_s3 + $0x3550] ss:$24 sps:$4 sm:$0xff]  }
 0x5c6   : > { %9063 = vmatpush1.bf16.msra.mxu1 %v28290_v35  ;;  %v28353_v35 = vld [vmem:[%s38719_s3 + $0x3520] ss:$24 sps:$4 sm:$0xff]  }
 0x5c7   : > { %13774 = vmatpush1.bf16.msra.mxu0 %v28293_v57  ;;  %9064 = vmatprep.subr.bf16.mxu1 %v28298_v58  ;;  %v28358_v57 = vld [vmem:[%s38719_s3 + $0x1d4c] ss:$24 sps:$4 sm:$0xff]  }
 0x5c8   : > { %13775 = vmatprep.subr.bf16.mxu0 %v28301_v6  ;;  %v28361_v58 = vld [vmem:[%s38719_s3 + $0x3554] ss:$24 sps:$4 sm:$0xff]   ;;  %v28356_v6 = vld [vmem:[%s38719_s3 + $0x1d48] ss:$24 sps:$4 sm:$0xff]  }
 0x5ca   : > { %9065 = vmatpush1.bf16.msra.mxu1 %v28296_v16  ;;  %v28364_v16 = vld [vmem:[%s38719_s3 + $0x1d7c] ss:$24 sps:$4 sm:$0xff]  }
 0x5cb   : > { %13776 = vmatpush1.bf16.msra.mxu0 %v28299_v38  ;;  %9066 = vmatprep.subr.bf16.mxu1 %v28304_v22  ;;  %v28367_v38 = vld [vmem:[%s38719_s3 + $0x3584] ss:$24 sps:$4 sm:$0xff]   ;;  %v28362_v22 = vld [vmem:[%s38719_s3 + $0x1d78] ss:$24 sps:$4 sm:$0xff]  }
 0x5cc   : > { %13777 = vmatprep.subr.bf16.mxu0 %v28307_v1  ;;  %v28365_v1 = vld [vmem:[%s38719_s3 + $0x3580] ss:$24 sps:$4 sm:$0xff]  }
 0x5ce   : > { %9067 = vmatpush1.bf16.msra.mxu1 %v28302_v41  ;;  %v28370_v41 = vld [vmem:[%s38719_s3 + $0x1dac] ss:$24 sps:$4 sm:$0xff]  }
 0x5cf   : > { %13778 = vmatpush1.bf16.msra.mxu0 %v28305_v42  ;;  %9068 = vmatprep.subr.bf16.mxu1 %v28310_v27  ;;  %v28373_v42 = vld [vmem:[%s38719_s3 + $0x35b4] ss:$24 sps:$4 sm:$0xff]   ;;  %v28368_v27 = vld [vmem:[%s38719_s3 + $0x1da8] ss:$24 sps:$4 sm:$0xff]  }
 0x5d0   : > { %13779 = vmatprep.subr.bf16.mxu0 %v28313_v2  ;;  %v28371_v2 = vld [vmem:[%s38719_s3 + $0x35b0] ss:$24 sps:$4 sm:$0xff]  }
 0x5d2   : > { %9069 = vmatpush1.bf16.msra.mxu1 %v28308_v26  ;;  %v28376_v26 = vld [vmem:[%s38719_s3 + $0x1ddc] ss:$24 sps:$4 sm:$0xff]  }
 0x5d3   : > { %13780 = vmatpush1.bf16.msra.mxu0 %v28311_v3  ;;  %9070 = vmatprep.subr.bf16.mxu1 %v28316_v4  ;;  %v28379_v3 = vld [vmem:[%s38719_s3 + $0x35e4] ss:$24 sps:$4 sm:$0xff]   ;;  %v28374_v4 = vld [vmem:[%s38719_s3 + $0x1dd8] ss:$24 sps:$4 sm:$0xff]  }
 0x5d4   : > { %13781 = vmatprep.subr.bf16.mxu0 %v28319_v5  ;;  %v34954_v10 = vpop.f32.mrb[0].mxu1  ;;  %v28377_v5 = vld [vmem:[%s38719_s3 + $0x35e0] ss:$24 sps:$4 sm:$0xff]  }
 0x5d5   : > { %v34956_v11 = vpop.f32.mrb[1].mxu1 }
 0x5d6   : > { %v34958_v12 = vpop.f32.mrb[2].mxu1  ;;  %9071 = vmatpush1.bf16.msra.mxu1 %v28314_v39  ;;  %v28382_v39 = vld [vmem:[%s38719_s3 + $0x1e0c] ss:$24 sps:$4 sm:$0xff]  }
 0x5d7   : > { %13782 = vmatpush1.bf16.msra.mxu0 %v28317_v7  ;;  %v34966_v15 = vpop.f32.mrb[3].mxu1  ;;  %9072 = vmatprep.subr.bf16.mxu1 %v28322_v8  ;;  %v28385_v7 = vld [vmem:[%s38719_s3 + $0x3604] ss:$24 sps:$4 sm:$0xff]   ;;  %v28380_v8 = vld [vmem:[%s38719_s3 + $0x1e08] ss:$24 sps:$4 sm:$0xff]  }
 0x5d8   : > { %13783 = vmatprep.subr.bf16.mxu0 %v28325_v9  ;;  %v28383_v9 = vld [vmem:[%s38719_s3 + $0x3600] ss:$24 sps:$4 sm:$0xff]  }
 0x5da   : > { %9073 = vmatpush1.bf16.msra.mxu1 %v28320_v13  ;;  %v28388_v13 = vld [vmem:[%s38719_s3 + $0x1e3c] ss:$24 sps:$4 sm:$0xff]  }
 0x5db   : > { %13784 = vmatpush1.bf16.msra.mxu0 %v28323_v14  ;;  %9074 = vmatprep.subr.bf16.mxu1 %v28328_v18  ;;  %v28391_v14 = vld [vmem:[%s38719_s3 + $0x3634] ss:$24 sps:$4 sm:$0xff]  }
 0x5dc   : > { %13785 = vmatprep.subr.bf16.mxu0 %v28331_v19  ;;  %v35095_v18 = vld [vmem:[%s34888_s22 + $0x4] ss:$48 sps:$4 sm:$0xff]   ;;  %v30088_v19 = vld [vmem:[%s31193_s13] ss:$48 sps:$4 sm:$0xff]  }
 0x5de   : > { %9075 = vmatpush1.bf16.msra.mxu1 %v28326_v24  ;;  %v28386_v24 = vld [vmem:[%s38719_s3 + $0x1e38] ss:$24 sps:$4 sm:$0xff]  }
 0x5df   : > { %13786 = vmatpush1.bf16.msra.mxu0 %v28329_v54  ;;  %9076 = vmatprep.subr.bf16.mxu1 %v28334_v30  ;;  %v28389_v54 = vld [vmem:[%s38719_s3 + $0x3630] ss:$24 sps:$4 sm:$0xff]   ;;  %v28394_v30 = vld [vmem:[%s38719_s3 + $0x1e6c] ss:$24 sps:$4 sm:$0xff]  }
 0x5e0   : > { %13787 = vmatprep.subr.bf16.mxu0 %v28337_v34  ;;  %v28397_v34 = vld [vmem:[%s38719_s3 + $0x3664] ss:$24 sps:$4 sm:$0xff]  }
 0x5e2   : > { %9077 = vmatpush1.bf16.msra.mxu1 %v28332_v40  ;;  %v30089_v40 = vld [vmem:[%s31193_s13 + $0xc] ss:$48 sps:$4 sm:$0xff]  }
 0x5e3   : > { %13788 = vmatpush1.bf16.msra.mxu0 %v28335_v36  ;;  %9078 = vmatprep.subr.bf16.mxu1 %v28340_v47  ;;  %v28392_v36 = vld [vmem:[%s38719_s3 + $0x1e68] ss:$24 sps:$4 sm:$0xff]  }
 0x5e4   : > { %13789 = vmatprep.subr.bf16.mxu0 %v28343_v43  ;;  %v28395_v47 = vld [vmem:[%s38719_s3 + $0x3660] ss:$24 sps:$4 sm:$0xff]   ;;  %v28400_v43 = vld [vmem:[%s38719_s3 + $0x1e9c] ss:$24 sps:$4 sm:$0xff]  }
 0x5e6   : > { %9079 = vmatpush1.bf16.msra.mxu1 %v28338_v62  ;;  %v28403_v62 = vld [vmem:[%s38719_s3 + $0x3694] ss:$24 sps:$4 sm:$0xff]  }
 0x5e7   : > { %13790 = vmatpush1.bf16.msra.mxu0 %v28341_v31  ;;  %9080 = vmatprep.subr.bf16.mxu1 %v28346_v55  ;;  %v28398_v31 = vld [vmem:[%s38719_s3 + $0x1e98] ss:$24 sps:$4 sm:$0xff]  }
 0x5e8   : > { %13791 = vmatprep.subr.bf16.mxu0 %v28349_v56  ;;  %v28401_v55 = vld [vmem:[%s38719_s3 + $0x3690] ss:$24 sps:$4 sm:$0xff]   ;;  %v28406_v56 = vld [vmem:[%s38719_s3 + $0x1ecc] ss:$24 sps:$4 sm:$0xff]  }
 0x5ea   : > { %9081 = vmatpush1.bf16.msra.mxu1 %v28344_v32  ;;  %v28409_v32 = vld [vmem:[%s38719_s3 + $0x36c4] ss:$24 sps:$4 sm:$0xff]  }
 0x5eb   : > { %13792 = vmatpush1.bf16.msra.mxu0 %v28347_v33  ;;  %9082 = vmatprep.subr.bf16.mxu1 %v28352_v45  ;;  %v28404_v33 = vld [vmem:[%s38719_s3 + $0x1ec8] ss:$24 sps:$4 sm:$0xff]  }
 0x5ec   : > { %13793 = vmatprep.subr.bf16.mxu0 %v28355_v46  ;;  %v28407_v45 = vld [vmem:[%s38719_s3 + $0x36c0] ss:$24 sps:$4 sm:$0xff]   ;;  %v28412_v46 = vld [vmem:[%s38719_s3 + $0x1efc] ss:$24 sps:$4 sm:$0xff]  }
 0x5ee   : > { %9083 = vmatpush1.bf16.msra.mxu1 %v28350_v49  ;;  %v28415_v49 = vld [vmem:[%s38719_s3 + $0x36f4] ss:$24 sps:$4 sm:$0xff]  }
 0x5ef   : > { %13794 = vmatpush1.bf16.msra.mxu0 %v28353_v35  ;;  %9084 = vmatprep.subr.bf16.mxu1 %v28358_v57  ;;  %v28410_v35 = vld [vmem:[%s38719_s3 + $0x1ef8] ss:$24 sps:$4 sm:$0xff]  }
 0x5f0   : > { %13795 = vmatprep.subr.bf16.mxu0 %v28361_v58  ;;  %v28413_v57 = vld [vmem:[%s38719_s3 + $0x36f0] ss:$24 sps:$4 sm:$0xff]   ;;  %v28418_v58 = vld [vmem:[%s38719_s3 + $0x1f2c] ss:$24 sps:$4 sm:$0xff]  }
 0x5f2   : > { %9085 = vmatpush1.bf16.msra.mxu1 %v28356_v6  ;;  %v28421_v6 = vld [vmem:[%s38719_s3 + $0x3724] ss:$24 sps:$4 sm:$0xff]  }
 0x5f3   : > { %13796 = vmatpush1.bf16.msra.mxu0 %v28359_v0  ;;  %9086 = vmatprep.subr.bf16.mxu1 %v28364_v16  ;;  %v28416_v0 = vld [vmem:[%s38719_s3 + $0x1f28] ss:$24 sps:$4 sm:$0xff]  }
 0x5f4   : > { %13797 = vmatprep.subr.bf16.mxu0 %v28367_v38  ;;  %v28419_v16 = vld [vmem:[%s38719_s3 + $0x3720] ss:$24 sps:$4 sm:$0xff]   ;;  %v28424_v38 = vld [vmem:[%s38719_s3 + $0x1f5c] ss:$24 sps:$4 sm:$0xff]  }
 0x5f6   : > { %9087 = vmatpush1.bf16.msra.mxu1 %v28362_v22  ;;  %v28427_v22 = vld [vmem:[%s38719_s3 + $0x3754] ss:$24 sps:$4 sm:$0xff]  }
 0x5f7   : > { %13798 = vmatpush1.bf16.msra.mxu0 %v28365_v1  ;;  %9088 = vmatprep.subr.bf16.mxu1 %v28370_v41  ;;  %v28422_v1 = vld [vmem:[%s38719_s3 + $0x1f58] ss:$24 sps:$4 sm:$0xff]  }
 0x5f8   : > { %13799 = vmatprep.subr.bf16.mxu0 %v28373_v42  ;;  %v28425_v41 = vld [vmem:[%s38719_s3 + $0x3750] ss:$24 sps:$4 sm:$0xff]   ;;  %v28430_v42 = vld [vmem:[%s38719_s3 + $0x1f8c] ss:$24 sps:$4 sm:$0xff]  }
 0x5fa   : > { %9089 = vmatpush1.bf16.msra.mxu1 %v28368_v27  ;;  %v28433_v27 = vld [vmem:[%s38719_s3 + $0x3784] ss:$24 sps:$4 sm:$0xff]  }
 0x5fb   : > { %13800 = vmatpush1.bf16.msra.mxu0 %v28371_v2  ;;  %9090 = vmatprep.subr.bf16.mxu1 %v28376_v26  ;;  %v28428_v2 = vld [vmem:[%s38719_s3 + $0x1f88] ss:$24 sps:$4 sm:$0xff]  }
 0x5fc   : > { %13801 = vmatprep.subr.bf16.mxu0 %v28379_v3  ;;  %v28431_v26 = vld [vmem:[%s38719_s3 + $0x3780] ss:$24 sps:$4 sm:$0xff]   ;;  %v28436_v3 = vld [vmem:[%s38719_s3 + $0x1fbc] ss:$24 sps:$4 sm:$0xff]  }
 0x5fe   : > { %9091 = vmatpush1.bf16.msra.mxu1 %v28374_v4  ;;  %v28439_v4 = vld [vmem:[%s38719_s3 + $0x37b4] ss:$24 sps:$4 sm:$0xff]  }
 0x5ff   : > { %13802 = vmatpush1.bf16.msra.mxu0 %v28377_v5  ;;  %9103 = vmatprep.subr.bf16.mxu1 %v28382_v39  ;;  %v28434_v5 = vld [vmem:[%s38719_s3 + $0x1fb8] ss:$24 sps:$4 sm:$0xff]  }
 0x600   : > { %15615 = vmatprep.subr.bf16.mxu0 %v28385_v7  ;;  %v28437_v39 = vld [vmem:[%s38719_s3 + $0x37b0] ss:$24 sps:$4 sm:$0xff]   ;;  %v28442_v7 = vld [vmem:[%s38719_s3 + $0x1fec] ss:$24 sps:$4 sm:$0xff]  }
 0x601   : > { %9093 = vmatmul.mubr.bf16.vlgmr.msra.gmra.mrb[4].mxu1 %v30088_v19  ;;  %v28451_v19 = vld [vmem:[%s38719_s3 + $0x3814] ss:$24 sps:$4 sm:$0xff]  }
 0x602   : > { %13804 = vmatmul.mubr.bf16.vlgmr.msra.gmra.mrb[4].mxu0 %v34473_v17  ;;  %9104 = vmatpush1.bf16.msra.mxu1 %v28380_v8  ;;  %v28445_v8 = vld [vmem:[%s38719_s3 + $0x37e4] ss:$24 sps:$4 sm:$0xff]  }
 0x603   : > { %15616 = vmatpush1.bf16.msra.mxu0 %v28383_v9  ;;  %9105 = vmatprep.subr.bf16.mxu1 %v28388_v13  ;;  %v28440_v9 = vld [vmem:[%s38719_s3 + $0x1fe8] ss:$24 sps:$4 sm:$0xff]  }
 0x604   : > { %15617 = vmatprep.subr.bf16.mxu0 %v28391_v14  ;;  %9135 = vmatprep.mubr.bf16.mxu1 %v30089_v40  ;;  %v28443_v13 = vld [vmem:[%s38719_s3 + $0x37e0] ss:$24 sps:$4 sm:$0xff]   ;;  %v28448_v14 = vld [vmem:[%s38719_s3 + $0x201c] ss:$24 sps:$4 sm:$0xff]  }
 0x605   : > { %15647 = vmatprep.mubr.bf16.mxu0 %v35095_v18  ;;  %v28452_v40 = vld [vmem:[%s38719_s3 + $0x2048] ss:$24 sps:$4 sm:$0xff]  }
 0x606   : > { %9106 = vmatpush1.bf16.msra.mxu1 %v28386_v24  ;;  %v28446_v24 = vld [vmem:[%s38719_s3 + $0x2018] ss:$24 sps:$4 sm:$0xff]  }
 0x607   : > { %15618 = vmatpush1.bf16.msra.mxu0 %v28389_v54  ;;  %9107 = vmatprep.subr.bf16.mxu1 %v28394_v30  ;;  %v28449_v54 = vld [vmem:[%s38719_s3 + $0x3810] ss:$24 sps:$4 sm:$0xff]   ;;  %v28454_v30 = vld [vmem:[%s38719_s3 + $0x204c] ss:$24 sps:$4 sm:$0xff]  }
 0x608   : > { %15619 = vmatprep.subr.bf16.mxu0 %v28397_v34  ;;  %v28457_v34 = vld [vmem:[%s38719_s3 + $0x3844] ss:$24 sps:$4 sm:$0xff]  }
 0x60a   : > { %9108 = vmatpush1.bf16.msra.mxu1 %v28392_v36  ;;  %v28455_v36 = vld [vmem:[%s38719_s3 + $0x3840] ss:$24 sps:$4 sm:$0xff]  }
 0x60b   : > { %15620 = vmatpush1.bf16.msra.mxu0 %v28395_v47  ;;  %9109 = vmatprep.subr.bf16.mxu1 %v28400_v43  ;;  %v28460_v47 = vld [vmem:[%s38719_s3 + $0x207c] ss:$24 sps:$4 sm:$0xff]  }
 0x60c   : > { %15621 = vmatprep.subr.bf16.mxu0 %v28403_v62  ;;  %v28463_v43 = vld [vmem:[%s38719_s3 + $0x3874] ss:$24 sps:$4 sm:$0xff]   ;;  %v28458_v62 = vld [vmem:[%s38719_s3 + $0x2078] ss:$24 sps:$4 sm:$0xff]  }
 0x60e   : > { %9110 = vmatpush1.bf16.msra.mxu1 %v28398_v31  ;;  %v28461_v31 = vld [vmem:[%s38719_s3 + $0x3870] ss:$24 sps:$4 sm:$0xff]  }
 0x60f   : > { %15622 = vmatpush1.bf16.msra.mxu0 %v28401_v55  ;;  %9111 = vmatprep.subr.bf16.mxu1 %v28406_v56  ;;  %v28466_v55 = vld [vmem:[%s38719_s3 + $0x20ac] ss:$24 sps:$4 sm:$0xff]  }
 0x610   : > { %15623 = vmatprep.subr.bf16.mxu0 %v28409_v32  ;;  %v28469_v56 = vld [vmem:[%s38719_s3 + $0x38a4] ss:$24 sps:$4 sm:$0xff]   ;;  %v28464_v32 = vld [vmem:[%s38719_s3 + $0x20a8] ss:$24 sps:$4 sm:$0xff]  }
 0x612   : > { %9112 = vmatpush1.bf16.msra.mxu1 %v28404_v33  ;;  %v28467_v33 = vld [vmem:[%s38719_s3 + $0x38a0] ss:$24 sps:$4 sm:$0xff]  }
 0x613   : > { %15624 = vmatpush1.bf16.msra.mxu0 %v28407_v45  ;;  %9113 = vmatprep.subr.bf16.mxu1 %v28412_v46  ;;  %v28472_v45 = vld [vmem:[%s38719_s3 + $0x20dc] ss:$24 sps:$4 sm:$0xff]  }
 0x614   : > { %15625 = vmatprep.subr.bf16.mxu0 %v28415_v49  ;;  %v28475_v46 = vld [vmem:[%s38719_s3 + $0x38d4] ss:$24 sps:$4 sm:$0xff]   ;;  %v28470_v49 = vld [vmem:[%s38719_s3 + $0x20d8] ss:$24 sps:$4 sm:$0xff]  }
 0x616   : > { %9114 = vmatpush1.bf16.msra.mxu1 %v28410_v35  ;;  %v28473_v35 = vld [vmem:[%s38719_s3 + $0x38d0] ss:$24 sps:$4 sm:$0xff]  }
 0x617   : > { %15626 = vmatpush1.bf16.msra.mxu0 %v28413_v57  ;;  %9115 = vmatprep.subr.bf16.mxu1 %v28418_v58  ;;  %v28478_v57 = vld [vmem:[%s38719_s3 + $0x210c] ss:$24 sps:$4 sm:$0xff]  }
 0x618   : > { %15627 = vmatprep.subr.bf16.mxu0 %v28421_v6  ;;  %v28484_v58 = vld [vmem:[%s38719_s3 + $0x3904] ss:$24 sps:$4 sm:$0xff]  }
 0x619   : > { %v35282_v6 = vld [vmem:[%s34888_s22] ss:$48 sps:$4 sm:$0xff]  }
 0x61a   : > { %9116 = vmatpush1.bf16.msra.mxu1 %v28416_v0  ;;  %v28476_v0 = vld [vmem:[%s38719_s3 + $0x2108] ss:$24 sps:$4 sm:$0xff]  }
 0x61b   : > { %15628 = vmatpush1.bf16.msra.mxu0 %v28419_v16  ;;  %9117 = vmatprep.subr.bf16.mxu1 %v28424_v38  ;;  %v28482_v16 = vld [vmem:[%s38719_s3 + $0x3900] ss:$24 sps:$4 sm:$0xff]   ;;  %v28487_v38 = vld [vmem:[%s38719_s3 + $0x213c] ss:$24 sps:$4 sm:$0xff]  }
 0x61c   : > { %15629 = vmatprep.subr.bf16.mxu0 %v28427_v22  ;;  %v28490_v22 = vld [vmem:[%s38719_s3 + $0x3934] ss:$24 sps:$4 sm:$0xff]  }
 0x61e   : > { %9118 = vmatpush1.bf16.msra.mxu1 %v28422_v1  ;;  %v35297_v1 = vld [vmem:[%s34888_s22 + $0xc] ss:$48 sps:$4 sm:$0xff]  }
 0x61f   : > { %15630 = vmatpush1.bf16.msra.mxu0 %v28425_v41  ;;  %9119 = vmatprep.subr.bf16.mxu1 %v28430_v42  ;;  %v30090_v41 = vld [vmem:[%s31193_s13 + $0x8] ss:$48 sps:$4 sm:$0xff]  }
 0x620   : > { %15631 = vmatprep.subr.bf16.mxu0 %v28433_v27  ;;  %v28485_v42 = vld [vmem:[%s38719_s3 + $0x2138] ss:$24 sps:$4 sm:$0xff]  }
 0x621   : > { %v28488_v27 = vld [vmem:[%s38719_s3 + $0x3930] ss:$24 sps:$4 sm:$0xff]  }
 0x622   : > { %9120 = vmatpush1.bf16.msra.mxu1 %v28428_v2  ;;  %v28493_v2 = vld [vmem:[%s38719_s3 + $0x216c] ss:$24 sps:$4 sm:$0xff]  }
 0x623   : > { %15632 = vmatpush1.bf16.msra.mxu0 %v28431_v26  ;;  %9121 = vmatprep.subr.bf16.mxu1 %v28436_v3  ;;  %v28496_v26 = vld [vmem:[%s38719_s3 + $0x3964] ss:$24 sps:$4 sm:$0xff]  }
 0x624   : > { %15633 = vmatprep.subr.bf16.mxu0 %v28439_v4  ;;  %v30091_v3 = vld [vmem:[%s31193_s13 + $0x14] ss:$48 sps:$4 sm:$0xff]  }
 0x625   : > { %v28491_v4 = vld [vmem:[%s38719_s3 + $0x2168] ss:$24 sps:$4 sm:$0xff]  }
 0x626   : > { %9122 = vmatpush1.bf16.msra.mxu1 %v28434_v5  ;;  %v28494_v5 = vld [vmem:[%s38719_s3 + $0x3960] ss:$24 sps:$4 sm:$0xff]  }
 0x627   : > { %15634 = vmatpush1.bf16.msra.mxu0 %v28437_v39  ;;  %9123 = vmatprep.subr.bf16.mxu1 %v28442_v7  ;;  %v28499_v39 = vld [vmem:[%s38719_s3 + $0x219c] ss:$24 sps:$4 sm:$0xff]  }
 0x628   : > { %15635 = vmatprep.subr.bf16.mxu0 %v28445_v8  ;;  %v28502_v7 = vld [vmem:[%s38719_s3 + $0x3994] ss:$24 sps:$4 sm:$0xff]   ;;  %v28497_v8 = vld [vmem:[%s38719_s3 + $0x2198] ss:$24 sps:$4 sm:$0xff]  }
 0x62a   : > { %9124 = vmatpush1.bf16.msra.mxu1 %v28440_v9  ;;  %v28500_v9 = vld [vmem:[%s38719_s3 + $0x3990] ss:$24 sps:$4 sm:$0xff]  }
 0x62b   : > { %15636 = vmatpush1.bf16.msra.mxu0 %v28443_v13  ;;  %9125 = vmatprep.subr.bf16.mxu1 %v28448_v14  ;;  %v28505_v13 = vld [vmem:[%s38719_s3 + $0x21cc] ss:$24 sps:$4 sm:$0xff]  }
 0x62c   : > { %15637 = vmatprep.subr.bf16.mxu0 %v28451_v19  ;;  %v28508_v14 = vld [vmem:[%s38719_s3 + $0x39c4] ss:$24 sps:$4 sm:$0xff]   ;;  %v28503_v19 = vld [vmem:[%s38719_s3 + $0x21c8] ss:$24 sps:$4 sm:$0xff]  }
 0x62e   : > { %9126 = vmatpush1.bf16.msra.mxu1 %v28446_v24  ;;  %v28506_v24 = vld [vmem:[%s38719_s3 + $0x39c0] ss:$24 sps:$4 sm:$0xff]  }
 0x62f   : > { %15638 = vmatpush1.bf16.msra.mxu0 %v28449_v54  ;;  %9127 = vmatprep.subr.bf16.mxu1 %v28454_v30  ;;  %v28511_v54 = vld [vmem:[%s38719_s3 + $0x21fc] ss:$24 sps:$4 sm:$0xff]  }
 0x630   : > { %15639 = vmatprep.subr.bf16.mxu0 %v28457_v34  ;;  %v28514_v30 = vld [vmem:[%s38719_s3 + $0x39f4] ss:$24 sps:$4 sm:$0xff]   ;;  %v28509_v34 = vld [vmem:[%s38719_s3 + $0x21f8] ss:$24 sps:$4 sm:$0xff]  }
 0x632   : > { %9128 = vmatpush1.bf16.msra.mxu1 %v28452_v40  ;;  %v28512_v40 = vld [vmem:[%s38719_s3 + $0x39f0] ss:$24 sps:$4 sm:$0xff]  }
 0x633   : > { %15640 = vmatpush1.bf16.msra.mxu0 %v28455_v36  ;;  %9129 = vmatprep.subr.bf16.mxu1 %v28460_v47  ;;  %v28517_v36 = vld [vmem:[%s38719_s3 + $0x222c] ss:$24 sps:$4 sm:$0xff]  }
 0x634   : > { %15641 = vmatprep.subr.bf16.mxu0 %v28463_v43  ;;  %v28520_v47 = vld [vmem:[%s38719_s3 + $0x3a24] ss:$24 sps:$4 sm:$0xff]   ;;  %v28515_v43 = vld [vmem:[%s38719_s3 + $0x2228] ss:$24 sps:$4 sm:$0xff]  }
 0x636   : > { %9130 = vmatpush1.bf16.msra.mxu1 %v28458_v62  ;;  %v28518_v62 = vld [vmem:[%s38719_s3 + $0x3a20] ss:$24 sps:$4 sm:$0xff]  }
 0x637   : > { %15642 = vmatpush1.bf16.msra.mxu0 %v28461_v31  ;;  %9131 = vmatprep.subr.bf16.mxu1 %v28466_v55  ;;  %v28523_v31 = vld [vmem:[%s38719_s3 + $0x225c] ss:$24 sps:$4 sm:$0xff]  }
 0x638   : > { %15643 = vmatprep.subr.bf16.mxu0 %v28469_v56  ;;  %v28526_v55 = vld [vmem:[%s38719_s3 + $0x3a54] ss:$24 sps:$4 sm:$0xff]   ;;  %v28521_v56 = vld [vmem:[%s38719_s3 + $0x2258] ss:$24 sps:$4 sm:$0xff]  }
 0x63a   : > { %9132 = vmatpush1.bf16.msra.mxu1 %v28464_v32  ;;  %v28524_v32 = vld [vmem:[%s38719_s3 + $0x3a50] ss:$24 sps:$4 sm:$0xff]  }
 0x63b   : > { %15644 = vmatpush1.bf16.msra.mxu0 %v28467_v33  ;;  %9133 = vmatprep.subr.bf16.mxu1 %v28472_v45  ;;  %v28529_v33 = vld [vmem:[%s38719_s3 + $0x228c] ss:$24 sps:$4 sm:$0xff]  }
 0x63c   : > { %15645 = vmatprep.subr.bf16.mxu0 %v28475_v46  ;;  %v28532_v45 = vld [vmem:[%s38719_s3 + $0x3a84] ss:$24 sps:$4 sm:$0xff]   ;;  %v28527_v46 = vld [vmem:[%s38719_s3 + $0x2288] ss:$24 sps:$4 sm:$0xff]  }
 0x63e   : > { %9134 = vmatpush1.bf16.msra.mxu1 %v28470_v49  ;;  %v28530_v49 = vld [vmem:[%s38719_s3 + $0x3a80] ss:$24 sps:$4 sm:$0xff]  }
 0x63f   : > { %15646 = vmatpush1.bf16.msra.mxu0 %v28473_v35  ;;  %9146 = vmatprep.subr.bf16.mxu1 %v28478_v57  ;;  %v28535_v35 = vld [vmem:[%s38719_s3 + $0x22bc] ss:$24 sps:$4 sm:$0xff]  }
 0x640   : > { %15658 = vmatprep.subr.bf16.mxu0 %v28484_v58  ;;  %v28538_v57 = vld [vmem:[%s38719_s3 + $0x3ab4] ss:$24 sps:$4 sm:$0xff]   ;;  %v28533_v58 = vld [vmem:[%s38719_s3 + $0x22b8] ss:$24 sps:$4 sm:$0xff]  }
 0x641   : > { %9136 = vmatmul.mubr.bf16.vlgmr.msra.gmra.mrb[4].mxu1 %v30090_v41  ;;  %v28542_v41 = vld [vmem:[%s38719_s3 + $0x3ae0] ss:$24 sps:$4 sm:$0xff]  }
 0x642   : > { %15648 = vmatmul.mubr.bf16.vlgmr.msra.gmra.mrb[0].mxu0 %v35282_v6  ;;  %9147 = vmatpush1.bf16.msra.mxu1 %v28476_v0  ;;  %v28536_v0 = vld [vmem:[%s38719_s3 + $0x3ab0] ss:$24 sps:$4 sm:$0xff]  }
 0x643   : > { %15659 = vmatpush1.bf16.msra.mxu0 %v28482_v16  ;;  %9148 = vmatprep.subr.bf16.mxu1 %v28487_v38  ;;  %v28541_v16 = vld [vmem:[%s38719_s3 + $0x22ec] ss:$24 sps:$4 sm:$0xff]  }
 0x644   : > { %15660 = vmatprep.subr.bf16.mxu0 %v28490_v22  ;;  %9178 = vmatprep.mubr.bf16.mxu1 %v30091_v3  ;;  %v28544_v38 = vld [vmem:[%s38719_s3 + $0x3ae4] ss:$24 sps:$4 sm:$0xff]   ;;  %v28539_v22 = vld [vmem:[%s38719_s3 + $0x22e8] ss:$24 sps:$4 sm:$0xff]  }
 0x645   : > { %15690 = vmatprep.mubr.bf16.mxu0 %v35297_v1  ;;  %v28553_v3 = vld [vmem:[%s38719_s3 + $0x234c] ss:$24 sps:$4 sm:$0xff]  }
 0x646   : > { %9149 = vmatpush1.bf16.msra.mxu1 %v28485_v42  ;;  %v28547_v42 = vld [vmem:[%s38719_s3 + $0x231c] ss:$24 sps:$4 sm:$0xff]  }
 0x647   : > { %15661 = vmatpush1.bf16.msra.mxu0 %v28488_v27  ;;  %9150 = vmatprep.subr.bf16.mxu1 %v28493_v2  ;;  %v28550_v27 = vld [vmem:[%s38719_s3 + $0x3b14] ss:$24 sps:$4 sm:$0xff]   ;;  %v28545_v2 = vld [vmem:[%s38719_s3 + $0x2318] ss:$24 sps:$4 sm:$0xff]  }
 0x648   : > { %15662 = vmatprep.subr.bf16.mxu0 %v28496_v26  ;;  %v28548_v26 = vld [vmem:[%s38719_s3 + $0x3b10] ss:$24 sps:$4 sm:$0xff]  }
 0x64a   : > { %9151 = vmatpush1.bf16.msra.mxu1 %v28491_v4  ;;  %v28556_v4 = vld [vmem:[%s38719_s3 + $0x3b44] ss:$24 sps:$4 sm:$0xff]  }
 0x64b   : > { %15663 = vmatpush1.bf16.msra.mxu0 %v28494_v5  ;;  %9152 = vmatprep.subr.bf16.mxu1 %v28499_v39  ;;  %v28551_v5 = vld [vmem:[%s38719_s3 + $0x2348] ss:$24 sps:$4 sm:$0xff]  }
 0x64c   : > { %15664 = vmatprep.subr.bf16.mxu0 %v28502_v7  ;;  %v28554_v39 = vld [vmem:[%s38719_s3 + $0x3b40] ss:$24 sps:$4 sm:$0xff]   ;;  %v28559_v7 = vld [vmem:[%s38719_s3 + $0x237c] ss:$24 sps:$4 sm:$0xff]  }
 0x64e   : > { %9153 = vmatpush1.bf16.msra.mxu1 %v28497_v8  ;;  %v28562_v8 = vld [vmem:[%s38719_s3 + $0x3b74] ss:$24 sps:$4 sm:$0xff]  }
 0x64f   : > { %15665 = vmatpush1.bf16.msra.mxu0 %v28500_v9  ;;  %9154 = vmatprep.subr.bf16.mxu1 %v28505_v13  ;;  %v28557_v9 = vld [vmem:[%s38719_s3 + $0x2378] ss:$24 sps:$4 sm:$0xff]  }
 0x650   : > { %15666 = vmatprep.subr.bf16.mxu0 %v28508_v14  ;;  %v28560_v13 = vld [vmem:[%s38719_s3 + $0x3b70] ss:$24 sps:$4 sm:$0xff]   ;;  %v28565_v14 = vld [vmem:[%s38719_s3 + $0x23ac] ss:$24 sps:$4 sm:$0xff]  }
 0x652   : > { %9155 = vmatpush1.bf16.msra.mxu1 %v28503_v19  ;;  %v28568_v19 = vld [vmem:[%s38719_s3 + $0x3ba4] ss:$24 sps:$4 sm:$0xff]  }
 0x653   : > { %15667 = vmatpush1.bf16.msra.mxu0 %v28506_v24  ;;  %9156 = vmatprep.subr.bf16.mxu1 %v28511_v54  ;;  %v28563_v24 = vld [vmem:[%s38719_s3 + $0x23a8] ss:$24 sps:$4 sm:$0xff]  }
 0x654   : > { %15668 = vmatprep.subr.bf16.mxu0 %v28514_v30  ;;  %v28566_v54 = vld [vmem:[%s38719_s3 + $0x3ba0] ss:$24 sps:$4 sm:$0xff]   ;;  %v28571_v30 = vld [vmem:[%s38719_s3 + $0x23dc] ss:$24 sps:$4 sm:$0xff]  }
 0x656   : > { %9157 = vmatpush1.bf16.msra.mxu1 %v28509_v34  ;;  %v28574_v34 = vld [vmem:[%s38719_s3 + $0x3bd4] ss:$24 sps:$4 sm:$0xff]  }
 0x657   : > { %15669 = vmatpush1.bf16.msra.mxu0 %v28512_v40  ;;  %9158 = vmatprep.subr.bf16.mxu1 %v28517_v36  ;;  %v28569_v40 = vld [vmem:[%s38719_s3 + $0x23d8] ss:$24 sps:$4 sm:$0xff]  }
 0x658   : > { %15670 = vmatprep.subr.bf16.mxu0 %v28520_v47  ;;  %v28572_v36 = vld [vmem:[%s38719_s3 + $0x3bd0] ss:$24 sps:$4 sm:$0xff]   ;;  %v28577_v47 = vld [vmem:[%s38719_s3 + $0x240c] ss:$24 sps:$4 sm:$0xff]  }
 0x65a   : > { %9159 = vmatpush1.bf16.msra.mxu1 %v28515_v43  ;;  %v28583_v43 = vld [vmem:[%s38719_s3 + $0x3c04] ss:$24 sps:$4 sm:$0xff]  }
 0x65b   : > { %15671 = vmatpush1.bf16.msra.mxu0 %v28518_v62  ;;  %9160 = vmatprep.subr.bf16.mxu1 %v28523_v31  ;;  %v35484_v62 = vld [vmem:[%s34888_s22 + $0x8] ss:$48 sps:$4 sm:$0xff]  }
 0x65c   : > { %15672 = vmatprep.subr.bf16.mxu0 %v28526_v55  ;;  %v28575_v31 = vld [vmem:[%s38719_s3 + $0x2408] ss:$24 sps:$4 sm:$0xff]  }
 0x65d   : > { %v28581_v55 = vld [vmem:[%s38719_s3 + $0x3c00] ss:$24 sps:$4 sm:$0xff]  }
 0x65e   : > { %9161 = vmatpush1.bf16.msra.mxu1 %v28521_v56  ;;  %v28586_v56 = vld [vmem:[%s38719_s3 + $0x243c] ss:$24 sps:$4 sm:$0xff]  }
 0x65f   : > { %15673 = vmatpush1.bf16.msra.mxu0 %v28524_v32  ;;  %9162 = vmatprep.subr.bf16.mxu1 %v28529_v33  ;;  %v28589_v32 = vld [vmem:[%s38719_s3 + $0x3c34] ss:$24 sps:$4 sm:$0xff]  }
 0x660   : > { %15674 = vmatprep.subr.bf16.mxu0 %v28532_v45  ;;  %v35499_v33 = vld [vmem:[%s34888_s22 + $0x14] ss:$48 sps:$4 sm:$0xff]   ;;  %v30092_v45 = vld [vmem:[%s31193_s13 + $0x10] ss:$48 sps:$4 sm:$0xff]  }
 0x662   : > { %9163 = vmatpush1.bf16.msra.mxu1 %v28527_v46  ;;  %v28584_v46 = vld [vmem:[%s38719_s3 + $0x2438] ss:$24 sps:$4 sm:$0xff]  }
 0x663   : > { %15675 = vmatpush1.bf16.msra.mxu0 %v28530_v49  ;;  %9164 = vmatprep.subr.bf16.mxu1 %v28535_v35  ;;  %v28587_v49 = vld [vmem:[%s38719_s3 + $0x3c30] ss:$24 sps:$4 sm:$0xff]   ;;  %v28592_v35 = vld [vmem:[%s38719_s3 + $0x246c] ss:$24 sps:$4 sm:$0xff]  }
 0x664   : > { %15676 = vmatprep.subr.bf16.mxu0 %v28538_v57  ;;  %v28595_v57 = vld [vmem:[%s38719_s3 + $0x3c64] ss:$24 sps:$4 sm:$0xff]  }
 0x666   : > { %9165 = vmatpush1.bf16.msra.mxu1 %v28533_v58  ;;  %v28590_v58 = vld [vmem:[%s38719_s3 + $0x2468] ss:$24 sps:$4 sm:$0xff]  }
 0x667   : > { %15677 = vmatpush1.bf16.msra.mxu0 %v28536_v0  ;;  %9166 = vmatprep.subr.bf16.mxu1 %v28541_v16  ;;  %v28593_v0 = vld [vmem:[%s38719_s3 + $0x3c60] ss:$24 sps:$4 sm:$0xff]   ;;  %v28598_v16 = vld [vmem:[%s38719_s3 + $0x249c] ss:$24 sps:$4 sm:$0xff]  }
 0x668   : > { %15678 = vmatprep.subr.bf16.mxu0 %v28544_v38  ;;  %v28596_v38 = vld [vmem:[%s38719_s3 + $0x2498] ss:$24 sps:$4 sm:$0xff]  }
 0x66a   : > { %9167 = vmatpush1.bf16.msra.mxu1 %v28539_v22  ;;  %v28599_v22 = vld [vmem:[%s38719_s3 + $0x3c90] ss:$24 sps:$4 sm:$0xff]  }
 0x66b   : > { %15679 = vmatpush1.bf16.msra.mxu0 %v28542_v41  ;;  %9168 = vmatprep.subr.bf16.mxu1 %v28547_v42  ;;  %v28604_v41 = vld [vmem:[%s38719_s3 + $0x24cc] ss:$24 sps:$4 sm:$0xff]  }
 0x66c   : > { %15680 = vmatprep.subr.bf16.mxu0 %v28550_v27  ;;  %v28607_v42 = vld [vmem:[%s38719_s3 + $0x3cc4] ss:$24 sps:$4 sm:$0xff]   ;;  %v28602_v27 = vld [vmem:[%s38719_s3 + $0x24c8] ss:$24 sps:$4 sm:$0xff]  }
 0x66e   : > { %9169 = vmatpush1.bf16.msra.mxu1 %v28545_v2  ;;  %v28605_v2 = vld [vmem:[%s38719_s3 + $0x3cc0] ss:$24 sps:$4 sm:$0xff]  }
 0x66f   : > { %15681 = vmatpush1.bf16.msra.mxu0 %v28548_v26  ;;  %9170 = vmatprep.subr.bf16.mxu1 %v28553_v3  ;;  %v28610_v26 = vld [vmem:[%s38719_s3 + $0x24fc] ss:$24 sps:$4 sm:$0xff]  }
 0x670   : > { %15682 = vmatprep.subr.bf16.mxu0 %v28556_v4  ;;  %v28613_v3 = vld [vmem:[%s38719_s3 + $0x3cf4] ss:$24 sps:$4 sm:$0xff]   ;;  %v28608_v4 = vld [vmem:[%s38719_s3 + $0x24f8] ss:$24 sps:$4 sm:$0xff]  }
 0x672   : > { %9171 = vmatpush1.bf16.msra.mxu1 %v28551_v5  ;;  %v28611_v5 = vld [vmem:[%s38719_s3 + $0x3cf0] ss:$24 sps:$4 sm:$0xff]  }
 0x673   : > { %15683 = vmatpush1.bf16.msra.mxu0 %v28554_v39  ;;  %9172 = vmatprep.subr.bf16.mxu1 %v28559_v7  ;;  %v28616_v39 = vld [vmem:[%s38719_s3 + $0x252c] ss:$24 sps:$4 sm:$0xff]  }
 0x674   : > { %15684 = vmatprep.subr.bf16.mxu0 %v28562_v8  ;;  %v28619_v7 = vld [vmem:[%s38719_s3 + $0x3d24] ss:$24 sps:$4 sm:$0xff]   ;;  %v28614_v8 = vld [vmem:[%s38719_s3 + $0x2528] ss:$24 sps:$4 sm:$0xff]  }
 0x676   : > { %9173 = vmatpush1.bf16.msra.mxu1 %v28557_v9  ;;  %v28617_v9 = vld [vmem:[%s38719_s3 + $0x3d20] ss:$24 sps:$4 sm:$0xff]  }
 0x677   : > { %15685 = vmatpush1.bf16.msra.mxu0 %v28560_v13  ;;  %9174 = vmatprep.subr.bf16.mxu1 %v28565_v14  ;;  %v28622_v13 = vld [vmem:[%s38719_s3 + $0x255c] ss:$24 sps:$4 sm:$0xff]  }
 0x678   : > { %15686 = vmatprep.subr.bf16.mxu0 %v28568_v19  ;;  %v28625_v14 = vld [vmem:[%s38719_s3 + $0x3d54] ss:$24 sps:$4 sm:$0xff]   ;;  %v28620_v19 = vld [vmem:[%s38719_s3 + $0x2558] ss:$24 sps:$4 sm:$0xff]  }
 0x67a   : > { %9175 = vmatpush1.bf16.msra.mxu1 %v28563_v24  ;;  %v28623_v24 = vld [vmem:[%s38719_s3 + $0x3d50] ss:$24 sps:$4 sm:$0xff]  }
 0x67b   : > { %15687 = vmatpush1.bf16.msra.mxu0 %v28566_v54  ;;  %9176 = vmatprep.subr.bf16.mxu1 %v28571_v30  ;;  %v28628_v54 = vld [vmem:[%s38719_s3 + $0x258c] ss:$24 sps:$4 sm:$0xff]  }
 0x67c   : > { %15688 = vmatprep.subr.bf16.mxu0 %v28574_v34  ;;  %v28631_v30 = vld [vmem:[%s38719_s3 + $0x3d84] ss:$24 sps:$4 sm:$0xff]   ;;  %v28626_v34 = vld [vmem:[%s38719_s3 + $0x2588] ss:$24 sps:$4 sm:$0xff]  }
 0x67e   : > { %9177 = vmatpush1.bf16.msra.mxu1 %v28569_v40  ;;  %v28629_v40 = vld [vmem:[%s38719_s3 + $0x3d80] ss:$24 sps:$4 sm:$0xff]  }
 0x67f   : > { %15689 = vmatpush1.bf16.msra.mxu0 %v28572_v36  ;;  %11332 = vmatprep.subr.bf16.mxu1 %v28577_v47  ;;  %v28634_v36 = vld [vmem:[%s38719_s3 + $0x25bc] ss:$24 sps:$4 sm:$0xff]  }
 0x680   : > { %15701 = vmatprep.subr.bf16.mxu0 %v28583_v43  ;;  %v28637_v47 = vld [vmem:[%s38719_s3 + $0x3db4] ss:$24 sps:$4 sm:$0xff]   ;;  %v28632_v43 = vld [vmem:[%s38719_s3 + $0x25b8] ss:$24 sps:$4 sm:$0xff]  }
 0x681   : > { %9179 = vmatmul.mubr.bf16.vlgmr.msra.gmra.mrb[4].mxu1 %v30092_v45  ;;  %v28641_v45 = vld [vmem:[%s38719_s3 + $0x3de0] ss:$24 sps:$4 sm:$0xff]  }
 0x682   : > { %15691 = vmatmul.mubr.bf16.vlgmr.msra.gmra.mrb[0].mxu0 %v35484_v62  ;;  %11333 = vmatpush1.bf16.msra.mxu1 %v28575_v31  ;;  %v28635_v31 = vld [vmem:[%s38719_s3 + $0x3db0] ss:$24 sps:$4 sm:$0xff]  }
 0x683   : > { %15702 = vmatpush1.bf16.msra.mxu0 %v28581_v55  ;;  %11334 = vmatprep.subr.bf16.mxu1 %v28586_v56  ;;  %v28640_v55 = vld [vmem:[%s38719_s3 + $0x25ec] ss:$24 sps:$4 sm:$0xff]  }
 0x684   : > { %15703 = vmatprep.subr.bf16.mxu0 %v28589_v32  ;;  %11364 = vmatprep.mubr.bf16.mxu1 %v32613_v48  ;;  %v28601_v48 = vld [vmem:[%s38719_s3 + $0x3c94] ss:$24 sps:$4 sm:$0xff]   ;;  %v28643_v56 = vld [vmem:[%s38719_s3 + $0x3de4] ss:$24 sps:$4 sm:$0xff]   ;;  %v28638_v32 = vld [vmem:[%s38719_s3 + $0x25e8] ss:$24 sps:$4 sm:$0xff]  }
 0x685   : > { %15733 = vmatprep.mubr.bf16.mxu0 %v35499_v33 }
 0x686   : > { %11335 = vmatpush1.bf16.msra.mxu1 %v28584_v46  ;;  %v28646_v46 = vld [vmem:[%s38719_s3 + $0x261c] ss:$24 sps:$4 sm:$0xff]  }
 0x687   : > { %15704 = vmatpush1.bf16.msra.mxu0 %v28587_v49  ;;  %11336 = vmatprep.subr.bf16.mxu1 %v28592_v35  ;;  %v28649_v49 = vld [vmem:[%s38719_s3 + $0x3e14] ss:$24 sps:$4 sm:$0xff]   ;;  %v28644_v35 = vld [vmem:[%s38719_s3 + $0x2618] ss:$24 sps:$4 sm:$0xff]  }
 0x688   : > { %15705 = vmatprep.subr.bf16.mxu0 %v28595_v57  ;;  %v28647_v57 = vld [vmem:[%s38719_s3 + $0x3e10] ss:$24 sps:$4 sm:$0xff]  }
 0x68a   : > { %11337 = vmatpush1.bf16.msra.mxu1 %v28590_v58  ;;  %v28652_v58 = vld [vmem:[%s38719_s3 + $0x264c] ss:$24 sps:$4 sm:$0xff]  }
 0x68b   : > { %15706 = vmatpush1.bf16.msra.mxu0 %v28593_v0  ;;  %11338 = vmatprep.subr.bf16.mxu1 %v28598_v16  ;;  %v28655_v0 = vld [vmem:[%s38719_s3 + $0x3e44] ss:$24 sps:$4 sm:$0xff]   ;;  %v28650_v16 = vld [vmem:[%s38719_s3 + $0x2648] ss:$24 sps:$4 sm:$0xff]  }
 0x68c   : > { %15707 = vmatprep.subr.bf16.mxu0 %v28601_v48  ;;  %v28653_v48 = vld [vmem:[%s38719_s3 + $0x3e40] ss:$24 sps:$4 sm:$0xff]  }
 0x68e   : > { %11339 = vmatpush1.bf16.msra.mxu1 %v28596_v38  ;;  %v28658_v38 = vld [vmem:[%s38719_s3 + $0x267c] ss:$24 sps:$4 sm:$0xff]  }
 0x68f   : > { %15708 = vmatpush1.bf16.msra.mxu0 %v28599_v22  ;;  %11340 = vmatprep.subr.bf16.mxu1 %v28604_v41  ;;  %v28661_v22 = vld [vmem:[%s38719_s3 + $0x3e74] ss:$24 sps:$4 sm:$0xff]   ;;  %v28656_v41 = vld [vmem:[%s38719_s3 + $0x2678] ss:$24 sps:$4 sm:$0xff]  }
 0x690   : > { %15709 = vmatprep.subr.bf16.mxu0 %v28607_v42  ;;  %v28659_v42 = vld [vmem:[%s38719_s3 + $0x3e70] ss:$24 sps:$4 sm:$0xff]  }
 0x692   : > { %11341 = vmatpush1.bf16.msra.mxu1 %v28602_v27  ;;  %v28664_v27 = vld [vmem:[%s38719_s3 + $0x26ac] ss:$24 sps:$4 sm:$0xff]  }
 0x693   : > { %15710 = vmatpush1.bf16.msra.mxu0 %v28605_v2  ;;  %11342 = vmatprep.subr.bf16.mxu1 %v28610_v26  ;;  %v28667_v2 = vld [vmem:[%s38719_s3 + $0x3ea4] ss:$24 sps:$4 sm:$0xff]   ;;  %v28662_v26 = vld [vmem:[%s38719_s3 + $0x26a8] ss:$24 sps:$4 sm:$0xff]  }
 0x694   : > { %15711 = vmatprep.subr.bf16.mxu0 %v28613_v3  ;;  %v28665_v3 = vld [vmem:[%s38719_s3 + $0x3ea0] ss:$24 sps:$4 sm:$0xff]  }
 0x696   : > { %11343 = vmatpush1.bf16.msra.mxu1 %v28608_v4  ;;  %v28670_v4 = vld [vmem:[%s38719_s3 + $0x26dc] ss:$24 sps:$4 sm:$0xff]  }
 0x697   : > { %15712 = vmatpush1.bf16.msra.mxu0 %v28611_v5  ;;  %11344 = vmatprep.subr.bf16.mxu1 %v28616_v39  ;;  %v28673_v5 = vld [vmem:[%s38719_s3 + $0x3ed4] ss:$24 sps:$4 sm:$0xff]   ;;  %v28668_v39 = vld [vmem:[%s38719_s3 + $0x26d8] ss:$24 sps:$4 sm:$0xff]  }
 0x698   : > { %15713 = vmatprep.subr.bf16.mxu0 %v28619_v7  ;;  %v28671_v7 = vld [vmem:[%s38719_s3 + $0x3ed0] ss:$24 sps:$4 sm:$0xff]  }
 0x69a   : > { %11345 = vmatpush1.bf16.msra.mxu1 %v28614_v8  ;;  %v28676_v8 = vld [vmem:[%s38719_s3 + $0x270c] ss:$24 sps:$4 sm:$0xff]  }
 0x69b   : > { %15714 = vmatpush1.bf16.msra.mxu0 %v28617_v9  ;;  %11346 = vmatprep.subr.bf16.mxu1 %v28622_v13  ;;  %v28682_v9 = vld [vmem:[%s38719_s3 + $0x3614] ss:$24 sps:$4 sm:$0xff]  }
 0x69c   : > { %15715 = vmatprep.subr.bf16.mxu0 %v28625_v14  ;;  %v35686_v13 = vld [vmem:[%s34888_s22 + $0x10] ss:$48 sps:$4 sm:$0xff]  }
 0x69d   : > { %v28674_v14 = vld [vmem:[%s38719_s3 + $0x2708] ss:$24 sps:$4 sm:$0xff]  }
 0x69e   : > { %11347 = vmatpush1.bf16.msra.mxu1 %v28620_v19  ;;  %v28680_v19 = vld [vmem:[%s38719_s3 + $0x3610] ss:$24 sps:$4 sm:$0xff]  }
 0x69f   : > { %15716 = vmatpush1.bf16.msra.mxu0 %v28623_v24  ;;  %11348 = vmatprep.subr.bf16.mxu1 %v28628_v54  ;;  %v28685_v24 = vld [vmem:[%s38719_s3 + $0x273c] ss:$24 sps:$4 sm:$0xff]  }
 0x6a0   : > { %15717 = vmatprep.subr.bf16.mxu0 %v28631_v30  ;;  %v28688_v54 = vld [vmem:[%s38719_s3 + $0x3644] ss:$24 sps:$4 sm:$0xff]   ;;  %v28683_v30 = vld [vmem:[%s38719_s3 + $0x2738] ss:$24 sps:$4 sm:$0xff]  }
 0x6a2   : > { %11349 = vmatpush1.bf16.msra.mxu1 %v28626_v34  ;;  %v28686_v34 = vld [vmem:[%s38719_s3 + $0x3640] ss:$24 sps:$4 sm:$0xff]  }
 0x6a3   : > { %15718 = vmatpush1.bf16.msra.mxu0 %v28629_v40  ;;  %11350 = vmatprep.subr.bf16.mxu1 %v28634_v36  ;;  %v28691_v40 = vld [vmem:[%s38719_s3 + $0x276c] ss:$24 sps:$4 sm:$0xff]   ;;  %v28689_v36 = vld [vmem:[%s38719_s3 + $0x2768] ss:$24 sps:$4 sm:$0xff]  }
 0x6a4   : > { %15719 = vmatprep.subr.bf16.mxu0 %v28637_v47  ;;  %v28692_v47 = vld [vmem:[%s38719_s3 + $0x3670] ss:$24 sps:$4 sm:$0xff]  }
 0x6a6   : > { %11351 = vmatpush1.bf16.msra.mxu1 %v28632_v43  ;;  %v28697_v43 = vld [vmem:[%s38719_s3 + $0x279c] ss:$24 sps:$4 sm:$0xff]  }
 0x6a7   : > { %15720 = vmatpush1.bf16.msra.mxu0 %v28635_v31  ;;  %11352 = vmatprep.subr.bf16.mxu1 %v28640_v55  ;;  %v28698_v31 = vld [vmem:[%s38719_s3 + $0x36a0] ss:$24 sps:$4 sm:$0xff]   ;;  %v28703_v55 = vld [vmem:[%s38719_s3 + $0x27cc] ss:$24 sps:$4 sm:$0xff]  }
 0x6a8   : > { %15721 = vmatprep.subr.bf16.mxu0 %v28643_v56  ;;  %v28706_v56 = vld [vmem:[%s38719_s3 + $0x36d4] ss:$24 sps:$4 sm:$0xff]  }
 0x6aa   : > { %11353 = vmatpush1.bf16.msra.mxu1 %v28638_v32  ;;  %v28701_v32 = vld [vmem:[%s38719_s3 + $0x27c8] ss:$24 sps:$4 sm:$0xff]  }
 0x6ab   : > { %15722 = vmatpush1.bf16.msra.mxu0 %v28641_v45  ;;  %11354 = vmatprep.subr.bf16.mxu1 %v28646_v46  ;;  %v28704_v45 = vld [vmem:[%s38719_s3 + $0x36d0] ss:$24 sps:$4 sm:$0xff]   ;;  %v28709_v46 = vld [vmem:[%s38719_s3 + $0x27fc] ss:$24 sps:$4 sm:$0xff]  }
 0x6ac   : > { %15723 = vmatprep.subr.bf16.mxu0 %v28649_v49  ;;  %v28712_v49 = vld [vmem:[%s38719_s3 + $0x3704] ss:$24 sps:$4 sm:$0xff]  }
 0x6ae   : > { %11355 = vmatpush1.bf16.msra.mxu1 %v28644_v35  ;;  %v28707_v35 = vld [vmem:[%s38719_s3 + $0x27f8] ss:$24 sps:$4 sm:$0xff]  }
 0x6af   : > { %15724 = vmatpush1.bf16.msra.mxu0 %v28647_v57  ;;  %11356 = vmatprep.subr.bf16.mxu1 %v28652_v58  ;;  %v28710_v57 = vld [vmem:[%s38719_s3 + $0x3700] ss:$24 sps:$4 sm:$0xff]   ;;  %v28715_v58 = vld [vmem:[%s38719_s3 + $0x282c] ss:$24 sps:$4 sm:$0xff]  }
 0x6b0   : > { %15725 = vmatprep.subr.bf16.mxu0 %v28655_v0  ;;  %v28718_v0 = vld [vmem:[%s38719_s3 + $0x3734] ss:$24 sps:$4 sm:$0xff]  }
 0x6b2   : > { %11357 = vmatpush1.bf16.msra.mxu1 %v28650_v16  ;;  %v28713_v16 = vld [vmem:[%s38719_s3 + $0x2828] ss:$24 sps:$4 sm:$0xff]  }
 0x6b3   : > { %15726 = vmatpush1.bf16.msra.mxu0 %v28653_v48  ;;  %11358 = vmatprep.subr.bf16.mxu1 %v28658_v38  ;;  %v28716_v48 = vld [vmem:[%s38719_s3 + $0x3730] ss:$24 sps:$4 sm:$0xff]   ;;  %v28721_v38 = vld [vmem:[%s38719_s3 + $0x285c] ss:$24 sps:$4 sm:$0xff]  }
 0x6b4   : > { %15727 = vmatprep.subr.bf16.mxu0 %v28661_v22  ;;  %v28724_v22 = vld [vmem:[%s38719_s3 + $0x3764] ss:$24 sps:$4 sm:$0xff]  }
 0x6b6   : > { %11359 = vmatpush1.bf16.msra.mxu1 %v28656_v41  ;;  %v28719_v41 = vld [vmem:[%s38719_s3 + $0x2858] ss:$24 sps:$4 sm:$0xff]  }
 0x6b7   : > { %15728 = vmatpush1.bf16.msra.mxu0 %v28659_v42  ;;  %11360 = vmatprep.subr.bf16.mxu1 %v28664_v27  ;;  %v28722_v42 = vld [vmem:[%s38719_s3 + $0x3760] ss:$24 sps:$4 sm:$0xff]   ;;  %v28727_v27 = vld [vmem:[%s38719_s3 + $0x288c] ss:$24 sps:$4 sm:$0xff]  }
 0x6b8   : > { %15729 = vmatprep.subr.bf16.mxu0 %v28667_v2  ;;  %v28730_v2 = vld [vmem:[%s38719_s3 + $0x3794] ss:$24 sps:$4 sm:$0xff]  }
 0x6ba   : > { %11361 = vmatpush1.bf16.msra.mxu1 %v28662_v26  ;;  %v28725_v26 = vld [vmem:[%s38719_s3 + $0x2888] ss:$24 sps:$4 sm:$0xff]  }
 0x6bb   : > { %15730 = vmatpush1.bf16.msra.mxu0 %v28665_v3  ;;  %11362 = vmatprep.subr.bf16.mxu1 %v28670_v4  ;;  %v28728_v3 = vld [vmem:[%s38719_s3 + $0x3790] ss:$24 sps:$4 sm:$0xff]   ;;  %v28733_v4 = vld [vmem:[%s38719_s3 + $0x28bc] ss:$24 sps:$4 sm:$0xff]  }
 0x6bc   : > { %15731 = vmatprep.subr.bf16.mxu0 %v28673_v5  ;;  %v28736_v5 = vld [vmem:[%s38719_s3 + $0x37c4] ss:$24 sps:$4 sm:$0xff]  }
 0x6be   : > { %11363 = vmatpush1.bf16.msra.mxu1 %v28668_v39  ;;  %v28731_v39 = vld [vmem:[%s38719_s3 + $0x28b8] ss:$24 sps:$4 sm:$0xff]  }
 0x6bf   : > { %15732 = vmatpush1.bf16.msra.mxu0 %v28671_v7  ;;  %11375 = vmatprep.subr.bf16.mxu1 %v28676_v8  ;;  %v28734_v7 = vld [vmem:[%s38719_s3 + $0x37c0] ss:$24 sps:$4 sm:$0xff]   ;;  %v28739_v8 = vld [vmem:[%s38719_s3 + $0x28ec] ss:$24 sps:$4 sm:$0xff]  }
 0x6c0   : > { %15873 = vmatprep.subr.bf16.mxu0 %v28682_v9  ;;  %v28742_v9 = vld [vmem:[%s38719_s3 + $0x37f4] ss:$24 sps:$4 sm:$0xff]  }
 0x6c1   : > { %11365 = vmatmul.mubr.bf16.vlgmr.msra.gmra.mrb[4].mxu1 %v32809_v29  ;;  %v28694_v29 = vld [vmem:[%s38719_s3 + $0x3674] ss:$24 sps:$4 sm:$0xff]  }
 0x6c2   : > { %15734 = vmatmul.mubr.bf16.vlgmr.msra.gmra.mrb[0].mxu0 %v35686_v13  ;;  %11376 = vmatpush1.bf16.msra.mxu1 %v28674_v14  ;;  %v28737_v14 = vld [vmem:[%s38719_s3 + $0x28e8] ss:$24 sps:$4 sm:$0xff]  }
 0x6c3   : > { %15874 = vmatpush1.bf16.msra.mxu0 %v28680_v19  ;;  %11377 = vmatprep.subr.bf16.mxu1 %v28685_v24  ;;  %v28740_v19 = vld [vmem:[%s38719_s3 + $0x37f0] ss:$24 sps:$4 sm:$0xff]   ;;  %v28745_v24 = vld [vmem:[%s38719_s3 + $0x291c] ss:$24 sps:$4 sm:$0xff]  }
 0x6c4   : > { %15875 = vmatprep.subr.bf16.mxu0 %v28688_v54  ;;  %11407 = vmatprep.mubr.bf16.mxu1 %v32833_v44  ;;  %v28700_v44 = vld [vmem:[%s38719_s3 + $0x36a4] ss:$24 sps:$4 sm:$0xff]  }
 0x6c5   : > { %15905 = vmatprep.mubr.bf16.mxu0 %v35095_v18  ;;  %v28695_v18 = vld [vmem:[%s38719_s3 + $0x2798] ss:$24 sps:$4 sm:$0xff]   ;;  %v28748_v54 = vld [vmem:[%s38719_s3 + $0x3824] ss:$24 sps:$4 sm:$0xff]  }
 0x6c6   : > { %11378 = vmatpush1.bf16.msra.mxu1 %v28683_v30  ;;  %v28743_v30 = vld [vmem:[%s38719_s3 + $0x2918] ss:$24 sps:$4 sm:$0xff]  }
 0x6c7   : > { %15876 = vmatpush1.bf16.msra.mxu0 %v28686_v34  ;;  %11379 = vmatprep.subr.bf16.mxu1 %v28691_v40  ;;  %v28746_v34 = vld [vmem:[%s38719_s3 + $0x3820] ss:$24 sps:$4 sm:$0xff]   ;;  %v28751_v40 = vld [vmem:[%s38719_s3 + $0x294c] ss:$24 sps:$4 sm:$0xff]  }
 0x6c8   : > { %15877 = vmatprep.subr.bf16.mxu0 %v28694_v29  ;;  %v28754_v29 = vld [vmem:[%s38719_s3 + $0x3854] ss:$24 sps:$4 sm:$0xff]  }
 0x6ca   : > { %11380 = vmatpush1.bf16.msra.mxu1 %v28689_v36  ;;  %v28749_v36 = vld [vmem:[%s38719_s3 + $0x2948] ss:$24 sps:$4 sm:$0xff]  }
 0x6cb   : > { %15878 = vmatpush1.bf16.msra.mxu0 %v28692_v47  ;;  %11381 = vmatprep.subr.bf16.mxu1 %v28697_v43  ;;  %v28752_v47 = vld [vmem:[%s38719_s3 + $0x3850] ss:$24 sps:$4 sm:$0xff]   ;;  %v28757_v43 = vld [vmem:[%s38719_s3 + $0x297c] ss:$24 sps:$4 sm:$0xff]  }
 0x6cc   : > { %15879 = vmatprep.subr.bf16.mxu0 %v28700_v44  ;;  %v28760_v44 = vld [vmem:[%s38719_s3 + $0x3884] ss:$24 sps:$4 sm:$0xff]  }
 0x6ce   : > { %11382 = vmatpush1.bf16.msra.mxu1 %v28695_v18  ;;  %v28755_v18 = vld [vmem:[%s38719_s3 + $0x2978] ss:$24 sps:$4 sm:$0xff]  }
 0x6cf   : > { %15880 = vmatpush1.bf16.msra.mxu0 %v28698_v31  ;;  %11383 = vmatprep.subr.bf16.mxu1 %v28703_v55  ;;  %v28758_v31 = vld [vmem:[%s38719_s3 + $0x3880] ss:$24 sps:$4 sm:$0xff]   ;;  %v28763_v55 = vld [vmem:[%s38719_s3 + $0x29ac] ss:$24 sps:$4 sm:$0xff]  }
 0x6d0   : > { %15881 = vmatprep.subr.bf16.mxu0 %v28706_v56  ;;  %v28766_v56 = vld [vmem:[%s38719_s3 + $0x38b4] ss:$24 sps:$4 sm:$0xff]  }
 0x6d2   : > { %11384 = vmatpush1.bf16.msra.mxu1 %v28701_v32  ;;  %v28761_v32 = vld [vmem:[%s38719_s3 + $0x29a8] ss:$24 sps:$4 sm:$0xff]  }
 0x6d3   : > { %15882 = vmatpush1.bf16.msra.mxu0 %v28704_v45  ;;  %11385 = vmatprep.subr.bf16.mxu1 %v28709_v46  ;;  %v28764_v45 = vld [vmem:[%s38719_s3 + $0x38b0] ss:$24 sps:$4 sm:$0xff]   ;;  %v28769_v46 = vld [vmem:[%s38719_s3 + $0x29dc] ss:$24 sps:$4 sm:$0xff]  }
 0x6d4   : > { %15883 = vmatprep.subr.bf16.mxu0 %v28712_v49  ;;  %v28772_v49 = vld [vmem:[%s38719_s3 + $0x38e4] ss:$24 sps:$4 sm:$0xff]  }
 0x6d6   : > { %11386 = vmatpush1.bf16.msra.mxu1 %v28707_v35  ;;  %v28767_v35 = vld [vmem:[%s38719_s3 + $0x29d8] ss:$24 sps:$4 sm:$0xff]  }
 0x6d7   : > { %15884 = vmatpush1.bf16.msra.mxu0 %v28710_v57  ;;  %11387 = vmatprep.subr.bf16.mxu1 %v28715_v58  ;;  %v28770_v57 = vld [vmem:[%s38719_s3 + $0x38e0] ss:$24 sps:$4 sm:$0xff]   ;;  %v28775_v58 = vld [vmem:[%s38719_s3 + $0x2a0c] ss:$24 sps:$4 sm:$0xff]  }
 0x6d8   : > { %15885 = vmatprep.subr.bf16.mxu0 %v28718_v0  ;;  %v28778_v0 = vld [vmem:[%s38719_s3 + $0x3914] ss:$24 sps:$4 sm:$0xff]  }
 0x6da   : > { %11388 = vmatpush1.bf16.msra.mxu1 %v28713_v16  ;;  %v28773_v16 = vld [vmem:[%s38719_s3 + $0x2a08] ss:$24 sps:$4 sm:$0xff]  }
 0x6db   : > { %15886 = vmatpush1.bf16.msra.mxu0 %v28716_v48  ;;  %11389 = vmatprep.subr.bf16.mxu1 %v28721_v38  ;;  %v28776_v48 = vld [vmem:[%s38719_s3 + $0x3910] ss:$24 sps:$4 sm:$0xff]   ;;  %v28781_v38 = vld [vmem:[%s38719_s3 + $0x2a3c] ss:$24 sps:$4 sm:$0xff]  }
 0x6dc   : > { %15887 = vmatprep.subr.bf16.mxu0 %v28724_v22  ;;  %v28784_v22 = vld [vmem:[%s38719_s3 + $0x3944] ss:$24 sps:$4 sm:$0xff]  }
 0x6de   : > { %11390 = vmatpush1.bf16.msra.mxu1 %v28719_v41  ;;  %v28779_v41 = vld [vmem:[%s38719_s3 + $0x2a38] ss:$24 sps:$4 sm:$0xff]  }
 0x6df   : > { %15888 = vmatpush1.bf16.msra.mxu0 %v28722_v42  ;;  %11391 = vmatprep.subr.bf16.mxu1 %v28727_v27  ;;  %v28782_v42 = vld [vmem:[%s38719_s3 + $0x3940] ss:$24 sps:$4 sm:$0xff]   ;;  %v28787_v27 = vld [vmem:[%s38719_s3 + $0x2a6c] ss:$24 sps:$4 sm:$0xff]  }
 0x6e0   : > { %15889 = vmatprep.subr.bf16.mxu0 %v28730_v2  ;;  %v28788_v2 = vld [vmem:[%s38719_s3 + $0x3970] ss:$24 sps:$4 sm:$0xff]  }
 0x6e2   : > { %11392 = vmatpush1.bf16.msra.mxu1 %v28725_v26  ;;  %v28793_v26 = vld [vmem:[%s38719_s3 + $0x2a9c] ss:$24 sps:$4 sm:$0xff]  }
 0x6e3   : > { %15890 = vmatpush1.bf16.msra.mxu0 %v28728_v3  ;;  %11393 = vmatprep.subr.bf16.mxu1 %v28733_v4  ;;  %v28794_v3 = vld [vmem:[%s38719_s3 + $0x39a0] ss:$24 sps:$4 sm:$0xff]   ;;  %v28799_v4 = vld [vmem:[%s38719_s3 + $0x2acc] ss:$24 sps:$4 sm:$0xff]  }
 0x6e4   : > { %15891 = vmatprep.subr.bf16.mxu0 %v28736_v5  ;;  %v28802_v5 = vld [vmem:[%s38719_s3 + $0x39d4] ss:$24 sps:$4 sm:$0xff]  }
 0x6e6   : > { %11394 = vmatpush1.bf16.msra.mxu1 %v28731_v39  ;;  %v28797_v39 = vld [vmem:[%s38719_s3 + $0x2ac8] ss:$24 sps:$4 sm:$0xff]  }
 0x6e7   : > { %15892 = vmatpush1.bf16.msra.mxu0 %v28734_v7  ;;  %11395 = vmatprep.subr.bf16.mxu1 %v28739_v8  ;;  %v28800_v7 = vld [vmem:[%s38719_s3 + $0x39d0] ss:$24 sps:$4 sm:$0xff]   ;;  %v28805_v8 = vld [vmem:[%s38719_s3 + $0x2afc] ss:$24 sps:$4 sm:$0xff]  }
 0x6e8   : > { %15893 = vmatprep.subr.bf16.mxu0 %v28742_v9  ;;  %v28808_v9 = vld [vmem:[%s38719_s3 + $0x3a04] ss:$24 sps:$4 sm:$0xff]  }
 0x6ea   : > { %11396 = vmatpush1.bf16.msra.mxu1 %v28737_v14  ;;  %v28803_v14 = vld [vmem:[%s38719_s3 + $0x2af8] ss:$24 sps:$4 sm:$0xff]  }
 0x6eb   : > { %15894 = vmatpush1.bf16.msra.mxu0 %v28740_v19  ;;  %11397 = vmatprep.subr.bf16.mxu1 %v28745_v24  ;;  %v28806_v19 = vld [vmem:[%s38719_s3 + $0x3a00] ss:$24 sps:$4 sm:$0xff]   ;;  %v28811_v24 = vld [vmem:[%s38719_s3 + $0x2b2c] ss:$24 sps:$4 sm:$0xff]  }
 0x6ec   : > { %15895 = vmatprep.subr.bf16.mxu0 %v28748_v54  ;;  %v28814_v54 = vld [vmem:[%s38719_s3 + $0x3a34] ss:$24 sps:$4 sm:$0xff]  }
 0x6ee   : > { %11398 = vmatpush1.bf16.msra.mxu1 %v28743_v30  ;;  %v28809_v30 = vld [vmem:[%s38719_s3 + $0x2b28] ss:$24 sps:$4 sm:$0xff]  }
 0x6ef   : > { %15896 = vmatpush1.bf16.msra.mxu0 %v28746_v34  ;;  %11399 = vmatprep.subr.bf16.mxu1 %v28751_v40  ;;  %v28812_v34 = vld [vmem:[%s38719_s3 + $0x3a30] ss:$24 sps:$4 sm:$0xff]   ;;  %v28817_v40 = vld [vmem:[%s38719_s3 + $0x2b5c] ss:$24 sps:$4 sm:$0xff]  }
 0x6f0   : > { %15897 = vmatprep.subr.bf16.mxu0 %v28754_v29  ;;  %v28820_v29 = vld [vmem:[%s38719_s3 + $0x3a64] ss:$24 sps:$4 sm:$0xff]  }
 0x6f2   : > { %11400 = vmatpush1.bf16.msra.mxu1 %v28749_v36  ;;  %v28815_v36 = vld [vmem:[%s38719_s3 + $0x2b58] ss:$24 sps:$4 sm:$0xff]  }
 0x6f3   : > { %15898 = vmatpush1.bf16.msra.mxu0 %v28752_v47  ;;  %11401 = vmatprep.subr.bf16.mxu1 %v28757_v43  ;;  %v28818_v47 = vld [vmem:[%s38719_s3 + $0x3a60] ss:$24 sps:$4 sm:$0xff]   ;;  %v28823_v43 = vld [vmem:[%s38719_s3 + $0x2b8c] ss:$24 sps:$4 sm:$0xff]  }
 0x6f4   : > { %15899 = vmatprep.subr.bf16.mxu0 %v28760_v44  ;;  %v28826_v44 = vld [vmem:[%s38719_s3 + $0x3a94] ss:$24 sps:$4 sm:$0xff]  }
 0x6f6   : > { %11402 = vmatpush1.bf16.msra.mxu1 %v28755_v18  ;;  %v28821_v18 = vld [vmem:[%s38719_s3 + $0x2b88] ss:$24 sps:$4 sm:$0xff]  }
 0x6f7   : > { %15900 = vmatpush1.bf16.msra.mxu0 %v28758_v31  ;;  %11403 = vmatprep.subr.bf16.mxu1 %v28763_v55  ;;  %v28824_v31 = vld [vmem:[%s38719_s3 + $0x3a90] ss:$24 sps:$4 sm:$0xff]   ;;  %v28829_v55 = vld [vmem:[%s38719_s3 + $0x2bbc] ss:$24 sps:$4 sm:$0xff]  }
 0x6f8   : > { %15901 = vmatprep.subr.bf16.mxu0 %v28766_v56  ;;  %v28832_v56 = vld [vmem:[%s38719_s3 + $0x3ac4] ss:$24 sps:$4 sm:$0xff]  }
 0x6fa   : > { %11404 = vmatpush1.bf16.msra.mxu1 %v28761_v32  ;;  %v28827_v32 = vld [vmem:[%s38719_s3 + $0x2bb8] ss:$24 sps:$4 sm:$0xff]  }
 0x6fb   : > { %15902 = vmatpush1.bf16.msra.mxu0 %v28764_v45  ;;  %11405 = vmatprep.subr.bf16.mxu1 %v28769_v46  ;;  %v28830_v45 = vld [vmem:[%s38719_s3 + $0x3ac0] ss:$24 sps:$4 sm:$0xff]   ;;  %v28835_v46 = vld [vmem:[%s38719_s3 + $0x2bec] ss:$24 sps:$4 sm:$0xff]  }
 0x6fc   : > { %15903 = vmatprep.subr.bf16.mxu0 %v28772_v49  ;;  %v28838_v49 = vld [vmem:[%s38719_s3 + $0x3af4] ss:$24 sps:$4 sm:$0xff]  }
 0x6fe   : > { %11406 = vmatpush1.bf16.msra.mxu1 %v28767_v35  ;;  %v28833_v35 = vld [vmem:[%s38719_s3 + $0x2be8] ss:$24 sps:$4 sm:$0xff]  }
 0x6ff   : > { %15904 = vmatpush1.bf16.msra.mxu0 %v28770_v57  ;;  %11418 = vmatprep.subr.bf16.mxu1 %v28775_v58  ;;  %v28836_v57 = vld [vmem:[%s38719_s3 + $0x3af0] ss:$24 sps:$4 sm:$0xff]   ;;  %v28841_v58 = vld [vmem:[%s38719_s3 + $0x2c1c] ss:$24 sps:$4 sm:$0xff]  }
 0x700   : > { %15916 = vmatprep.subr.bf16.mxu0 %v28778_v0  ;;  %v28844_v0 = vld [vmem:[%s38719_s3 + $0x3b24] ss:$24 sps:$4 sm:$0xff]  }
 0x701   : > { %11408 = vmatmul.mubr.bf16.vlgmr.msra.gmra.mrb[4].mxu1 %v33025_v20  ;;  %v28790_v20 = vld [vmem:[%s38719_s3 + $0x3974] ss:$24 sps:$4 sm:$0xff]  }
 0x702   : > { %15906 = vmatmul.mubr.bf16.vlgmr.msra.gmra.mrb[4].mxu0 %v35282_v6  ;;  %11419 = vmatpush1.bf16.msra.mxu1 %v28773_v16  ;;  %v28785_v6 = vld [vmem:[%s38719_s3 + $0x2a68] ss:$24 sps:$4 sm:$0xff]   ;;  %v28839_v16 = vld [vmem:[%s38719_s3 + $0x2c18] ss:$24 sps:$4 sm:$0xff]  }
 0x703   : > { %15917 = vmatpush1.bf16.msra.mxu0 %v28776_v48  ;;  %11420 = vmatprep.subr.bf16.mxu1 %v28781_v38  ;;  %v28842_v48 = vld [vmem:[%s38719_s3 + $0x3b20] ss:$24 sps:$4 sm:$0xff]   ;;  %v28847_v38 = vld [vmem:[%s38719_s3 + $0x2c4c] ss:$24 sps:$4 sm:$0xff]  }
 0x704   : > { %15918 = vmatprep.subr.bf16.mxu0 %v28784_v22  ;;  %11450 = vmatprep.mubr.bf16.mxu1 %v33049_v25  ;;  %v28796_v25 = vld [vmem:[%s38719_s3 + $0x39a4] ss:$24 sps:$4 sm:$0xff]   ;;  %v28850_v22 = vld [vmem:[%s38719_s3 + $0x3b54] ss:$24 sps:$4 sm:$0xff]  }
 0x705   : > { %15948 = vmatprep.mubr.bf16.mxu0 %v35297_v1  ;;  %v28791_v1 = vld [vmem:[%s38719_s3 + $0x2a98] ss:$24 sps:$4 sm:$0xff]  }
 0x706   : > { %11421 = vmatpush1.bf16.msra.mxu1 %v28779_v41  ;;  %v28845_v41 = vld [vmem:[%s38719_s3 + $0x2c48] ss:$24 sps:$4 sm:$0xff]  }
 0x707   : > { %15919 = vmatpush1.bf16.msra.mxu0 %v28782_v42  ;;  %11422 = vmatprep.subr.bf16.mxu1 %v28787_v27  ;;  %v28848_v42 = vld [vmem:[%s38719_s3 + $0x3b50] ss:$24 sps:$4 sm:$0xff]   ;;  %v28853_v27 = vld [vmem:[%s38719_s3 + $0x2c7c] ss:$24 sps:$4 sm:$0xff]  }
 0x708   : > { %15920 = vmatprep.subr.bf16.mxu0 %v28790_v20  ;;  %v28856_v20 = vld [vmem:[%s38719_s3 + $0x3b84] ss:$24 sps:$4 sm:$0xff]  }
 0x70a   : > { %11423 = vmatpush1.bf16.msra.mxu1 %v28785_v6  ;;  %v28851_v6 = vld [vmem:[%s38719_s3 + $0x2c78] ss:$24 sps:$4 sm:$0xff]  }
 0x70b   : > { %15921 = vmatpush1.bf16.msra.mxu0 %v28788_v2  ;;  %11424 = vmatprep.subr.bf16.mxu1 %v28793_v26  ;;  %v28854_v2 = vld [vmem:[%s38719_s3 + $0x3b80] ss:$24 sps:$4 sm:$0xff]   ;;  %v28859_v26 = vld [vmem:[%s38719_s3 + $0x2cac] ss:$24 sps:$4 sm:$0xff]  }
 0x70c   : > { %15922 = vmatprep.subr.bf16.mxu0 %v28796_v25  ;;  %v28862_v25 = vld [vmem:[%s38719_s3 + $0x3bb4] ss:$24 sps:$4 sm:$0xff]  }
 0x70e   : > { %11425 = vmatpush1.bf16.msra.mxu1 %v28791_v1  ;;  %v28857_v1 = vld [vmem:[%s38719_s3 + $0x2ca8] ss:$24 sps:$4 sm:$0xff]  }
 0x70f   : > { %15923 = vmatpush1.bf16.msra.mxu0 %v28794_v3  ;;  %11426 = vmatprep.subr.bf16.mxu1 %v28799_v4  ;;  %v28860_v3 = vld [vmem:[%s38719_s3 + $0x3bb0] ss:$24 sps:$4 sm:$0xff]   ;;  %v28865_v4 = vld [vmem:[%s38719_s3 + $0x2cdc] ss:$24 sps:$4 sm:$0xff]  }
 0x710   : > { %15924 = vmatprep.subr.bf16.mxu0 %v28802_v5  ;;  %v28868_v5 = vld [vmem:[%s38719_s3 + $0x3be4] ss:$24 sps:$4 sm:$0xff]  }
 0x712   : > { %11427 = vmatpush1.bf16.msra.mxu1 %v28797_v39  ;;  %v28863_v39 = vld [vmem:[%s38719_s3 + $0x2cd8] ss:$24 sps:$4 sm:$0xff]  }
 0x713   : > { %15925 = vmatpush1.bf16.msra.mxu0 %v28800_v7  ;;  %11428 = vmatprep.subr.bf16.mxu1 %v28805_v8  ;;  %v28866_v7 = vld [vmem:[%s38719_s3 + $0x3be0] ss:$24 sps:$4 sm:$0xff]   ;;  %v28871_v8 = vld [vmem:[%s38719_s3 + $0x2d0c] ss:$24 sps:$4 sm:$0xff]  }
 0x714   : > { %15926 = vmatprep.subr.bf16.mxu0 %v28808_v9  ;;  %v28874_v9 = vld [vmem:[%s38719_s3 + $0x3c14] ss:$24 sps:$4 sm:$0xff]  }
 0x716   : > { %11429 = vmatpush1.bf16.msra.mxu1 %v28803_v14  ;;  %v28869_v14 = vld [vmem:[%s38719_s3 + $0x2d08] ss:$24 sps:$4 sm:$0xff]  }
 0x717   : > { %15927 = vmatpush1.bf16.msra.mxu0 %v28806_v19  ;;  %11430 = vmatprep.subr.bf16.mxu1 %v28811_v24  ;;  %v28872_v19 = vld [vmem:[%s38719_s3 + $0x3c10] ss:$24 sps:$4 sm:$0xff]   ;;  %v28877_v24 = vld [vmem:[%s38719_s3 + $0x2d3c] ss:$24 sps:$4 sm:$0xff]  }
 0x718   : > { %15928 = vmatprep.subr.bf16.mxu0 %v28814_v54  ;;  %v28880_v54 = vld [vmem:[%s38719_s3 + $0x3c44] ss:$24 sps:$4 sm:$0xff]  }
 0x71a   : > { %11431 = vmatpush1.bf16.msra.mxu1 %v28809_v30  ;;  %v28875_v30 = vld [vmem:[%s38719_s3 + $0x2d38] ss:$24 sps:$4 sm:$0xff]  }
 0x71b   : > { %15929 = vmatpush1.bf16.msra.mxu0 %v28812_v34  ;;  %11432 = vmatprep.subr.bf16.mxu1 %v28817_v40  ;;  %v28878_v34 = vld [vmem:[%s38719_s3 + $0x3c40] ss:$24 sps:$4 sm:$0xff]   ;;  %v28883_v40 = vld [vmem:[%s38719_s3 + $0x2d6c] ss:$24 sps:$4 sm:$0xff]  }
 0x71c   : > { %15930 = vmatprep.subr.bf16.mxu0 %v28820_v29  ;;  %v28884_v29 = vld [vmem:[%s38719_s3 + $0x3c70] ss:$24 sps:$4 sm:$0xff]  }
 0x71e   : > { %11433 = vmatpush1.bf16.msra.mxu1 %v28815_v36  ;;  %v28889_v36 = vld [vmem:[%s38719_s3 + $0x2d9c] ss:$24 sps:$4 sm:$0xff]  }
 0x71f   : > { %15931 = vmatpush1.bf16.msra.mxu0 %v28818_v47  ;;  %11434 = vmatprep.subr.bf16.mxu1 %v28823_v43  ;;  %v28890_v47 = vld [vmem:[%s38719_s3 + $0x3ca0] ss:$24 sps:$4 sm:$0xff]   ;;  %v28895_v43 = vld [vmem:[%s38719_s3 + $0x2dcc] ss:$24 sps:$4 sm:$0xff]  }
 0x720   : > { %15932 = vmatprep.subr.bf16.mxu0 %v28826_v44  ;;  %v28898_v44 = vld [vmem:[%s38719_s3 + $0x3cd4] ss:$24 sps:$4 sm:$0xff]  }
 0x722   : > { %11435 = vmatpush1.bf16.msra.mxu1 %v28821_v18  ;;  %v28893_v18 = vld [vmem:[%s38719_s3 + $0x2dc8] ss:$24 sps:$4 sm:$0xff]  }
 0x723   : > { %15933 = vmatpush1.bf16.msra.mxu0 %v28824_v31  ;;  %11436 = vmatprep.subr.bf16.mxu1 %v28829_v55  ;;  %v28896_v31 = vld [vmem:[%s38719_s3 + $0x3cd0] ss:$24 sps:$4 sm:$0xff]   ;;  %v28901_v55 = vld [vmem:[%s38719_s3 + $0x2dfc] ss:$24 sps:$4 sm:$0xff]  }
 0x724   : > { %15934 = vmatprep.subr.bf16.mxu0 %v28832_v56  ;;  %v28904_v56 = vld [vmem:[%s38719_s3 + $0x3d04] ss:$24 sps:$4 sm:$0xff]  }
 0x726   : > { %11437 = vmatpush1.bf16.msra.mxu1 %v28827_v32  ;;  %v28899_v32 = vld [vmem:[%s38719_s3 + $0x2df8] ss:$24 sps:$4 sm:$0xff]  }
 0x727   : > { %15935 = vmatpush1.bf16.msra.mxu0 %v28830_v45  ;;  %11438 = vmatprep.subr.bf16.mxu1 %v28835_v46  ;;  %v28902_v45 = vld [vmem:[%s38719_s3 + $0x3d00] ss:$24 sps:$4 sm:$0xff]   ;;  %v28907_v46 = vld [vmem:[%s38719_s3 + $0x2e2c] ss:$24 sps:$4 sm:$0xff]  }
 0x728   : > { %15936 = vmatprep.subr.bf16.mxu0 %v28838_v49  ;;  %v28910_v49 = vld [vmem:[%s38719_s3 + $0x3d34] ss:$24 sps:$4 sm:$0xff]  }
 0x72a   : > { %11439 = vmatpush1.bf16.msra.mxu1 %v28833_v35  ;;  %v28905_v35 = vld [vmem:[%s38719_s3 + $0x2e28] ss:$24 sps:$4 sm:$0xff]  }
 0x72b   : > { %15937 = vmatpush1.bf16.msra.mxu0 %v28836_v57  ;;  %11440 = vmatprep.subr.bf16.mxu1 %v28841_v58  ;;  %v28908_v57 = vld [vmem:[%s38719_s3 + $0x3d30] ss:$24 sps:$4 sm:$0xff]   ;;  %v28913_v58 = vld [vmem:[%s38719_s3 + $0x2e5c] ss:$24 sps:$4 sm:$0xff]  }
 0x72c   : > { %15938 = vmatprep.subr.bf16.mxu0 %v28844_v0  ;;  %v28916_v0 = vld [vmem:[%s38719_s3 + $0x3d64] ss:$24 sps:$4 sm:$0xff]  }
 0x72e   : > { %11441 = vmatpush1.bf16.msra.mxu1 %v28839_v16  ;;  %v28911_v16 = vld [vmem:[%s38719_s3 + $0x2e58] ss:$24 sps:$4 sm:$0xff]  }
 0x72f   : > { %15939 = vmatpush1.bf16.msra.mxu0 %v28842_v48  ;;  %11442 = vmatprep.subr.bf16.mxu1 %v28847_v38  ;;  %v28914_v48 = vld [vmem:[%s38719_s3 + $0x3d60] ss:$24 sps:$4 sm:$0xff]   ;;  %v28919_v38 = vld [vmem:[%s38719_s3 + $0x2e8c] ss:$24 sps:$4 sm:$0xff]  }
 0x730   : > { %15940 = vmatprep.subr.bf16.mxu0 %v28850_v22  ;;  %v28922_v22 = vld [vmem:[%s38719_s3 + $0x3d94] ss:$24 sps:$4 sm:$0xff]  }
 0x732   : > { %11443 = vmatpush1.bf16.msra.mxu1 %v28845_v41  ;;  %v28917_v41 = vld [vmem:[%s38719_s3 + $0x2e88] ss:$24 sps:$4 sm:$0xff]  }
 0x733   : > { %15941 = vmatpush1.bf16.msra.mxu0 %v28848_v42  ;;  %11444 = vmatprep.subr.bf16.mxu1 %v28853_v27  ;;  %v28920_v42 = vld [vmem:[%s38719_s3 + $0x3d90] ss:$24 sps:$4 sm:$0xff]   ;;  %v28925_v27 = vld [vmem:[%s38719_s3 + $0x2ebc] ss:$24 sps:$4 sm:$0xff]  }
 0x734   : > { %15942 = vmatprep.subr.bf16.mxu0 %v28856_v20  ;;  %v28928_v20 = vld [vmem:[%s38719_s3 + $0x3dc4] ss:$24 sps:$4 sm:$0xff]  }
 0x736   : > { %11445 = vmatpush1.bf16.msra.mxu1 %v28851_v6  ;;  %v28923_v6 = vld [vmem:[%s38719_s3 + $0x2eb8] ss:$24 sps:$4 sm:$0xff]  }
 0x737   : > { %15943 = vmatpush1.bf16.msra.mxu0 %v28854_v2  ;;  %11446 = vmatprep.subr.bf16.mxu1 %v28859_v26  ;;  %v28926_v2 = vld [vmem:[%s38719_s3 + $0x3dc0] ss:$24 sps:$4 sm:$0xff]   ;;  %v28931_v26 = vld [vmem:[%s38719_s3 + $0x2eec] ss:$24 sps:$4 sm:$0xff]  }
 0x738   : > { %15944 = vmatprep.subr.bf16.mxu0 %v28862_v25  ;;  %v28934_v25 = vld [vmem:[%s38719_s3 + $0x3df4] ss:$24 sps:$4 sm:$0xff]  }
 0x73a   : > { %11447 = vmatpush1.bf16.msra.mxu1 %v28857_v1  ;;  %v28929_v1 = vld [vmem:[%s38719_s3 + $0x2ee8] ss:$24 sps:$4 sm:$0xff]  }
 0x73b   : > { %15945 = vmatpush1.bf16.msra.mxu0 %v28860_v3  ;;  %11448 = vmatprep.subr.bf16.mxu1 %v28865_v4  ;;  %v28932_v3 = vld [vmem:[%s38719_s3 + $0x3df0] ss:$24 sps:$4 sm:$0xff]   ;;  %v28937_v4 = vld [vmem:[%s38719_s3 + $0x2f1c] ss:$24 sps:$4 sm:$0xff]  }
 0x73c   : > { %15946 = vmatprep.subr.bf16.mxu0 %v28868_v5  ;;  %v28940_v5 = vld [vmem:[%s38719_s3 + $0x3e24] ss:$24 sps:$4 sm:$0xff]  }
 0x73e   : > { %11449 = vmatpush1.bf16.msra.mxu1 %v28863_v39  ;;  %v28935_v39 = vld [vmem:[%s38719_s3 + $0x2f18] ss:$24 sps:$4 sm:$0xff]  }
 0x73f   : > { %15947 = vmatpush1.bf16.msra.mxu0 %v28866_v7  ;;  %13556 = vmatprep.subr.bf16.mxu1 %v28871_v8  ;;  %v28938_v7 = vld [vmem:[%s38719_s3 + $0x3e20] ss:$24 sps:$4 sm:$0xff]  }
 0x740   : > { %15959 = vmatprep.subr.bf16.mxu0 %v28874_v9  ;;  %v16315_v8 = vld [vmem:[%s34888_s22] sm:$0xff]  ;;  %v16321_v9 = vld [vmem:[%s34888_s22 + $0x30] sm:$0xff] }
 0x741   : > { %11451 = vmatmul.mubr.bf16.vlgmr.msra.gmra.mrb[4].mxu1 %v33237_v60  ;;  %v28886_v60 = vld [vmem:[%s38719_s3 + $0x3c74] ss:$24 sps:$4 sm:$0xff]  }
 0x742   : > { %15949 = vmatmul.mubr.bf16.vlgmr.msra.gmra.mrb[4].mxu0 %v35484_v62  ;;  %13557 = vmatpush1.bf16.msra.mxu1 %v28869_v14  ;;  %v28881_v62 = vld [vmem:[%s38719_s3 + $0x2d68] ss:$24 sps:$4 sm:$0xff]   ;;  %v28943_v14 = vld [vmem:[%s38719_s3 + $0x2f4c] ss:$24 sps:$4 sm:$0xff]  }
 0x743   : > { %15960 = vmatpush1.bf16.msra.mxu0 %v28872_v19  ;;  %13558 = vmatprep.subr.bf16.mxu1 %v28877_v24  ;;  %v28946_v19 = vld [vmem:[%s38719_s3 + $0x3e54] ss:$24 sps:$4 sm:$0xff]   ;;  %v16328_v24 = vshrl.u32 %v16315_v8, 16 }
 0x744   : > { %15961 = vmatprep.subr.bf16.mxu0 %v28880_v54  ;;  %13588 = vmatprep.mubr.bf16.mxu1 %v33853_v23  ;;  %v28892_v23 = vld [vmem:[%s38719_s3 + $0x3ca4] ss:$24 sps:$4 sm:$0xff]   ;;  %v16331_v54 = vshll.u32 %v16315_v8, 16  ;;  %v28980_v8 = vld [vmem:[%s38719_s3 + $0x3f60] ss:$24 sps:$4 sm:$0xff]  }
 0x745   : > { %15991 = vmatprep.mubr.bf16.mxu0 %v35499_v33  ;;  %v28887_v33 = vld [vmem:[%s38719_s3 + $0x2d98] ss:$24 sps:$4 sm:$0xff]  }
 0x746   : > { %13559 = vmatpush1.bf16.msra.mxu1 %v28875_v30  ;;  %v16370_v30 = vshrl.u32 %v16321_v9, 16 }
 0x747   : > { %15962 = vmatpush1.bf16.msra.mxu0 %v28878_v34  ;;  %13560 = vmatprep.subr.bf16.mxu1 %v28883_v40  ;;  %v16373_v34 = vshll.u32 %v16321_v9, 16  ;;  %v28941_v40 = vld [vmem:[%s38719_s3 + $0x2f48] ss:$24 sps:$4 sm:$0xff]   ;;  %v28985_v9 = vld [vmem:[%s38719_s3 + $0x309c] ss:$24 sps:$4 sm:$0xff]  }
 0x748   : > { %15963 = vmatprep.subr.bf16.mxu0 %v28886_v60  ;;  %v28944_v60 = vld [vmem:[%s38719_s3 + $0x3e50] ss:$24 sps:$4 sm:$0xff]  }
 0x74a   : > { %13561 = vmatpush1.bf16.msra.mxu1 %v28881_v62  ;;  %v28949_v62 = vld [vmem:[%s38719_s3 + $0x2f7c] ss:$24 sps:$4 sm:$0xff]  }
 0x74b   : > { %15964 = vmatpush1.bf16.msra.mxu0 %v28884_v29  ;;  %13562 = vmatprep.subr.bf16.mxu1 %v28889_v36  ;;  %v28952_v29 = vld [vmem:[%s38719_s3 + $0x3e84] ss:$24 sps:$4 sm:$0xff]   ;;  %v28947_v36 = vld [vmem:[%s38719_s3 + $0x2f78] ss:$24 sps:$4 sm:$0xff]  }
 0x74c   : > { %15965 = vmatprep.subr.bf16.mxu0 %v28892_v23  ;;  %v16330_v23 = vrot.slane %v16328_v24, 4  ;;  %v28991_v24 = vld [vmem:[%s38719_s3 + $0x30cc] ss:$24 sps:$4 sm:$0xff]  }
 0x74e   : > { %13563 = vmatpush1.bf16.msra.mxu1 %v28887_v33  ;;  %v16333_v33 = vrot.slane %v16331_v54, 5  ;;  %v28994_v54 = vld [vmem:[%s38719_s3 + $0x3fc4] ss:$24 sps:$4 sm:$0xff]  }
 0x74f   : > { %15966 = vmatpush1.bf16.msra.mxu0 %v28890_v47  ;;  %13564 = vmatprep.subr.bf16.mxu1 %v28895_v43  ;;  %v16372_v47 = vrot.slane %v16370_v30, 4  ;;  %v16375_v43 = vrot.slane %v16373_v34, 5  ;;  %v28989_v30 = vld [vmem:[%s38719_s3 + $0x30c8] ss:$24 sps:$4 sm:$0xff]  }
 0x750   : > { %15967 = vmatprep.subr.bf16.mxu0 %v28898_v44  ;;  %v28950_v44 = vld [vmem:[%s38719_s3 + $0x3e80] ss:$24 sps:$4 sm:$0xff]  }
 0x751   : > { %v28992_v34 = vld [vmem:[%s38719_s3 + $0x3fc0] ss:$24 sps:$4 sm:$0xff]  }
 0x752   : > { %13565 = vmatpush1.bf16.msra.mxu1 %v28893_v18  ;;  %v16318_v18 = vld [vmem:[%s34888_s22 + $0x18] sm:$0x11] }
 0x753   : > { %15968 = vmatpush1.bf16.msra.mxu0 %v28896_v31  ;;  %13566 = vmatprep.subr.bf16.mxu1 %v28901_v55  ;;  %v16324_v31 = vld [vmem:[%s34888_s22 + $0x48] sm:$0x11] }
 0x754   : > { %15969 = vmatprep.subr.bf16.mxu0 %v28904_v56  ;;  %v28955_v55 = vld [vmem:[%s38719_s3 + $0x2fac] ss:$24 sps:$4 sm:$0xff]  }
 0x755   : > { %v28958_v56 = vld [vmem:[%s38719_s3 + $0x3eb4] ss:$24 sps:$4 sm:$0xff]  }
 0x756   : > { %13567 = vmatpush1.bf16.msra.mxu1 %v28899_v32  ;;  %v16334_v32 = vor.u32 %v16333_v33, %v16330_v23  ;;  %v29006_v23 = vld [vmem:[%s38719_s3 + $0x4024] ss:$24 sps:$4 sm:$0xff]   ;;  %v29001_v33 = vld [vmem:[%s38719_s3 + $0x3128] ss:$24 sps:$4 sm:$0xff]  }
 0x757   : > { %15970 = vmatpush1.bf16.msra.mxu0 %v28902_v45  ;;  %13568 = vmatprep.subr.bf16.mxu1 %v28907_v46  ;;  %v16337_v45 = vshll.u32 %v16318_v18, 16  ;;  %v16376_v46 = vor.u32 %v16375_v43, %v16372_v47  ;;  %v29004_v47 = vld [vmem:[%s38719_s3 + $0x4020] ss:$24 sps:$4 sm:$0xff]   ;;  %v29009_v43 = vld [vmem:[%s38719_s3 + $0x315c] ss:$24 sps:$4 sm:$0xff]  }
 0x758   : > { %15971 = vmatprep.subr.bf16.mxu0 %v28910_v49  ;;  %v16379_v49 = vshll.u32 %v16324_v31, 16  ;;  %v29007_v18 = vld [vmem:[%s38719_s3 + $0x3158] ss:$24 sps:$4 sm:$0xff]  }
 0x759   : > { %v29010_v31 = vld [vmem:[%s38719_s3 + $0x4050] ss:$24 sps:$4 sm:$0xff]  }
 0x75a   : > { %13569 = vmatpush1.bf16.msra.mxu1 %v28905_v35  ;;  %v28953_v35 = vld [vmem:[%s38719_s3 + $0x2fa8] ss:$24 sps:$4 sm:$0xff]  }
 0x75b   : > { %15972 = vmatpush1.bf16.msra.mxu0 %v28908_v57  ;;  %13570 = vmatprep.subr.bf16.mxu1 %v28913_v58  ;;  %v28956_v57 = vld [vmem:[%s38719_s3 + $0x3eb0] ss:$24 sps:$4 sm:$0xff]   ;;  %v28961_v58 = vld [vmem:[%s38719_s3 + $0x2fdc] ss:$24 sps:$4 sm:$0xff]  }
 0x75c   : > { %15973 = vmatprep.subr.bf16.mxu0 %v28916_v0  ;;  %v28964_v0 = vld [vmem:[%s38719_s3 + $0x3ee4] ss:$24 sps:$4 sm:$0xff]  }
 0x75e   : > { %13571 = vmatpush1.bf16.msra.mxu1 %v28911_v16  ;;  %v16335_v16 = vrot.slane %v16334_v32, 4  ;;  %v29013_v32 = vld [vmem:[%s38719_s3 + $0x3188] ss:$24 sps:$4 sm:$0xff]  }
 0x75f   : > { %15974 = vmatpush1.bf16.msra.mxu0 %v28914_v48  ;;  %13572 = vmatprep.subr.bf16.mxu1 %v28919_v38  ;;  %v16339_v48 = vrot.slane %v16337_v45, 5  ;;  %v16377_v38 = vrot.slane %v16376_v46, 4  ;;  %v29016_v45 = vld [vmem:[%s38719_s3 + $0x4080] ss:$24 sps:$4 sm:$0xff]   ;;  %v29021_v46 = vld [vmem:[%s38719_s3 + $0x31bc] ss:$24 sps:$4 sm:$0xff]  }
 0x760   : > { %15975 = vmatprep.subr.bf16.mxu0 %v28922_v22  ;;  %v16381_v22 = vrot.slane %v16379_v49, 5  ;;  %v29024_v49 = vld [vmem:[%s38719_s3 + $0x40b4] ss:$24 sps:$4 sm:$0xff]  }
 0x762   : > { %13573 = vmatpush1.bf16.msra.mxu1 %v28917_v41  ;;  %v28959_v41 = vld [vmem:[%s38719_s3 + $0x2fd8] ss:$24 sps:$4 sm:$0xff]  }
 0x763   : > { %15976 = vmatpush1.bf16.msra.mxu0 %v28920_v42  ;;  %13574 = vmatprep.subr.bf16.mxu1 %v28925_v27  ;;  %v28962_v42 = vld [vmem:[%s38719_s3 + $0x3ee0] ss:$24 sps:$4 sm:$0xff]   ;;  %v28967_v27 = vld [vmem:[%s38719_s3 + $0x300c] ss:$24 sps:$4 sm:$0xff]  }
 0x764   : > { %15977 = vmatprep.subr.bf16.mxu0 %v28928_v20  ;;  %v28970_v20 = vld [vmem:[%s38719_s3 + $0x3f04] ss:$24 sps:$4 sm:$0xff]  }
 0x766   : > { %13575 = vmatpush1.bf16.msra.mxu1 %v28923_v6  ;;  %v36282_v6 = vsel %vm32133_vm5, %v16335_v16, %v16339_v48  ;;  %v29025_v16 = vld [vmem:[%s38719_s3 + $0x31e8] ss:$24 sps:$4 sm:$0xff]  }
 0x767   : > { %15978 = vmatpush1.bf16.msra.mxu0 %v28926_v2  ;;  %13576 = vmatprep.subr.bf16.mxu1 %v28931_v26  ;;  %v36286_v2 = vsel %vm32133_vm5, %v16377_v38, %v16381_v22  ;;  %v28965_v26 = vld [vmem:[%s38719_s3 + $0x3008] ss:$24 sps:$4 sm:$0xff]   ;;  %v29033_v38 = vld [vmem:[%s38719_s3 + $0x321c] ss:$24 sps:$4 sm:$0xff]  }
 0x768   : > { %15979 = vmatprep.subr.bf16.mxu0 %v28934_v25  ;;  %v28968_v25 = vld [vmem:[%s38719_s3 + $0x3f00] ss:$24 sps:$4 sm:$0xff]   ;;  %v29036_v22 = vld [vmem:[%s38719_s3 + $0x4114] ss:$24 sps:$4 sm:$0xff]  }
 0x769   : > { %v29028_v48 = vld [vmem:[%s38719_s3 + $0x40e0] ss:$24 sps:$4 sm:$0xff]  }
 0x76a   : > { %13577 = vmatpush1.bf16.msra.mxu1 %v28929_v1  ;;  %v28973_v1 = vld [vmem:[%s38719_s3 + $0x303c] ss:$24 sps:$4 sm:$0xff]  }
 0x76b   : > { %15980 = vmatpush1.bf16.msra.mxu0 %v28932_v3  ;;  %13578 = vmatprep.subr.bf16.mxu1 %v28937_v4  ;;  %v28976_v3 = vld [vmem:[%s38719_s3 + $0x3f34] ss:$24 sps:$4 sm:$0xff]   ;;  %v36302_v4 = vcombine.high %v36282_v6, %v36286_v2 }
 0x76c   : > { %15981 = vmatprep.subr.bf16.mxu0 %v28940_v5  ;;  %v28971_v5 = vld [vmem:[%s38719_s3 + $0x3038] ss:$24 sps:$4 sm:$0xff]  }
 0x76e   : > { %13579 = vmatpush1.bf16.msra.mxu1 %v28935_v39  ;;  %v28974_v39 = vld [vmem:[%s38719_s3 + $0x3f30] ss:$24 sps:$4 sm:$0xff]  }
 0x76f   : > { %15982 = vmatpush1.bf16.msra.mxu0 %v28938_v7  ;;  %13580 = vmatprep.subr.bf16.mxu1 %v28943_v14  ;;  %v28979_v7 = vld [vmem:[%s38719_s3 + $0x306c] ss:$24 sps:$4 sm:$0xff]   ;;  %v28983_v14 = vld [vmem:[%s38719_s3 + $0x3098] ss:$24 sps:$4 sm:$0xff]  }
 0x770   : > { %15983 = vmatprep.subr.bf16.mxu0 %v28946_v19  ;;  %v28986_v19 = vld [vmem:[%s38719_s3 + $0x3f90] ss:$24 sps:$4 sm:$0xff]  }
 0x772   : > { %13581 = vmatpush1.bf16.msra.mxu1 %v28941_v40  ;;  %v28997_v40 = vld [vmem:[%s38719_s3 + $0x30fc] ss:$24 sps:$4 sm:$0xff]  }
 0x773   : > { %15984 = vmatpush1.bf16.msra.mxu0 %v28944_v60  ;;  %13582 = vmatprep.subr.bf16.mxu1 %v28949_v62  ;;  %v29000_v60 = vld [vmem:[%s38719_s3 + $0x3ff4] ss:$24 sps:$4 sm:$0xff]   ;;  %v28995_v62 = vld [vmem:[%s38719_s3 + $0x30f8] ss:$24 sps:$4 sm:$0xff]  }
 0x774   : > { %15985 = vmatprep.subr.bf16.mxu0 %v28952_v29  ;;  %v28998_v29 = vld [vmem:[%s38719_s3 + $0x3ff0] ss:$24 sps:$4 sm:$0xff]  }
 0x776   : > { %13583 = vmatpush1.bf16.msra.mxu1 %v28947_v36  ;;  %v29003_v36 = vld [vmem:[%s38719_s3 + $0x312c] ss:$24 sps:$4 sm:$0xff]  }
 0x777   : > { %15986 = vmatpush1.bf16.msra.mxu0 %v28950_v44  ;;  %13584 = vmatprep.subr.bf16.mxu1 %v28955_v55  ;;  %v29012_v44 = vld [vmem:[%s38719_s3 + $0x4054] ss:$24 sps:$4 sm:$0xff]  }
 0x778   : > { %15987 = vmatprep.subr.bf16.mxu0 %v28958_v56  ;;  %v29015_v55 = vld [vmem:[%s38719_s3 + $0x318c] ss:$24 sps:$4 sm:$0xff]  }
 0x779   : > { %v29018_v56 = vld [vmem:[%s38719_s3 + $0x4084] ss:$24 sps:$4 sm:$0xff]  }
 0x77a   : > { %13585 = vmatpush1.bf16.msra.mxu1 %v28953_v35  ;;  %v29019_v35 = vld [vmem:[%s38719_s3 + $0x31b8] ss:$24 sps:$4 sm:$0xff]  }
 0x77b   : > { %15988 = vmatpush1.bf16.msra.mxu0 %v28956_v57  ;;  %13586 = vmatprep.subr.bf16.mxu1 %v28961_v58  ;;  %v29022_v57 = vld [vmem:[%s38719_s3 + $0x40b0] ss:$24 sps:$4 sm:$0xff]   ;;  %v29027_v58 = vld [vmem:[%s38719_s3 + $0x31ec] ss:$24 sps:$4 sm:$0xff]  }
 0x77c   : > { %15989 = vmatprep.subr.bf16.mxu0 %v28964_v0  ;;  %v29030_v0 = vld [vmem:[%s38719_s3 + $0x40e4] ss:$24 sps:$4 sm:$0xff]  }
 0x77e   : > { %13587 = vmatpush1.bf16.msra.mxu1 %v28959_v41  ;;  %v29031_v41 = vld [vmem:[%s38719_s3 + $0x3218] ss:$24 sps:$4 sm:$0xff]  }
 0x77f   : > { %15990 = vmatpush1.bf16.msra.mxu0 %v28962_v42  ;;  %13599 = vmatprep.subr.bf16.mxu1 %v28967_v27  ;;  %v29034_v42 = vld [vmem:[%s38719_s3 + $0x4110] ss:$24 sps:$4 sm:$0xff]  }
 0x780   : > { %17887 = vmatprep.subr.bf16.mxu0 %v28970_v20  ;;  %v16316_v27 = vld [vmem:[%s34888_s22 + $0x8] sm:$0xff]  ;;  %v16322_v20 = vld [vmem:[%s34888_s22 + $0x38] sm:$0xff] }
 0x781   : > { %13589 = vmatmul.mubr.bf16.vlgmr.msra.gmra.mrb[4].mxu1 %v34045_v59  ;;  %v28982_v59 = vld [vmem:[%s38719_s3 + $0x3f64] ss:$24 sps:$4 sm:$0xff]  }
 0x782   : > { %15992 = vmatmul.mubr.bf16.vlgmr.msra.gmra.mrb[4].mxu0 %v35686_v13  ;;  %13600 = vmatpush1.bf16.msra.mxu1 %v28965_v26  ;;  %v28977_v13 = vld [vmem:[%s38719_s3 + $0x3068] ss:$24 sps:$4 sm:$0xff]   ;;  %v29039_v26 = vld [vmem:[%s38719_s3 + $0x324c] ss:$24 sps:$4 sm:$0xff]  }
 0x783   : > { %17888 = vmatpush1.bf16.msra.mxu0 %v28968_v25  ;;  %13601 = vmatprep.subr.bf16.mxu1 %v28973_v1  ;;  %v29042_v25 = vld [vmem:[%s38719_s3 + $0x4144] ss:$24 sps:$4 sm:$0xff]   ;;  %v16342_v1 = vshrl.u32 %v16316_v27, 16 }
 0x784   : > { %17889 = vmatprep.subr.bf16.mxu0 %v28976_v3  ;;  %13631 = vmatprep.mubr.bf16.mxu1 %v34069_v21  ;;  %v28988_v21 = vld [vmem:[%s38719_s3 + $0x3f94] ss:$24 sps:$4 sm:$0xff]   ;;  %v16345_v3 = vshll.u32 %v16316_v27, 16  ;;  %v29076_v27 = vld [vmem:[%s38719_s3 + $0x4260] ss:$24 sps:$4 sm:$0xff]  }
 0x785   : > { %17919 = vmatprep.mubr.bf16.mxu0 %v36302_v4 }
 0x786   : > { %13602 = vmatpush1.bf16.msra.mxu1 %v28971_v5  ;;  %v16384_v5 = vshrl.u32 %v16322_v20, 16 }
 0x787   : > { %17890 = vmatpush1.bf16.msra.mxu0 %v28974_v39  ;;  %13603 = vmatprep.subr.bf16.mxu1 %v28979_v7  ;;  %v16387_v39 = vshll.u32 %v16322_v20, 16  ;;  %v29037_v7 = vld [vmem:[%s38719_s3 + $0x3248] ss:$24 sps:$4 sm:$0xff]   ;;  %v29081_v20 = vld [vmem:[%s38719_s3 + $0x339c] ss:$24 sps:$4 sm:$0xff]  }
 0x788   : > { %17891 = vmatprep.subr.bf16.mxu0 %v28982_v59  ;;  %v29040_v59 = vld [vmem:[%s38719_s3 + $0x4140] ss:$24 sps:$4 sm:$0xff]  }
 0x78a   : > { %13604 = vmatpush1.bf16.msra.mxu1 %v28977_v13  ;;  %v29045_v13 = vld [vmem:[%s38719_s3 + $0x327c] ss:$24 sps:$4 sm:$0xff]  }
 0x78b   : > { %17892 = vmatpush1.bf16.msra.mxu0 %v28980_v8  ;;  %13605 = vmatprep.subr.bf16.mxu1 %v28985_v9  ;;  %v29048_v8 = vld [vmem:[%s38719_s3 + $0x4174] ss:$24 sps:$4 sm:$0xff]   ;;  %v29043_v9 = vld [vmem:[%s38719_s3 + $0x3278] ss:$24 sps:$4 sm:$0xff]  }
 0x78c   : > { %17893 = vmatprep.subr.bf16.mxu0 %v28988_v21  ;;  %v16344_v21 = vrot.slane %v16342_v1, 4  ;;  %v29087_v1 = vld [vmem:[%s38719_s3 + $0x33cc] ss:$24 sps:$4 sm:$0xff]  }
 0x78e   : > { %13606 = vmatpush1.bf16.msra.mxu1 %v28983_v14  ;;  %v16347_v14 = vrot.slane %v16345_v3, 5  ;;  %v29090_v3 = vld [vmem:[%s38719_s3 + $0x42c4] ss:$24 sps:$4 sm:$0xff]  }
 0x78f   : > { %17894 = vmatpush1.bf16.msra.mxu0 %v28986_v19  ;;  %13607 = vmatprep.subr.bf16.mxu1 %v28991_v24  ;;  %v16386_v19 = vrot.slane %v16384_v5, 4  ;;  %v16389_v24 = vrot.slane %v16387_v39, 5  ;;  %v29085_v5 = vld [vmem:[%s38719_s3 + $0x33c8] ss:$24 sps:$4 sm:$0xff]  }
 0x790   : > { %17895 = vmatprep.subr.bf16.mxu0 %v28994_v54  ;;  %v29046_v54 = vld [vmem:[%s38719_s3 + $0x4170] ss:$24 sps:$4 sm:$0xff]   ;;  %v29088_v39 = vld [vmem:[%s38719_s3 + $0x42c0] ss:$24 sps:$4 sm:$0xff]  }
 0x792   : > { %13608 = vmatpush1.bf16.msra.mxu1 %v28989_v30  ;;  %v16319_v30 = vld [vmem:[%s34888_s22 + $0x20] sm:$0x11] }
 0x793   : > { %17896 = vmatpush1.bf16.msra.mxu0 %v28992_v34  ;;  %13609 = vmatprep.subr.bf16.mxu1 %v28997_v40  ;;  %v16325_v34 = vld [vmem:[%s34888_s22 + $0x50] sm:$0x11]  ;;  %v29051_v40 = vld [vmem:[%s38719_s3 + $0x32ac] ss:$24 sps:$4 sm:$0xff]  }
 0x794   : > { %17897 = vmatprep.subr.bf16.mxu0 %v29000_v60  ;;  %v29054_v60 = vld [vmem:[%s38719_s3 + $0x41a4] ss:$24 sps:$4 sm:$0xff]  }
 0x796   : > { %13610 = vmatpush1.bf16.msra.mxu1 %v28995_v62  ;;  %v16348_v62 = vor.u32 %v16347_v14, %v16344_v21  ;;  %v29102_v21 = vld [vmem:[%s38719_s3 + $0x4324] ss:$24 sps:$4 sm:$0xff]   ;;  %v29097_v14 = vld [vmem:[%s38719_s3 + $0x3428] ss:$24 sps:$4 sm:$0xff]  }
 0x797   : > { %17898 = vmatpush1.bf16.msra.mxu0 %v28998_v29  ;;  %13611 = vmatprep.subr.bf16.mxu1 %v29003_v36  ;;  %v16351_v29 = vshll.u32 %v16319_v30, 16  ;;  %v16390_v36 = vor.u32 %v16389_v24, %v16386_v19  ;;  %v29100_v19 = vld [vmem:[%s38719_s3 + $0x4320] ss:$24 sps:$4 sm:$0xff]   ;;  %v29105_v24 = vld [vmem:[%s38719_s3 + $0x345c] ss:$24 sps:$4 sm:$0xff]  }
 0x798   : > { %17899 = vmatprep.subr.bf16.mxu0 %v29006_v23  ;;  %v16393_v23 = vshll.u32 %v16325_v34, 16  ;;  %v29103_v30 = vld [vmem:[%s38719_s3 + $0x3458] ss:$24 sps:$4 sm:$0xff]  }
 0x799   : > { %v29106_v34 = vld [vmem:[%s38719_s3 + $0x4350] ss:$24 sps:$4 sm:$0xff]  }
 0x79a   : > { %13612 = vmatpush1.bf16.msra.mxu1 %v29001_v33  ;;  %v29049_v33 = vld [vmem:[%s38719_s3 + $0x32a8] ss:$24 sps:$4 sm:$0xff]  }
 0x79b   : > { %17900 = vmatpush1.bf16.msra.mxu0 %v29004_v47  ;;  %13613 = vmatprep.subr.bf16.mxu1 %v29009_v43  ;;  %v29052_v47 = vld [vmem:[%s38719_s3 + $0x41a0] ss:$24 sps:$4 sm:$0xff]   ;;  %v29057_v43 = vld [vmem:[%s38719_s3 + $0x32dc] ss:$24 sps:$4 sm:$0xff]  }
 0x79c   : > { %17901 = vmatprep.subr.bf16.mxu0 %v29012_v44  ;;  %v29060_v44 = vld [vmem:[%s38719_s3 + $0x41d4] ss:$24 sps:$4 sm:$0xff]  }
 0x79e   : > { %13614 = vmatpush1.bf16.msra.mxu1 %v29007_v18  ;;  %v16349_v18 = vrot.slane %v16348_v62, 4  ;;  %v29109_v62 = vld [vmem:[%s38719_s3 + $0x3488] ss:$24 sps:$4 sm:$0xff]  }
 0x79f   : > { %17902 = vmatpush1.bf16.msra.mxu0 %v29010_v31  ;;  %13615 = vmatprep.subr.bf16.mxu1 %v29015_v55  ;;  %v16353_v31 = vrot.slane %v16351_v29, 5  ;;  %v16391_v55 = vrot.slane %v16390_v36, 4  ;;  %v29112_v29 = vld [vmem:[%s38719_s3 + $0x4380] ss:$24 sps:$4 sm:$0xff]   ;;  %v29117_v36 = vld [vmem:[%s38719_s3 + $0x34bc] ss:$24 sps:$4 sm:$0xff]  }
 0x7a0   : > { %17903 = vmatprep.subr.bf16.mxu0 %v29018_v56  ;;  %v16395_v56 = vrot.slane %v16393_v23, 5  ;;  %v29120_v23 = vld [vmem:[%s38719_s3 + $0x43b4] ss:$24 sps:$4 sm:$0xff]  }
 0x7a2   : > { %13616 = vmatpush1.bf16.msra.mxu1 %v29013_v32  ;;  %v29055_v32 = vld [vmem:[%s38719_s3 + $0x32d8] ss:$24 sps:$4 sm:$0xff]  }
 0x7a3   : > { %17904 = vmatpush1.bf16.msra.mxu0 %v29016_v45  ;;  %13617 = vmatprep.subr.bf16.mxu1 %v29021_v46  ;;  %v29058_v45 = vld [vmem:[%s38719_s3 + $0x41d0] ss:$24 sps:$4 sm:$0xff]   ;;  %v29063_v46 = vld [vmem:[%s38719_s3 + $0x330c] ss:$24 sps:$4 sm:$0xff]  }
 0x7a4   : > { %17905 = vmatprep.subr.bf16.mxu0 %v29024_v49  ;;  %v29066_v49 = vld [vmem:[%s38719_s3 + $0x4204] ss:$24 sps:$4 sm:$0xff]  }
 0x7a6   : > { %13618 = vmatpush1.bf16.msra.mxu1 %v29019_v35  ;;  %v36494_v35 = vcombine.low %v36282_v6, %v36286_v2  ;;  %v29069_v6 = vld [vmem:[%s38719_s3 + $0x333c] ss:$24 sps:$4 sm:$0xff]  }
 0x7a7   : > { %17906 = vmatpush1.bf16.msra.mxu0 %v29022_v57  ;;  %13619 = vmatprep.subr.bf16.mxu1 %v29027_v58  ;;  %v36498_v57 = vsel %vm32133_vm5, %v16349_v18, %v16353_v31  ;;  %v36502_v58 = vsel %vm32133_vm5, %v16391_v55, %v16395_v56  ;;  %v29072_v2 = vld [vmem:[%s38719_s3 + $0x4234] ss:$24 sps:$4 sm:$0xff]   ;;  %v29121_v18 = vld [vmem:[%s38719_s3 + $0x34e8] ss:$24 sps:$4 sm:$0xff]  }
 0x7a8   : > { %17907 = vmatprep.subr.bf16.mxu0 %v29030_v0  ;;  %v29061_v0 = vld [vmem:[%s38719_s3 + $0x3308] ss:$24 sps:$4 sm:$0xff]   ;;  %v29129_v55 = vld [vmem:[%s38719_s3 + $0x351c] ss:$24 sps:$4 sm:$0xff]  }
 0x7a9   : > { %v29124_v31 = vld [vmem:[%s38719_s3 + $0x43e0] ss:$24 sps:$4 sm:$0xff]   ;;  %v29132_v56 = vld [vmem:[%s38719_s3 + $0x4414] ss:$24 sps:$4 sm:$0xff]  }
 0x7aa   : > { %13620 = vmatpush1.bf16.msra.mxu1 %v29025_v16  ;;  %v29064_v16 = vld [vmem:[%s38719_s3 + $0x4200] ss:$24 sps:$4 sm:$0xff]  }
 0x7ab   : > { %17908 = vmatpush1.bf16.msra.mxu0 %v29028_v48  ;;  %13621 = vmatprep.subr.bf16.mxu1 %v29033_v38  ;;  %v36518_v48 = vcombine.high %v36498_v57, %v36502_v58  ;;  %v29067_v38 = vld [vmem:[%s38719_s3 + $0x3338] ss:$24 sps:$4 sm:$0xff]  }
 0x7ac   : > { %17909 = vmatprep.subr.bf16.mxu0 %v29036_v22  ;;  %v29070_v22 = vld [vmem:[%s38719_s3 + $0x4230] ss:$24 sps:$4 sm:$0xff]  }
 0x7ae   : > { %13622 = vmatpush1.bf16.msra.mxu1 %v29031_v41  ;;  %v29075_v41 = vld [vmem:[%s38719_s3 + $0x336c] ss:$24 sps:$4 sm:$0xff]  }
 0x7af   : > { %17910 = vmatpush1.bf16.msra.mxu0 %v29034_v42  ;;  %13623 = vmatprep.subr.bf16.mxu1 %v29039_v26  ;;  %v29073_v42 = vld [vmem:[%s38719_s3 + $0x3368] ss:$24 sps:$4 sm:$0xff]   ;;  %v29079_v26 = vld [vmem:[%s38719_s3 + $0x3398] ss:$24 sps:$4 sm:$0xff]  }
 0x7b0   : > { %17911 = vmatprep.subr.bf16.mxu0 %v29042_v25  ;;  %v29082_v25 = vld [vmem:[%s38719_s3 + $0x4290] ss:$24 sps:$4 sm:$0xff]  }
 0x7b2   : > { %13624 = vmatpush1.bf16.msra.mxu1 %v29037_v7  ;;  %v29093_v7 = vld [vmem:[%s38719_s3 + $0x33fc] ss:$24 sps:$4 sm:$0xff]  }
 0x7b3   : > { %17912 = vmatpush1.bf16.msra.mxu0 %v29040_v59  ;;  %13625 = vmatprep.subr.bf16.mxu1 %v29045_v13  ;;  %v29096_v59 = vld [vmem:[%s38719_s3 + $0x42f4] ss:$24 sps:$4 sm:$0xff]   ;;  %v29091_v13 = vld [vmem:[%s38719_s3 + $0x33f8] ss:$24 sps:$4 sm:$0xff]  }
 0x7b4   : > { %17913 = vmatprep.subr.bf16.mxu0 %v29048_v8  ;;  %v29094_v8 = vld [vmem:[%s38719_s3 + $0x42f0] ss:$24 sps:$4 sm:$0xff]  }
 0x7b6   : > { %13626 = vmatpush1.bf16.msra.mxu1 %v29043_v9  ;;  %v29099_v9 = vld [vmem:[%s38719_s3 + $0x342c] ss:$24 sps:$4 sm:$0xff]  }
 0x7b7   : > { %17914 = vmatpush1.bf16.msra.mxu0 %v29046_v54  ;;  %13627 = vmatprep.subr.bf16.mxu1 %v29051_v40  ;;  %v29108_v54 = vld [vmem:[%s38719_s3 + $0x4354] ss:$24 sps:$4 sm:$0xff]  }
 0x7b8   : > { %17915 = vmatprep.subr.bf16.mxu0 %v29054_v60  ;;  %v29111_v40 = vld [vmem:[%s38719_s3 + $0x348c] ss:$24 sps:$4 sm:$0xff]  }
 0x7b9   : > { %v29114_v60 = vld [vmem:[%s38719_s3 + $0x4384] ss:$24 sps:$4 sm:$0xff]  }
 0x7ba   : > { %13628 = vmatpush1.bf16.msra.mxu1 %v29049_v33  ;;  %v29115_v33 = vld [vmem:[%s38719_s3 + $0x34b8] ss:$24 sps:$4 sm:$0xff]  }
 0x7bb   : > { %17916 = vmatpush1.bf16.msra.mxu0 %v29052_v47  ;;  %13629 = vmatprep.subr.bf16.mxu1 %v29057_v43  ;;  %v29118_v47 = vld [vmem:[%s38719_s3 + $0x43b0] ss:$24 sps:$4 sm:$0xff]   ;;  %v29123_v43 = vld [vmem:[%s38719_s3 + $0x34ec] ss:$24 sps:$4 sm:$0xff]  }
 0x7bc   : > { %17917 = vmatprep.subr.bf16.mxu0 %v29060_v44  ;;  %v29126_v44 = vld [vmem:[%s38719_s3 + $0x43e4] ss:$24 sps:$4 sm:$0xff]  }
 0x7be   : > { %13630 = vmatpush1.bf16.msra.mxu1 %v29055_v32  ;;  %v29127_v32 = vld [vmem:[%s38719_s3 + $0x3518] ss:$24 sps:$4 sm:$0xff]  }
 0x7bf   : > { %17918 = vmatpush1.bf16.msra.mxu0 %v29058_v45  ;;  %13642 = vmatprep.subr.bf16.mxu1 %v29063_v46  ;;  %v29130_v45 = vld [vmem:[%s38719_s3 + $0x4410] ss:$24 sps:$4 sm:$0xff]  }
 0x7c0   : > { %17930 = vmatprep.subr.bf16.mxu0 %v29066_v49  ;;  %v16317_v46 = vld [vmem:[%s34888_s22 + $0x10] sm:$0xff]  ;;  %v16323_v49 = vld [vmem:[%s34888_s22 + $0x40] sm:$0xff] }
 0x7c1   : > { %13632 = vmatmul.mubr.bf16.vlgmr.msra.gmra.mrb[4].mxu1 %v34261_v37  ;;  %v29078_v37 = vld [vmem:[%s38719_s3 + $0x4264] ss:$24 sps:$4 sm:$0xff]  }
 0x7c2   : > { %17920 = vmatmul.mubr.bf16.vlgmr.msra.gmra.mrb[0].mxu0 %v36494_v35  ;;  %13643 = vmatpush1.bf16.msra.mxu1 %v29061_v0  ;;  %v29135_v0 = vld [vmem:[%s38719_s3 + $0x354c] ss:$24 sps:$4 sm:$0xff]  }
 0x7c3   : > { %17931 = vmatpush1.bf16.msra.mxu0 %v29064_v16  ;;  %13644 = vmatprep.subr.bf16.mxu1 %v29069_v6  ;;  %v29138_v16 = vld [vmem:[%s38719_s3 + $0x4444] ss:$24 sps:$4 sm:$0xff]   ;;  %v16356_v6 = vshrl.u32 %v16317_v46, 16 }
 0x7c4   : > { %17932 = vmatprep.subr.bf16.mxu0 %v29072_v2  ;;  %13674 = vmatprep.mubr.bf16.mxu1 %v34285_v61  ;;  %v29084_v61 = vld [vmem:[%s38719_s3 + $0x4294] ss:$24 sps:$4 sm:$0xff]   ;;  %v16359_v2 = vshll.u32 %v16317_v46, 16  ;;  %v29172_v46 = vld [vmem:[%s38719_s3 + $0x4560] ss:$24 sps:$4 sm:$0xff]  }
 0x7c5   : > { %17962 = vmatprep.mubr.bf16.mxu0 %v36518_v48 }
 0x7c6   : > { %13645 = vmatpush1.bf16.msra.mxu1 %v29067_v38  ;;  %v16398_v38 = vshrl.u32 %v16323_v49, 16 }
 0x7c7   : > { %17933 = vmatpush1.bf16.msra.mxu0 %v29070_v22  ;;  %13646 = vmatprep.subr.bf16.mxu1 %v29075_v41  ;;  %v16401_v22 = vshll.u32 %v16323_v49, 16  ;;  %v29133_v41 = vld [vmem:[%s38719_s3 + $0x3548] ss:$24 sps:$4 sm:$0xff]   ;;  %v29177_v49 = vld [vmem:[%s38719_s3 + $0x369c] ss:$24 sps:$4 sm:$0xff]  }
 0x7c8   : > { %17934 = vmatprep.subr.bf16.mxu0 %v29078_v37  ;;  %v29136_v37 = vld [vmem:[%s38719_s3 + $0x4440] ss:$24 sps:$4 sm:$0xff]  }
 0x7ca   : > { %13647 = vmatpush1.bf16.msra.mxu1 %v29073_v42  ;;  %v29141_v42 = vld [vmem:[%s38719_s3 + $0x357c] ss:$24 sps:$4 sm:$0xff]  }
 0x7cb   : > { %17935 = vmatpush1.bf16.msra.mxu0 %v29076_v27  ;;  %13648 = vmatprep.subr.bf16.mxu1 %v29081_v20  ;;  %v29144_v27 = vld [vmem:[%s38719_s3 + $0x4474] ss:$24 sps:$4 sm:$0xff]   ;;  %v29139_v20 = vld [vmem:[%s38719_s3 + $0x3578] ss:$24 sps:$4 sm:$0xff]  }
 0x7cc   : > { %17936 = vmatprep.subr.bf16.mxu0 %v29084_v61  ;;  %v16358_v61 = vrot.slane %v16356_v6, 4  ;;  %v29178_v6 = vld [vmem:[%s38719_s3 + $0x4590] ss:$24 sps:$4 sm:$0xff]  }
 0x7ce   : > { %13649 = vmatpush1.bf16.msra.mxu1 %v29079_v26  ;;  %v16361_v26 = vrot.slane %v16359_v2, 5  ;;  %v29183_v2 = vld [vmem:[%s38719_s3 + $0x36cc] ss:$24 sps:$4 sm:$0xff]  }
 0x7cf   : > { %17937 = vmatpush1.bf16.msra.mxu0 %v29082_v25  ;;  %13650 = vmatprep.subr.bf16.mxu1 %v29087_v1  ;;  %v16400_v25 = vrot.slane %v16398_v38, 4  ;;  %v16403_v1 = vrot.slane %v16401_v22, 5  ;;  %v29186_v38 = vld [vmem:[%s38719_s3 + $0x45c4] ss:$24 sps:$4 sm:$0xff]   ;;  %v29181_v22 = vld [vmem:[%s38719_s3 + $0x36c8] ss:$24 sps:$4 sm:$0xff]  }
 0x7d0   : > { %17938 = vmatprep.subr.bf16.mxu0 %v29090_v3  ;;  %v29142_v3 = vld [vmem:[%s38719_s3 + $0x4470] ss:$24 sps:$4 sm:$0xff]  }
 0x7d2   : > { %13651 = vmatpush1.bf16.msra.mxu1 %v29085_v5  ;;  %v16320_v5 = vld [vmem:[%s34888_s22 + $0x28] sm:$0x11] }
 0x7d3   : > { %17939 = vmatpush1.bf16.msra.mxu0 %v29088_v39  ;;  %13652 = vmatprep.subr.bf16.mxu1 %v29093_v7  ;;  %v16326_v39 = vld [vmem:[%s34888_s22 + $0x58] sm:$0x11]  ;;  %v29147_v7 = vld [vmem:[%s38719_s3 + $0x35ac] ss:$24 sps:$4 sm:$0xff]  }
 0x7d4   : > { %17940 = vmatprep.subr.bf16.mxu0 %v29096_v59  ;;  %v29150_v59 = vld [vmem:[%s38719_s3 + $0x44a4] ss:$24 sps:$4 sm:$0xff]  }
 0x7d6   : > { %13653 = vmatpush1.bf16.msra.mxu1 %v29091_v13  ;;  %v16362_v13 = vor.u32 %v16361_v26, %v16358_v61  ;;  %v29195_v61 = vld [vmem:[%s38719_s3 + $0x372c] ss:$24 sps:$4 sm:$0xff]  }
 0x7d7   : > { %17941 = vmatpush1.bf16.msra.mxu0 %v29094_v8  ;;  %13654 = vmatprep.subr.bf16.mxu1 %v29099_v9  ;;  %v16365_v8 = vshll.u32 %v16320_v5, 16  ;;  %v16404_v9 = vor.u32 %v16403_v1, %v16400_v25  ;;  %v29198_v26 = vld [vmem:[%s38719_s3 + $0x4624] ss:$24 sps:$4 sm:$0xff]   ;;  %v29193_v25 = vld [vmem:[%s38719_s3 + $0x3728] ss:$24 sps:$4 sm:$0xff]  }
 0x7d8   : > { %17942 = vmatprep.subr.bf16.mxu0 %v29102_v21  ;;  %v16407_v21 = vshll.u32 %v16326_v39, 16  ;;  %v29196_v1 = vld [vmem:[%s38719_s3 + $0x4620] ss:$24 sps:$4 sm:$0xff]   ;;  %v29204_v5 = vld [vmem:[%s38719_s3 + $0x4654] ss:$24 sps:$4 sm:$0xff]  }
 0x7d9   : > { %v29199_v39 = vld [vmem:[%s38719_s3 + $0x3758] ss:$24 sps:$4 sm:$0xff]  }
 0x7da   : > { %13655 = vmatpush1.bf16.msra.mxu1 %v29097_v14  ;;  %v29145_v14 = vld [vmem:[%s38719_s3 + $0x35a8] ss:$24 sps:$4 sm:$0xff]  }
 0x7db   : > { %17943 = vmatpush1.bf16.msra.mxu0 %v29100_v19  ;;  %13656 = vmatprep.subr.bf16.mxu1 %v29105_v24  ;;  %v29148_v19 = vld [vmem:[%s38719_s3 + $0x44a0] ss:$24 sps:$4 sm:$0xff]   ;;  %v29153_v24 = vld [vmem:[%s38719_s3 + $0x35dc] ss:$24 sps:$4 sm:$0xff]  }
 0x7dc   : > { %17944 = vmatprep.subr.bf16.mxu0 %v29108_v54  ;;  %v29156_v54 = vld [vmem:[%s38719_s3 + $0x44d4] ss:$24 sps:$4 sm:$0xff]  }
 0x7de   : > { %13657 = vmatpush1.bf16.msra.mxu1 %v29103_v30  ;;  %v16363_v30 = vrot.slane %v16362_v13, 4  ;;  %v29210_v13 = vld [vmem:[%s38719_s3 + $0x4684] ss:$24 sps:$4 sm:$0xff]  }
 0x7df   : > { %17945 = vmatpush1.bf16.msra.mxu0 %v29106_v34  ;;  %13658 = vmatprep.subr.bf16.mxu1 %v29111_v40  ;;  %v16367_v34 = vrot.slane %v16365_v8, 5  ;;  %v16405_v40 = vrot.slane %v16404_v9, 4  ;;  %v29205_v8 = vld [vmem:[%s38719_s3 + $0x3788] ss:$24 sps:$4 sm:$0xff]  }
 0x7e0   : > { %17946 = vmatprep.subr.bf16.mxu0 %v29114_v60  ;;  %v16409_v60 = vrot.slane %v16407_v21, 5  ;;  %v29208_v9 = vld [vmem:[%s38719_s3 + $0x4680] ss:$24 sps:$4 sm:$0xff]   ;;  %v29213_v21 = vld [vmem:[%s38719_s3 + $0x37bc] ss:$24 sps:$4 sm:$0xff]  }
 0x7e2   : > { %13659 = vmatpush1.bf16.msra.mxu1 %v29109_v62  ;;  %v29151_v62 = vld [vmem:[%s38719_s3 + $0x35d8] ss:$24 sps:$4 sm:$0xff]  }
 0x7e3   : > { %17947 = vmatpush1.bf16.msra.mxu0 %v29112_v29  ;;  %13660 = vmatprep.subr.bf16.mxu1 %v29117_v36  ;;  %v29154_v29 = vld [vmem:[%s38719_s3 + $0x44d0] ss:$24 sps:$4 sm:$0xff]   ;;  %v29159_v36 = vld [vmem:[%s38719_s3 + $0x360c] ss:$24 sps:$4 sm:$0xff]  }
 0x7e4   : > { %17948 = vmatprep.subr.bf16.mxu0 %v29120_v23  ;;  %v29162_v23 = vld [vmem:[%s38719_s3 + $0x4504] ss:$24 sps:$4 sm:$0xff]  }
 0x7e6   : > { %13661 = vmatpush1.bf16.msra.mxu1 %v29115_v33  ;;  %v36710_v33 = vcombine.low %v36498_v57, %v36502_v58  ;;  %v29165_v57 = vld [vmem:[%s38719_s3 + $0x363c] ss:$24 sps:$4 sm:$0xff]  }
 0x7e7   : > { %17949 = vmatpush1.bf16.msra.mxu0 %v29118_v47  ;;  %13662 = vmatprep.subr.bf16.mxu1 %v29123_v43  ;;  %v36714_v47 = vsel %vm32133_vm5, %v16363_v30, %v16367_v34  ;;  %v36718_v43 = vsel %vm32133_vm5, %v16405_v40, %v16409_v60  ;;  %v29222_v30 = vld [vmem:[%s38719_s3 + $0x46e4] ss:$24 sps:$4 sm:$0xff]   ;;  %v29217_v34 = vld [vmem:[%s38719_s3 + $0x37e8] ss:$24 sps:$4 sm:$0xff]  }
 0x7e8   : > { %17950 = vmatprep.subr.bf16.mxu0 %v29126_v44  ;;  %v29157_v44 = vld [vmem:[%s38719_s3 + $0x3608] ss:$24 sps:$4 sm:$0xff]   ;;  %v36734_v58 = vcombine.high %v36714_v47, %v36718_v43  ;;  %v29225_v60 = vld [vmem:[%s38719_s3 + $0x381c] ss:$24 sps:$4 sm:$0xff]  }
 0x7e9   : > { %v29220_v40 = vld [vmem:[%s38719_s3 + $0x46e0] ss:$24 sps:$4 sm:$0xff]  }
 0x7ea   : > { %13663 = vmatpush1.bf16.msra.mxu1 %v29121_v18  ;;  %v29160_v18 = vld [vmem:[%s38719_s3 + $0x4500] ss:$24 sps:$4 sm:$0xff]  }
 0x7eb   : > { %17951 = vmatpush1.bf16.msra.mxu0 %v29124_v31  ;;  %13664 = vmatprep.subr.bf16.mxu1 %v29129_v55  ;;  %v29163_v31 = vld [vmem:[%s38719_s3 + $0x3638] ss:$24 sps:$4 sm:$0xff]  }
 0x7ec   : > { %17952 = vmatprep.subr.bf16.mxu0 %v29132_v56  ;;  %v29166_v55 = vld [vmem:[%s38719_s3 + $0x4530] ss:$24 sps:$4 sm:$0xff]   ;;  %v29171_v56 = vld [vmem:[%s38719_s3 + $0x366c] ss:$24 sps:$4 sm:$0xff]  }
 0x7ee   : > { %13665 = vmatpush1.bf16.msra.mxu1 %v29127_v32  ;;  %v30093_v32 = vld [vmem:[%s34888_s22 + $0x4] ss:$48 sps:$4 sm:$0xff]  }
 0x7ef   : > { %17953 = vmatpush1.bf16.msra.mxu0 %v29130_v45  ;;  %13666 = vmatprep.subr.bf16.mxu1 %v29135_v0  ;;  %v29169_v45 = vld [vmem:[%s38719_s3 + $0x3668] ss:$24 sps:$4 sm:$0xff]   ;;  %v29180_v0 = vld [vmem:[%s38719_s3 + $0x4594] ss:$24 sps:$4 sm:$0xff]  }
 0x7f0   : > { %17954 = vmatprep.subr.bf16.mxu0 %v29138_v16  ;;  %v29175_v16 = vld [vmem:[%s38719_s3 + $0x3698] ss:$24 sps:$4 sm:$0xff]  }
 0x7f2   : > { %13667 = vmatpush1.bf16.msra.mxu1 %v29133_v41  ;;  %v29184_v41 = vld [vmem:[%s38719_s3 + $0x45c0] ss:$24 sps:$4 sm:$0xff]  }
 0x7f3   : > { %17955 = vmatpush1.bf16.msra.mxu0 %v29136_v37  ;;  %13668 = vmatprep.subr.bf16.mxu1 %v29141_v42  ;;  %v29189_v37 = vld [vmem:[%s38719_s3 + $0x36fc] ss:$24 sps:$4 sm:$0xff]  }
 0x7f4   : > { %17956 = vmatprep.subr.bf16.mxu0 %v29144_v27  ;;  %v29192_v42 = vld [vmem:[%s38719_s3 + $0x45f4] ss:$24 sps:$4 sm:$0xff]   ;;  %v29187_v27 = vld [vmem:[%s38719_s3 + $0x36f8] ss:$24 sps:$4 sm:$0xff]  }
 0x7f6   : > { %13669 = vmatpush1.bf16.msra.mxu1 %v29139_v20  ;;  %v29190_v20 = vld [vmem:[%s38719_s3 + $0x45f0] ss:$24 sps:$4 sm:$0xff]  }
 0x7f7   : > { %17957 = vmatpush1.bf16.msra.mxu0 %v29142_v3  ;;  %13670 = vmatprep.subr.bf16.mxu1 %v29147_v7  ;;  %v29201_v3 = vld [vmem:[%s38719_s3 + $0x375c] ss:$24 sps:$4 sm:$0xff]   ;;  %v29202_v7 = vld [vmem:[%s38719_s3 + $0x4650] ss:$24 sps:$4 sm:$0xff]  }
 0x7f8   : > { %17958 = vmatprep.subr.bf16.mxu0 %v29150_v59  ;;  %v29207_v59 = vld [vmem:[%s38719_s3 + $0x378c] ss:$24 sps:$4 sm:$0xff]  }
 0x7fa   : > { %13671 = vmatpush1.bf16.msra.mxu1 %v29145_v14  ;;  %v29216_v14 = vld [vmem:[%s38719_s3 + $0x46b4] ss:$24 sps:$4 sm:$0xff]  }
 0x7fb   : > { %17959 = vmatpush1.bf16.msra.mxu0 %v29148_v19  ;;  %13672 = vmatprep.subr.bf16.mxu1 %v29153_v24  ;;  %v29211_v19 = vld [vmem:[%s38719_s3 + $0x37b8] ss:$24 sps:$4 sm:$0xff]  }
 0x7fc   : > { %17960 = vmatprep.subr.bf16.mxu0 %v29156_v54  ;;  %v29214_v24 = vld [vmem:[%s38719_s3 + $0x46b0] ss:$24 sps:$4 sm:$0xff]   ;;  %v29219_v54 = vld [vmem:[%s38719_s3 + $0x37ec] ss:$24 sps:$4 sm:$0xff]  }
 0x7fe   : > { %13673 = vmatpush1.bf16.msra.mxu1 %v29151_v62  ;;  %v29228_v62 = vld [vmem:[%s38719_s3 + $0x4714] ss:$24 sps:$4 sm:$0xff]  }
 0x7ff   : > { %17961 = vmatpush1.bf16.msra.mxu0 %v29154_v29  ;;  %15744 = vmatprep.subr.bf16.mxu1 %v29159_v36  ;;  %v29223_v29 = vld [vmem:[%s38719_s3 + $0x3818] ss:$24 sps:$4 sm:$0xff]  }
 0x800   : > { %17973 = vmatprep.subr.bf16.mxu0 %v29162_v23  ;;  %v29226_v36 = vld [vmem:[%s38719_s3 + $0x4710] ss:$24 sps:$4 sm:$0xff]   ;;  %v29231_v23 = vld [vmem:[%s38719_s3 + $0x384c] ss:$24 sps:$4 sm:$0xff]  }
 0x801   : > { %13675 = vmatmul.mubr.bf16.vlgmr.msra.gmra.mrb[4].mxu1 %v34473_v17  ;;  %v29174_v17 = vld [vmem:[%s38719_s3 + $0x4564] ss:$24 sps:$4 sm:$0xff]  }
 0x802   : > { %17963 = vmatmul.mubr.bf16.vlgmr.msra.gmra.mrb[0].mxu0 %v36710_v33  ;;  %15745 = vmatpush1.bf16.msra.mxu1 %v29157_v44  ;;  %v29234_v44 = vld [vmem:[%s38719_s3 + $0x4744] ss:$24 sps:$4 sm:$0xff]  }
 0x803   : > { %17974 = vmatpush1.bf16.msra.mxu0 %v29160_v18  ;;  %15746 = vmatprep.subr.bf16.mxu1 %v29165_v57  ;;  %v29229_v18 = vld [vmem:[%s38719_s3 + $0x3848] ss:$24 sps:$4 sm:$0xff]  }
 0x804   : > { %17975 = vmatprep.subr.bf16.mxu0 %v29168_v51  ;;  %15776 = vmatprep.mubr.bf16.mxu1 %v30093_v32  ;;  %v29232_v57 = vld [vmem:[%s38719_s3 + $0x4740] ss:$24 sps:$4 sm:$0xff]   ;;  %v29237_v51 = vld [vmem:[%s38719_s3 + $0x387c] ss:$24 sps:$4 sm:$0xff]  }
 0x805   : > { %18005 = vmatprep.mubr.bf16.mxu0 %v36734_v58  ;;  %v29246_v32 = vld [vmem:[%s38719_s3 + $0x47a4] ss:$24 sps:$4 sm:$0xff]  }
 0x806   : > { %15747 = vmatpush1.bf16.msra.mxu1 %v29163_v31  ;;  %v29240_v31 = vld [vmem:[%s38719_s3 + $0x4774] ss:$24 sps:$4 sm:$0xff]  }
 0x807   : > { %17976 = vmatpush1.bf16.msra.mxu0 %v29166_v55  ;;  %15748 = vmatprep.subr.bf16.mxu1 %v29171_v56  ;;  %v29235_v55 = vld [vmem:[%s38719_s3 + $0x3878] ss:$24 sps:$4 sm:$0xff]  }
 0x808   : > { %17977 = vmatprep.subr.bf16.mxu0 %v29174_v17  ;;  %v29238_v56 = vld [vmem:[%s38719_s3 + $0x4770] ss:$24 sps:$4 sm:$0xff]   ;;  %v29243_v17 = vld [vmem:[%s38719_s3 + $0x38ac] ss:$24 sps:$4 sm:$0xff]  }
 0x80a   : > { %15749 = vmatpush1.bf16.msra.mxu1 %v29169_v45  ;;  %v29241_v45 = vld [vmem:[%s38719_s3 + $0x38a8] ss:$24 sps:$4 sm:$0xff]  }
 0x80b   : > { %17978 = vmatpush1.bf16.msra.mxu0 %v29172_v46  ;;  %15750 = vmatprep.subr.bf16.mxu1 %v29177_v49  ;;  %v29244_v46 = vld [vmem:[%s38719_s3 + $0x47a0] ss:$24 sps:$4 sm:$0xff]   ;;  %v29249_v49 = vld [vmem:[%s38719_s3 + $0x38dc] ss:$24 sps:$4 sm:$0xff]  }
 0x80c   : > { %17979 = vmatprep.subr.bf16.mxu0 %v29180_v0  ;;  %v29252_v0 = vld [vmem:[%s38719_s3 + $0x47d4] ss:$24 sps:$4 sm:$0xff]  }
 0x80e   : > { %15751 = vmatpush1.bf16.msra.mxu1 %v29175_v16  ;;  %v29247_v16 = vld [vmem:[%s38719_s3 + $0x38d8] ss:$24 sps:$4 sm:$0xff]  }
 0x80f   : > { %17980 = vmatpush1.bf16.msra.mxu0 %v29178_v6  ;;  %15752 = vmatprep.subr.bf16.mxu1 %v29183_v2  ;;  %v29250_v6 = vld [vmem:[%s38719_s3 + $0x47d0] ss:$24 sps:$4 sm:$0xff]   ;;  %v29255_v2 = vld [vmem:[%s38719_s3 + $0x390c] ss:$24 sps:$4 sm:$0xff]  }
 0x810   : > { %17981 = vmatprep.subr.bf16.mxu0 %v29186_v38  ;;  %v29258_v38 = vld [vmem:[%s38719_s3 + $0x3f14] ss:$24 sps:$4 sm:$0xff]  }
 0x812   : > { %15753 = vmatpush1.bf16.msra.mxu1 %v29181_v22  ;;  %v36922_v22 = vcombine.low %v36714_v47, %v36718_v43  ;;  %v29264_v47 = vld [vmem:[%s38719_s3 + $0x3f44] ss:$24 sps:$4 sm:$0xff]  }
 0x813   : > { %17982 = vmatpush1.bf16.msra.mxu0 %v29184_v41  ;;  %15754 = vmatprep.subr.bf16.mxu1 %v29189_v37  ;;  %v29253_v41 = vld [vmem:[%s38719_s3 + $0x3908] ss:$24 sps:$4 sm:$0xff]  }
 0x814   : > { %17983 = vmatprep.subr.bf16.mxu0 %v29192_v42  ;;  %v29256_v37 = vld [vmem:[%s38719_s3 + $0x3f10] ss:$24 sps:$4 sm:$0xff]   ;;  %v29261_v42 = vld [vmem:[%s38719_s3 + $0x393c] ss:$24 sps:$4 sm:$0xff]  }
 0x815   : > { %v30094_v43 = vld [vmem:[%s34888_s22] ss:$48 sps:$4 sm:$0xff]  }
 0x816   : > { %15755 = vmatpush1.bf16.msra.mxu1 %v29187_v27  ;;  %v29259_v27 = vld [vmem:[%s38719_s3 + $0x3938] ss:$24 sps:$4 sm:$0xff]  }
 0x817   : > { %17984 = vmatpush1.bf16.msra.mxu0 %v29190_v20  ;;  %15756 = vmatprep.subr.bf16.mxu1 %v29195_v61  ;;  %v29262_v20 = vld [vmem:[%s38719_s3 + $0x3f40] ss:$24 sps:$4 sm:$0xff]   ;;  %v29267_v61 = vld [vmem:[%s38719_s3 + $0x396c] ss:$24 sps:$4 sm:$0xff]  }
 0x818   : > { %17985 = vmatprep.subr.bf16.mxu0 %v29198_v26  ;;  %v29270_v26 = vld [vmem:[%s38719_s3 + $0x3f74] ss:$24 sps:$4 sm:$0xff]  }
 0x81a   : > { %15757 = vmatpush1.bf16.msra.mxu1 %v29193_v25  ;;  %v30095_v25 = vld [vmem:[%s34888_s22 + $0xc] ss:$48 sps:$4 sm:$0xff]  }
 0x81b   : > { %17986 = vmatpush1.bf16.msra.mxu0 %v29196_v1  ;;  %15758 = vmatprep.subr.bf16.mxu1 %v29201_v3  ;;  %v29265_v1 = vld [vmem:[%s38719_s3 + $0x3968] ss:$24 sps:$4 sm:$0xff]  }
 0x81c   : > { %17987 = vmatprep.subr.bf16.mxu0 %v29204_v5  ;;  %v29268_v3 = vld [vmem:[%s38719_s3 + $0x3f70] ss:$24 sps:$4 sm:$0xff]   ;;  %v29273_v5 = vld [vmem:[%s38719_s3 + $0x399c] ss:$24 sps:$4 sm:$0xff]  }
 0x81e   : > { %15759 = vmatpush1.bf16.msra.mxu1 %v29199_v39  ;;  %v29276_v39 = vld [vmem:[%s38719_s3 + $0x3fa4] ss:$24 sps:$4 sm:$0xff]  }
 0x81f   : > { %17988 = vmatpush1.bf16.msra.mxu0 %v29202_v7  ;;  %15760 = vmatprep.subr.bf16.mxu1 %v29207_v59  ;;  %v29271_v7 = vld [vmem:[%s38719_s3 + $0x3998] ss:$24 sps:$4 sm:$0xff]  }
 0x820   : > { %17989 = vmatprep.subr.bf16.mxu0 %v29210_v13  ;;  %v29274_v59 = vld [vmem:[%s38719_s3 + $0x3fa0] ss:$24 sps:$4 sm:$0xff]   ;;  %v29279_v13 = vld [vmem:[%s38719_s3 + $0x39cc] ss:$24 sps:$4 sm:$0xff]  }
 0x822   : > { %15761 = vmatpush1.bf16.msra.mxu1 %v29205_v8  ;;  %v29282_v8 = vld [vmem:[%s38719_s3 + $0x3fd4] ss:$24 sps:$4 sm:$0xff]  }
 0x823   : > { %17990 = vmatpush1.bf16.msra.mxu0 %v29208_v9  ;;  %15762 = vmatprep.subr.bf16.mxu1 %v29213_v21  ;;  %v29277_v9 = vld [vmem:[%s38719_s3 + $0x39c8] ss:$24 sps:$4 sm:$0xff]  }
 0x824   : > { %17991 = vmatprep.subr.bf16.mxu0 %v29216_v14  ;;  %v29280_v21 = vld [vmem:[%s38719_s3 + $0x3fd0] ss:$24 sps:$4 sm:$0xff]   ;;  %v29285_v14 = vld [vmem:[%s38719_s3 + $0x39fc] ss:$24 sps:$4 sm:$0xff]  }
 0x826   : > { %15763 = vmatpush1.bf16.msra.mxu1 %v29211_v19  ;;  %v29288_v19 = vld [vmem:[%s38719_s3 + $0x4004] ss:$24 sps:$4 sm:$0xff]  }
 0x827   : > { %17992 = vmatpush1.bf16.msra.mxu0 %v29214_v24  ;;  %15764 = vmatprep.subr.bf16.mxu1 %v29219_v54  ;;  %v29283_v24 = vld [vmem:[%s38719_s3 + $0x39f8] ss:$24 sps:$4 sm:$0xff]  }
 0x828   : > { %17993 = vmatprep.subr.bf16.mxu0 %v29222_v30  ;;  %v29286_v54 = vld [vmem:[%s38719_s3 + $0x4000] ss:$24 sps:$4 sm:$0xff]   ;;  %v29291_v30 = vld [vmem:[%s38719_s3 + $0x3a2c] ss:$24 sps:$4 sm:$0xff]  }
 0x82a   : > { %15765 = vmatpush1.bf16.msra.mxu1 %v29217_v34  ;;  %v29294_v34 = vld [vmem:[%s38719_s3 + $0x4034] ss:$24 sps:$4 sm:$0xff]  }
 0x82b   : > { %17994 = vmatpush1.bf16.msra.mxu0 %v29220_v40  ;;  %15766 = vmatprep.subr.bf16.mxu1 %v29225_v60  ;;  %v29289_v40 = vld [vmem:[%s38719_s3 + $0x3a28] ss:$24 sps:$4 sm:$0xff]  }
 0x82c   : > { %17995 = vmatprep.subr.bf16.mxu0 %v29228_v62  ;;  %v29292_v60 = vld [vmem:[%s38719_s3 + $0x4030] ss:$24 sps:$4 sm:$0xff]   ;;  %v29297_v62 = vld [vmem:[%s38719_s3 + $0x3a5c] ss:$24 sps:$4 sm:$0xff]  }
 0x82e   : > { %15767 = vmatpush1.bf16.msra.mxu1 %v29223_v29  ;;  %v29300_v29 = vld [vmem:[%s38719_s3 + $0x4064] ss:$24 sps:$4 sm:$0xff]  }
 0x82f   : > { %17996 = vmatpush1.bf16.msra.mxu0 %v29226_v36  ;;  %15768 = vmatprep.subr.bf16.mxu1 %v29231_v23  ;;  %v29295_v36 = vld [vmem:[%s38719_s3 + $0x3a58] ss:$24 sps:$4 sm:$0xff]  }
 0x830   : > { %17997 = vmatprep.subr.bf16.mxu0 %v29234_v44  ;;  %v29298_v23 = vld [vmem:[%s38719_s3 + $0x4060] ss:$24 sps:$4 sm:$0xff]   ;;  %v29303_v44 = vld [vmem:[%s38719_s3 + $0x3a8c] ss:$24 sps:$4 sm:$0xff]  }
 0x832   : > { %15769 = vmatpush1.bf16.msra.mxu1 %v29229_v18  ;;  %v29306_v18 = vld [vmem:[%s38719_s3 + $0x4094] ss:$24 sps:$4 sm:$0xff]  }
 0x833   : > { %17998 = vmatpush1.bf16.msra.mxu0 %v29232_v57  ;;  %15770 = vmatprep.subr.bf16.mxu1 %v29237_v51  ;;  %v29301_v57 = vld [vmem:[%s38719_s3 + $0x3a88] ss:$24 sps:$4 sm:$0xff]  }
 0x834   : > { %17999 = vmatprep.subr.bf16.mxu0 %v29240_v31  ;;  %v29304_v51 = vld [vmem:[%s38719_s3 + $0x4090] ss:$24 sps:$4 sm:$0xff]   ;;  %v29309_v31 = vld [vmem:[%s38719_s3 + $0x3abc] ss:$24 sps:$4 sm:$0xff]  }
 0x836   : > { %15771 = vmatpush1.bf16.msra.mxu1 %v29235_v55  ;;  %v29312_v55 = vld [vmem:[%s38719_s3 + $0x40c4] ss:$24 sps:$4 sm:$0xff]  }
 0x837   : > { %18000 = vmatpush1.bf16.msra.mxu0 %v29238_v56  ;;  %15772 = vmatprep.subr.bf16.mxu1 %v29243_v17  ;;  %v29307_v56 = vld [vmem:[%s38719_s3 + $0x3ab8] ss:$24 sps:$4 sm:$0xff]  }
 0x838   : > { %18001 = vmatprep.subr.bf16.mxu0 %v29246_v32  ;;  %v29310_v17 = vld [vmem:[%s38719_s3 + $0x40c0] ss:$24 sps:$4 sm:$0xff]   ;;  %v29315_v32 = vld [vmem:[%s38719_s3 + $0x3aec] ss:$24 sps:$4 sm:$0xff]  }
 0x83a   : > { %15773 = vmatpush1.bf16.msra.mxu1 %v29241_v45  ;;  %v29318_v45 = vld [vmem:[%s38719_s3 + $0x40f4] ss:$24 sps:$4 sm:$0xff]  }
 0x83b   : > { %18002 = vmatpush1.bf16.msra.mxu0 %v29244_v46  ;;  %15774 = vmatprep.subr.bf16.mxu1 %v29249_v49  ;;  %v29313_v46 = vld [vmem:[%s38719_s3 + $0x3ae8] ss:$24 sps:$4 sm:$0xff]  }
 0x83c   : > { %18003 = vmatprep.subr.bf16.mxu0 %v29252_v0  ;;  %v29316_v49 = vld [vmem:[%s38719_s3 + $0x40f0] ss:$24 sps:$4 sm:$0xff]   ;;  %v29321_v0 = vld [vmem:[%s38719_s3 + $0x3b1c] ss:$24 sps:$4 sm:$0xff]  }
 0x83e   : > { %15775 = vmatpush1.bf16.msra.mxu1 %v29247_v16  ;;  %v29324_v16 = vld [vmem:[%s38719_s3 + $0x4124] ss:$24 sps:$4 sm:$0xff]  }
 0x83f   : > { %18004 = vmatpush1.bf16.msra.mxu0 %v29250_v6  ;;  %15787 = vmatprep.subr.bf16.mxu1 %v29255_v2  ;;  %v29319_v6 = vld [vmem:[%s38719_s3 + $0x3b18] ss:$24 sps:$4 sm:$0xff]  }
 0x840   : > { %18145 = vmatprep.subr.bf16.mxu0 %v29258_v38  ;;  %v29322_v2 = vld [vmem:[%s38719_s3 + $0x4120] ss:$24 sps:$4 sm:$0xff]   ;;  %v29327_v38 = vld [vmem:[%s38719_s3 + $0x3b4c] ss:$24 sps:$4 sm:$0xff]  }
 0x841   : > { %15777 = vmatmul.mubr.bf16.vlgmr.msra.gmra.mrb[4].mxu1 %v30094_v43  ;;  %v29336_v43 = vld [vmem:[%s38719_s3 + $0x4184] ss:$24 sps:$4 sm:$0xff]  }
 0x842   : > { %18006 = vmatmul.mubr.bf16.vlgmr.msra.gmra.mrb[0].mxu0 %v36922_v22  ;;  %15788 = vmatpush1.bf16.msra.mxu1 %v29253_v41  ;;  %v29330_v41 = vld [vmem:[%s38719_s3 + $0x4154] ss:$24 sps:$4 sm:$0xff]  }
 0x843   : > { %18146 = vmatpush1.bf16.msra.mxu0 %v29256_v37  ;;  %15789 = vmatprep.subr.bf16.mxu1 %v29261_v42  ;;  %v29325_v37 = vld [vmem:[%s38719_s3 + $0x3b48] ss:$24 sps:$4 sm:$0xff]  }
 0x844   : > { %18147 = vmatprep.subr.bf16.mxu0 %v29264_v47  ;;  %15819 = vmatprep.mubr.bf16.mxu1 %v30095_v25  ;;  %v29328_v42 = vld [vmem:[%s38719_s3 + $0x4150] ss:$24 sps:$4 sm:$0xff]   ;;  %v29333_v47 = vld [vmem:[%s38719_s3 + $0x3b7c] ss:$24 sps:$4 sm:$0xff]  }
 0x845   : > { %18177 = vmatprep.mubr.bf16.mxu0 %v36302_v4  ;;  %v29337_v25 = vld [vmem:[%s38719_s3 + $0x3ba8] ss:$24 sps:$4 sm:$0xff]  }
 0x846   : > { %15790 = vmatpush1.bf16.msra.mxu1 %v29259_v27  ;;  %v29331_v27 = vld [vmem:[%s38719_s3 + $0x3b78] ss:$24 sps:$4 sm:$0xff]  }
 0x847   : > { %18148 = vmatpush1.bf16.msra.mxu0 %v29262_v20  ;;  %15791 = vmatprep.subr.bf16.mxu1 %v29267_v61  ;;  %v29334_v20 = vld [vmem:[%s38719_s3 + $0x4180] ss:$24 sps:$4 sm:$0xff]   ;;  %v29339_v61 = vld [vmem:[%s38719_s3 + $0x3bac] ss:$24 sps:$4 sm:$0xff]  }
 0x848   : > { %18149 = vmatprep.subr.bf16.mxu0 %v29270_v26  ;;  %v29342_v26 = vld [vmem:[%s38719_s3 + $0x41b4] ss:$24 sps:$4 sm:$0xff]  }
 0x84a   : > { %15792 = vmatpush1.bf16.msra.mxu1 %v29265_v1  ;;  %v29340_v1 = vld [vmem:[%s38719_s3 + $0x41b0] ss:$24 sps:$4 sm:$0xff]  }
 0x84b   : > { %18150 = vmatpush1.bf16.msra.mxu0 %v29268_v3  ;;  %15793 = vmatprep.subr.bf16.mxu1 %v29273_v5  ;;  %v29345_v3 = vld [vmem:[%s38719_s3 + $0x3bdc] ss:$24 sps:$4 sm:$0xff]  }
 0x84c   : > { %18151 = vmatprep.subr.bf16.mxu0 %v29276_v39  ;;  %v29348_v5 = vld [vmem:[%s38719_s3 + $0x41e4] ss:$24 sps:$4 sm:$0xff]   ;;  %v29343_v39 = vld [vmem:[%s38719_s3 + $0x3bd8] ss:$24 sps:$4 sm:$0xff]  }
 0x84e   : > { %15794 = vmatpush1.bf16.msra.mxu1 %v29271_v7  ;;  %v29346_v7 = vld [vmem:[%s38719_s3 + $0x41e0] ss:$24 sps:$4 sm:$0xff]  }
 0x84f   : > { %18152 = vmatpush1.bf16.msra.mxu0 %v29274_v59  ;;  %15795 = vmatprep.subr.bf16.mxu1 %v29279_v13  ;;  %v29351_v59 = vld [vmem:[%s38719_s3 + $0x3c0c] ss:$24 sps:$4 sm:$0xff]  }
 0x850   : > { %18153 = vmatprep.subr.bf16.mxu0 %v29282_v8  ;;  %v29354_v13 = vld [vmem:[%s38719_s3 + $0x4214] ss:$24 sps:$4 sm:$0xff]   ;;  %v29349_v8 = vld [vmem:[%s38719_s3 + $0x3c08] ss:$24 sps:$4 sm:$0xff]  }
 0x852   : > { %15796 = vmatpush1.bf16.msra.mxu1 %v29277_v9  ;;  %v29352_v9 = vld [vmem:[%s38719_s3 + $0x4210] ss:$24 sps:$4 sm:$0xff]  }
 0x853   : > { %18154 = vmatpush1.bf16.msra.mxu0 %v29280_v21  ;;  %15797 = vmatprep.subr.bf16.mxu1 %v29285_v14  ;;  %v29357_v21 = vld [vmem:[%s38719_s3 + $0x3c3c] ss:$24 sps:$4 sm:$0xff]  }
 0x854   : > { %18155 = vmatprep.subr.bf16.mxu0 %v29288_v19  ;;  %v29360_v14 = vld [vmem:[%s38719_s3 + $0x4244] ss:$24 sps:$4 sm:$0xff]  }
 0x855   : > { %v30096_v19 = vld [vmem:[%s34888_s22 + $0x8] ss:$48 sps:$4 sm:$0xff]  }
 0x856   : > { %15798 = vmatpush1.bf16.msra.mxu1 %v29283_v24  ;;  %v29355_v24 = vld [vmem:[%s38719_s3 + $0x3c38] ss:$24 sps:$4 sm:$0xff]  }
 0x857   : > { %18156 = vmatpush1.bf16.msra.mxu0 %v29286_v54  ;;  %15799 = vmatprep.subr.bf16.mxu1 %v29291_v30  ;;  %v29358_v54 = vld [vmem:[%s38719_s3 + $0x4240] ss:$24 sps:$4 sm:$0xff]   ;;  %v29363_v30 = vld [vmem:[%s38719_s3 + $0x3c6c] ss:$24 sps:$4 sm:$0xff]  }
 0x858   : > { %18157 = vmatprep.subr.bf16.mxu0 %v29294_v34  ;;  %v29366_v34 = vld [vmem:[%s38719_s3 + $0x4274] ss:$24 sps:$4 sm:$0xff]  }
 0x85a   : > { %15800 = vmatpush1.bf16.msra.mxu1 %v29289_v40  ;;  %v30097_v40 = vld [vmem:[%s34888_s22 + $0x14] ss:$48 sps:$4 sm:$0xff]  }
 0x85b   : > { %18158 = vmatpush1.bf16.msra.mxu0 %v29292_v60  ;;  %15801 = vmatprep.subr.bf16.mxu1 %v29297_v62  ;;  %v29361_v60 = vld [vmem:[%s38719_s3 + $0x3c68] ss:$24 sps:$4 sm:$0xff]  }
 0x85c   : > { %18159 = vmatprep.subr.bf16.mxu0 %v29300_v29  ;;  %v29364_v62 = vld [vmem:[%s38719_s3 + $0x4270] ss:$24 sps:$4 sm:$0xff]   ;;  %v29369_v29 = vld [vmem:[%s38719_s3 + $0x3c9c] ss:$24 sps:$4 sm:$0xff]  }
 0x85e   : > { %15802 = vmatpush1.bf16.msra.mxu1 %v29295_v36  ;;  %v29372_v36 = vld [vmem:[%s38719_s3 + $0x42a4] ss:$24 sps:$4 sm:$0xff]  }
 0x85f   : > { %18160 = vmatpush1.bf16.msra.mxu0 %v29298_v23  ;;  %15803 = vmatprep.subr.bf16.mxu1 %v29303_v44  ;;  %v29367_v23 = vld [vmem:[%s38719_s3 + $0x3c98] ss:$24 sps:$4 sm:$0xff]  }
 0x860   : > { %18161 = vmatprep.subr.bf16.mxu0 %v29306_v18  ;;  %v29370_v44 = vld [vmem:[%s38719_s3 + $0x42a0] ss:$24 sps:$4 sm:$0xff]   ;;  %v29375_v18 = vld [vmem:[%s38719_s3 + $0x3ccc] ss:$24 sps:$4 sm:$0xff]  }
 0x862   : > { %15804 = vmatpush1.bf16.msra.mxu1 %v29301_v57  ;;  %v29378_v57 = vld [vmem:[%s38719_s3 + $0x42d4] ss:$24 sps:$4 sm:$0xff]  }
 0x863   : > { %18162 = vmatpush1.bf16.msra.mxu0 %v29304_v51  ;;  %15805 = vmatprep.subr.bf16.mxu1 %v29309_v31  ;;  %v29373_v51 = vld [vmem:[%s38719_s3 + $0x3cc8] ss:$24 sps:$4 sm:$0xff]  }
 0x864   : > { %18163 = vmatprep.subr.bf16.mxu0 %v29312_v55  ;;  %v29376_v31 = vld [vmem:[%s38719_s3 + $0x42d0] ss:$24 sps:$4 sm:$0xff]   ;;  %v29381_v55 = vld [vmem:[%s38719_s3 + $0x3cfc] ss:$24 sps:$4 sm:$0xff]  }
 0x866   : > { %15806 = vmatpush1.bf16.msra.mxu1 %v29307_v56  ;;  %v29384_v56 = vld [vmem:[%s38719_s3 + $0x4304] ss:$24 sps:$4 sm:$0xff]  }
 0x867   : > { %18164 = vmatpush1.bf16.msra.mxu0 %v29310_v17  ;;  %15807 = vmatprep.subr.bf16.mxu1 %v29315_v32  ;;  %v29379_v17 = vld [vmem:[%s38719_s3 + $0x3cf8] ss:$24 sps:$4 sm:$0xff]  }
 0x868   : > { %18165 = vmatprep.subr.bf16.mxu0 %v29318_v45  ;;  %v29382_v32 = vld [vmem:[%s38719_s3 + $0x4300] ss:$24 sps:$4 sm:$0xff]   ;;  %v29387_v45 = vld [vmem:[%s38719_s3 + $0x3d2c] ss:$24 sps:$4 sm:$0xff]  }
 0x86a   : > { %15808 = vmatpush1.bf16.msra.mxu1 %v29313_v46  ;;  %v29390_v46 = vld [vmem:[%s38719_s3 + $0x4334] ss:$24 sps:$4 sm:$0xff]  }
 0x86b   : > { %18166 = vmatpush1.bf16.msra.mxu0 %v29316_v49  ;;  %15809 = vmatprep.subr.bf16.mxu1 %v29321_v0  ;;  %v29385_v49 = vld [vmem:[%s38719_s3 + $0x3d28] ss:$24 sps:$4 sm:$0xff]  }
 0x86c   : > { %18167 = vmatprep.subr.bf16.mxu0 %v29324_v16  ;;  %v29388_v0 = vld [vmem:[%s38719_s3 + $0x4330] ss:$24 sps:$4 sm:$0xff]   ;;  %v29393_v16 = vld [vmem:[%s38719_s3 + $0x3d5c] ss:$24 sps:$4 sm:$0xff]  }
 0x86e   : > { %15810 = vmatpush1.bf16.msra.mxu1 %v29319_v6  ;;  %v29396_v6 = vld [vmem:[%s38719_s3 + $0x4364] ss:$24 sps:$4 sm:$0xff]  }
 0x86f   : > { %18168 = vmatpush1.bf16.msra.mxu0 %v29322_v2  ;;  %15811 = vmatprep.subr.bf16.mxu1 %v29327_v38  ;;  %v29391_v2 = vld [vmem:[%s38719_s3 + $0x3d58] ss:$24 sps:$4 sm:$0xff]  }
 0x870   : > { %18169 = vmatprep.subr.bf16.mxu0 %v29330_v41  ;;  %v29394_v38 = vld [vmem:[%s38719_s3 + $0x4360] ss:$24 sps:$4 sm:$0xff]   ;;  %v29399_v41 = vld [vmem:[%s38719_s3 + $0x3d8c] ss:$24 sps:$4 sm:$0xff]  }
 0x872   : > { %15812 = vmatpush1.bf16.msra.mxu1 %v29325_v37  ;;  %v29402_v37 = vld [vmem:[%s38719_s3 + $0x4394] ss:$24 sps:$4 sm:$0xff]  }
 0x873   : > { %18170 = vmatpush1.bf16.msra.mxu0 %v29328_v42  ;;  %15813 = vmatprep.subr.bf16.mxu1 %v29333_v47  ;;  %v29397_v42 = vld [vmem:[%s38719_s3 + $0x3d88] ss:$24 sps:$4 sm:$0xff]  }
 0x874   : > { %18171 = vmatprep.subr.bf16.mxu0 %v29336_v43  ;;  %v29400_v47 = vld [vmem:[%s38719_s3 + $0x4390] ss:$24 sps:$4 sm:$0xff]   ;;  %v29405_v43 = vld [vmem:[%s38719_s3 + $0x3dbc] ss:$24 sps:$4 sm:$0xff]  }
 0x876   : > { %15814 = vmatpush1.bf16.msra.mxu1 %v29331_v27  ;;  %v29408_v27 = vld [vmem:[%s38719_s3 + $0x43c4] ss:$24 sps:$4 sm:$0xff]  }
 0x877   : > { %18172 = vmatpush1.bf16.msra.mxu0 %v29334_v20  ;;  %15815 = vmatprep.subr.bf16.mxu1 %v29339_v61  ;;  %v29403_v20 = vld [vmem:[%s38719_s3 + $0x3db8] ss:$24 sps:$4 sm:$0xff]  }
 0x878   : > { %18173 = vmatprep.subr.bf16.mxu0 %v29342_v26  ;;  %v29406_v61 = vld [vmem:[%s38719_s3 + $0x43c0] ss:$24 sps:$4 sm:$0xff]   ;;  %v29411_v26 = vld [vmem:[%s38719_s3 + $0x3dec] ss:$24 sps:$4 sm:$0xff]  }
 0x87a   : > { %15816 = vmatpush1.bf16.msra.mxu1 %v29337_v25  ;;  %v29414_v25 = vld [vmem:[%s38719_s3 + $0x43f4] ss:$24 sps:$4 sm:$0xff]  }
 0x87b   : > { %18174 = vmatpush1.bf16.msra.mxu0 %v29340_v1  ;;  %15817 = vmatprep.subr.bf16.mxu1 %v29345_v3  ;;  %v29409_v1 = vld [vmem:[%s38719_s3 + $0x3de8] ss:$24 sps:$4 sm:$0xff]  }
 0x87c   : > { %18175 = vmatprep.subr.bf16.mxu0 %v29348_v5  ;;  %v29412_v3 = vld [vmem:[%s38719_s3 + $0x43f0] ss:$24 sps:$4 sm:$0xff]   ;;  %v29417_v5 = vld [vmem:[%s38719_s3 + $0x3e1c] ss:$24 sps:$4 sm:$0xff]  }
 0x87e   : > { %15818 = vmatpush1.bf16.msra.mxu1 %v29343_v39  ;;  %v29420_v39 = vld [vmem:[%s38719_s3 + $0x4424] ss:$24 sps:$4 sm:$0xff]  }
 0x87f   : > { %18176 = vmatpush1.bf16.msra.mxu0 %v29346_v7  ;;  %15830 = vmatprep.subr.bf16.mxu1 %v29351_v59  ;;  %v29415_v7 = vld [vmem:[%s38719_s3 + $0x3e18] ss:$24 sps:$4 sm:$0xff]  }
 0x880   : > { %18188 = vmatprep.subr.bf16.mxu0 %v29354_v13  ;;  %v29418_v59 = vld [vmem:[%s38719_s3 + $0x4420] ss:$24 sps:$4 sm:$0xff]   ;;  %v29423_v13 = vld [vmem:[%s38719_s3 + $0x3e4c] ss:$24 sps:$4 sm:$0xff]  }
 0x881   : > { %15820 = vmatmul.mubr.bf16.vlgmr.msra.gmra.mrb[4].mxu1 %v30096_v19  ;;  %v29432_v19 = vld [vmem:[%s38719_s3 + $0x4484] ss:$24 sps:$4 sm:$0xff]  }
 0x882   : > { %18178 = vmatmul.mubr.bf16.vlgmr.msra.gmra.mrb[4].mxu0 %v36494_v35  ;;  %15831 = vmatpush1.bf16.msra.mxu1 %v29349_v8  ;;  %v29426_v8 = vld [vmem:[%s38719_s3 + $0x4454] ss:$24 sps:$4 sm:$0xff]  }
 0x883   : > { %18189 = vmatpush1.bf16.msra.mxu0 %v29352_v9  ;;  %15832 = vmatprep.subr.bf16.mxu1 %v29357_v21  ;;  %v29421_v9 = vld [vmem:[%s38719_s3 + $0x3e48] ss:$24 sps:$4 sm:$0xff]  }
 0x884   : > { %18190 = vmatprep.subr.bf16.mxu0 %v29360_v14  ;;  %15862 = vmatprep.mubr.bf16.mxu1 %v30097_v40  ;;  %v29424_v21 = vld [vmem:[%s38719_s3 + $0x4450] ss:$24 sps:$4 sm:$0xff]   ;;  %v29429_v14 = vld [vmem:[%s38719_s3 + $0x3e7c] ss:$24 sps:$4 sm:$0xff]  }
 0x885   : > { %18220 = vmatprep.mubr.bf16.mxu0 %v36518_v48  ;;  %v29433_v40 = vld [vmem:[%s38719_s3 + $0x3ea8] ss:$24 sps:$4 sm:$0xff]  }
 0x886   : > { %15833 = vmatpush1.bf16.msra.mxu1 %v29355_v24  ;;  %v29427_v24 = vld [vmem:[%s38719_s3 + $0x3e78] ss:$24 sps:$4 sm:$0xff]  }
 0x887   : > { %18191 = vmatpush1.bf16.msra.mxu0 %v29358_v54  ;;  %15834 = vmatprep.subr.bf16.mxu1 %v29363_v30  ;;  %v29430_v54 = vld [vmem:[%s38719_s3 + $0x4480] ss:$24 sps:$4 sm:$0xff]   ;;  %v29435_v30 = vld [vmem:[%s38719_s3 + $0x3eac] ss:$24 sps:$4 sm:$0xff]  }
 0x888   : > { %18192 = vmatprep.subr.bf16.mxu0 %v29366_v34  ;;  %v29438_v34 = vld [vmem:[%s38719_s3 + $0x44b4] ss:$24 sps:$4 sm:$0xff]  }
 0x88a   : > { %15835 = vmatpush1.bf16.msra.mxu1 %v29361_v60  ;;  %v29436_v60 = vld [vmem:[%s38719_s3 + $0x44b0] ss:$24 sps:$4 sm:$0xff]  }
 0x88b   : > { %18193 = vmatpush1.bf16.msra.mxu0 %v29364_v62  ;;  %15836 = vmatprep.subr.bf16.mxu1 %v29369_v29  ;;  %v29441_v62 = vld [vmem:[%s38719_s3 + $0x3edc] ss:$24 sps:$4 sm:$0xff]  }
 0x88c   : > { %18194 = vmatprep.subr.bf16.mxu0 %v29372_v36  ;;  %v29444_v29 = vld [vmem:[%s38719_s3 + $0x44e4] ss:$24 sps:$4 sm:$0xff]   ;;  %v29439_v36 = vld [vmem:[%s38719_s3 + $0x3ed8] ss:$24 sps:$4 sm:$0xff]  }
 0x88e   : > { %15837 = vmatpush1.bf16.msra.mxu1 %v29367_v23  ;;  %v29442_v23 = vld [vmem:[%s38719_s3 + $0x44e0] ss:$24 sps:$4 sm:$0xff]  }
 0x88f   : > { %18195 = vmatpush1.bf16.msra.mxu0 %v29370_v44  ;;  %15838 = vmatprep.subr.bf16.mxu1 %v29375_v18  ;;  %v29447_v44 = vld [vmem:[%s38719_s3 + $0x3f0c] ss:$24 sps:$4 sm:$0xff]  }
 0x890   : > { %18196 = vmatprep.subr.bf16.mxu0 %v29378_v57  ;;  %v29450_v18 = vld [vmem:[%s38719_s3 + $0x4514] ss:$24 sps:$4 sm:$0xff]   ;;  %v29445_v57 = vld [vmem:[%s38719_s3 + $0x3f08] ss:$24 sps:$4 sm:$0xff]  }
 0x892   : > { %15839 = vmatpush1.bf16.msra.mxu1 %v29373_v51  ;;  %v29448_v51 = vld [vmem:[%s38719_s3 + $0x4510] ss:$24 sps:$4 sm:$0xff]  }
 0x893   : > { %18197 = vmatpush1.bf16.msra.mxu0 %v29376_v31  ;;  %15840 = vmatprep.subr.bf16.mxu1 %v29381_v55  ;;  %v29453_v31 = vld [vmem:[%s38719_s3 + $0x3f3c] ss:$24 sps:$4 sm:$0xff]  }
 0x894   : > { %18198 = vmatprep.subr.bf16.mxu0 %v29384_v56  ;;  %v29456_v55 = vld [vmem:[%s38719_s3 + $0x4544] ss:$24 sps:$4 sm:$0xff]  }
 0x895   : > { %v30098_v56 = vld [vmem:[%s34888_s22 + $0x10] ss:$48 sps:$4 sm:$0xff]  }
 0x896   : > { %15841 = vmatpush1.bf16.msra.mxu1 %v29379_v17  ;;  %v29451_v17 = vld [vmem:[%s38719_s3 + $0x3f38] ss:$24 sps:$4 sm:$0xff]  }
 0x897   : > { %18199 = vmatpush1.bf16.msra.mxu0 %v29382_v32  ;;  %15842 = vmatprep.subr.bf16.mxu1 %v29387_v45  ;;  %v29454_v32 = vld [vmem:[%s38719_s3 + $0x4540] ss:$24 sps:$4 sm:$0xff]   ;;  %v29459_v45 = vld [vmem:[%s38719_s3 + $0x3f6c] ss:$24 sps:$4 sm:$0xff]  }
 0x898   : > { %18200 = vmatprep.subr.bf16.mxu0 %v29390_v46  ;;  %v29462_v46 = vld [vmem:[%s38719_s3 + $0x4574] ss:$24 sps:$4 sm:$0xff]  }
 0x89a   : > { %15843 = vmatpush1.bf16.msra.mxu1 %v29385_v49  ;;  %v29457_v49 = vld [vmem:[%s38719_s3 + $0x3f68] ss:$24 sps:$4 sm:$0xff]  }
 0x89b   : > { %18201 = vmatpush1.bf16.msra.mxu0 %v29388_v0  ;;  %15844 = vmatprep.subr.bf16.mxu1 %v29393_v16  ;;  %v29460_v0 = vld [vmem:[%s38719_s3 + $0x4570] ss:$24 sps:$4 sm:$0xff]   ;;  %v29465_v16 = vld [vmem:[%s38719_s3 + $0x3f9c] ss:$24 sps:$4 sm:$0xff]  }
 0x89c   : > { %18202 = vmatprep.subr.bf16.mxu0 %v29396_v6  ;;  %v29463_v6 = vld [vmem:[%s38719_s3 + $0x3f98] ss:$24 sps:$4 sm:$0xff]  }
 0x89e   : > { %15845 = vmatpush1.bf16.msra.mxu1 %v29391_v2  ;;  %v29466_v2 = vld [vmem:[%s38719_s3 + $0x45a0] ss:$24 sps:$4 sm:$0xff]  }
 0x89f   : > { %18203 = vmatpush1.bf16.msra.mxu0 %v29394_v38  ;;  %15846 = vmatprep.subr.bf16.mxu1 %v29399_v41  ;;  %v29471_v38 = vld [vmem:[%s38719_s3 + $0x3fcc] ss:$24 sps:$4 sm:$0xff]  }
 0x8a0   : > { %18204 = vmatprep.subr.bf16.mxu0 %v29402_v37  ;;  %v29474_v41 = vld [vmem:[%s38719_s3 + $0x45d4] ss:$24 sps:$4 sm:$0xff]   ;;  %v29469_v37 = vld [vmem:[%s38719_s3 + $0x3fc8] ss:$24 sps:$4 sm:$0xff]  }
 0x8a2   : > { %15847 = vmatpush1.bf16.msra.mxu1 %v29397_v42  ;;  %v29472_v42 = vld [vmem:[%s38719_s3 + $0x45d0] ss:$24 sps:$4 sm:$0xff]  }
 0x8a3   : > { %18205 = vmatpush1.bf16.msra.mxu0 %v29400_v47  ;;  %15848 = vmatprep.subr.bf16.mxu1 %v29405_v43  ;;  %v29477_v47 = vld [vmem:[%s38719_s3 + $0x3ffc] ss:$24 sps:$4 sm:$0xff]  }
 0x8a4   : > { %18206 = vmatprep.subr.bf16.mxu0 %v29408_v27  ;;  %v29480_v43 = vld [vmem:[%s38719_s3 + $0x4604] ss:$24 sps:$4 sm:$0xff]   ;;  %v29475_v27 = vld [vmem:[%s38719_s3 + $0x3ff8] ss:$24 sps:$4 sm:$0xff]  }
 0x8a6   : > { %15849 = vmatpush1.bf16.msra.mxu1 %v29403_v20  ;;  %v29478_v20 = vld [vmem:[%s38719_s3 + $0x4600] ss:$24 sps:$4 sm:$0xff]  }
 0x8a7   : > { %18207 = vmatpush1.bf16.msra.mxu0 %v29406_v61  ;;  %15850 = vmatprep.subr.bf16.mxu1 %v29411_v26  ;;  %v29483_v61 = vld [vmem:[%s38719_s3 + $0x402c] ss:$24 sps:$4 sm:$0xff]  }
 0x8a8   : > { %18208 = vmatprep.subr.bf16.mxu0 %v29414_v25  ;;  %v29486_v26 = vld [vmem:[%s38719_s3 + $0x4634] ss:$24 sps:$4 sm:$0xff]   ;;  %v29481_v25 = vld [vmem:[%s38719_s3 + $0x4028] ss:$24 sps:$4 sm:$0xff]  }
 0x8aa   : > { %15851 = vmatpush1.bf16.msra.mxu1 %v29409_v1  ;;  %v29484_v1 = vld [vmem:[%s38719_s3 + $0x4630] ss:$24 sps:$4 sm:$0xff]  }
 0x8ab   : > { %18209 = vmatpush1.bf16.msra.mxu0 %v29412_v3  ;;  %15852 = vmatprep.subr.bf16.mxu1 %v29417_v5  ;;  %v29489_v3 = vld [vmem:[%s38719_s3 + $0x405c] ss:$24 sps:$4 sm:$0xff]  }
 0x8ac   : > { %18210 = vmatprep.subr.bf16.mxu0 %v29420_v39  ;;  %v29492_v5 = vld [vmem:[%s38719_s3 + $0x4664] ss:$24 sps:$4 sm:$0xff]   ;;  %v29487_v39 = vld [vmem:[%s38719_s3 + $0x4058] ss:$24 sps:$4 sm:$0xff]  }
 0x8ae   : > { %15853 = vmatpush1.bf16.msra.mxu1 %v29415_v7  ;;  %v29490_v7 = vld [vmem:[%s38719_s3 + $0x4660] ss:$24 sps:$4 sm:$0xff]  }
 0x8af   : > { %18211 = vmatpush1.bf16.msra.mxu0 %v29418_v59  ;;  %15854 = vmatprep.subr.bf16.mxu1 %v29423_v13  ;;  %v29495_v59 = vld [vmem:[%s38719_s3 + $0x408c] ss:$24 sps:$4 sm:$0xff]  }
 0x8b0   : > { %18212 = vmatprep.subr.bf16.mxu0 %v29426_v8  ;;  %v29498_v13 = vld [vmem:[%s38719_s3 + $0x4694] ss:$24 sps:$4 sm:$0xff]   ;;  %v29493_v8 = vld [vmem:[%s38719_s3 + $0x4088] ss:$24 sps:$4 sm:$0xff]  }
 0x8b2   : > { %15855 = vmatpush1.bf16.msra.mxu1 %v29421_v9  ;;  %v29496_v9 = vld [vmem:[%s38719_s3 + $0x4690] ss:$24 sps:$4 sm:$0xff]  }
 0x8b3   : > { %18213 = vmatpush1.bf16.msra.mxu0 %v29424_v21  ;;  %15856 = vmatprep.subr.bf16.mxu1 %v29429_v14  ;;  %v29501_v21 = vld [vmem:[%s38719_s3 + $0x40bc] ss:$24 sps:$4 sm:$0xff]  }
 0x8b4   : > { %18214 = vmatprep.subr.bf16.mxu0 %v29432_v19  ;;  %v29504_v14 = vld [vmem:[%s38719_s3 + $0x46c4] ss:$24 sps:$4 sm:$0xff]   ;;  %v29499_v19 = vld [vmem:[%s38719_s3 + $0x40b8] ss:$24 sps:$4 sm:$0xff]  }
 0x8b6   : > { %15857 = vmatpush1.bf16.msra.mxu1 %v29427_v24  ;;  %v29502_v24 = vld [vmem:[%s38719_s3 + $0x46c0] ss:$24 sps:$4 sm:$0xff]  }
 0x8b7   : > { %18215 = vmatpush1.bf16.msra.mxu0 %v29430_v54  ;;  %15858 = vmatprep.subr.bf16.mxu1 %v29435_v30  ;;  %v29507_v54 = vld [vmem:[%s38719_s3 + $0x40ec] ss:$24 sps:$4 sm:$0xff]  }
 0x8b8   : > { %18216 = vmatprep.subr.bf16.mxu0 %v29438_v34  ;;  %v29510_v30 = vld [vmem:[%s38719_s3 + $0x46f4] ss:$24 sps:$4 sm:$0xff]   ;;  %v29505_v34 = vld [vmem:[%s38719_s3 + $0x40e8] ss:$24 sps:$4 sm:$0xff]  }
 0x8ba   : > { %15859 = vmatpush1.bf16.msra.mxu1 %v29433_v40  ;;  %v29508_v40 = vld [vmem:[%s38719_s3 + $0x46f0] ss:$24 sps:$4 sm:$0xff]  }
 0x8bb   : > { %18217 = vmatpush1.bf16.msra.mxu0 %v29436_v60  ;;  %15860 = vmatprep.subr.bf16.mxu1 %v29441_v62  ;;  %v29513_v60 = vld [vmem:[%s38719_s3 + $0x411c] ss:$24 sps:$4 sm:$0xff]  }
 0x8bc   : > { %18218 = vmatprep.subr.bf16.mxu0 %v29444_v29  ;;  %v29516_v62 = vld [vmem:[%s38719_s3 + $0x4724] ss:$24 sps:$4 sm:$0xff]   ;;  %v29511_v29 = vld [vmem:[%s38719_s3 + $0x4118] ss:$24 sps:$4 sm:$0xff]  }
 0x8be   : > { %15861 = vmatpush1.bf16.msra.mxu1 %v29439_v36  ;;  %v29514_v36 = vld [vmem:[%s38719_s3 + $0x4720] ss:$24 sps:$4 sm:$0xff]  }
 0x8bf   : > { %18219 = vmatpush1.bf16.msra.mxu0 %v29442_v23  ;;  %18016 = vmatprep.subr.bf16.mxu1 %v29447_v44  ;;  %v29519_v23 = vld [vmem:[%s38719_s3 + $0x414c] ss:$24 sps:$4 sm:$0xff]  }
 0x8c0   : > { %18231 = vmatprep.subr.bf16.mxu0 %v29450_v18  ;;  %v29522_v44 = vld [vmem:[%s38719_s3 + $0x4754] ss:$24 sps:$4 sm:$0xff]   ;;  %v29517_v18 = vld [vmem:[%s38719_s3 + $0x4148] ss:$24 sps:$4 sm:$0xff]  }
 0x8c1   : > { %15863 = vmatmul.mubr.bf16.vlgmr.msra.gmra.mrb[4].mxu1 %v30098_v56  ;;  %v29526_v56 = vld [vmem:[%s38719_s3 + $0x4780] ss:$24 sps:$4 sm:$0xff]  }
 0x8c2   : > { %18221 = vmatmul.mubr.bf16.vlgmr.msra.gmra.mrb[4].mxu0 %v36710_v33  ;;  %18017 = vmatpush1.bf16.msra.mxu1 %v29445_v57  ;;  %v29520_v57 = vld [vmem:[%s38719_s3 + $0x4750] ss:$24 sps:$4 sm:$0xff]  }
 0x8c3   : > { %18232 = vmatpush1.bf16.msra.mxu0 %v29448_v51  ;;  %18018 = vmatprep.subr.bf16.mxu1 %v29453_v31  ;;  %v29525_v51 = vld [vmem:[%s38719_s3 + $0x417c] ss:$24 sps:$4 sm:$0xff]  }
 0x8c4   : > { %18233 = vmatprep.subr.bf16.mxu0 %v29456_v55  ;;  %18048 = vmatprep.mubr.bf16.mxu1 %v36302_v4  ;;  %v29468_v4 = vld [vmem:[%s38719_s3 + $0x45a4] ss:$24 sps:$4 sm:$0xff]   ;;  %v29523_v55 = vld [vmem:[%s38719_s3 + $0x4178] ss:$24 sps:$4 sm:$0xff]  }
 0x8c5   : > { %18263 = vmatprep.mubr.bf16.mxu0 %v36734_v58  ;;  %v29528_v31 = vld [vmem:[%s38719_s3 + $0x4784] ss:$24 sps:$4 sm:$0xff]  }
 0x8c6   : > { %18019 = vmatpush1.bf16.msra.mxu1 %v29451_v17  ;;  %v29531_v17 = vld [vmem:[%s38719_s3 + $0x41ac] ss:$24 sps:$4 sm:$0xff]  }
 0x8c7   : > { %18234 = vmatpush1.bf16.msra.mxu0 %v29454_v32  ;;  %18020 = vmatprep.subr.bf16.mxu1 %v29459_v45  ;;  %v29534_v32 = vld [vmem:[%s38719_s3 + $0x47b4] ss:$24 sps:$4 sm:$0xff]   ;;  %v29529_v45 = vld [vmem:[%s38719_s3 + $0x41a8] ss:$24 sps:$4 sm:$0xff]  }
 0x8c8   : > { %18235 = vmatprep.subr.bf16.mxu0 %v29462_v46  ;;  %v29532_v46 = vld [vmem:[%s38719_s3 + $0x47b0] ss:$24 sps:$4 sm:$0xff]  }
 0x8ca   : > { %18021 = vmatpush1.bf16.msra.mxu1 %v29457_v49  ;;  %v18587_v49 = vld [vmem:[%s34888_s22] sm:$0xee] }
 0x8cb   : > { %18236 = vmatpush1.bf16.msra.mxu0 %v29460_v0  ;;  %18022 = vmatprep.subr.bf16.mxu1 %v29465_v16  ;;  %v18590_v0 = vld [vmem:[%s34888_s22 + $0x18] sm:$0x11]  ;;  %v18593_v16 = vld [vmem:[%s34888_s22 + $0x30] sm:$0xee] }
 0x8cc   : > { %18237 = vmatprep.subr.bf16.mxu0 %v29468_v4  ;;  %v18596_v4 = vld [vmem:[%s34888_s22 + $0x48] sm:$0x11] }
 0x8ce   : > { %18023 = vmatpush1.bf16.msra.mxu1 %v29463_v6  ;;  %v29537_v6 = vld [vmem:[%s38719_s3 + $0x41dc] ss:$24 sps:$4 sm:$0xff]  }
 0x8cf   : > { %18238 = vmatpush1.bf16.msra.mxu0 %v29466_v2  ;;  %18024 = vmatprep.subr.bf16.mxu1 %v29471_v38  ;;  %v29540_v2 = vld [vmem:[%s38719_s3 + $0x47e4] ss:$24 sps:$4 sm:$0xff]   ;;  %v25473_v38 = vrot.slane %v18587_v49, 9  ;;  %v29600_v49 = vld [vmem:[%s38719_s3 + $0x49b4] ss:$24 sps:$4 sm:$0xff]  }
 0x8d0   : > { %18239 = vmatprep.subr.bf16.mxu0 %v29474_v41  ;;  %v18613_v41 = vrot.slane %v18590_v0, 5  ;;  %v29595_v0 = vld [vmem:[%s38719_s3 + $0x43b8] ss:$24 sps:$4 sm:$0xff]  }
 0x8d2   : > { %18025 = vmatpush1.bf16.msra.mxu1 %v29469_v37  ;;  %v25476_v37 = vrot.slane %v18593_v16, 9  ;;  %v29598_v16 = vld [vmem:[%s38719_s3 + $0x49b0] ss:$24 sps:$4 sm:$0xff]  }
 0x8d3   : > { %18240 = vmatpush1.bf16.msra.mxu0 %v29472_v42  ;;  %18026 = vmatprep.subr.bf16.mxu1 %v29477_v47  ;;  %v18625_v42 = vrot.slane %v18596_v4, 5  ;;  %v29535_v47 = vld [vmem:[%s38719_s3 + $0x41d8] ss:$24 sps:$4 sm:$0xff]   ;;  %v29603_v4 = vld [vmem:[%s38719_s3 + $0x43ec] ss:$24 sps:$4 sm:$0xff]  }
 0x8d4   : > { %18241 = vmatprep.subr.bf16.mxu0 %v29480_v43  ;;  %v29538_v43 = vld [vmem:[%s38719_s3 + $0x47e0] ss:$24 sps:$4 sm:$0xff]  }
 0x8d6   : > { %18027 = vmatpush1.bf16.msra.mxu1 %v29475_v27  ;;  %v29543_v27 = vld [vmem:[%s38719_s3 + $0x420c] ss:$24 sps:$4 sm:$0xff]  }
 0x8d7   : > { %18242 = vmatpush1.bf16.msra.mxu0 %v29478_v20  ;;  %18028 = vmatprep.subr.bf16.mxu1 %v29483_v61  ;;  %v29546_v20 = vld [vmem:[%s38719_s3 + $0x4804] ss:$24 sps:$4 sm:$0xff]   ;;  %v37518_v61 = vsel %vm30463_vm2, %v25473_v38, %v18613_v41  ;;  %v29604_v38 = vld [vmem:[%s38719_s3 + $0x49e0] ss:$24 sps:$4 sm:$0xff]  }
 0x8d8   : > { %18243 = vmatprep.subr.bf16.mxu0 %v29486_v26  ;;  %v37522_v26 = vsel %vm30463_vm2, %v25476_v37, %v18625_v42  ;;  %v29609_v41 = vld [vmem:[%s38719_s3 + $0x441c] ss:$24 sps:$4 sm:$0xff]   ;;  %v29607_v42 = vld [vmem:[%s38719_s3 + $0x4418] ss:$24 sps:$4 sm:$0xff]  }
 0x8d9   : > { %v29612_v37 = vld [vmem:[%s38719_s3 + $0x4a14] ss:$24 sps:$4 sm:$0xff]  }
 0x8da   : > { %18029 = vmatpush1.bf16.msra.mxu1 %v29481_v25  ;;  %v29541_v25 = vld [vmem:[%s38719_s3 + $0x4208] ss:$24 sps:$4 sm:$0xff]  }
 0x8db   : > { %18244 = vmatpush1.bf16.msra.mxu0 %v29484_v1  ;;  %18030 = vmatprep.subr.bf16.mxu1 %v29489_v3  ;;  %v29544_v1 = vld [vmem:[%s38719_s3 + $0x4800] ss:$24 sps:$4 sm:$0xff]   ;;  %v29549_v3 = vld [vmem:[%s38719_s3 + $0x423c] ss:$24 sps:$4 sm:$0xff]  }
 0x8dc   : > { %18245 = vmatprep.subr.bf16.mxu0 %v29492_v5  ;;  %v29552_v5 = vld [vmem:[%s38719_s3 + $0x4834] ss:$24 sps:$4 sm:$0xff]  }
 0x8de   : > { %18031 = vmatpush1.bf16.msra.mxu1 %v29487_v39  ;;  %v37538_v39 = vcombine.high %v37518_v61, %v37522_v26 }
 0x8df   : > { %18246 = vmatpush1.bf16.msra.mxu0 %v29490_v7  ;;  %18032 = vmatprep.subr.bf16.mxu1 %v29495_v59  ;;  %v29547_v7 = vld [vmem:[%s38719_s3 + $0x4238] ss:$24 sps:$4 sm:$0xff]  }
 0x8e0   : > { %18247 = vmatprep.subr.bf16.mxu0 %v29498_v13  ;;  %v29550_v59 = vld [vmem:[%s38719_s3 + $0x4830] ss:$24 sps:$4 sm:$0xff]   ;;  %v29555_v13 = vld [vmem:[%s38719_s3 + $0x426c] ss:$24 sps:$4 sm:$0xff]  }
 0x8e2   : > { %18033 = vmatpush1.bf16.msra.mxu1 %v29493_v8  ;;  %v29553_v8 = vld [vmem:[%s38719_s3 + $0x4268] ss:$24 sps:$4 sm:$0xff]  }
 0x8e3   : > { %18248 = vmatpush1.bf16.msra.mxu0 %v29496_v9  ;;  %18034 = vmatprep.subr.bf16.mxu1 %v29501_v21  ;;  %v29556_v9 = vld [vmem:[%s38719_s3 + $0x4860] ss:$24 sps:$4 sm:$0xff]   ;;  %v29561_v21 = vld [vmem:[%s38719_s3 + $0x429c] ss:$24 sps:$4 sm:$0xff]  }
 0x8e4   : > { %18249 = vmatprep.subr.bf16.mxu0 %v29504_v14  ;;  %v29559_v14 = vld [vmem:[%s38719_s3 + $0x4298] ss:$24 sps:$4 sm:$0xff]  }
 0x8e6   : > { %18035 = vmatpush1.bf16.msra.mxu1 %v29499_v19  ;;  %v29562_v19 = vld [vmem:[%s38719_s3 + $0x4890] ss:$24 sps:$4 sm:$0xff]  }
 0x8e7   : > { %18250 = vmatpush1.bf16.msra.mxu0 %v29502_v24  ;;  %18036 = vmatprep.subr.bf16.mxu1 %v29507_v54  ;;  %v29567_v24 = vld [vmem:[%s38719_s3 + $0x42cc] ss:$24 sps:$4 sm:$0xff]  }
 0x8e8   : > { %18251 = vmatprep.subr.bf16.mxu0 %v29510_v30  ;;  %v29570_v54 = vld [vmem:[%s38719_s3 + $0x48c4] ss:$24 sps:$4 sm:$0xff]   ;;  %v29565_v30 = vld [vmem:[%s38719_s3 + $0x42c8] ss:$24 sps:$4 sm:$0xff]  }
 0x8ea   : > { %18037 = vmatpush1.bf16.msra.mxu1 %v29505_v34  ;;  %v29568_v34 = vld [vmem:[%s38719_s3 + $0x48c0] ss:$24 sps:$4 sm:$0xff]  }
 0x8eb   : > { %18252 = vmatpush1.bf16.msra.mxu0 %v29508_v40  ;;  %18038 = vmatprep.subr.bf16.mxu1 %v29513_v60  ;;  %v29573_v40 = vld [vmem:[%s38719_s3 + $0x42fc] ss:$24 sps:$4 sm:$0xff]  }
 0x8ec   : > { %18253 = vmatprep.subr.bf16.mxu0 %v29516_v62  ;;  %v29576_v60 = vld [vmem:[%s38719_s3 + $0x48f4] ss:$24 sps:$4 sm:$0xff]   ;;  %v29571_v62 = vld [vmem:[%s38719_s3 + $0x42f8] ss:$24 sps:$4 sm:$0xff]  }
 0x8ee   : > { %18039 = vmatpush1.bf16.msra.mxu1 %v29511_v29  ;;  %v29574_v29 = vld [vmem:[%s38719_s3 + $0x48f0] ss:$24 sps:$4 sm:$0xff]  }
 0x8ef   : > { %18254 = vmatpush1.bf16.msra.mxu0 %v29514_v36  ;;  %18040 = vmatprep.subr.bf16.mxu1 %v29519_v23  ;;  %v29579_v36 = vld [vmem:[%s38719_s3 + $0x432c] ss:$24 sps:$4 sm:$0xff]  }
 0x8f0   : > { %18255 = vmatprep.subr.bf16.mxu0 %v29522_v44  ;;  %v29582_v23 = vld [vmem:[%s38719_s3 + $0x4924] ss:$24 sps:$4 sm:$0xff]   ;;  %v29577_v44 = vld [vmem:[%s38719_s3 + $0x4328] ss:$24 sps:$4 sm:$0xff]  }
 0x8f2   : > { %18041 = vmatpush1.bf16.msra.mxu1 %v29517_v18  ;;  %v29580_v18 = vld [vmem:[%s38719_s3 + $0x4920] ss:$24 sps:$4 sm:$0xff]  }
 0x8f3   : > { %18256 = vmatpush1.bf16.msra.mxu0 %v29520_v57  ;;  %18042 = vmatprep.subr.bf16.mxu1 %v29525_v51  ;;  %v29585_v57 = vld [vmem:[%s38719_s3 + $0x435c] ss:$24 sps:$4 sm:$0xff]  }
 0x8f4   : > { %18257 = vmatprep.subr.bf16.mxu0 %v29528_v31  ;;  %v29588_v51 = vld [vmem:[%s38719_s3 + $0x4954] ss:$24 sps:$4 sm:$0xff]   ;;  %v29583_v31 = vld [vmem:[%s38719_s3 + $0x4358] ss:$24 sps:$4 sm:$0xff]  }
 0x8f6   : > { %18043 = vmatpush1.bf16.msra.mxu1 %v29523_v55  ;;  %v29586_v55 = vld [vmem:[%s38719_s3 + $0x4950] ss:$24 sps:$4 sm:$0xff]  }
 0x8f7   : > { %18258 = vmatpush1.bf16.msra.mxu0 %v29526_v56  ;;  %18044 = vmatprep.subr.bf16.mxu1 %v29531_v17  ;;  %v29591_v56 = vld [vmem:[%s38719_s3 + $0x438c] ss:$24 sps:$4 sm:$0xff]  }
 0x8f8   : > { %18259 = vmatprep.subr.bf16.mxu0 %v29534_v32  ;;  %v29594_v17 = vld [vmem:[%s38719_s3 + $0x4984] ss:$24 sps:$4 sm:$0xff]   ;;  %v29589_v32 = vld [vmem:[%s38719_s3 + $0x4388] ss:$24 sps:$4 sm:$0xff]  }
 0x8fa   : > { %18045 = vmatpush1.bf16.msra.mxu1 %v29529_v45  ;;  %v29592_v45 = vld [vmem:[%s38719_s3 + $0x4980] ss:$24 sps:$4 sm:$0xff]  }
 0x8fb   : > { %18260 = vmatpush1.bf16.msra.mxu0 %v29532_v46  ;;  %18046 = vmatprep.subr.bf16.mxu1 %v29537_v6  ;;  %v29597_v46 = vld [vmem:[%s38719_s3 + $0x43bc] ss:$24 sps:$4 sm:$0xff]  }
 0x8fc   : > { %18261 = vmatprep.subr.bf16.mxu0 %v29540_v2  ;;  %v29606_v6 = vld [vmem:[%s38719_s3 + $0x49e4] ss:$24 sps:$4 sm:$0xff]   ;;  %v29601_v2 = vld [vmem:[%s38719_s3 + $0x43e8] ss:$24 sps:$4 sm:$0xff]  }
 0x8fe   : > { %18047 = vmatpush1.bf16.msra.mxu1 %v29535_v47  ;;  %v29610_v47 = vld [vmem:[%s38719_s3 + $0x4a10] ss:$24 sps:$4 sm:$0xff]  }
 0x8ff   : > { %18262 = vmatpush1.bf16.msra.mxu0 %v29538_v43  ;;  %18059 = vmatprep.subr.bf16.mxu1 %v29543_v27  ;;  %v29615_v43 = vld [vmem:[%s38719_s3 + $0x444c] ss:$24 sps:$4 sm:$0xff]  }
 0x900   : > { %20111 = vmatprep.subr.bf16.mxu0 %v29546_v20  ;;  %v29618_v27 = vld [vmem:[%s38719_s3 + $0x4a44] ss:$24 sps:$4 sm:$0xff]   ;;  %v29613_v20 = vld [vmem:[%s38719_s3 + $0x4448] ss:$24 sps:$4 sm:$0xff]  }
 0x901   : > { %18049 = vmatmul.mubr.bf16.vlgmr.msra.gmra.mrb[4].mxu1 %v36494_v35  ;;  %v29558_v35 = vld [vmem:[%s38719_s3 + $0x4864] ss:$24 sps:$4 sm:$0xff]  }
 0x902   : > { %18264 = vmatmul.mubr.bf16.vlgmr.msra.gmra.mrb[4].mxu0 %v36922_v22  ;;  %18060 = vmatpush1.bf16.msra.mxu1 %v29541_v25  ;;  %v29616_v25 = vld [vmem:[%s38719_s3 + $0x4a40] ss:$24 sps:$4 sm:$0xff]  }
 0x903   : > { %20112 = vmatpush1.bf16.msra.mxu0 %v29544_v1  ;;  %18061 = vmatprep.subr.bf16.mxu1 %v29549_v3  ;;  %v29621_v1 = vld [vmem:[%s38719_s3 + $0x447c] ss:$24 sps:$4 sm:$0xff]  }
 0x904   : > { %20113 = vmatprep.subr.bf16.mxu0 %v29552_v5  ;;  %18091 = vmatprep.mubr.bf16.mxu1 %v36518_v48  ;;  %v29564_v48 = vld [vmem:[%s38719_s3 + $0x4894] ss:$24 sps:$4 sm:$0xff]   ;;  %v29619_v5 = vld [vmem:[%s38719_s3 + $0x4478] ss:$24 sps:$4 sm:$0xff]  }
 0x905   : > { %20143 = vmatprep.mubr.bf16.mxu0 %v37538_v39  ;;  %v29624_v3 = vld [vmem:[%s38719_s3 + $0x4a74] ss:$24 sps:$4 sm:$0xff]  }
 0x906   : > { %18062 = vmatpush1.bf16.msra.mxu1 %v29547_v7  ;;  %v29622_v7 = vld [vmem:[%s38719_s3 + $0x4a70] ss:$24 sps:$4 sm:$0xff]  }
 0x907   : > { %20114 = vmatpush1.bf16.msra.mxu0 %v29550_v59  ;;  %18063 = vmatprep.subr.bf16.mxu1 %v29555_v13  ;;  %v29627_v59 = vld [vmem:[%s38719_s3 + $0x44ac] ss:$24 sps:$4 sm:$0xff]  }
 0x908   : > { %20115 = vmatprep.subr.bf16.mxu0 %v29558_v35  ;;  %v29630_v13 = vld [vmem:[%s38719_s3 + $0x4aa4] ss:$24 sps:$4 sm:$0xff]   ;;  %v29625_v35 = vld [vmem:[%s38719_s3 + $0x44a8] ss:$24 sps:$4 sm:$0xff]  }
 0x90a   : > { %18064 = vmatpush1.bf16.msra.mxu1 %v29553_v8  ;;  %v29628_v8 = vld [vmem:[%s38719_s3 + $0x4aa0] ss:$24 sps:$4 sm:$0xff]  }
 0x90b   : > { %20116 = vmatpush1.bf16.msra.mxu0 %v29556_v9  ;;  %18065 = vmatprep.subr.bf16.mxu1 %v29561_v21  ;;  %v18588_v9 = vld [vmem:[%s34888_s22 + $0x8] sm:$0xee]  ;;  %v18591_v21 = vld [vmem:[%s34888_s22 + $0x20] sm:$0x11] }
 0x90c   : > { %20117 = vmatprep.subr.bf16.mxu0 %v29564_v48  ;;  %v18594_v48 = vld [vmem:[%s34888_s22 + $0x38] sm:$0xee] }
 0x90e   : > { %18066 = vmatpush1.bf16.msra.mxu1 %v29559_v14  ;;  %v18597_v14 = vld [vmem:[%s34888_s22 + $0x50] sm:$0x11] }
 0x90f   : > { %20118 = vmatpush1.bf16.msra.mxu0 %v29562_v19  ;;  %18067 = vmatprep.subr.bf16.mxu1 %v29567_v24  ;;  %v29633_v19 = vld [vmem:[%s38719_s3 + $0x44dc] ss:$24 sps:$4 sm:$0xff]  }
 0x910   : > { %20119 = vmatprep.subr.bf16.mxu0 %v29570_v54  ;;  %v29636_v24 = vld [vmem:[%s38719_s3 + $0x4ad4] ss:$24 sps:$4 sm:$0xff]   ;;  %v25474_v54 = vrot.slane %v18588_v9, 9 }
 0x911   : > { %v29696_v9 = vld [vmem:[%s38719_s3 + $0x4cb4] ss:$24 sps:$4 sm:$0xff]  }
 0x912   : > { %18068 = vmatpush1.bf16.msra.mxu1 %v29565_v30  ;;  %v18617_v30 = vrot.slane %v18591_v21, 5  ;;  %v29691_v21 = vld [vmem:[%s38719_s3 + $0x46b8] ss:$24 sps:$4 sm:$0xff]  }
 0x913   : > { %20120 = vmatpush1.bf16.msra.mxu0 %v29568_v34  ;;  %18069 = vmatprep.subr.bf16.mxu1 %v29573_v40  ;;  %v25477_v34 = vrot.slane %v18594_v48, 9  ;;  %v18629_v40 = vrot.slane %v18597_v14, 5  ;;  %v29694_v48 = vld [vmem:[%s38719_s3 + $0x4cb0] ss:$24 sps:$4 sm:$0xff]   ;;  %v29699_v14 = vld [vmem:[%s38719_s3 + $0x46ec] ss:$24 sps:$4 sm:$0xff]  }
 0x914   : > { %20121 = vmatprep.subr.bf16.mxu0 %v29576_v60  ;;  %v29631_v60 = vld [vmem:[%s38719_s3 + $0x44d8] ss:$24 sps:$4 sm:$0xff]  }
 0x916   : > { %18070 = vmatpush1.bf16.msra.mxu1 %v29571_v62  ;;  %v29634_v62 = vld [vmem:[%s38719_s3 + $0x4ad0] ss:$24 sps:$4 sm:$0xff]  }
 0x917   : > { %20122 = vmatpush1.bf16.msra.mxu0 %v29574_v29  ;;  %18071 = vmatprep.subr.bf16.mxu1 %v29579_v36  ;;  %v29639_v29 = vld [vmem:[%s38719_s3 + $0x450c] ss:$24 sps:$4 sm:$0xff]  }
 0x918   : > { %20123 = vmatprep.subr.bf16.mxu0 %v29582_v23  ;;  %v29642_v36 = vld [vmem:[%s38719_s3 + $0x4b04] ss:$24 sps:$4 sm:$0xff]   ;;  %v37730_v23 = vcombine.low %v37518_v61, %v37522_v26  ;;  %v29648_v26 = vld [vmem:[%s38719_s3 + $0x4b34] ss:$24 sps:$4 sm:$0xff]  }
 0x919   : > { %v29645_v61 = vld [vmem:[%s38719_s3 + $0x453c] ss:$24 sps:$4 sm:$0xff]  }
 0x91a   : > { %18072 = vmatpush1.bf16.msra.mxu1 %v29577_v44  ;;  %v37734_v44 = vsel %vm30463_vm2, %v25474_v54, %v18617_v30  ;;  %v29700_v54 = vld [vmem:[%s38719_s3 + $0x4ce0] ss:$24 sps:$4 sm:$0xff]   ;;  %v29705_v30 = vld [vmem:[%s38719_s3 + $0x471c] ss:$24 sps:$4 sm:$0xff]  }
 0x91b   : > { %20124 = vmatpush1.bf16.msra.mxu0 %v29580_v18  ;;  %18073 = vmatprep.subr.bf16.mxu1 %v29585_v57  ;;  %v37738_v18 = vsel %vm30463_vm2, %v25477_v34, %v18629_v40  ;;  %v29637_v57 = vld [vmem:[%s38719_s3 + $0x4508] ss:$24 sps:$4 sm:$0xff]   ;;  %v29708_v34 = vld [vmem:[%s38719_s3 + $0x4d14] ss:$24 sps:$4 sm:$0xff]   ;;  %v29703_v40 = vld [vmem:[%s38719_s3 + $0x4718] ss:$24 sps:$4 sm:$0xff]  }
 0x91c   : > { %20125 = vmatprep.subr.bf16.mxu0 %v29588_v51  ;;  %v29640_v51 = vld [vmem:[%s38719_s3 + $0x4b00] ss:$24 sps:$4 sm:$0xff]  }
 0x91e   : > { %18074 = vmatpush1.bf16.msra.mxu1 %v29583_v31  ;;  %v37754_v31 = vcombine.high %v37734_v44, %v37738_v18 }
 0x91f   : > { %20126 = vmatpush1.bf16.msra.mxu0 %v29586_v55  ;;  %18075 = vmatprep.subr.bf16.mxu1 %v29591_v56  ;;  %v29643_v55 = vld [vmem:[%s38719_s3 + $0x4538] ss:$24 sps:$4 sm:$0xff]  }
 0x920   : > { %20127 = vmatprep.subr.bf16.mxu0 %v29594_v17  ;;  %v29646_v56 = vld [vmem:[%s38719_s3 + $0x4b30] ss:$24 sps:$4 sm:$0xff]   ;;  %v29651_v17 = vld [vmem:[%s38719_s3 + $0x456c] ss:$24 sps:$4 sm:$0xff]  }
 0x922   : > { %18076 = vmatpush1.bf16.msra.mxu1 %v29589_v32  ;;  %v29649_v32 = vld [vmem:[%s38719_s3 + $0x4568] ss:$24 sps:$4 sm:$0xff]  }
 0x923   : > { %20128 = vmatpush1.bf16.msra.mxu0 %v29592_v45  ;;  %18077 = vmatprep.subr.bf16.mxu1 %v29597_v46  ;;  %v29652_v45 = vld [vmem:[%s38719_s3 + $0x4b60] ss:$24 sps:$4 sm:$0xff]   ;;  %v29657_v46 = vld [vmem:[%s38719_s3 + $0x459c] ss:$24 sps:$4 sm:$0xff]  }
 0x924   : > { %20129 = vmatprep.subr.bf16.mxu0 %v29600_v49  ;;  %v29655_v49 = vld [vmem:[%s38719_s3 + $0x4598] ss:$24 sps:$4 sm:$0xff]  }
 0x926   : > { %18078 = vmatpush1.bf16.msra.mxu1 %v29595_v0  ;;  %v29658_v0 = vld [vmem:[%s38719_s3 + $0x4b90] ss:$24 sps:$4 sm:$0xff]  }
 0x927   : > { %20130 = vmatpush1.bf16.msra.mxu0 %v29598_v16  ;;  %18079 = vmatprep.subr.bf16.mxu1 %v29603_v4  ;;  %v29663_v16 = vld [vmem:[%s38719_s3 + $0x45cc] ss:$24 sps:$4 sm:$0xff]  }
 0x928   : > { %20131 = vmatprep.subr.bf16.mxu0 %v29606_v6  ;;  %v29666_v4 = vld [vmem:[%s38719_s3 + $0x4bc4] ss:$24 sps:$4 sm:$0xff]   ;;  %v29661_v6 = vld [vmem:[%s38719_s3 + $0x45c8] ss:$24 sps:$4 sm:$0xff]  }
 0x92a   : > { %18080 = vmatpush1.bf16.msra.mxu1 %v29601_v2  ;;  %v29664_v2 = vld [vmem:[%s38719_s3 + $0x4bc0] ss:$24 sps:$4 sm:$0xff]  }
 0x92b   : > { %20132 = vmatpush1.bf16.msra.mxu0 %v29604_v38  ;;  %18081 = vmatprep.subr.bf16.mxu1 %v29609_v41  ;;  %v29669_v38 = vld [vmem:[%s38719_s3 + $0x45fc] ss:$24 sps:$4 sm:$0xff]  }
 0x92c   : > { %20133 = vmatprep.subr.bf16.mxu0 %v29612_v37  ;;  %v29672_v41 = vld [vmem:[%s38719_s3 + $0x4bf4] ss:$24 sps:$4 sm:$0xff]   ;;  %v29667_v37 = vld [vmem:[%s38719_s3 + $0x45f8] ss:$24 sps:$4 sm:$0xff]  }
 0x92e   : > { %18082 = vmatpush1.bf16.msra.mxu1 %v29607_v42  ;;  %v29670_v42 = vld [vmem:[%s38719_s3 + $0x4bf0] ss:$24 sps:$4 sm:$0xff]  }
 0x92f   : > { %20134 = vmatpush1.bf16.msra.mxu0 %v29610_v47  ;;  %18083 = vmatprep.subr.bf16.mxu1 %v29615_v43  ;;  %v29675_v47 = vld [vmem:[%s38719_s3 + $0x462c] ss:$24 sps:$4 sm:$0xff]  }
 0x930   : > { %20135 = vmatprep.subr.bf16.mxu0 %v29618_v27  ;;  %v29678_v43 = vld [vmem:[%s38719_s3 + $0x4c24] ss:$24 sps:$4 sm:$0xff]   ;;  %v29673_v27 = vld [vmem:[%s38719_s3 + $0x4628] ss:$24 sps:$4 sm:$0xff]  }
 0x932   : > { %18084 = vmatpush1.bf16.msra.mxu1 %v29613_v20  ;;  %v29676_v20 = vld [vmem:[%s38719_s3 + $0x4c20] ss:$24 sps:$4 sm:$0xff]  }
 0x933   : > { %20136 = vmatpush1.bf16.msra.mxu0 %v29616_v25  ;;  %18085 = vmatprep.subr.bf16.mxu1 %v29621_v1  ;;  %v29681_v25 = vld [vmem:[%s38719_s3 + $0x465c] ss:$24 sps:$4 sm:$0xff]  }
 0x934   : > { %20137 = vmatprep.subr.bf16.mxu0 %v29624_v3  ;;  %v29684_v1 = vld [vmem:[%s38719_s3 + $0x4c54] ss:$24 sps:$4 sm:$0xff]   ;;  %v29679_v3 = vld [vmem:[%s38719_s3 + $0x4658] ss:$24 sps:$4 sm:$0xff]  }
 0x936   : > { %18086 = vmatpush1.bf16.msra.mxu1 %v29619_v5  ;;  %v29682_v5 = vld [vmem:[%s38719_s3 + $0x4c50] ss:$24 sps:$4 sm:$0xff]  }
 0x937   : > { %20138 = vmatpush1.bf16.msra.mxu0 %v29622_v7  ;;  %18087 = vmatprep.subr.bf16.mxu1 %v29627_v59  ;;  %v29687_v7 = vld [vmem:[%s38719_s3 + $0x468c] ss:$24 sps:$4 sm:$0xff]  }
 0x938   : > { %20139 = vmatprep.subr.bf16.mxu0 %v29630_v13  ;;  %v29690_v59 = vld [vmem:[%s38719_s3 + $0x4c84] ss:$24 sps:$4 sm:$0xff]   ;;  %v29685_v13 = vld [vmem:[%s38719_s3 + $0x4688] ss:$24 sps:$4 sm:$0xff]  }
 0x93a   : > { %18088 = vmatpush1.bf16.msra.mxu1 %v29625_v35  ;;  %v29688_v35 = vld [vmem:[%s38719_s3 + $0x4c80] ss:$24 sps:$4 sm:$0xff]  }
 0x93b   : > { %20140 = vmatpush1.bf16.msra.mxu0 %v29628_v8  ;;  %18089 = vmatprep.subr.bf16.mxu1 %v29633_v19  ;;  %v29693_v8 = vld [vmem:[%s38719_s3 + $0x46bc] ss:$24 sps:$4 sm:$0xff]  }
 0x93c   : > { %20141 = vmatprep.subr.bf16.mxu0 %v29636_v24  ;;  %v29702_v19 = vld [vmem:[%s38719_s3 + $0x4ce4] ss:$24 sps:$4 sm:$0xff]   ;;  %v29697_v24 = vld [vmem:[%s38719_s3 + $0x46e8] ss:$24 sps:$4 sm:$0xff]  }
 0x93e   : > { %18090 = vmatpush1.bf16.msra.mxu1 %v29631_v60  ;;  %v29706_v60 = vld [vmem:[%s38719_s3 + $0x4d10] ss:$24 sps:$4 sm:$0xff]  }
 0x93f   : > { %20142 = vmatpush1.bf16.msra.mxu0 %v29634_v62  ;;  %18102 = vmatprep.subr.bf16.mxu1 %v29639_v29  ;;  %v29711_v62 = vld [vmem:[%s38719_s3 + $0x474c] ss:$24 sps:$4 sm:$0xff]  }
 0x940   : > { %20154 = vmatprep.subr.bf16.mxu0 %v29642_v36  ;;  %v29714_v29 = vld [vmem:[%s38719_s3 + $0x4d44] ss:$24 sps:$4 sm:$0xff]   ;;  %v29709_v36 = vld [vmem:[%s38719_s3 + $0x4748] ss:$24 sps:$4 sm:$0xff]  }
 0x941   : > { %18092 = vmatmul.mubr.bf16.vlgmr.msra.gmra.mrb[4].mxu1 %v36710_v33  ;;  %v29654_v33 = vld [vmem:[%s38719_s3 + $0x4b64] ss:$24 sps:$4 sm:$0xff]  }
 0x942   : > { %20144 = vmatmul.mubr.bf16.vlgmr.msra.gmra.mrb[0].mxu0 %v37730_v23  ;;  %18103 = vmatpush1.bf16.msra.mxu1 %v29637_v57  ;;  %v29712_v57 = vld [vmem:[%s38719_s3 + $0x4d40] ss:$24 sps:$4 sm:$0xff]  }
 0x943   : > { %20155 = vmatpush1.bf16.msra.mxu0 %v29640_v51  ;;  %18104 = vmatprep.subr.bf16.mxu1 %v29645_v61  ;;  %v29717_v51 = vld [vmem:[%s38719_s3 + $0x477c] ss:$24 sps:$4 sm:$0xff]  }
 0x944   : > { %20156 = vmatprep.subr.bf16.mxu0 %v29648_v26  ;;  %18134 = vmatprep.mubr.bf16.mxu1 %v36734_v58  ;;  %v29660_v58 = vld [vmem:[%s38719_s3 + $0x4b94] ss:$24 sps:$4 sm:$0xff]   ;;  %v29715_v26 = vld [vmem:[%s38719_s3 + $0x4778] ss:$24 sps:$4 sm:$0xff]  }
 0x945   : > { %20186 = vmatprep.mubr.bf16.mxu0 %v37754_v31  ;;  %v29720_v61 = vld [vmem:[%s38719_s3 + $0x4d74] ss:$24 sps:$4 sm:$0xff]  }
 0x946   : > { %18105 = vmatpush1.bf16.msra.mxu1 %v29643_v55  ;;  %v29718_v55 = vld [vmem:[%s38719_s3 + $0x4d70] ss:$24 sps:$4 sm:$0xff]  }
 0x947   : > { %20157 = vmatpush1.bf16.msra.mxu0 %v29646_v56  ;;  %18106 = vmatprep.subr.bf16.mxu1 %v29651_v17  ;;  %v29723_v56 = vld [vmem:[%s38719_s3 + $0x47ac] ss:$24 sps:$4 sm:$0xff]  }
 0x948   : > { %20158 = vmatprep.subr.bf16.mxu0 %v29654_v33  ;;  %v29726_v17 = vld [vmem:[%s38719_s3 + $0x4da4] ss:$24 sps:$4 sm:$0xff]   ;;  %v29721_v33 = vld [vmem:[%s38719_s3 + $0x47a8] ss:$24 sps:$4 sm:$0xff]  }
 0x94a   : > { %18107 = vmatpush1.bf16.msra.mxu1 %v29649_v32  ;;  %v29724_v32 = vld [vmem:[%s38719_s3 + $0x4da0] ss:$24 sps:$4 sm:$0xff]  }
 0x94b   : > { %20159 = vmatpush1.bf16.msra.mxu0 %v29652_v45  ;;  %18108 = vmatprep.subr.bf16.mxu1 %v29657_v46  ;;  %v18589_v45 = vld [vmem:[%s34888_s22 + $0x10] sm:$0xee]  ;;  %v18592_v46 = vld [vmem:[%s34888_s22 + $0x28] sm:$0x11] }
 0x94c   : > { %20160 = vmatprep.subr.bf16.mxu0 %v29660_v58  ;;  %v18595_v58 = vld [vmem:[%s34888_s22 + $0x40] sm:$0xee] }
 0x94e   : > { %18109 = vmatpush1.bf16.msra.mxu1 %v29655_v49  ;;  %v18598_v49 = vld [vmem:[%s34888_s22 + $0x58] sm:$0x11] }
 0x94f   : > { %20161 = vmatpush1.bf16.msra.mxu0 %v29658_v0  ;;  %18110 = vmatprep.subr.bf16.mxu1 %v29663_v16  ;;  %v29729_v0 = vld [vmem:[%s38719_s3 + $0x47dc] ss:$24 sps:$4 sm:$0xff]  }
 0x950   : > { %20162 = vmatprep.subr.bf16.mxu0 %v29666_v4  ;;  %v29732_v16 = vld [vmem:[%s38719_s3 + $0x4dd4] ss:$24 sps:$4 sm:$0xff]   ;;  %v25475_v4 = vrot.slane %v18589_v45, 9 }
 0x951   : > { %v29792_v45 = vld [vmem:[%s38719_s3 + $0x49bc] ss:$24 sps:$4 sm:$0xff]  }
 0x952   : > { %18111 = vmatpush1.bf16.msra.mxu1 %v29661_v6  ;;  %v18621_v6 = vrot.slane %v18592_v46, 5  ;;  %v29787_v46 = vld [vmem:[%s38719_s3 + $0x4fb0] ss:$24 sps:$4 sm:$0xff]  }
 0x953   : > { %20163 = vmatpush1.bf16.msra.mxu0 %v29664_v2  ;;  %18112 = vmatprep.subr.bf16.mxu1 %v29669_v38  ;;  %v25478_v2 = vrot.slane %v18595_v58, 9  ;;  %v18633_v38 = vrot.slane %v18598_v49, 5  ;;  %v29790_v58 = vld [vmem:[%s38719_s3 + $0x49b8] ss:$24 sps:$4 sm:$0xff]   ;;  %v29795_v49 = vld [vmem:[%s38719_s3 + $0x4fe4] ss:$24 sps:$4 sm:$0xff]  }
 0x954   : > { %20164 = vmatprep.subr.bf16.mxu0 %v29672_v41  ;;  %v29727_v41 = vld [vmem:[%s38719_s3 + $0x47d8] ss:$24 sps:$4 sm:$0xff]  }
 0x956   : > { %18113 = vmatpush1.bf16.msra.mxu1 %v29667_v37  ;;  %v29730_v37 = vld [vmem:[%s38719_s3 + $0x4dd0] ss:$24 sps:$4 sm:$0xff]  }
 0x957   : > { %20165 = vmatpush1.bf16.msra.mxu0 %v29670_v42  ;;  %18114 = vmatprep.subr.bf16.mxu1 %v29675_v47  ;;  %v29735_v42 = vld [vmem:[%s38719_s3 + $0x4e04] ss:$24 sps:$4 sm:$0xff]  }
 0x958   : > { %20166 = vmatprep.subr.bf16.mxu0 %v29678_v43  ;;  %v29738_v47 = vld [vmem:[%s38719_s3 + $0x480c] ss:$24 sps:$4 sm:$0xff]   ;;  %v37946_v43 = vcombine.low %v37734_v44, %v37738_v18 }
 0x959   : > { %v29741_v44 = vld [vmem:[%s38719_s3 + $0x4e34] ss:$24 sps:$4 sm:$0xff]  }
 0x95a   : > { %18115 = vmatpush1.bf16.msra.mxu1 %v29673_v27  ;;  %v37950_v27 = vsel %vm30463_vm2, %v25475_v4, %v18621_v6  ;;  %v29796_v4 = vld [vmem:[%s38719_s3 + $0x49e8] ss:$24 sps:$4 sm:$0xff]   ;;  %v29801_v6 = vld [vmem:[%s38719_s3 + $0x5014] ss:$24 sps:$4 sm:$0xff]  }
 0x95b   : > { %20167 = vmatpush1.bf16.msra.mxu0 %v29676_v20  ;;  %18116 = vmatprep.subr.bf16.mxu1 %v29681_v25  ;;  %v37954_v20 = vsel %vm30463_vm2, %v25478_v2, %v18633_v38  ;;  %v29733_v25 = vld [vmem:[%s38719_s3 + $0x4e00] ss:$24 sps:$4 sm:$0xff]   ;;  %v29804_v2 = vld [vmem:[%s38719_s3 + $0x4a1c] ss:$24 sps:$4 sm:$0xff]   ;;  %v29799_v38 = vld [vmem:[%s38719_s3 + $0x5010] ss:$24 sps:$4 sm:$0xff]  }
 0x95c   : > { %20168 = vmatprep.subr.bf16.mxu0 %v29684_v1  ;;  %v29736_v1 = vld [vmem:[%s38719_s3 + $0x4808] ss:$24 sps:$4 sm:$0xff]   ;;  %v37970_v18 = vcombine.high %v37950_v27, %v37954_v20 }
 0x95e   : > { %18117 = vmatpush1.bf16.msra.mxu1 %v29679_v3  ;;  %v29739_v3 = vld [vmem:[%s38719_s3 + $0x4e30] ss:$24 sps:$4 sm:$0xff]  }
 0x95f   : > { %20169 = vmatpush1.bf16.msra.mxu0 %v29682_v5  ;;  %18118 = vmatprep.subr.bf16.mxu1 %v29687_v7  ;;  %v29742_v5 = vld [vmem:[%s38719_s3 + $0x4838] ss:$24 sps:$4 sm:$0xff]   ;;  %v29747_v7 = vld [vmem:[%s38719_s3 + $0x4e64] ss:$24 sps:$4 sm:$0xff]  }
 0x960   : > { %20170 = vmatprep.subr.bf16.mxu0 %v29690_v59  ;;  %v29745_v59 = vld [vmem:[%s38719_s3 + $0x4e60] ss:$24 sps:$4 sm:$0xff]  }
 0x962   : > { %18119 = vmatpush1.bf16.msra.mxu1 %v29685_v13  ;;  %v29748_v13 = vld [vmem:[%s38719_s3 + $0x4868] ss:$24 sps:$4 sm:$0xff]  }
 0x963   : > { %20171 = vmatpush1.bf16.msra.mxu0 %v29688_v35  ;;  %18120 = vmatprep.subr.bf16.mxu1 %v29693_v8  ;;  %v29753_v35 = vld [vmem:[%s38719_s3 + $0x4e94] ss:$24 sps:$4 sm:$0xff]  }
 0x964   : > { %20172 = vmatprep.subr.bf16.mxu0 %v29696_v9  ;;  %v29756_v8 = vld [vmem:[%s38719_s3 + $0x489c] ss:$24 sps:$4 sm:$0xff]   ;;  %v29751_v9 = vld [vmem:[%s38719_s3 + $0x4e90] ss:$24 sps:$4 sm:$0xff]  }
 0x966   : > { %18121 = vmatpush1.bf16.msra.mxu1 %v29691_v21  ;;  %v29754_v21 = vld [vmem:[%s38719_s3 + $0x4898] ss:$24 sps:$4 sm:$0xff]  }
 0x967   : > { %20173 = vmatpush1.bf16.msra.mxu0 %v29694_v48  ;;  %18122 = vmatprep.subr.bf16.mxu1 %v29699_v14  ;;  %v29759_v48 = vld [vmem:[%s38719_s3 + $0x4ec4] ss:$24 sps:$4 sm:$0xff]  }
 0x968   : > { %20174 = vmatprep.subr.bf16.mxu0 %v29702_v19  ;;  %v29762_v14 = vld [vmem:[%s38719_s3 + $0x48cc] ss:$24 sps:$4 sm:$0xff]   ;;  %v29757_v19 = vld [vmem:[%s38719_s3 + $0x4ec0] ss:$24 sps:$4 sm:$0xff]  }
 0x96a   : > { %18123 = vmatpush1.bf16.msra.mxu1 %v29697_v24  ;;  %v29760_v24 = vld [vmem:[%s38719_s3 + $0x48c8] ss:$24 sps:$4 sm:$0xff]  }
 0x96b   : > { %20175 = vmatpush1.bf16.msra.mxu0 %v29700_v54  ;;  %18124 = vmatprep.subr.bf16.mxu1 %v29705_v30  ;;  %v29765_v54 = vld [vmem:[%s38719_s3 + $0x4ef4] ss:$24 sps:$4 sm:$0xff]  }
 0x96c   : > { %20176 = vmatprep.subr.bf16.mxu0 %v29708_v34  ;;  %v29768_v30 = vld [vmem:[%s38719_s3 + $0x48fc] ss:$24 sps:$4 sm:$0xff]   ;;  %v29763_v34 = vld [vmem:[%s38719_s3 + $0x4ef0] ss:$24 sps:$4 sm:$0xff]  }
 0x96e   : > { %18125 = vmatpush1.bf16.msra.mxu1 %v29703_v40  ;;  %v29766_v40 = vld [vmem:[%s38719_s3 + $0x48f8] ss:$24 sps:$4 sm:$0xff]  }
 0x96f   : > { %20177 = vmatpush1.bf16.msra.mxu0 %v29706_v60  ;;  %18126 = vmatprep.subr.bf16.mxu1 %v29711_v62  ;;  %v29771_v60 = vld [vmem:[%s38719_s3 + $0x4f24] ss:$24 sps:$4 sm:$0xff]  }
 0x970   : > { %20178 = vmatprep.subr.bf16.mxu0 %v29714_v29  ;;  %v29774_v62 = vld [vmem:[%s38719_s3 + $0x492c] ss:$24 sps:$4 sm:$0xff]   ;;  %v29769_v29 = vld [vmem:[%s38719_s3 + $0x4f20] ss:$24 sps:$4 sm:$0xff]  }
 0x972   : > { %18127 = vmatpush1.bf16.msra.mxu1 %v29709_v36  ;;  %v29772_v36 = vld [vmem:[%s38719_s3 + $0x4928] ss:$24 sps:$4 sm:$0xff]  }
 0x973   : > { %20179 = vmatpush1.bf16.msra.mxu0 %v29712_v57  ;;  %18128 = vmatprep.subr.bf16.mxu1 %v29717_v51  ;;  %v29777_v57 = vld [vmem:[%s38719_s3 + $0x4f54] ss:$24 sps:$4 sm:$0xff]  }
 0x974   : > { %20180 = vmatprep.subr.bf16.mxu0 %v29720_v61  ;;  %v29780_v51 = vld [vmem:[%s38719_s3 + $0x495c] ss:$24 sps:$4 sm:$0xff]   ;;  %v29775_v61 = vld [vmem:[%s38719_s3 + $0x4f50] ss:$24 sps:$4 sm:$0xff]  }
 0x976   : > { %18129 = vmatpush1.bf16.msra.mxu1 %v29715_v26  ;;  %v29778_v26 = vld [vmem:[%s38719_s3 + $0x4958] ss:$24 sps:$4 sm:$0xff]  }
 0x977   : > { %20181 = vmatpush1.bf16.msra.mxu0 %v29718_v55  ;;  %18130 = vmatprep.subr.bf16.mxu1 %v29723_v56  ;;  %v29783_v55 = vld [vmem:[%s38719_s3 + $0x4f84] ss:$24 sps:$4 sm:$0xff]  }
 0x978   : > { %20182 = vmatprep.subr.bf16.mxu0 %v29726_v17  ;;  %v29786_v56 = vld [vmem:[%s38719_s3 + $0x498c] ss:$24 sps:$4 sm:$0xff]   ;;  %v29781_v17 = vld [vmem:[%s38719_s3 + $0x4f80] ss:$24 sps:$4 sm:$0xff]  }
 0x97a   : > { %18131 = vmatpush1.bf16.msra.mxu1 %v29721_v33  ;;  %v29784_v33 = vld [vmem:[%s38719_s3 + $0x4988] ss:$24 sps:$4 sm:$0xff]  }
 0x97b   : > { %20183 = vmatpush1.bf16.msra.mxu0 %v29724_v32  ;;  %18132 = vmatprep.subr.bf16.mxu1 %v29729_v0  ;;  %v29789_v32 = vld [vmem:[%s38719_s3 + $0x4fb4] ss:$24 sps:$4 sm:$0xff]  }
 0x97c   : > { %20184 = vmatprep.subr.bf16.mxu0 %v29732_v16  ;;  %v29798_v0 = vld [vmem:[%s38719_s3 + $0x49ec] ss:$24 sps:$4 sm:$0xff]   ;;  %v29793_v16 = vld [vmem:[%s38719_s3 + $0x4fe0] ss:$24 sps:$4 sm:$0xff]  }
 0x97e   : > { %18133 = vmatpush1.bf16.msra.mxu1 %v29727_v41  ;;  %v29802_v41 = vld [vmem:[%s38719_s3 + $0x4a18] ss:$24 sps:$4 sm:$0xff]  }
 0x97f   : > { %20185 = vmatpush1.bf16.msra.mxu0 %v29730_v37  ;;  %20240 = vmatprep.subr.bf16.mxu1 %v29738_v47  ;;  %v29807_v37 = vld [vmem:[%s38719_s3 + $0x5044] ss:$24 sps:$4 sm:$0xff]   ;;  %v29805_v47 = vld [vmem:[%s38719_s3 + $0x5040] ss:$24 sps:$4 sm:$0xff]  }
 0x980   : > { %20197 = vmatprep.subr.bf16.mxu0 %v29735_v42  ;;  %v29810_v42 = vld [vmem:[%s38719_s3 + $0x4a4c] ss:$24 sps:$4 sm:$0xff]  }
 0x981   : > { %18135 = vmatmul.mubr.bf16.vlgmr.msra.gmra.mrb[4].mxu1 %v36922_v22  ;;  %v29750_v22 = vld [vmem:[%s38719_s3 + $0x486c] ss:$24 sps:$4 sm:$0xff]  }
 0x982   : > { %20187 = vmatmul.mubr.bf16.vlgmr.msra.gmra.mrb[0].mxu0 %v37946_v43  ;;  %20241 = vmatpush1.bf16.msra.mxu1 %v29736_v1  ;;  %v29813_v1 = vld [vmem:[%s38719_s3 + $0x5074] ss:$24 sps:$4 sm:$0xff]  }
 0x983   : > { %20198 = vmatpush1.bf16.msra.mxu0 %v29733_v25  ;;  %20242 = vmatprep.subr.bf16.mxu1 %v29744_v28  ;;  %v29808_v25 = vld [vmem:[%s38719_s3 + $0x4a48] ss:$24 sps:$4 sm:$0xff]  }
 0x984   : > { %20199 = vmatprep.subr.bf16.mxu0 %v29741_v44  ;;  %20229 = vmatprep.mubr.bf16.mxu0 %v37970_v18  ;;  %v29816_v44 = vld [vmem:[%s38719_s3 + $0x4a7c] ss:$24 sps:$4 sm:$0xff]   ;;  %v29811_v28 = vld [vmem:[%s38719_s3 + $0x5070] ss:$24 sps:$4 sm:$0xff]  }
 0x985   : > { %20272 = vmatprep.mubr.bf16.mxu1 %v37538_v39 }
 0x986   : > { %20243 = vmatpush1.bf16.msra.mxu1 %v29742_v5  ;;  %v29819_v5 = vld [vmem:[%s38719_s3 + $0x50a4] ss:$24 sps:$4 sm:$0xff]  }
 0x987   : > { %20200 = vmatpush1.bf16.msra.mxu0 %v29739_v3  ;;  %20244 = vmatprep.subr.bf16.mxu1 %v29750_v22  ;;  %v29814_v3 = vld [vmem:[%s38719_s3 + $0x4a78] ss:$24 sps:$4 sm:$0xff]  }
 0x988   : > { %20201 = vmatprep.subr.bf16.mxu0 %v29747_v7  ;;  %v29822_v7 = vld [vmem:[%s38719_s3 + $0x4aac] ss:$24 sps:$4 sm:$0xff]   ;;  %v29817_v22 = vld [vmem:[%s38719_s3 + $0x50a0] ss:$24 sps:$4 sm:$0xff]  }
 0x98a   : > { %20245 = vmatpush1.bf16.msra.mxu1 %v29748_v13  ;;  %v29825_v13 = vld [vmem:[%s38719_s3 + $0x50d4] ss:$24 sps:$4 sm:$0xff]  }
 0x98b   : > { %20202 = vmatpush1.bf16.msra.mxu0 %v29745_v59  ;;  %20246 = vmatprep.subr.bf16.mxu1 %v29756_v8  ;;  %v29820_v59 = vld [vmem:[%s38719_s3 + $0x4aa8] ss:$24 sps:$4 sm:$0xff]  }
 0x98c   : > { %20203 = vmatprep.subr.bf16.mxu0 %v29753_v35  ;;  %v29828_v35 = vld [vmem:[%s38719_s3 + $0x4adc] ss:$24 sps:$4 sm:$0xff]   ;;  %v29823_v8 = vld [vmem:[%s38719_s3 + $0x50d0] ss:$24 sps:$4 sm:$0xff]  }
 0x98e   : > { %20247 = vmatpush1.bf16.msra.mxu1 %v29754_v21  ;;  %v29831_v21 = vld [vmem:[%s38719_s3 + $0x4b0c] ss:$24 sps:$4 sm:$0xff]  }
 0x98f   : > { %20204 = vmatpush1.bf16.msra.mxu0 %v29751_v9  ;;  %20248 = vmatprep.subr.bf16.mxu1 %v29762_v14  ;;  %v29826_v9 = vld [vmem:[%s38719_s3 + $0x4ad8] ss:$24 sps:$4 sm:$0xff]   ;;  %v38158_v14 = vcombine.low %v37950_v27, %v37954_v20  ;;  %v29840_v27 = vld [vmem:[%s38719_s3 + $0x4844] ss:$24 sps:$4 sm:$0xff]  }
 0x990   : > { %20205 = vmatprep.subr.bf16.mxu0 %v29759_v48  ;;  %v29834_v48 = vld [vmem:[%s38719_s3 + $0x4814] ss:$24 sps:$4 sm:$0xff]   ;;  %v29835_v20 = vld [vmem:[%s38719_s3 + $0x4b38] ss:$24 sps:$4 sm:$0xff]  }
 0x992   : > { %20249 = vmatpush1.bf16.msra.mxu1 %v29760_v24  ;;  %v29832_v24 = vld [vmem:[%s38719_s3 + $0x4810] ss:$24 sps:$4 sm:$0xff]  }
 0x993   : > { %20206 = vmatpush1.bf16.msra.mxu0 %v29757_v19  ;;  %20250 = vmatprep.subr.bf16.mxu1 %v29768_v30  ;;  %v29829_v19 = vld [vmem:[%s38719_s3 + $0x4b08] ss:$24 sps:$4 sm:$0xff]  }
 0x994   : > { %20207 = vmatprep.subr.bf16.mxu0 %v29765_v54  ;;  %v29837_v54 = vld [vmem:[%s38719_s3 + $0x4b3c] ss:$24 sps:$4 sm:$0xff]   ;;  %v29838_v30 = vld [vmem:[%s38719_s3 + $0x4840] ss:$24 sps:$4 sm:$0xff]  }
 0x996   : > { %20251 = vmatpush1.bf16.msra.mxu1 %v29766_v40  ;;  %v29846_v40 = vld [vmem:[%s38719_s3 + $0x4874] ss:$24 sps:$4 sm:$0xff]  }
 0x997   : > { %20208 = vmatpush1.bf16.msra.mxu0 %v29763_v34  ;;  %20252 = vmatprep.subr.bf16.mxu1 %v29774_v62  ;;  %v29843_v34 = vld [vmem:[%s38719_s3 + $0x4b6c] ss:$24 sps:$4 sm:$0xff]   ;;  %v29844_v62 = vld [vmem:[%s38719_s3 + $0x4870] ss:$24 sps:$4 sm:$0xff]  }
 0x998   : > { %20209 = vmatprep.subr.bf16.mxu0 %v29771_v60  ;;  %v29841_v60 = vld [vmem:[%s38719_s3 + $0x4b68] ss:$24 sps:$4 sm:$0xff]  }
 0x99a   : > { %20253 = vmatpush1.bf16.msra.mxu1 %v29772_v36  ;;  %v29847_v36 = vld [vmem:[%s38719_s3 + $0x4b98] ss:$24 sps:$4 sm:$0xff]  }
 0x99b   : > { %20210 = vmatpush1.bf16.msra.mxu0 %v29769_v29  ;;  %20254 = vmatprep.subr.bf16.mxu1 %v29780_v51  ;;  %v29849_v29 = vld [vmem:[%s38719_s3 + $0x4b9c] ss:$24 sps:$4 sm:$0xff]   ;;  %v29855_v51 = vld [vmem:[%s38719_s3 + $0x4bcc] ss:$24 sps:$4 sm:$0xff]  }
 0x99c   : > { %20211 = vmatprep.subr.bf16.mxu0 %v29777_v57  ;;  %v29850_v57 = vld [vmem:[%s38719_s3 + $0x48a0] ss:$24 sps:$4 sm:$0xff]  }
 0x99e   : > { %20255 = vmatpush1.bf16.msra.mxu1 %v29778_v26  ;;  %v29853_v26 = vld [vmem:[%s38719_s3 + $0x4bc8] ss:$24 sps:$4 sm:$0xff]  }
 0x99f   : > { %20212 = vmatpush1.bf16.msra.mxu0 %v29775_v61  ;;  %20256 = vmatprep.subr.bf16.mxu1 %v29786_v56  ;;  %v29858_v61 = vld [vmem:[%s38719_s3 + $0x48d4] ss:$24 sps:$4 sm:$0xff]  }
 0x9a0   : > { %20213 = vmatprep.subr.bf16.mxu0 %v29783_v55  ;;  %v29856_v55 = vld [vmem:[%s38719_s3 + $0x48d0] ss:$24 sps:$4 sm:$0xff]   ;;  %v29861_v56 = vld [vmem:[%s38719_s3 + $0x4bfc] ss:$24 sps:$4 sm:$0xff]  }
 0x9a2   : > { %20257 = vmatpush1.bf16.msra.mxu1 %v29784_v33  ;;  %v29859_v33 = vld [vmem:[%s38719_s3 + $0x4bf8] ss:$24 sps:$4 sm:$0xff]  }
 0x9a3   : > { %20214 = vmatpush1.bf16.msra.mxu0 %v29781_v17  ;;  %20258 = vmatprep.subr.bf16.mxu1 %v29792_v45  ;;  %v29864_v17 = vld [vmem:[%s38719_s3 + $0x4904] ss:$24 sps:$4 sm:$0xff]  }
 0x9a4   : > { %20215 = vmatprep.subr.bf16.mxu0 %v29789_v32  ;;  %v29862_v32 = vld [vmem:[%s38719_s3 + $0x4900] ss:$24 sps:$4 sm:$0xff]   ;;  %v29867_v45 = vld [vmem:[%s38719_s3 + $0x4c2c] ss:$24 sps:$4 sm:$0xff]  }
 0x9a6   : > { %20259 = vmatpush1.bf16.msra.mxu1 %v29790_v58  ;;  %v29865_v58 = vld [vmem:[%s38719_s3 + $0x4c28] ss:$24 sps:$4 sm:$0xff]  }
 0x9a7   : > { %20216 = vmatpush1.bf16.msra.mxu0 %v29787_v46  ;;  %20260 = vmatprep.subr.bf16.mxu1 %v29798_v0  ;;  %v29870_v46 = vld [vmem:[%s38719_s3 + $0x4934] ss:$24 sps:$4 sm:$0xff]  }
 0x9a8   : > { %20217 = vmatprep.subr.bf16.mxu0 %v29795_v49  ;;  %v29868_v49 = vld [vmem:[%s38719_s3 + $0x4930] ss:$24 sps:$4 sm:$0xff]   ;;  %v29873_v0 = vld [vmem:[%s38719_s3 + $0x4c5c] ss:$24 sps:$4 sm:$0xff]  }
 0x9aa   : > { %20261 = vmatpush1.bf16.msra.mxu1 %v29796_v4  ;;  %v29871_v4 = vld [vmem:[%s38719_s3 + $0x4c58] ss:$24 sps:$4 sm:$0xff]  }
 0x9ab   : > { %20218 = vmatpush1.bf16.msra.mxu0 %v29793_v16  ;;  %20262 = vmatprep.subr.bf16.mxu1 %v29804_v2  ;;  %v29876_v16 = vld [vmem:[%s38719_s3 + $0x4964] ss:$24 sps:$4 sm:$0xff]  }
 0x9ac   : > { %20219 = vmatprep.subr.bf16.mxu0 %v29801_v6  ;;  %v29874_v6 = vld [vmem:[%s38719_s3 + $0x4960] ss:$24 sps:$4 sm:$0xff]   ;;  %v29879_v2 = vld [vmem:[%s38719_s3 + $0x4c8c] ss:$24 sps:$4 sm:$0xff]  }
 0x9ae   : > { %20263 = vmatpush1.bf16.msra.mxu1 %v29802_v41  ;;  %v29877_v41 = vld [vmem:[%s38719_s3 + $0x4c88] ss:$24 sps:$4 sm:$0xff]  }
 0x9af   : > { %20220 = vmatpush1.bf16.msra.mxu0 %v29799_v38  ;;  %20264 = vmatprep.subr.bf16.mxu1 %v29810_v42  ;;  %v29882_v38 = vld [vmem:[%s38719_s3 + $0x4994] ss:$24 sps:$4 sm:$0xff]  }
 0x9b0   : > { %20221 = vmatprep.subr.bf16.mxu0 %v29807_v37  ;;  %v29880_v37 = vld [vmem:[%s38719_s3 + $0x4990] ss:$24 sps:$4 sm:$0xff]   ;;  %v29885_v42 = vld [vmem:[%s38719_s3 + $0x4cbc] ss:$24 sps:$4 sm:$0xff]  }
 0x9b2   : > { %20265 = vmatpush1.bf16.msra.mxu1 %v29808_v25  ;;  %v29883_v25 = vld [vmem:[%s38719_s3 + $0x4cb8] ss:$24 sps:$4 sm:$0xff]  }
 0x9b3   : > { %20222 = vmatpush1.bf16.msra.mxu0 %v29805_v47  ;;  %20266 = vmatprep.subr.bf16.mxu1 %v29816_v44  ;;  %v29888_v47 = vld [vmem:[%s38719_s3 + $0x49c4] ss:$24 sps:$4 sm:$0xff]  }
 0x9b4   : > { %20223 = vmatprep.subr.bf16.mxu0 %v29813_v1  ;;  %v29886_v1 = vld [vmem:[%s38719_s3 + $0x49c0] ss:$24 sps:$4 sm:$0xff]   ;;  %v29891_v44 = vld [vmem:[%s38719_s3 + $0x4cec] ss:$24 sps:$4 sm:$0xff]  }
 0x9b6   : > { %20267 = vmatpush1.bf16.msra.mxu1 %v29814_v3  ;;  %v29889_v3 = vld [vmem:[%s38719_s3 + $0x4ce8] ss:$24 sps:$4 sm:$0xff]  }
 0x9b7   : > { %20224 = vmatpush1.bf16.msra.mxu0 %v29811_v28  ;;  %20268 = vmatprep.subr.bf16.mxu1 %v29822_v7  ;;  %v29894_v28 = vld [vmem:[%s38719_s3 + $0x49f4] ss:$24 sps:$4 sm:$0xff]  }
 0x9b8   : > { %20225 = vmatprep.subr.bf16.mxu0 %v29819_v5  ;;  %v29892_v5 = vld [vmem:[%s38719_s3 + $0x49f0] ss:$24 sps:$4 sm:$0xff]   ;;  %v29897_v7 = vld [vmem:[%s38719_s3 + $0x4d1c] ss:$24 sps:$4 sm:$0xff]  }
 0x9ba   : > { %20269 = vmatpush1.bf16.msra.mxu1 %v29820_v59  ;;  %v29895_v59 = vld [vmem:[%s38719_s3 + $0x4d18] ss:$24 sps:$4 sm:$0xff]  }
 0x9bb   : > { %20226 = vmatpush1.bf16.msra.mxu0 %v29817_v22  ;;  %20270 = vmatprep.subr.bf16.mxu1 %v29828_v35  ;;  %v29900_v22 = vld [vmem:[%s38719_s3 + $0x4a24] ss:$24 sps:$4 sm:$0xff]  }
 0x9bc   : > { %20227 = vmatprep.subr.bf16.mxu0 %v29825_v13  ;;  %v29898_v13 = vld [vmem:[%s38719_s3 + $0x4a20] ss:$24 sps:$4 sm:$0xff]   ;;  %v29903_v35 = vld [vmem:[%s38719_s3 + $0x4d4c] ss:$24 sps:$4 sm:$0xff]  }
 0x9be   : > { %20271 = vmatpush1.bf16.msra.mxu1 %v29826_v9  ;;  %v29901_v9 = vld [vmem:[%s38719_s3 + $0x4d48] ss:$24 sps:$4 sm:$0xff]  }
 0x9bf   : > { %20228 = vmatpush1.bf16.msra.mxu0 %v29823_v8  ;;  %20283 = vmatprep.subr.bf16.mxu1 %v29831_v21  ;;  %v29906_v8 = vld [vmem:[%s38719_s3 + $0x4a54] ss:$24 sps:$4 sm:$0xff]   ;;  %v29904_v21 = vld [vmem:[%s38719_s3 + $0x4a50] ss:$24 sps:$4 sm:$0xff]  }
 0x9c0   : > { %20369 = vmatprep.subr.bf16.mxu0 %v29834_v48  ;;  %v29909_v48 = vld [vmem:[%s38719_s3 + $0x4d7c] ss:$24 sps:$4 sm:$0xff]  }
 0x9c1   : > { %20273 = vmatmul.mubr.bf16.vlgmr.msra.gmra.mrb[4].mxu1 %v37730_v23 }
 0x9c2   : > { %20230 = vmatmul.mubr.bf16.vlgmr.msra.gmra.mrb[0].mxu0 %v38158_v14  ;;  %20284 = vmatpush1.bf16.msra.mxu1 %v29829_v19  ;;  %v29912_v19 = vld [vmem:[%s38719_s3 + $0x4a84] ss:$24 sps:$4 sm:$0xff]  }
 0x9c3   : > { %20370 = vmatpush1.bf16.msra.mxu0 %v29832_v24  ;;  %20285 = vmatprep.subr.bf16.mxu1 %v29837_v54  ;;  %v29907_v24 = vld [vmem:[%s38719_s3 + $0x4d78] ss:$24 sps:$4 sm:$0xff]  }
 0x9c4   : > { %20371 = vmatprep.subr.bf16.mxu0 %v29840_v27  ;;  %20315 = vmatprep.mubr.bf16.mxu1 %v37754_v31  ;;  %v29910_v54 = vld [vmem:[%s38719_s3 + $0x4a80] ss:$24 sps:$4 sm:$0xff]   ;;  %v29915_v27 = vld [vmem:[%s38719_s3 + $0x4dac] ss:$24 sps:$4 sm:$0xff]  }
 0x9c5   : > { %20401 = vmatprep.mubr.bf16.mxu0 %v37538_v39  ;;  %v29852_v39 = vld [vmem:[%s38719_s3 + $0x48a4] ss:$24 sps:$4 sm:$0xff]  }
 0x9c6   : > { %20286 = vmatpush1.bf16.msra.mxu1 %v29835_v20  ;;  %v29918_v20 = vld [vmem:[%s38719_s3 + $0x4ab4] ss:$24 sps:$4 sm:$0xff]  }
 0x9c7   : > { %20372 = vmatpush1.bf16.msra.mxu0 %v29838_v30  ;;  %20287 = vmatprep.subr.bf16.mxu1 %v29843_v34  ;;  %v29913_v30 = vld [vmem:[%s38719_s3 + $0x4da8] ss:$24 sps:$4 sm:$0xff]  }
 0x9c8   : > { %20373 = vmatprep.subr.bf16.mxu0 %v29846_v40  ;;  %v29916_v34 = vld [vmem:[%s38719_s3 + $0x4ab0] ss:$24 sps:$4 sm:$0xff]   ;;  %v29921_v40 = vld [vmem:[%s38719_s3 + $0x4ddc] ss:$24 sps:$4 sm:$0xff]  }
 0x9ca   : > { %20288 = vmatpush1.bf16.msra.mxu1 %v29841_v60  ;;  %v29924_v60 = vld [vmem:[%s38719_s3 + $0x4ae4] ss:$24 sps:$4 sm:$0xff]  }
 0x9cb   : > { %20374 = vmatpush1.bf16.msra.mxu0 %v29844_v62  ;;  %20289 = vmatprep.subr.bf16.mxu1 %v29849_v29  ;;  %v29919_v62 = vld [vmem:[%s38719_s3 + $0x4dd8] ss:$24 sps:$4 sm:$0xff]  }
 0x9cc   : > { %20375 = vmatprep.subr.bf16.mxu0 %v29852_v39  ;;  %v29922_v29 = vld [vmem:[%s38719_s3 + $0x4ae0] ss:$24 sps:$4 sm:$0xff]   ;;  %v29927_v39 = vld [vmem:[%s38719_s3 + $0x4e0c] ss:$24 sps:$4 sm:$0xff]  }
 0x9ce   : > { %20290 = vmatpush1.bf16.msra.mxu1 %v29847_v36  ;;  %v29930_v36 = vld [vmem:[%s38719_s3 + $0x4b14] ss:$24 sps:$4 sm:$0xff]  }
 0x9cf   : > { %20376 = vmatpush1.bf16.msra.mxu0 %v29850_v57  ;;  %20291 = vmatprep.subr.bf16.mxu1 %v29855_v51  ;;  %v29925_v57 = vld [vmem:[%s38719_s3 + $0x4e08] ss:$24 sps:$4 sm:$0xff]  }
 0x9d0   : > { %20377 = vmatprep.subr.bf16.mxu0 %v29858_v61  ;;  %v29928_v51 = vld [vmem:[%s38719_s3 + $0x4b10] ss:$24 sps:$4 sm:$0xff]   ;;  %v29933_v61 = vld [vmem:[%s38719_s3 + $0x4e3c] ss:$24 sps:$4 sm:$0xff]  }
 0x9d2   : > { %20292 = vmatpush1.bf16.msra.mxu1 %v29853_v26  ;;  %v29936_v26 = vld [vmem:[%s38719_s3 + $0x4b44] ss:$24 sps:$4 sm:$0xff]  }
 0x9d3   : > { %20378 = vmatpush1.bf16.msra.mxu0 %v29856_v55  ;;  %20293 = vmatprep.subr.bf16.mxu1 %v29861_v56  ;;  %v29931_v55 = vld [vmem:[%s38719_s3 + $0x4e38] ss:$24 sps:$4 sm:$0xff]  }
 0x9d4   : > { %20379 = vmatprep.subr.bf16.mxu0 %v29864_v17  ;;  %v29934_v56 = vld [vmem:[%s38719_s3 + $0x4b40] ss:$24 sps:$4 sm:$0xff]   ;;  %v29939_v17 = vld [vmem:[%s38719_s3 + $0x4e6c] ss:$24 sps:$4 sm:$0xff]  }
 0x9d6   : > { %20294 = vmatpush1.bf16.msra.mxu1 %v29859_v33  ;;  %v29937_v33 = vld [vmem:[%s38719_s3 + $0x4e68] ss:$24 sps:$4 sm:$0xff]  }
 0x9d7   : > { %20380 = vmatpush1.bf16.msra.mxu0 %v29862_v32  ;;  %20295 = vmatprep.subr.bf16.mxu1 %v29867_v45  ;;  %v29940_v32 = vld [vmem:[%s38719_s3 + $0x4b70] ss:$24 sps:$4 sm:$0xff]   ;;  %v29945_v45 = vld [vmem:[%s38719_s3 + $0x4e9c] ss:$24 sps:$4 sm:$0xff]  }
 0x9d8   : > { %20381 = vmatprep.subr.bf16.mxu0 %v29870_v46  ;;  %v29943_v46 = vld [vmem:[%s38719_s3 + $0x4e98] ss:$24 sps:$4 sm:$0xff]  }
 0x9da   : > { %20296 = vmatpush1.bf16.msra.mxu1 %v29865_v58  ;;  %v29946_v58 = vld [vmem:[%s38719_s3 + $0x4ba0] ss:$24 sps:$4 sm:$0xff]  }
 0x9db   : > { %20382 = vmatpush1.bf16.msra.mxu0 %v29868_v49  ;;  %20297 = vmatprep.subr.bf16.mxu1 %v29873_v0  ;;  %v29951_v49 = vld [vmem:[%s38719_s3 + $0x4ecc] ss:$24 sps:$4 sm:$0xff]  }
 0x9dc   : > { %20383 = vmatprep.subr.bf16.mxu0 %v29876_v16  ;;  %v29954_v0 = vld [vmem:[%s38719_s3 + $0x4bd4] ss:$24 sps:$4 sm:$0xff]   ;;  %v29949_v16 = vld [vmem:[%s38719_s3 + $0x4ec8] ss:$24 sps:$4 sm:$0xff]  }
 0x9de   : > { %20298 = vmatpush1.bf16.msra.mxu1 %v29871_v4  ;;  %v29952_v4 = vld [vmem:[%s38719_s3 + $0x4bd0] ss:$24 sps:$4 sm:$0xff]  }
 0x9df   : > { %20384 = vmatpush1.bf16.msra.mxu0 %v29874_v6  ;;  %20299 = vmatprep.subr.bf16.mxu1 %v29879_v2  ;;  %v29957_v6 = vld [vmem:[%s38719_s3 + $0x4efc] ss:$24 sps:$4 sm:$0xff]  }
 0x9e0   : > { %20385 = vmatprep.subr.bf16.mxu0 %v29882_v38  ;;  %v29960_v2 = vld [vmem:[%s38719_s3 + $0x4c04] ss:$24 sps:$4 sm:$0xff]   ;;  %v29955_v38 = vld [vmem:[%s38719_s3 + $0x4ef8] ss:$24 sps:$4 sm:$0xff]  }
 0x9e2   : > { %20300 = vmatpush1.bf16.msra.mxu1 %v29877_v41  ;;  %v29958_v41 = vld [vmem:[%s38719_s3 + $0x4c00] ss:$24 sps:$4 sm:$0xff]  }
 0x9e3   : > { %20386 = vmatpush1.bf16.msra.mxu0 %v29880_v37  ;;  %20301 = vmatprep.subr.bf16.mxu1 %v29885_v42  ;;  %v29963_v37 = vld [vmem:[%s38719_s3 + $0x4f2c] ss:$24 sps:$4 sm:$0xff]  }
 0x9e4   : > { %20387 = vmatprep.subr.bf16.mxu0 %v29888_v47  ;;  %v29966_v42 = vld [vmem:[%s38719_s3 + $0x4c34] ss:$24 sps:$4 sm:$0xff]   ;;  %v29961_v47 = vld [vmem:[%s38719_s3 + $0x4f28] ss:$24 sps:$4 sm:$0xff]  }
 0x9e6   : > { %20302 = vmatpush1.bf16.msra.mxu1 %v29883_v25  ;;  %v29964_v25 = vld [vmem:[%s38719_s3 + $0x4c30] ss:$24 sps:$4 sm:$0xff]  }
 0x9e7   : > { %20388 = vmatpush1.bf16.msra.mxu0 %v29886_v1  ;;  %20303 = vmatprep.subr.bf16.mxu1 %v29891_v44  ;;  %v29969_v1 = vld [vmem:[%s38719_s3 + $0x4f5c] ss:$24 sps:$4 sm:$0xff]  }
 0x9e8   : > { %20389 = vmatprep.subr.bf16.mxu0 %v29894_v28  ;;  %v29972_v44 = vld [vmem:[%s38719_s3 + $0x4c64] ss:$24 sps:$4 sm:$0xff]   ;;  %v29967_v28 = vld [vmem:[%s38719_s3 + $0x4f58] ss:$24 sps:$4 sm:$0xff]  }
 0x9ea   : > { %20304 = vmatpush1.bf16.msra.mxu1 %v29889_v3  ;;  %v29970_v3 = vld [vmem:[%s38719_s3 + $0x4c60] ss:$24 sps:$4 sm:$0xff]  }
 0x9eb   : > { %20390 = vmatpush1.bf16.msra.mxu0 %v29892_v5  ;;  %20305 = vmatprep.subr.bf16.mxu1 %v29897_v7  ;;  %v29975_v5 = vld [vmem:[%s38719_s3 + $0x4f8c] ss:$24 sps:$4 sm:$0xff]  }
 0x9ec   : > { %20391 = vmatprep.subr.bf16.mxu0 %v29900_v22  ;;  %v29978_v7 = vld [vmem:[%s38719_s3 + $0x4c94] ss:$24 sps:$4 sm:$0xff]   ;;  %v29973_v22 = vld [vmem:[%s38719_s3 + $0x4f88] ss:$24 sps:$4 sm:$0xff]  }
 0x9ee   : > { %20306 = vmatpush1.bf16.msra.mxu1 %v29895_v59  ;;  %v29976_v59 = vld [vmem:[%s38719_s3 + $0x4c90] ss:$24 sps:$4 sm:$0xff]  }
 0x9ef   : > { %20392 = vmatpush1.bf16.msra.mxu0 %v29898_v13  ;;  %20307 = vmatprep.subr.bf16.mxu1 %v29903_v35  ;;  %v29981_v13 = vld [vmem:[%s38719_s3 + $0x4fbc] ss:$24 sps:$4 sm:$0xff]  }
 0x9f0   : > { %20393 = vmatprep.subr.bf16.mxu0 %v29906_v8  ;;  %v29984_v35 = vld [vmem:[%s38719_s3 + $0x4cc4] ss:$24 sps:$4 sm:$0xff]   ;;  %v29979_v8 = vld [vmem:[%s38719_s3 + $0x4fb8] ss:$24 sps:$4 sm:$0xff]  }
 0x9f2   : > { %20308 = vmatpush1.bf16.msra.mxu1 %v29901_v9  ;;  %v29982_v9 = vld [vmem:[%s38719_s3 + $0x4cc0] ss:$24 sps:$4 sm:$0xff]  }
 0x9f3   : > { %20394 = vmatpush1.bf16.msra.mxu0 %v29904_v21  ;;  %20309 = vmatprep.subr.bf16.mxu1 %v29909_v48  ;;  %v29987_v21 = vld [vmem:[%s38719_s3 + $0x4fec] ss:$24 sps:$4 sm:$0xff]  }
 0x9f4   : > { %20395 = vmatprep.subr.bf16.mxu0 %v29912_v19  ;;  %v29990_v48 = vld [vmem:[%s38719_s3 + $0x4cf4] ss:$24 sps:$4 sm:$0xff]   ;;  %v29985_v19 = vld [vmem:[%s38719_s3 + $0x4fe8] ss:$24 sps:$4 sm:$0xff]  }
 0x9f6   : > { %20310 = vmatpush1.bf16.msra.mxu1 %v29907_v24  ;;  %v29988_v24 = vld [vmem:[%s38719_s3 + $0x4cf0] ss:$24 sps:$4 sm:$0xff]  }
 0x9f7   : > { %20396 = vmatpush1.bf16.msra.mxu0 %v29910_v54  ;;  %20311 = vmatprep.subr.bf16.mxu1 %v29915_v27  ;;  %v29993_v54 = vld [vmem:[%s38719_s3 + $0x501c] ss:$24 sps:$4 sm:$0xff]  }
 0x9f8   : > { %20397 = vmatprep.subr.bf16.mxu0 %v29918_v20  ;;  %v29996_v27 = vld [vmem:[%s38719_s3 + $0x4d24] ss:$24 sps:$4 sm:$0xff]   ;;  %v29991_v20 = vld [vmem:[%s38719_s3 + $0x5018] ss:$24 sps:$4 sm:$0xff]  }
 0x9fa   : > { %20312 = vmatpush1.bf16.msra.mxu1 %v29913_v30  ;;  %v29994_v30 = vld [vmem:[%s38719_s3 + $0x4d20] ss:$24 sps:$4 sm:$0xff]  }
 0x9fb   : > { %20398 = vmatpush1.bf16.msra.mxu0 %v29916_v34  ;;  %20313 = vmatprep.subr.bf16.mxu1 %v29921_v40  ;;  %v29999_v34 = vld [vmem:[%s38719_s3 + $0x504c] ss:$24 sps:$4 sm:$0xff]  }
 0x9fc   : > { %20399 = vmatprep.subr.bf16.mxu0 %v29924_v60  ;;  %v30002_v40 = vld [vmem:[%s38719_s3 + $0x4d54] ss:$24 sps:$4 sm:$0xff]   ;;  %v29997_v60 = vld [vmem:[%s38719_s3 + $0x5048] ss:$24 sps:$4 sm:$0xff]  }
 0x9fe   : > { %20314 = vmatpush1.bf16.msra.mxu1 %v29919_v62  ;;  %v30000_v62 = vld [vmem:[%s38719_s3 + $0x4d50] ss:$24 sps:$4 sm:$0xff]  }
 0x9ff   : > { %20400 = vmatpush1.bf16.msra.mxu0 %v29922_v29  ;;  %20326 = vmatprep.subr.bf16.mxu1 %v29927_v39  ;;  %v30005_v29 = vld [vmem:[%s38719_s3 + $0x507c] ss:$24 sps:$4 sm:$0xff]  }
 0xa00   : > { %20412 = vmatprep.subr.bf16.mxu0 %v29930_v36  ;;  %v30008_v39 = vld [vmem:[%s38719_s3 + $0x4d84] ss:$24 sps:$4 sm:$0xff]   ;;  %v30003_v36 = vld [vmem:[%s38719_s3 + $0x5078] ss:$24 sps:$4 sm:$0xff]  }
 0xa01   : > { %20316 = vmatmul.mubr.bf16.vlgmr.msra.gmra.mrb[4].mxu1 %v37946_v43 }
 0xa02   : > { %20402 = vmatmul.mubr.bf16.vlgmr.msra.gmra.mrb[4].mxu0 %v37730_v23  ;;  %20327 = vmatpush1.bf16.msra.mxu1 %v29925_v57  ;;  %v29942_v23 = vld [vmem:[%s38719_s3 + $0x4b74] ss:$24 sps:$4 sm:$0xff]   ;;  %v30006_v57 = vld [vmem:[%s38719_s3 + $0x4d80] ss:$24 sps:$4 sm:$0xff]  }
 0xa03   : > { %20413 = vmatpush1.bf16.msra.mxu0 %v29928_v51  ;;  %20328 = vmatprep.subr.bf16.mxu1 %v29933_v61  ;;  %v30011_v51 = vld [vmem:[%s38719_s3 + $0x50ac] ss:$24 sps:$4 sm:$0xff]  }
 0xa04   : > { %20414 = vmatprep.subr.bf16.mxu0 %v29936_v26  ;;  %20358 = vmatprep.mubr.bf16.mxu1 %v37970_v18  ;;  %v30014_v61 = vld [vmem:[%s38719_s3 + $0x4db4] ss:$24 sps:$4 sm:$0xff]   ;;  %v30009_v26 = vld [vmem:[%s38719_s3 + $0x50a8] ss:$24 sps:$4 sm:$0xff]  }
 0xa05   : > { %20444 = vmatprep.mubr.bf16.mxu0 %v37754_v31  ;;  %v29948_v31 = vld [vmem:[%s38719_s3 + $0x4ba4] ss:$24 sps:$4 sm:$0xff]  }
 0xa06   : > { %20329 = vmatpush1.bf16.msra.mxu1 %v29931_v55  ;;  %v30012_v55 = vld [vmem:[%s38719_s3 + $0x4db0] ss:$24 sps:$4 sm:$0xff]  }
 0xa07   : > { %20415 = vmatpush1.bf16.msra.mxu0 %v29934_v56  ;;  %20330 = vmatprep.subr.bf16.mxu1 %v29939_v17  ;;  %v30017_v56 = vld [vmem:[%s38719_s3 + $0x50dc] ss:$24 sps:$4 sm:$0xff]  }
 0xa08   : > { %20416 = vmatprep.subr.bf16.mxu0 %v29942_v23  ;;  %v30020_v17 = vld [vmem:[%s38719_s3 + $0x4de4] ss:$24 sps:$4 sm:$0xff]   ;;  %v30015_v23 = vld [vmem:[%s38719_s3 + $0x50d8] ss:$24 sps:$4 sm:$0xff]  }
 0xa0a   : > { %20331 = vmatpush1.bf16.msra.mxu1 %v29937_v33  ;;  %v30018_v33 = vld [vmem:[%s38719_s3 + $0x4de0] ss:$24 sps:$4 sm:$0xff]  }
 0xa0b   : > { %20417 = vmatpush1.bf16.msra.mxu0 %v29940_v32  ;;  %20332 = vmatprep.subr.bf16.mxu1 %v29945_v45  ;;  %v30023_v32 = vld [vmem:[%s38719_s3 + $0x4e14] ss:$24 sps:$4 sm:$0xff]   ;;  %v30021_v45 = vld [vmem:[%s38719_s3 + $0x4e10] ss:$24 sps:$4 sm:$0xff]  }
 0xa0c   : > { %20418 = vmatprep.subr.bf16.mxu0 %v29948_v31  ;;  %v30026_v31 = vld [vmem:[%s38719_s3 + $0x4e44] ss:$24 sps:$4 sm:$0xff]  }
 0xa0e   : > { %20333 = vmatpush1.bf16.msra.mxu1 %v29943_v46  ;;  %v30024_v46 = vld [vmem:[%s38719_s3 + $0x4e40] ss:$24 sps:$4 sm:$0xff]  }
 0xa0f   : > { %20419 = vmatpush1.bf16.msra.mxu0 %v29946_v58  ;;  %20334 = vmatprep.subr.bf16.mxu1 %v29951_v49  ;;  %v30029_v58 = vld [vmem:[%s38719_s3 + $0x4e74] ss:$24 sps:$4 sm:$0xff]   ;;  %v30027_v49 = vld [vmem:[%s38719_s3 + $0x4e70] ss:$24 sps:$4 sm:$0xff]  }
 0xa10   : > { %20420 = vmatprep.subr.bf16.mxu0 %v29954_v0  ;;  %v30035_v0 = vld [vmem:[%s38719_s3 + $0x4ed4] ss:$24 sps:$4 sm:$0xff]  }
 0xa12   : > { %20335 = vmatpush1.bf16.msra.mxu1 %v29949_v16  ;;  %v30033_v16 = vld [vmem:[%s38719_s3 + $0x4ed0] ss:$24 sps:$4 sm:$0xff]  }
 0xa13   : > { %20421 = vmatpush1.bf16.msra.mxu0 %v29952_v4  ;;  %20336 = vmatprep.subr.bf16.mxu1 %v29957_v6  ;;  %v30038_v4 = vld [vmem:[%s38719_s3 + $0x4f04] ss:$24 sps:$4 sm:$0xff]   ;;  %v30036_v6 = vld [vmem:[%s38719_s3 + $0x4f00] ss:$24 sps:$4 sm:$0xff]  }
 0xa14   : > { %20422 = vmatprep.subr.bf16.mxu0 %v29960_v2  ;;  %v30041_v2 = vld [vmem:[%s38719_s3 + $0x4f34] ss:$24 sps:$4 sm:$0xff]  }
 0xa16   : > { %20337 = vmatpush1.bf16.msra.mxu1 %v29955_v38  ;;  %v30039_v38 = vld [vmem:[%s38719_s3 + $0x4f30] ss:$24 sps:$4 sm:$0xff]  }
 0xa17   : > { %20423 = vmatpush1.bf16.msra.mxu0 %v29958_v41  ;;  %20338 = vmatprep.subr.bf16.mxu1 %v29963_v37  ;;  %v30044_v41 = vld [vmem:[%s38719_s3 + $0x4f64] ss:$24 sps:$4 sm:$0xff]   ;;  %v30042_v37 = vld [vmem:[%s38719_s3 + $0x4f60] ss:$24 sps:$4 sm:$0xff]  }
 0xa18   : > { %20424 = vmatprep.subr.bf16.mxu0 %v29966_v42  ;;  %v30047_v42 = vld [vmem:[%s38719_s3 + $0x4f94] ss:$24 sps:$4 sm:$0xff]  }
 0xa1a   : > { %20339 = vmatpush1.bf16.msra.mxu1 %v29961_v47  ;;  %v30045_v47 = vld [vmem:[%s38719_s3 + $0x4f90] ss:$24 sps:$4 sm:$0xff]  }
 0xa1b   : > { %20425 = vmatpush1.bf16.msra.mxu0 %v29964_v25  ;;  %20340 = vmatprep.subr.bf16.mxu1 %v29969_v1  ;;  %v30050_v25 = vld [vmem:[%s38719_s3 + $0x4fc4] ss:$24 sps:$4 sm:$0xff]   ;;  %v30048_v1 = vld [vmem:[%s38719_s3 + $0x4fc0] ss:$24 sps:$4 sm:$0xff]  }
 0xa1c   : > { %20426 = vmatprep.subr.bf16.mxu0 %v29972_v44  ;;  %v30053_v44 = vld [vmem:[%s38719_s3 + $0x4ff4] ss:$24 sps:$4 sm:$0xff]  }
 0xa1e   : > { %20341 = vmatpush1.bf16.msra.mxu1 %v29967_v28  ;;  %v30051_v28 = vld [vmem:[%s38719_s3 + $0x4ff0] ss:$24 sps:$4 sm:$0xff]  }
 0xa1f   : > { %20427 = vmatpush1.bf16.msra.mxu0 %v29970_v3  ;;  %20342 = vmatprep.subr.bf16.mxu1 %v29975_v5  ;;  %v30056_v3 = vld [vmem:[%s38719_s3 + $0x5024] ss:$24 sps:$4 sm:$0xff]   ;;  %v30054_v5 = vld [vmem:[%s38719_s3 + $0x5020] ss:$24 sps:$4 sm:$0xff]  }
 0xa20   : > { %20428 = vmatprep.subr.bf16.mxu0 %v29978_v7  ;;  %v30059_v7 = vld [vmem:[%s38719_s3 + $0x5054] ss:$24 sps:$4 sm:$0xff]  }
 0xa22   : > { %20343 = vmatpush1.bf16.msra.mxu1 %v29973_v22  ;;  %v30057_v22 = vld [vmem:[%s38719_s3 + $0x5050] ss:$24 sps:$4 sm:$0xff]  }
 0xa23   : > { %20429 = vmatpush1.bf16.msra.mxu0 %v29976_v59  ;;  %20344 = vmatprep.subr.bf16.mxu1 %v29981_v13  ;;  %v30062_v59 = vld [vmem:[%s38719_s3 + $0x5084] ss:$24 sps:$4 sm:$0xff]   ;;  %v30060_v13 = vld [vmem:[%s38719_s3 + $0x5080] ss:$24 sps:$4 sm:$0xff]  }
 0xa24   : > { %20430 = vmatprep.subr.bf16.mxu0 %v29984_v35  ;;  %v30065_v35 = vld [vmem:[%s38719_s3 + $0x50b4] ss:$24 sps:$4 sm:$0xff]  }
 0xa26   : > { %20345 = vmatpush1.bf16.msra.mxu1 %v29979_v8  ;;  %v30063_v8 = vld [vmem:[%s38719_s3 + $0x50b0] ss:$24 sps:$4 sm:$0xff]  }
 0xa27   : > { %20431 = vmatpush1.bf16.msra.mxu0 %v29982_v9  ;;  %20346 = vmatprep.subr.bf16.mxu1 %v29987_v21  ;;  %v30068_v9 = vld [vmem:[%s38719_s3 + $0x50e4] ss:$24 sps:$4 sm:$0xff]   ;;  %v30066_v21 = vld [vmem:[%s38719_s3 + $0x50e0] ss:$24 sps:$4 sm:$0xff]  }
 0xa28   : > { %20432 = vmatprep.subr.bf16.mxu0 %v29990_v48  ;;  %v20536_v48 = vlaneseq }
 0xa2a   : > { %20347 = vmatpush1.bf16.msra.mxu1 %v29985_v19  ;;  %v38647_v19 = vshrl.u32 %v20536_v48, 7 }
 0xa2b   : > { %20433 = vmatpush1.bf16.msra.mxu0 %v29988_v24  ;;  %20348 = vmatprep.subr.bf16.mxu1 %v29993_v54  ;;  %v38653_v54 = vld [vmem:[%s38720_s4] sm:$0x3f] }
 0xa2c   : > { %20434 = vmatprep.subr.bf16.mxu0 %v29996_v27  ;;  %v20538_v24 = vsub.s32 0, %v38647_v19  ;;  %v20542_v27 = vsub.s32 1, %v38647_v19 }
 0xa2e   : > { %20349 = vmatpush1.bf16.msra.mxu1 %v29991_v20  ;;  %v20539_v20 = vrot.slane %v38653_v54, %v20538_v24 }
 0xa2f   : > { %20435 = vmatpush1.bf16.msra.mxu0 %v29994_v30  ;;  %20350 = vmatprep.subr.bf16.mxu1 %v29999_v34  ;;  %v20543_v34 = vrot.slane %v38653_v54, %v20542_v27 }
 0xa30   : > { %20436 = vmatprep.subr.bf16.mxu0 %v30002_v40 }
 0xa32   : > { %20351 = vmatpush1.bf16.msra.mxu1 %v29997_v60 }
 0xa33   : > { %20437 = vmatpush1.bf16.msra.mxu0 %v30000_v62  ;;  %20352 = vmatprep.subr.bf16.mxu1 %v30005_v29 }
 0xa34   : > { %20438 = vmatprep.subr.bf16.mxu0 %v30008_v39 }
 0xa36   : > { %20353 = vmatpush1.bf16.msra.mxu1 %v30003_v36 }
 0xa37   : > { %20439 = vmatpush1.bf16.msra.mxu0 %v30006_v57  ;;  %20354 = vmatprep.subr.bf16.mxu1 %v30011_v51 }
 0xa38   : > { %20440 = vmatprep.subr.bf16.mxu0 %v30014_v61 }
 0xa3a   : > { %20355 = vmatpush1.bf16.msra.mxu1 %v30009_v26 }
 0xa3b   : > { %20441 = vmatpush1.bf16.msra.mxu0 %v30012_v55  ;;  %20356 = vmatprep.subr.bf16.mxu1 %v30017_v56 }
 0xa3c   : > { %20442 = vmatprep.subr.bf16.mxu0 %v30020_v17 }
 0xa3e   : > { %20357 = vmatpush1.bf16.msra.mxu1 %v30015_v23 }
 0xa3f   : > { %20443 = vmatpush1.bf16.msra.mxu0 %v30018_v33 }
 0xa40   : > { %20455 = vmatprep.subr.bf16.mxu0 %v30023_v32 }
 0xa41   : > { %20359 = vmatmul.mubr.bf16.vlgmr.msra.gmra.mrb[4].mxu1 %v38158_v14 }
 0xa42   : > { %20445 = vmatmul.mubr.bf16.vlgmr.msra.gmra.mrb[4].mxu0 %v37946_v43  ;;  %v30032_v43 = vld [vmem:[%s38719_s3 + $0x4ea4] ss:$24 sps:$4 sm:$0xff]  }
 0xa43   : > { %20456 = vmatpush1.bf16.msra.mxu0 %v30021_v45  ;;  %20487 = vmatprep.mubr.bf16.mxu0 %v37970_v18  ;;  %v30030_v18 = vld [vmem:[%s38719_s3 + $0x4ea0] ss:$24 sps:$4 sm:$0xff]  }
 0xa44   : > { %20457 = vmatprep.subr.bf16.mxu0 %v30026_v31 }
 0xa47   : > { %20458 = vmatpush1.bf16.msra.mxu0 %v30024_v46 }
 0xa48   : > { %20459 = vmatprep.subr.bf16.mxu0 %v30029_v58 }
 0xa4b   : > { %20460 = vmatpush1.bf16.msra.mxu0 %v30027_v49 }
 0xa4c   : > { %20461 = vmatprep.subr.bf16.mxu0 %v30032_v43  ;;  %v25773_v43 = vld [vmem:[#allocation3] ss:$0 sm:$0xff] }
 0xa4f   : > { %20462 = vmatpush1.bf16.msra.mxu0 %v30030_v18  ;;  %v20546_v18 = vsub.s32 2, %v38647_v19 }
 0xa50   : > { %20463 = vmatprep.subr.bf16.mxu0 %v30035_v0 }
 0xa51   : > { %v20547_v0 = vrot.slane %v38653_v54, %v20546_v18 }
 0xa53   : > { %20464 = vmatpush1.bf16.msra.mxu0 %v30033_v16 }
 0xa54   : > { %20465 = vmatprep.subr.bf16.mxu0 %v30038_v4 }
 0xa57   : > { %20466 = vmatpush1.bf16.msra.mxu0 %v30036_v6 }
 0xa58   : > { %20467 = vmatprep.subr.bf16.mxu0 %v30041_v2 }
 0xa5b   : > { %20468 = vmatpush1.bf16.msra.mxu0 %v30039_v38 }
 0xa5c   : > { %20469 = vmatprep.subr.bf16.mxu0 %v30044_v41 }
 0xa5f   : > { %20470 = vmatpush1.bf16.msra.mxu0 %v30042_v37 }
 0xa60   : > { %20471 = vmatprep.subr.bf16.mxu0 %v30047_v42 }
 0xa63   : > { %20472 = vmatpush1.bf16.msra.mxu0 %v30045_v47 }
 0xa64   : > { %20473 = vmatprep.subr.bf16.mxu0 %v30050_v25 }
 0xa67   : > { %20474 = vmatpush1.bf16.msra.mxu0 %v30048_v1 }
 0xa68   : > { %20475 = vmatprep.subr.bf16.mxu0 %v30053_v44 }
 0xa6b   : > { %20476 = vmatpush1.bf16.msra.mxu0 %v30051_v28 }
 0xa6c   : > { %20477 = vmatprep.subr.bf16.mxu0 %v30056_v3 }
 0xa6f   : > { %20478 = vmatpush1.bf16.msra.mxu0 %v30054_v5 }
 0xa70   : > { %20479 = vmatprep.subr.bf16.mxu0 %v30059_v7 }
 0xa73   : > { %20480 = vmatpush1.bf16.msra.mxu0 %v30057_v22 }
 0xa74   : > { %20481 = vmatprep.subr.bf16.mxu0 %v30062_v59 }
 0xa77   : > { %20482 = vmatpush1.bf16.msra.mxu0 %v30060_v13 }
 0xa78   : > { %20483 = vmatprep.subr.bf16.mxu0 %v30065_v35 }
 0xa7b   : > { %20484 = vmatpush1.bf16.msra.mxu0 %v30063_v8 }
 0xa7c   : > { %20485 = vmatprep.subr.bf16.mxu0 %v30068_v9 }
 0xa7f   : > { %20486 = vmatpush1.bf16.msra.mxu0 %v30066_v21 }
 0xa82   : > { %20488 = vmatmul.mubr.bf16.vlgmr.msra.gmra.mrb[4].mxu0 %v38158_v14  ;;  %v38660_v14 = vld [vmem:[%s38721_s5] sm:$0x3f] }
 0xa83   : > { %v20595_v36 = vrot.slane %v38660_v14, %v20538_v24  ;;  %v20599_v26 = vrot.slane %v38660_v14, %v20542_v27  ;;  %v20603_v2 = vrot.slane %v38660_v14, %v20546_v18  ;;  %v20554_v24 = vsub.s32 4, %v38647_v19 }
 0xa84   : > { %v20558_v27 = vsub.s32 5, %v38647_v19 }
 0xa95   : > { %v20231_v30 = vpop.f32.mrb[0].mxu0 }
 0xa96   : > { %v25776_v40 = vadd.f32 %v20231_v30, %v34954_v10  ;;  %v20233_v60 = vpop.f32.mrb[1].mxu0 }
 0xa97   : > { %v25777_v62 = vadd.f32 %v20233_v60, %v34956_v11  ;;  %v20235_v29 = vpop.f32.mrb[2].mxu0 }
 0xa98   : > { %v20566_v39 = vadd.f32 %v25776_v40, %v20539_v20  ;;  %v25778_v57 = vadd.f32 %v20235_v29, %v34958_v12  ;;  %v20237_v51 = vpop.f32.mrb[3].mxu0  ;;  %v30155_v12 = vmov 0  }
 0xa99   : > { %v20567_v61 = vadd.f32 %v25777_v62, %v20543_v34  ;;  %v25779_v55 = vadd.f32 %v20237_v51, %v34966_v15  ;;  %26152 = vset.pattern.permute.xlu1 %v30155_v12  ;;  %26153 = vset.pattern.permute.xlu0 %v30155_v12  ;;  %v20550_v15 = vsub.s32 3, %v38647_v19 }
 0xa9a   : > { %v20578_v56 = vmax.f32 %v20566_v39, 0.0  ;;  %v20572_v17 = vadd.f32 %v25778_v57, %v20539_v20  ;;  %20655 = vperm.xlu1 %26152, %v25773_v43   ;;  %v20555_v20 = vrot.slane %v38653_v54, %v20554_v24  ;;  %v20611_v57 = vrot.slane %v38660_v14, %v20554_v24 }
 0xa9b   : > { %v20579_v23 = vmax.f32 %v20567_v61, 0.0  ;;  %v20573_v33 = vadd.f32 %v25779_v55, %v20543_v34  ;;  %v20551_v16 = vrot.slane %v38653_v54, %v20550_v15  ;;  %v20607_v37 = vrot.slane %v38660_v14, %v20550_v15 }
 0xa9c   : > { %v20622_v10 = vmul.f32 %v20595_v36, %v20578_v56  ;;  %v20584_v32 = vmax.f32 %v20572_v17, 0.0  ;;  %v20559_v34 = vrot.slane %v38653_v54, %v20558_v27  ;;  %v20615_v55 = vrot.slane %v38660_v14, %v20558_v27 }
 0xa9d   : > { %v20623_v45 = vmul.f32 %v20599_v26, %v20579_v23  ;;  %v20585_v11 = vmax.f32 %v20573_v33, 0.0 }
 0xa9e   : > { %v20628_v31 = vmul.f32 %v20595_v36, %v20584_v32 }
 0xa9f   : > { %v20629_v46 = vmul.f32 %v20599_v26, %v20585_v11  ;;  %v20634_v58 = vadd.f32 %v20623_v45, %v20622_v10 }
 0xaa1   : > { %v20641_v49 = vadd.f32 %v20629_v46, %v20628_v31 }
 0xb14   : > { %v20360_v4 = vpop.f32.mrb[4].mxu1 }
 0xb15   : > { %v20568_v6 = vadd.f32 %v20547_v0, %v20360_v4  ;;  %v20362_v38 = vpop.f32.mrb[5].mxu1 }
 0xb16   : > { %v20569_v41 = vadd.f32 %v20551_v16, %v20362_v38  ;;  %v20364_v42 = vpop.f32.mrb[6].mxu1 }
 0xb17   : > { %v20580_v47 = vmax.f32 %v20568_v6, 0.0  ;;  %v20574_v25 = vadd.f32 %v20547_v0, %v20364_v42  ;;  %v20366_v1 = vpop.f32.mrb[7].mxu1 }
 0xb18   : > { %v20581_v44 = vmax.f32 %v20569_v41, 0.0  ;;  %v20575_v28 = vadd.f32 %v20551_v16, %v20366_v1 }
 0xb19   : > { %v20624_v3 = vmul.f32 %v20603_v2, %v20580_v47  ;;  %v20586_v5 = vmax.f32 %v20574_v25, 0.0  ;;  %v20656_v14 = vpop.permute.xlu1 %20655 }
 0xb1a   : > { %v20625_v7 = vmul.f32 %v20607_v37, %v20581_v44  ;;  %v20587_v22 = vmax.f32 %v20575_v28, 0.0 }
 0xb1b   : > { %v20635_v59 = vadd.f32 %v20634_v58, %v20624_v3  ;;  %v20630_v13 = vmul.f32 %v20603_v2, %v20586_v5 }
 0xb1c   : > { %v20631_v35 = vmul.f32 %v20607_v37, %v20587_v22 }
 0xb1d   : > { %v20642_v8 = vadd.f32 %v20641_v49, %v20630_v13  ;;  %v20636_v9 = vadd.f32 %v20635_v59, %v20625_v7 }
 0xb1f   : > { %v20643_v21 = vadd.f32 %v20642_v8, %v20631_v35 }
 0xb55   : > { %v20489_v30 = vpop.f32.mrb[4].mxu0 }
 0xb56   : > { %v25780_v40 = vadd.f32 %v20489_v30, %v34747_v50  ;;  %v20491_v60 = vpop.f32.mrb[5].mxu0 }
 0xb57   : > { %v25781_v62 = vadd.f32 %v20491_v60, %v34749_v52  ;;  %v20493_v29 = vpop.f32.mrb[6].mxu0 }
 0xb58   : > { %v20570_v39 = vadd.f32 %v25780_v40, %v20555_v20  ;;  %v25782_v36 = vadd.f32 %v20493_v29, %v34751_v53  ;;  %v20495_v51 = vpop.f32.mrb[7].mxu0 }
 0xb59   : > { %v20571_v61 = vadd.f32 %v25781_v62, %v20559_v34  ;;  %v25783_v26 = vadd.f32 %v20495_v51, %v34759_v63  ;;  %v20663_v63 = vand.u32 127, %v20536_v48 }
 0xb5a   : > { %v20582_v56 = vmax.f32 %v20570_v39, 0.0  ;;  %v20576_v54 = vadd.f32 %v25782_v36, %v20555_v20 }
 0xb5b   : > { %v20583_v17 = vmax.f32 %v20571_v61, 0.0  ;;  %v20577_v50 = vadd.f32 %v25783_v26, %v20559_v34  ;;  %v20666_v49 = vsub.s32 %v20663_v63, %v38647_v19 }
 0xb5c   : > { %v20588_v23 = vmax.f32 %v20576_v54, 0.0  ;;  %v20626_v52 = vmul.f32 %v20611_v57, %v20582_v56 }
 0xb5d   : > { %v20589_v33 = vmax.f32 %v20577_v50, 0.0  ;;  %v20627_v10 = vmul.f32 %v20615_v55, %v20583_v17 }
 0xb5e   : > { %v20632_v32 = vmul.f32 %v20611_v57, %v20588_v23  ;;  %v20637_v53 = vadd.f32 %v20636_v9, %v20626_v52 }
 0xb5f   : > { %v20633_v45 = vmul.f32 %v20615_v55, %v20589_v33 }
 0xb60   : > { %v20638_v11 = vadd.f32 %v20637_v53, %v20627_v10  ;;  %v20644_v31 = vadd.f32 %v20643_v21, %v20632_v32 }
 0xb62   : > { %20639 = vadd.xlane.f32.xlu0 %v20638_v11  ;;  %v20645_v46 = vadd.f32 %v20644_v31, %v20633_v45 }
 0xb66   : > { %20646 = vadd.xlane.f32.xlu0 %v20645_v46 }
 0xbef   : > { %v20640_v58 = vpop.xlane.xlu0 %20639 }
 0xbf0   : > { %v20658_v43 = vadd.f32 %v20656_v14, %v20640_v58 }
 0xbf2   : > { %v20667_v15 = vrot.slane %v20658_v43, %v20666_v49 }
 0xbf3   : > { %v20647_v12 = vpop.xlane.xlu0 %20646 }
 0xbf4   : > { %v20659_v18 = vadd.f32 %v20656_v14, %v20647_v12 }
 0xbf6   : > { %v20671_v0 = vrot.slane %v20659_v18, %v20666_v49 }
 0xbf8   : > { %v20673_v16 = vsel %vm20672_vm6, %v20671_v0, %v20667_v15 }
 0xbf9   : > { %20676 = vst.msk [vmem:[%s452_s18] sm:$0x3] %vm20675_vm7, %v20673_v16 }
 0xbfa PF: > { %p16_p1 = scmp.ge.s32.totalorder %s30236_s10, 10   ;;  %s38731_s26 = smov %s30133_s27 }
 0xbfb   : > { %s38732_s27 = smov %s30273_s24  ;;  %s38733_s28 = smov %s30141_s29 }
 0xbfc   : > { %s38734_s29 = smov %s30260_s19  ;;  %s38735_s30 = smov %s30149_s8 }
 0xbfd   : > { %s38736_s8 = smov %s30246_s14  ;;  %s38737_s9 = smov %s30236_s10 }
 0xbfe   :  { %18 = sbr.rel (!%p16_p1) target bundleno = 7 (0x7), region = 176 }

</bundles_post_ra>
